<compile_context>
chip_gen: v6e
topology: v6e:2x2x1
jax: 0.10.0
libtpu: 0.0.40
codegen_flags: <defaults>
</compile_context>

<pallas_src>
import functools

import jax
import jax.numpy as jnp
import numpy as np
from jax.experimental import pallas as pl
from jax.experimental.pallas import tpu as pltpu

BN_EPS = 1e-5
LEAKY_SLOPE = 0.01
ACT_DTYPE = jnp.bfloat16          # activation / weight dtype fed to the MXU


def _dense_conv_kernel(*refs, n_src, cins, cout, H, W, act, final):
    """One (batch, t) grid step of a dense-skip 3x3x3 'same' Conv3d block.

    Operand order (VMEM refs):
      for s in range(n_src):
        a[s]  (1, 1, Hp, Wp, cin_s) bf16   plane t   (H/W zero-halo'd)
        b[s]  (1, 1, Hp, Wp, cin_s) bf16   plane min(t+1, T-1)
      for s in range(n_src):
        w[s]  (3, 3, 3, cin_s, cout) bf16
      bias    (1, cout) f32
      [scale, shift (1, cout) f32]          only when act=True (folded eval BN)
      o_ref   final -> (1, 1, cout, H*W) f32 (lane-dense)
              else  -> (1, 1, Hp, Wp, cout) bf16 (zero H/W halo written in-kernel)
      prev[s] (Hp, Wp, cin_s) bf16 scratch  carried plane t-1
    """
    Hp, Wp = H + 2, W + 2

    pos = 0
    a_refs, b_refs = [], []
    for _ in range(n_src):
        a_refs.append(refs[pos])
        b_refs.append(refs[pos + 1])
        pos += 2
    w_refs = refs[pos:pos + n_src]
    pos += n_src
    bias_ref = refs[pos]
    pos += 1
    if act:
        scale_ref, shift_ref = refs[pos], refs[pos + 1]
        pos += 2
    o_ref = refs[pos]
    pos += 1
    prev_refs = refs[pos:pos + n_src]

    t = pl.program_id(1)
    nt = pl.num_programs(1)

    # T halo: plane t-1 comes from the carry scratch; zero it on the first
    # time-plane of every batch element (t restarts at 0 for each b).
    @pl.when(t == 0)
    def _():
        for s in range(n_src):
            prev_refs[s][...] = jnp.zeros_like(prev_refs[s])

    # Plane t+1 does not exist on the last step -> zero its contribution.
    next_scale = jnp.where(t < nt - 1, 1.0, 0.0).astype(ACT_DTYPE)

    # 27 small MXU dots per source (K = cin, f32 accumulation); no lane concat.
    acc = jnp.zeros((H * W, cout), jnp.float32)
    for s in range(n_src):
        cin = cins[s]
        loaders = (
            lambda kw, r=prev_refs[s]: r[:, kw:kw + W, :],
            lambda kw, r=a_refs[s]: r[0, 0, :, kw:kw + W, :],
            lambda kw, r=b_refs[s]: r[0, 0, :, kw:kw + W, :],
        )
        for kt in range(3):
            for kw in range(3):
                xw = loaders[kt](kw)                        # (Hp, W, cin) bf16
                if kt == 2:
                    xw = xw * next_scale                    # mask last-step t+1
                for kh in range(3):
                    patch = xw[kh:kh + H].reshape(H * W, cin)
                    wk = w_refs[s][kt, kh, kw, :, :]        # (cin, cout) bf16
                    acc = acc + jnp.dot(patch, wk,
                                        preferred_element_type=jnp.float32)

    y = acc + bias_ref[...]                                 # (H*W, cout) f32
    if act:
        y = jnp.where(y > 0, y, LEAKY_SLOPE * y)            # LeakyReLU(0.01)
        y = y * scale_ref[...] + shift_ref[...]             # folded eval BatchNorm

    if final:
        # Lane-dense final store: H*W (>= 128) on the lane axis, cout rows.
        o_ref[...] = jnp.transpose(y).reshape(1, 1, cout, H * W).astype(o_ref.dtype)
    else:
        # Pre-padded activation plane for downstream layers: interior + 4 thin
        # halo strips, each element written exactly once (no full-plane zero
        # store followed by a masked offset store).
        yb = y.reshape(1, 1, H, W, cout).astype(o_ref.dtype)
        zrow = jnp.zeros((1, 1, 1, Wp, cout), o_ref.dtype)
        zcol = jnp.zeros((1, 1, H, 1, cout), o_ref.dtype)
        o_ref[:, :, 0:1, :, :] = zrow
        o_ref[:, :, H + 1:H + 2, :, :] = zrow
        o_ref[:, :, 1:H + 1, 0:1, :] = zcol
        o_ref[:, :, 1:H + 1, W + 1:W + 2, :] = zcol
        o_ref[:, :, 1:H + 1, 1:W + 1, :] = yb

    # Carry: this step's center plane becomes the next step's t-1 plane.
    for s in range(n_src):
        prev_refs[s][...] = a_refs[s][0, 0, :, :, :]


def _mosaic_padded_bytes(shape, dtype):
    """VMEM footprint of one buffer with Mosaic tile padding (lane dim padded to
    128, second-minor padded to the 8 * 32-bit-packing sublane tile)."""
    itemsize = np.dtype(dtype).itemsize
    dims = [int(d) for d in shape] or [1]
    if len(dims) == 1:
        dims = [1] + dims
    packing = max(1, 4 // itemsize)
    lane = -(-dims[-1] // 128) * 128
    sub = -(-dims[-2] // (8 * packing)) * (8 * packing)
    lead = 1
    for d in dims[:-2]:
        lead *= d
    return lead * sub * lane * itemsize


def _vmem_cap_bytes():
    """Per-generation scoped-VMEM budget (physical capacity minus headroom:
    ~108 MiB usable on v5e/v6e, ~56 MiB on v7x).  Conservative fallback 64 MiB."""
    try:
        info = pltpu.get_tpu_info()
        cap = int(getattr(info, "vmem_capacity_bytes", 0) or 0)
        if cap > 0:
            return int(cap * 0.85)
    except Exception:
        pass
    return 64 * 1024 * 1024


def conv_block(xs, layer, *, padded_out):
    """One DenseDecoder conv block over channels-last, H/W zero-halo'd bf16 sources.

    xs: list of dense-skip sources, each (B, T, Hp, Wp, Cin_s) bf16 with zero H/W
        halos (T unpadded).  The PyTorch channel concat is realised by passing the
        sources separately and splitting the weight along Cin.
    Returns (B, T, Hp, Wp, Cout) bf16 with zero H/W halos when padded_out, else
    the lane-dense (B, T, Cout, H*W) f32 final result.
    """
    B, T, Hp, Wp, _ = xs[0].shape
    H, W = Hp - 2, Wp - 2
    n_src = len(xs)
    cins = tuple(int(x.shape[-1]) for x in xs)
    w = layer["w"]                                   # (3, 3, 3, sum(cins), Cout) f32
    cout = int(w.shape[-1])
    act = bool(layer["act"])
    final = not padded_out

    # Split the weight along Cin per dense source.
    splits = [int(v) for v in np.cumsum(cins)[:-1]]
    w_parts = [p.astype(ACT_DTYPE) for p in jnp.split(w, splits, axis=3)]

    bias = layer["b"].reshape(1, cout).astype(jnp.float32)
    p_ops = [bias]
    if act:
        # Fold eval-mode BatchNorm into a per-channel scale/shift.
        scale = layer["gamma"] / jnp.sqrt(layer["var"] + BN_EPS)
        shift = layer["beta"] - layer["mean"] * scale
        p_ops += [scale.reshape(1, cout).astype(jnp.float32),
                  shift.reshape(1, cout).astype(jnp.float32)]

    args, in_specs = [], []
    # Two operands per source: plane t and clamped plane t+1 (plane t-1 is carried
    # in VMEM scratch) -> 2x read amplification instead of 3x.
    for s in range(n_src):
        blk = (1, 1, Hp, Wp, cins[s])
        in_specs.append(pl.BlockSpec(blk, lambda b, t: (b, t, 0, 0, 0)))
        in_specs.append(pl.BlockSpec(
            blk, lambda b, t, _T=T: (b, jnp.minimum(t + 1, _T - 1), 0, 0, 0)))
        args += [xs[s], xs[s]]
    for s in range(n_src):
        wshape = (3, 3, 3, cins[s], cout)
        in_specs.append(pl.BlockSpec(wshape, lambda b, t: (0, 0, 0, 0, 0)))
        args.append(w_parts[s])
    for p in p_ops:
        in_specs.append(pl.BlockSpec((1, cout), lambda b, t: (0, 0)))
        args.append(p)

    if final:
        out_dtype = jnp.float32
        out_block = (1, 1, cout, H * W)
        out_shape = jax.ShapeDtypeStruct((B, T, cout, H * W), out_dtype)
        out_spec = pl.BlockSpec(out_block, lambda b, t: (b, t, 0, 0))
    else:
        out_dtype = ACT_DTYPE
        out_block = (1, 1, Hp, Wp, cout)
        out_shape = jax.ShapeDtypeStruct((B, T, Hp, Wp, cout), out_dtype)
        out_spec = pl.BlockSpec(out_block, lambda b, t: (b, t, 0, 0, 0))

    scratch_shapes = [pltpu.VMEM((Hp, Wp, cins[s]), ACT_DTYPE)
                      for s in range(n_src)]

    # Padding-aware VMEM estimate (double-buffered operands + scratch + output
    # + in-kernel temporaries), capped per generation.
    est = 0
    for c in cins:
        est += 4 * _mosaic_padded_bytes((1, 1, Hp, Wp, c), ACT_DTYPE)   # a,b x dbuf
        est += _mosaic_padded_bytes((Hp, Wp, c), ACT_DTYPE)             # carry
        est += 2 * _mosaic_padded_bytes((3, 3, 3, c, cout), ACT_DTYPE)  # weights
    est += 6 * _mosaic_padded_bytes((1, cout), jnp.float32)
    est += 2 * _mosaic_padded_bytes(out_block, out_dtype)
    est += _mosaic_padded_bytes((H * W, cout), jnp.float32)             # accumulator
    est += 4 * _mosaic_padded_bytes((Hp, W, max(cins)), ACT_DTYPE)      # kw slices
    est += 2 * _mosaic_padded_bytes((H * W, max(cins)), ACT_DTYPE)      # patches
    # If this ever exceeds the per-generation cap, H-tiling (see TODO) is needed.
    vmem_limit = int(min(max(int(est * 1.3) + (4 << 20), 32 << 20),
                         _vmem_cap_bytes()))

    kernel = functools.partial(
        _dense_conv_kernel, n_src=n_src, cins=cins, cout=cout, H=H, W=W,
        act=act, final=final)

    return pl.pallas_call(
        kernel,
        out_shape=out_shape,
        grid=(B, T),
        in_specs=in_specs,
        out_specs=out_spec,
        scratch_shapes=scratch_shapes,
        compiler_params=pltpu.CompilerParams(
            # b stays "parallel" so v7x megacore can shard batch; t must be
            # "arbitrary" because of the carried t-1 plane.
            dimension_semantics=("parallel", "arbitrary"),
            vmem_limit_bytes=vmem_limit,
        ),
    )(*args)


def dense_decoder_forward(x, params):
    """x: (B, T, 3, H, W) -> (B, T, data_depth, H, W) float32 (DenseDecoder.forward)."""
    B, T, C, H, W = x.shape
    xc = jnp.transpose(x, (0, 1, 3, 4, 2))                        # channels-last
    # Only the raw 3-channel input is H/W-padded in HBM; every later layer writes
    # its activation with the zero H/W halo in-kernel, and the T halo is handled
    # by the carry scratch / masked next-plane (no padded T planes anywhere).
    xp = jnp.pad(xc, ((0, 0), (0, 0), (1, 1), (1, 1), (0, 0))).astype(ACT_DTYPE)

    x1 = conv_block([xp], params[0], padded_out=True)
    x2 = conv_block([x1], params[1], padded_out=True)
    x3 = conv_block([x1, x2], params[2], padded_out=True)
    x4 = conv_block([x1, x2, x3], params[3], padded_out=False)    # (B, T, cout, H*W)

    return x4.reshape(B, T, -1, H, W)


# ---------------- pure-JAX reference (mirrors the kernel's bf16 numerics) ----
def _ref_block(x, layer):
    y = jax.lax.conv_general_dilated(
        x.astype(ACT_DTYPE), layer["w"].astype(ACT_DTYPE),
        window_strides=(1, 1, 1), padding=((1, 1), (1, 1), (1, 1)),
        dimension_numbers=("NDHWC", "DHWIO", "NDHWC"),
        preferred_element_type=jnp.float32)
    y = y + layer["b"]
    if layer["act"]:
        y = jnp.where(y > 0, y, LEAKY_SLOPE * y)
        y = (y - layer["mean"]) / jnp.sqrt(layer["var"] + BN_EPS) * layer["gamma"] + layer["beta"]
    return y


def dense_decoder_ref(x, params):
    xc = jnp.transpose(x, (0, 1, 3, 4, 2))
    x1 = _ref_block(xc, params[0]).astype(ACT_DTYPE)
    x2 = _ref_block(x1, params[1]).astype(ACT_DTYPE)
    x3 = _ref_block(jnp.concatenate([x1, x2], axis=-1), params[2]).astype(ACT_DTYPE)
    x4 = _ref_block(jnp.concatenate([x1, x2, x3], axis=-1), params[3])
    return jnp.transpose(x4, (0, 1, 4, 2, 3))


# ------------------------- deterministic param init --------------------------
def init_params(key, hidden=32, data_depth=1):
    cfgs = [(3, hidden, True),
            (hidden, hidden, True),
            (2 * hidden, hidden, True),
            (3 * hidden, data_depth, False)]
    params = []
    for (cin, cout, act) in cfgs:
        key, k1, k2, k3, k4, k5, k6 = jax.random.split(key, 7)
        params.append(dict(
            w=jax.random.normal(k1, (3, 3, 3, cin, cout), jnp.float32)
              * (1.0 / np.sqrt(27.0 * cin)),
            b=0.1 * jax.random.normal(k2, (cout,), jnp.float32),
            gamma=1.0 + 0.1 * jax.random.normal(k3, (cout,), jnp.float32),
            beta=0.1 * jax.random.normal(k4, (cout,), jnp.float32),
            mean=0.1 * jax.random.normal(k5, (cout,), jnp.float32),
            var=jnp.abs(1.0 + 0.1 * jax.random.normal(k6, (cout,), jnp.float32)),
            act=act,
        ))
    return params


if __name__ == "__main__":
    key = jax.random.PRNGKey(0)
    kx, kp = jax.random.split(key)

    B, T, C, H, W = 2, 4, 3, 16, 16
    hidden = 32
    x = jax.random.normal(kx, (B, T, C, H, W), jnp.float32)
    params = init_params(kp, hidden=hidden, data_depth=1)

    out = jax.block_until_ready(dense_decoder_forward(x, params))
    assert out.shape == (B, T, 1, H, W), out.shape

    ref = jax.block_until_ready(dense_decoder_ref(x, params))
    np.testing.assert_allclose(np.asarray(out, dtype=np.float32),
                               np.asarray(ref, dtype=np.float32),
                               rtol=2e-2, atol=2e-2)

    print("KERNEL_OK")
</pallas_src>

<mosaic_0001>
module attributes {stable_mosaic.version = 11 : i64} {
  func.func @_dense_conv_kernel(%arg0: i32, %arg1: i32, %arg2: memref<1x1x18x18x3xbf16, #tpu.memory_space<vmem>>, %arg3: memref<1x1x18x18x3xbf16, #tpu.memory_space<vmem>>, %arg4: memref<3x3x3x3x32xbf16, #tpu.memory_space<vmem>>, %arg5: memref<1x32xf32, #tpu.memory_space<vmem>>, %arg6: memref<1x32xf32, #tpu.memory_space<vmem>>, %arg7: memref<1x32xf32, #tpu.memory_space<vmem>>, %arg8: memref<1x1x18x18x32xbf16, #tpu.memory_space<vmem>>, %arg9: memref<18x18x3xbf16, #tpu.memory_space<vmem>>) attributes {dimension_semantics = [#tpu.dimension_semantics<parallel>, #tpu.dimension_semantics<arbitrary>], iteration_bounds = array<i64: 2, 4>, scalar_prefetch = 0 : i64, scratch_operands = 1 : i64, tpu.core_type = #tpu.core_type<tc>, window_params = [{transform_indices = @transform_0, window_bounds = array<i64: 1, 1, 18, 18, 3>}, {transform_indices = @transform_1, window_bounds = array<i64: 1, 1, 18, 18, 3>}, {pipeline_mode = #tpu.pipeline_mode<synchronous>, transform_indices = @transform_2, window_bounds = array<i64: 3, 3, 3, 3, 32>}, {pipeline_mode = #tpu.pipeline_mode<synchronous>, transform_indices = @transform_3, window_bounds = array<i64: 1, 32>}, {pipeline_mode = #tpu.pipeline_mode<synchronous>, transform_indices = @transform_4, window_bounds = array<i64: 1, 32>}, {pipeline_mode = #tpu.pipeline_mode<synchronous>, transform_indices = @transform_5, window_bounds = array<i64: 1, 32>}, {transform_indices = @transform_6, window_bounds = array<i64: 1, 1, 18, 18, 32>}]} {
    %c0_i32 = arith.constant 0 : i32
    %0 = arith.cmpi eq, %arg1, %c0_i32 : i32
    %1 = arith.extui %0 : i1 to i32
    %c0_i32_0 = arith.constant 0 : i32
    %2 = arith.cmpi ne, %1, %c0_i32_0 : i32
    scf.if %2 {
      %cst_243 = arith.constant 0.000000e+00 : bf16
      %216 = vector.broadcast %cst_243 : bf16 to vector<18x18x3xbf16>
      %c0_244 = arith.constant 0 : index
      %c0_245 = arith.constant 0 : index
      %c0_246 = arith.constant 0 : index
      %217 = vector.load %arg9[%c0_244, %c0_245, %c0_246] : memref<18x18x3xbf16, #tpu.memory_space<vmem>>, vector<18x18x3xbf16>
      tpu.vector_store %arg9[%c0_244, %c0_245, %c0_246], %216 {strides = array<i32>} : memref<18x18x3xbf16, #tpu.memory_space<vmem>>, vector<18x18x3xbf16>,
    } else {
    }
    %c3_i32 = arith.constant 3 : i32
    %3 = arith.cmpi slt, %arg1, %c3_i32 : i32
    %cst = arith.constant 1.000000e+00 : f32
    %cst_1 = arith.constant 0.000000e+00 : f32
    %4 = arith.select %3, %cst, %cst_1 : f32
    %5 = arith.truncf %4 : f32 to bf16
    %cst_2 = arith.constant 0.000000e+00 : f32
    %6 = vector.broadcast %cst_2 : f32 to vector<256x32xf32>
    %c0 = arith.constant 0 : index
    %c0_3 = arith.constant 0 : index
    %c0_4 = arith.constant 0 : index
    %7 = vector.load %arg9[%c0, %c0_3, %c0_4] : memref<18x18x3xbf16, #tpu.memory_space<vmem>>, vector<18x16x3xbf16>
    %8 = vector.extract_strided_slice %7 {offsets = [0, 0, 0], sizes = [16, 16, 3], strides = [1, 1, 1]} : vector<18x16x3xbf16> to vector<16x16x3xbf16>
    %9 = vector.shape_cast %8 : vector<16x16x3xbf16> to vector<256x3xbf16>
    %c0_5 = arith.constant 0 : index
    %c0_6 = arith.constant 0 : index
    %c0_7 = arith.constant 0 : index
    %c0_8 = arith.constant 0 : index
    %c0_9 = arith.constant 0 : index
    %10 = vector.load %arg4[%c0_5, %c0_6, %c0_7, %c0_8, %c0_9] : memref<3x3x3x3x32xbf16, #tpu.memory_space<vmem>>, vector<1x1x1x3x32xbf16>
    %11 = vector.shape_cast %10 : vector<1x1x1x3x32xbf16> to vector<3x32xbf16>
    %cst_10 = arith.constant dense<0.000000e+00> : vector<256x32xf32>
    %12 = tpu.matmul %9, %11, %cst_10 {dimension_numbers = #tpu.dot_dimension_numbers<[1], [0], [0], [1], [0, 0, 1, 1], [], []>} : vector<256x3xbf16>, vector<3x32xbf16>, vector<256x32xf32> -> vector<256x32xf32>
    %13 = arith.addf %6, %12 : vector<256x32xf32>
    %14 = vector.extract_strided_slice %7 {offsets = [1, 0, 0], sizes = [16, 16, 3], strides = [1, 1, 1]} : vector<18x16x3xbf16> to vector<16x16x3xbf16>
    %15 = vector.shape_cast %14 : vector<16x16x3xbf16> to vector<256x3xbf16>
    %c0_11 = arith.constant 0 : index
    %c1 = arith.constant 1 : index
    %c0_12 = arith.constant 0 : index
    %c0_13 = arith.constant 0 : index
    %c0_14 = arith.constant 0 : index
    %16 = vector.load %arg4[%c0_11, %c1, %c0_12, %c0_13, %c0_14] : memref<3x3x3x3x32xbf16, #tpu.memory_space<vmem>>, vector<1x1x1x3x32xbf16>
    %17 = vector.shape_cast %16 : vector<1x1x1x3x32xbf16> to vector<3x32xbf16>
    %cst_15 = arith.constant dense<0.000000e+00> : vector<256x32xf32>
    %18 = tpu.matmul %15, %17, %cst_15 {dimension_numbers = #tpu.dot_dimension_numbers<[1], [0], [0], [1], [0, 0, 1, 1], [], []>} : vector<256x3xbf16>, vector<3x32xbf16>, vector<256x32xf32> -> vector<256x32xf32>
    %19 = arith.addf %13, %18 : vector<256x32xf32>
    %20 = vector.extract_strided_slice %7 {offsets = [2, 0, 0], sizes = [16, 16, 3], strides = [1, 1, 1]} : vector<18x16x3xbf16> to vector<16x16x3xbf16>
    %21 = vector.shape_cast %20 : vector<16x16x3xbf16> to vector<256x3xbf16>
    %c0_16 = arith.constant 0 : index
    %c2 = arith.constant 2 : index
    %c0_17 = arith.constant 0 : index
    %c0_18 = arith.constant 0 : index
    %c0_19 = arith.constant 0 : index
    %22 = vector.load %arg4[%c0_16, %c2, %c0_17, %c0_18, %c0_19] : memref<3x3x3x3x32xbf16, #tpu.memory_space<vmem>>, vector<1x1x1x3x32xbf16>
    %23 = vector.shape_cast %22 : vector<1x1x1x3x32xbf16> to vector<3x32xbf16>
    %cst_20 = arith.constant dense<0.000000e+00> : vector<256x32xf32>
    %24 = tpu.matmul %21, %23, %cst_20 {dimension_numbers = #tpu.dot_dimension_numbers<[1], [0], [0], [1], [0, 0, 1, 1], [], []>} : vector<256x3xbf16>, vector<3x32xbf16>, vector<256x32xf32> -> vector<256x32xf32>
    %25 = arith.addf %19, %24 : vector<256x32xf32>
    %c0_21 = arith.constant 0 : index
    %c1_22 = arith.constant 1 : index
    %c0_23 = arith.constant 0 : index
    %26 = vector.load %arg9[%c0_21, %c1_22, %c0_23] : memref<18x18x3xbf16, #tpu.memory_space<vmem>>, vector<18x16x3xbf16>
    %27 = vector.extract_strided_slice %26 {offsets = [0, 0, 0], sizes = [16, 16, 3], strides = [1, 1, 1]} : vector<18x16x3xbf16> to vector<16x16x3xbf16>
    %28 = vector.shape_cast %27 : vector<16x16x3xbf16> to vector<256x3xbf16>
    %c0_24 = arith.constant 0 : index
    %c0_25 = arith.constant 0 : index
    %c1_26 = arith.constant 1 : index
    %c0_27 = arith.constant 0 : index
    %c0_28 = arith.constant 0 : index
    %29 = vector.load %arg4[%c0_24, %c0_25, %c1_26, %c0_27, %c0_28] : memref<3x3x3x3x32xbf16, #tpu.memory_space<vmem>>, vector<1x1x1x3x32xbf16>
    %30 = vector.shape_cast %29 : vector<1x1x1x3x32xbf16> to vector<3x32xbf16>
    %cst_29 = arith.constant dense<0.000000e+00> : vector<256x32xf32>
    %31 = tpu.matmul %28, %30, %cst_29 {dimension_numbers = #tpu.dot_dimension_numbers<[1], [0], [0], [1], [0, 0, 1, 1], [], []>} : vector<256x3xbf16>, vector<3x32xbf16>, vector<256x32xf32> -> vector<256x32xf32>
    %32 = arith.addf %25, %31 : vector<256x32xf32>
    %33 = vector.extract_strided_slice %26 {offsets = [1, 0, 0], sizes = [16, 16, 3], strides = [1, 1, 1]} : vector<18x16x3xbf16> to vector<16x16x3xbf16>
    %34 = vector.shape_cast %33 : vector<16x16x3xbf16> to vector<256x3xbf16>
    %c0_30 = arith.constant 0 : index
    %c1_31 = arith.constant 1 : index
    %c1_32 = arith.constant 1 : index
    %c0_33 = arith.constant 0 : index
    %c0_34 = arith.constant 0 : index
    %35 = vector.load %arg4[%c0_30, %c1_31, %c1_32, %c0_33, %c0_34] : memref<3x3x3x3x32xbf16, #tpu.memory_space<vmem>>, vector<1x1x1x3x32xbf16>
    %36 = vector.shape_cast %35 : vector<1x1x1x3x32xbf16> to vector<3x32xbf16>
    %cst_35 = arith.constant dense<0.000000e+00> : vector<256x32xf32>
    %37 = tpu.matmul %34, %36, %cst_35 {dimension_numbers = #tpu.dot_dimension_numbers<[1], [0], [0], [1], [0, 0, 1, 1], [], []>} : vector<256x3xbf16>, vector<3x32xbf16>, vector<256x32xf32> -> vector<256x32xf32>
    %38 = arith.addf %32, %37 : vector<256x32xf32>
    %39 = vector.extract_strided_slice %26 {offsets = [2, 0, 0], sizes = [16, 16, 3], strides = [1, 1, 1]} : vector<18x16x3xbf16> to vector<16x16x3xbf16>
    %40 = vector.shape_cast %39 : vector<16x16x3xbf16> to vector<256x3xbf16>
    %c0_36 = arith.constant 0 : index
    %c2_37 = arith.constant 2 : index
    %c1_38 = arith.constant 1 : index
    %c0_39 = arith.constant 0 : index
    %c0_40 = arith.constant 0 : index
    %41 = vector.load %arg4[%c0_36, %c2_37, %c1_38, %c0_39, %c0_40] : memref<3x3x3x3x32xbf16, #tpu.memory_space<vmem>>, vector<1x1x1x3x32xbf16>
    %42 = vector.shape_cast %41 : vector<1x1x1x3x32xbf16> to vector<3x32xbf16>
    %cst_41 = arith.constant dense<0.000000e+00> : vector<256x32xf32>
    %43 = tpu.matmul %40, %42, %cst_41 {dimension_numbers = #tpu.dot_dimension_numbers<[1], [0], [0], [1], [0, 0, 1, 1], [], []>} : vector<256x3xbf16>, vector<3x32xbf16>, vector<256x32xf32> -> vector<256x32xf32>
    %44 = arith.addf %38, %43 : vector<256x32xf32>
    %c0_42 = arith.constant 0 : index
    %c2_43 = arith.constant 2 : index
    %c0_44 = arith.constant 0 : index
    %45 = vector.load %arg9[%c0_42, %c2_43, %c0_44] : memref<18x18x3xbf16, #tpu.memory_space<vmem>>, vector<18x16x3xbf16>
    %46 = vector.extract_strided_slice %45 {offsets = [0, 0, 0], sizes = [16, 16, 3], strides = [1, 1, 1]} : vector<18x16x3xbf16> to vector<16x16x3xbf16>
    %47 = vector.shape_cast %46 : vector<16x16x3xbf16> to vector<256x3xbf16>
    %c0_45 = arith.constant 0 : index
    %c0_46 = arith.constant 0 : index
    %c2_47 = arith.constant 2 : index
    %c0_48 = arith.constant 0 : index
    %c0_49 = arith.constant 0 : index
    %48 = vector.load %arg4[%c0_45, %c0_46, %c2_47, %c0_48, %c0_49] : memref<3x3x3x3x32xbf16, #tpu.memory_space<vmem>>, vector<1x1x1x3x32xbf16>
    %49 = vector.shape_cast %48 : vector<1x1x1x3x32xbf16> to vector<3x32xbf16>
    %cst_50 = arith.constant dense<0.000000e+00> : vector<256x32xf32>
    %50 = tpu.matmul %47, %49, %cst_50 {dimension_numbers = #tpu.dot_dimension_numbers<[1], [0], [0], [1], [0, 0, 1, 1], [], []>} : vector<256x3xbf16>, vector<3x32xbf16>, vector<256x32xf32> -> vector<256x32xf32>
    %51 = arith.addf %44, %50 : vector<256x32xf32>
    %52 = vector.extract_strided_slice %45 {offsets = [1, 0, 0], sizes = [16, 16, 3], strides = [1, 1, 1]} : vector<18x16x3xbf16> to vector<16x16x3xbf16>
    %53 = vector.shape_cast %52 : vector<16x16x3xbf16> to vector<256x3xbf16>
    %c0_51 = arith.constant 0 : index
    %c1_52 = arith.constant 1 : index
    %c2_53 = arith.constant 2 : index
    %c0_54 = arith.constant 0 : index
    %c0_55 = arith.constant 0 : index
    %54 = vector.load %arg4[%c0_51, %c1_52, %c2_53, %c0_54, %c0_55] : memref<3x3x3x3x32xbf16, #tpu.memory_space<vmem>>, vector<1x1x1x3x32xbf16>
    %55 = vector.shape_cast %54 : vector<1x1x1x3x32xbf16> to vector<3x32xbf16>
    %cst_56 = arith.constant dense<0.000000e+00> : vector<256x32xf32>
    %56 = tpu.matmul %53, %55, %cst_56 {dimension_numbers = #tpu.dot_dimension_numbers<[1], [0], [0], [1], [0, 0, 1, 1], [], []>} : vector<256x3xbf16>, vector<3x32xbf16>, vector<256x32xf32> -> vector<256x32xf32>
    %57 = arith.addf %51, %56 : vector<256x32xf32>
    %58 = vector.extract_strided_slice %45 {offsets = [2, 0, 0], sizes = [16, 16, 3], strides = [1, 1, 1]} : vector<18x16x3xbf16> to vector<16x16x3xbf16>
    %59 = vector.shape_cast %58 : vector<16x16x3xbf16> to vector<256x3xbf16>
    %c0_57 = arith.constant 0 : index
    %c2_58 = arith.constant 2 : index
    %c2_59 = arith.constant 2 : index
    %c0_60 = arith.constant 0 : index
    %c0_61 = arith.constant 0 : index
    %60 = vector.load %arg4[%c0_57, %c2_58, %c2_59, %c0_60, %c0_61] : memref<3x3x3x3x32xbf16, #tpu.memory_space<vmem>>, vector<1x1x1x3x32xbf16>
    %61 = vector.shape_cast %60 : vector<1x1x1x3x32xbf16> to vector<3x32xbf16>
    %cst_62 = arith.constant dense<0.000000e+00> : vector<256x32xf32>
    %62 = tpu.matmul %59, %61, %cst_62 {dimension_numbers = #tpu.dot_dimension_numbers<[1], [0], [0], [1], [0, 0, 1, 1], [], []>} : vector<256x3xbf16>, vector<3x32xbf16>, vector<256x32xf32> -> vector<256x32xf32>
    %63 = arith.addf %57, %62 : vector<256x32xf32>
    %c0_63 = arith.constant 0 : index
    %c0_64 = arith.constant 0 : index
    %c0_65 = arith.constant 0 : index
    %c0_66 = arith.constant 0 : index
    %c0_67 = arith.constant 0 : index
    %64 = vector.load %arg2[%c0_63, %c0_64, %c0_65, %c0_66, %c0_67] : memref<1x1x18x18x3xbf16, #tpu.memory_space<vmem>>, vector<1x1x18x16x3xbf16>
    %65 = vector.shape_cast %64 : vector<1x1x18x16x3xbf16> to vector<18x16x3xbf16>
    %66 = vector.extract_strided_slice %65 {offsets = [0, 0, 0], sizes = [16, 16, 3], strides = [1, 1, 1]} : vector<18x16x3xbf16> to vector<16x16x3xbf16>
    %67 = vector.shape_cast %66 : vector<16x16x3xbf16> to vector<256x3xbf16>
    %c1_68 = arith.constant 1 : index
    %c0_69 = arith.constant 0 : index
    %c0_70 = arith.constant 0 : index
    %c0_71 = arith.constant 0 : index
    %c0_72 = arith.constant 0 : index
    %68 = vector.load %arg4[%c1_68, %c0_69, %c0_70, %c0_71, %c0_72] : memref<3x3x3x3x32xbf16, #tpu.memory_space<vmem>>, vector<1x1x1x3x32xbf16>
    %69 = vector.shape_cast %68 : vector<1x1x1x3x32xbf16> to vector<3x32xbf16>
    %cst_73 = arith.constant dense<0.000000e+00> : vector<256x32xf32>
    %70 = tpu.matmul %67, %69, %cst_73 {dimension_numbers = #tpu.dot_dimension_numbers<[1], [0], [0], [1], [0, 0, 1, 1], [], []>} : vector<256x3xbf16>, vector<3x32xbf16>, vector<256x32xf32> -> vector<256x32xf32>
    %71 = arith.addf %63, %70 : vector<256x32xf32>
    %72 = vector.extract_strided_slice %65 {offsets = [1, 0, 0], sizes = [16, 16, 3], strides = [1, 1, 1]} : vector<18x16x3xbf16> to vector<16x16x3xbf16>
    %73 = vector.shape_cast %72 : vector<16x16x3xbf16> to vector<256x3xbf16>
    %c1_74 = arith.constant 1 : index
    %c1_75 = arith.constant 1 : index
    %c0_76 = arith.constant 0 : index
    %c0_77 = arith.constant 0 : index
    %c0_78 = arith.constant 0 : index
    %74 = vector.load %arg4[%c1_74, %c1_75, %c0_76, %c0_77, %c0_78] : memref<3x3x3x3x32xbf16, #tpu.memory_space<vmem>>, vector<1x1x1x3x32xbf16>
    %75 = vector.shape_cast %74 : vector<1x1x1x3x32xbf16> to vector<3x32xbf16>
    %cst_79 = arith.constant dense<0.000000e+00> : vector<256x32xf32>
    %76 = tpu.matmul %73, %75, %cst_79 {dimension_numbers = #tpu.dot_dimension_numbers<[1], [0], [0], [1], [0, 0, 1, 1], [], []>} : vector<256x3xbf16>, vector<3x32xbf16>, vector<256x32xf32> -> vector<256x32xf32>
    %77 = arith.addf %71, %76 : vector<256x32xf32>
    %78 = vector.extract_strided_slice %65 {offsets = [2, 0, 0], sizes = [16, 16, 3], strides = [1, 1, 1]} : vector<18x16x3xbf16> to vector<16x16x3xbf16>
    %79 = vector.shape_cast %78 : vector<16x16x3xbf16> to vector<256x3xbf16>
    %c1_80 = arith.constant 1 : index
    %c2_81 = arith.constant 2 : index
    %c0_82 = arith.constant 0 : index
    %c0_83 = arith.constant 0 : index
    %c0_84 = arith.constant 0 : index
    %80 = vector.load %arg4[%c1_80, %c2_81, %c0_82, %c0_83, %c0_84] : memref<3x3x3x3x32xbf16, #tpu.memory_space<vmem>>, vector<1x1x1x3x32xbf16>
    %81 = vector.shape_cast %80 : vector<1x1x1x3x32xbf16> to vector<3x32xbf16>
    %cst_85 = arith.constant dense<0.000000e+00> : vector<256x32xf32>
    %82 = tpu.matmul %79, %81, %cst_85 {dimension_numbers = #tpu.dot_dimension_numbers<[1], [0], [0], [1], [0, 0, 1, 1], [], []>} : vector<256x3xbf16>, vector<3x32xbf16>, vector<256x32xf32> -> vector<256x32xf32>
    %83 = arith.addf %77, %82 : vector<256x32xf32>
    %c0_86 = arith.constant 0 : index
    %c0_87 = arith.constant 0 : index
    %c0_88 = arith.constant 0 : index
    %c1_89 = arith.constant 1 : index
    %c0_90 = arith.constant 0 : index
    %84 = vector.load %arg2[%c0_86, %c0_87, %c0_88, %c1_89, %c0_90] : memref<1x1x18x18x3xbf16, #tpu.memory_space<vmem>>, vector<1x1x18x16x3xbf16>
    %85 = vector.shape_cast %84 : vector<1x1x18x16x3xbf16> to vector<18x16x3xbf16>
    %86 = vector.extract_strided_slice %85 {offsets = [0, 0, 0], sizes = [16, 16, 3], strides = [1, 1, 1]} : vector<18x16x3xbf16> to vector<16x16x3xbf16>
    %87 = vector.shape_cast %86 : vector<16x16x3xbf16> to vector<256x3xbf16>
    %c1_91 = arith.constant 1 : index
    %c0_92 = arith.constant 0 : index
    %c1_93 = arith.constant 1 : index
    %c0_94 = arith.constant 0 : index
    %c0_95 = arith.constant 0 : index
    %88 = vector.load %arg4[%c1_91, %c0_92, %c1_93, %c0_94, %c0_95] : memref<3x3x3x3x32xbf16, #tpu.memory_space<vmem>>, vector<1x1x1x3x32xbf16>
    %89 = vector.shape_cast %88 : vector<1x1x1x3x32xbf16> to vector<3x32xbf16>
    %cst_96 = arith.constant dense<0.000000e+00> : vector<256x32xf32>
    %90 = tpu.matmul %87, %89, %cst_96 {dimension_numbers = #tpu.dot_dimension_numbers<[1], [0], [0], [1], [0, 0, 1, 1], [], []>} : vector<256x3xbf16>, vector<3x32xbf16>, vector<256x32xf32> -> vector<256x32xf32>
    %91 = arith.addf %83, %90 : vector<256x32xf32>
    %92 = vector.extract_strided_slice %85 {offsets = [1, 0, 0], sizes = [16, 16, 3], strides = [1, 1, 1]} : vector<18x16x3xbf16> to vector<16x16x3xbf16>
    %93 = vector.shape_cast %92 : vector<16x16x3xbf16> to vector<256x3xbf16>
    %c1_97 = arith.constant 1 : index
    %c1_98 = arith.constant 1 : index
    %c1_99 = arith.constant 1 : index
    %c0_100 = arith.constant 0 : index
    %c0_101 = arith.constant 0 : index
    %94 = vector.load %arg4[%c1_97, %c1_98, %c1_99, %c0_100, %c0_101] : memref<3x3x3x3x32xbf16, #tpu.memory_space<vmem>>, vector<1x1x1x3x32xbf16>
    %95 = vector.shape_cast %94 : vector<1x1x1x3x32xbf16> to vector<3x32xbf16>
    %cst_102 = arith.constant dense<0.000000e+00> : vector<256x32xf32>
    %96 = tpu.matmul %93, %95, %cst_102 {dimension_numbers = #tpu.dot_dimension_numbers<[1], [0], [0], [1], [0, 0, 1, 1], [], []>} : vector<256x3xbf16>, vector<3x32xbf16>, vector<256x32xf32> -> vector<256x32xf32>
    %97 = arith.addf %91, %96 : vector<256x32xf32>
    %98 = vector.extract_strided_slice %85 {offsets = [2, 0, 0], sizes = [16, 16, 3], strides = [1, 1, 1]} : vector<18x16x3xbf16> to vector<16x16x3xbf16>
    %99 = vector.shape_cast %98 : vector<16x16x3xbf16> to vector<256x3xbf16>
    %c1_103 = arith.constant 1 : index
    %c2_104 = arith.constant 2 : index
    %c1_105 = arith.constant 1 : index
    %c0_106 = arith.constant 0 : index
    %c0_107 = arith.constant 0 : index
    %100 = vector.load %arg4[%c1_103, %c2_104, %c1_105, %c0_106, %c0_107] : memref<3x3x3x3x32xbf16, #tpu.memory_space<vmem>>, vector<1x1x1x3x32xbf16>
    %101 = vector.shape_cast %100 : vector<1x1x1x3x32xbf16> to vector<3x32xbf16>
    %cst_108 = arith.constant dense<0.000000e+00> : vector<256x32xf32>
    %102 = tpu.matmul %99, %101, %cst_108 {dimension_numbers = #tpu.dot_dimension_numbers<[1], [0], [0], [1], [0, 0, 1, 1], [], []>} : vector<256x3xbf16>, vector<3x32xbf16>, vector<256x32xf32> -> vector<256x32xf32>
    %103 = arith.addf %97, %102 : vector<256x32xf32>
    %c0_109 = arith.constant 0 : index
    %c0_110 = arith.constant 0 : index
    %c0_111 = arith.constant 0 : index
    %c2_112 = arith.constant 2 : index
    %c0_113 = arith.constant 0 : index
    %104 = vector.load %arg2[%c0_109, %c0_110, %c0_111, %c2_112, %c0_113] : memref<1x1x18x18x3xbf16, #tpu.memory_space<vmem>>, vector<1x1x18x16x3xbf16>
    %105 = vector.shape_cast %104 : vector<1x1x18x16x3xbf16> to vector<18x16x3xbf16>
    %106 = vector.extract_strided_slice %105 {offsets = [0, 0, 0], sizes = [16, 16, 3], strides = [1, 1, 1]} : vector<18x16x3xbf16> to vector<16x16x3xbf16>
    %107 = vector.shape_cast %106 : vector<16x16x3xbf16> to vector<256x3xbf16>
    %c1_114 = arith.constant 1 : index
    %c0_115 = arith.constant 0 : index
    %c2_116 = arith.constant 2 : index
    %c0_117 = arith.constant 0 : index
    %c0_118 = arith.constant 0 : index
    %108 = vector.load %arg4[%c1_114, %c0_115, %c2_116, %c0_117, %c0_118] : memref<3x3x3x3x32xbf16, #tpu.memory_space<vmem>>, vector<1x1x1x3x32xbf16>
    %109 = vector.shape_cast %108 : vector<1x1x1x3x32xbf16> to vector<3x32xbf16>
    %cst_119 = arith.constant dense<0.000000e+00> : vector<256x32xf32>
    %110 = tpu.matmul %107, %109, %cst_119 {dimension_numbers = #tpu.dot_dimension_numbers<[1], [0], [0], [1], [0, 0, 1, 1], [], []>} : vector<256x3xbf16>, vector<3x32xbf16>, vector<256x32xf32> -> vector<256x32xf32>
    %111 = arith.addf %103, %110 : vector<256x32xf32>
    %112 = vector.extract_strided_slice %105 {offsets = [1, 0, 0], sizes = [16, 16, 3], strides = [1, 1, 1]} : vector<18x16x3xbf16> to vector<16x16x3xbf16>
    %113 = vector.shape_cast %112 : vector<16x16x3xbf16> to vector<256x3xbf16>
    %c1_120 = arith.constant 1 : index
    %c1_121 = arith.constant 1 : index
    %c2_122 = arith.constant 2 : index
    %c0_123 = arith.constant 0 : index
    %c0_124 = arith.constant 0 : index
    %114 = vector.load %arg4[%c1_120, %c1_121, %c2_122, %c0_123, %c0_124] : memref<3x3x3x3x32xbf16, #tpu.memory_space<vmem>>, vector<1x1x1x3x32xbf16>
    %115 = vector.shape_cast %114 : vector<1x1x1x3x32xbf16> to vector<3x32xbf16>
    %cst_125 = arith.constant dense<0.000000e+00> : vector<256x32xf32>
    %116 = tpu.matmul %113, %115, %cst_125 {dimension_numbers = #tpu.dot_dimension_numbers<[1], [0], [0], [1], [0, 0, 1, 1], [], []>} : vector<256x3xbf16>, vector<3x32xbf16>, vector<256x32xf32> -> vector<256x32xf32>
    %117 = arith.addf %111, %116 : vector<256x32xf32>
    %118 = vector.extract_strided_slice %105 {offsets = [2, 0, 0], sizes = [16, 16, 3], strides = [1, 1, 1]} : vector<18x16x3xbf16> to vector<16x16x3xbf16>
    %119 = vector.shape_cast %118 : vector<16x16x3xbf16> to vector<256x3xbf16>
    %c1_126 = arith.constant 1 : index
    %c2_127 = arith.constant 2 : index
    %c2_128 = arith.constant 2 : index
    %c0_129 = arith.constant 0 : index
    %c0_130 = arith.constant 0 : index
    %120 = vector.load %arg4[%c1_126, %c2_127, %c2_128, %c0_129, %c0_130] : memref<3x3x3x3x32xbf16, #tpu.memory_space<vmem>>, vector<1x1x1x3x32xbf16>
    %121 = vector.shape_cast %120 : vector<1x1x1x3x32xbf16> to vector<3x32xbf16>
    %cst_131 = arith.constant dense<0.000000e+00> : vector<256x32xf32>
    %122 = tpu.matmul %119, %121, %cst_131 {dimension_numbers = #tpu.dot_dimension_numbers<[1], [0], [0], [1], [0, 0, 1, 1], [], []>} : vector<256x3xbf16>, vector<3x32xbf16>, vector<256x32xf32> -> vector<256x32xf32>
    %123 = arith.addf %117, %122 : vector<256x32xf32>
    %c0_132 = arith.constant 0 : index
    %c0_133 = arith.constant 0 : index
    %c0_134 = arith.constant 0 : index
    %c0_135 = arith.constant 0 : index
    %c0_136 = arith.constant 0 : index
    %124 = vector.load %arg3[%c0_132, %c0_133, %c0_134, %c0_135, %c0_136] : memref<1x1x18x18x3xbf16, #tpu.memory_space<vmem>>, vector<1x1x18x16x3xbf16>
    %125 = vector.shape_cast %124 : vector<1x1x18x16x3xbf16> to vector<18x16x3xbf16>
    %126 = vector.broadcast %5 : bf16 to vector<18x16x3xbf16>
    %127 = arith.mulf %125, %126 : vector<18x16x3xbf16>
    %128 = vector.extract_strided_slice %127 {offsets = [0, 0, 0], sizes = [16, 16, 3], strides = [1, 1, 1]} : vector<18x16x3xbf16> to vector<16x16x3xbf16>
    %129 = vector.shape_cast %128 : vector<16x16x3xbf16> to vector<256x3xbf16>
    %c2_137 = arith.constant 2 : index
    %c0_138 = arith.constant 0 : index
    %c0_139 = arith.constant 0 : index
    %c0_140 = arith.constant 0 : index
    %c0_141 = arith.constant 0 : index
    %130 = vector.load %arg4[%c2_137, %c0_138, %c0_139, %c0_140, %c0_141] : memref<3x3x3x3x32xbf16, #tpu.memory_space<vmem>>, vector<1x1x1x3x32xbf16>
    %131 = vector.shape_cast %130 : vector<1x1x1x3x32xbf16> to vector<3x32xbf16>
    %cst_142 = arith.constant dense<0.000000e+00> : vector<256x32xf32>
    %132 = tpu.matmul %129, %131, %cst_142 {dimension_numbers = #tpu.dot_dimension_numbers<[1], [0], [0], [1], [0, 0, 1, 1], [], []>} : vector<256x3xbf16>, vector<3x32xbf16>, vector<256x32xf32> -> vector<256x32xf32>
    %133 = arith.addf %123, %132 : vector<256x32xf32>
    %134 = vector.extract_strided_slice %127 {offsets = [1, 0, 0], sizes = [16, 16, 3], strides = [1, 1, 1]} : vector<18x16x3xbf16> to vector<16x16x3xbf16>
    %135 = vector.shape_cast %134 : vector<16x16x3xbf16> to vector<256x3xbf16>
    %c2_143 = arith.constant 2 : index
    %c1_144 = arith.constant 1 : index
    %c0_145 = arith.constant 0 : index
    %c0_146 = arith.constant 0 : index
    %c0_147 = arith.constant 0 : index
    %136 = vector.load %arg4[%c2_143, %c1_144, %c0_145, %c0_146, %c0_147] : memref<3x3x3x3x32xbf16, #tpu.memory_space<vmem>>, vector<1x1x1x3x32xbf16>
    %137 = vector.shape_cast %136 : vector<1x1x1x3x32xbf16> to vector<3x32xbf16>
    %cst_148 = arith.constant dense<0.000000e+00> : vector<256x32xf32>
    %138 = tpu.matmul %135, %137, %cst_148 {dimension_numbers = #tpu.dot_dimension_numbers<[1], [0], [0], [1], [0, 0, 1, 1], [], []>} : vector<256x3xbf16>, vector<3x32xbf16>, vector<256x32xf32> -> vector<256x32xf32>
    %139 = arith.addf %133, %138 : vector<256x32xf32>
    %140 = vector.extract_strided_slice %127 {offsets = [2, 0, 0], sizes = [16, 16, 3], strides = [1, 1, 1]} : vector<18x16x3xbf16> to vector<16x16x3xbf16>
    %141 = vector.shape_cast %140 : vector<16x16x3xbf16> to vector<256x3xbf16>
    %c2_149 = arith.constant 2 : index
    %c2_150 = arith.constant 2 : index
    %c0_151 = arith.constant 0 : index
    %c0_152 = arith.constant 0 : index
    %c0_153 = arith.constant 0 : index
    %142 = vector.load %arg4[%c2_149, %c2_150, %c0_151, %c0_152, %c0_153] : memref<3x3x3x3x32xbf16, #tpu.memory_space<vmem>>, vector<1x1x1x3x32xbf16>
    %143 = vector.shape_cast %142 : vector<1x1x1x3x32xbf16> to vector<3x32xbf16>
    %cst_154 = arith.constant dense<0.000000e+00> : vector<256x32xf32>
    %144 = tpu.matmul %141, %143, %cst_154 {dimension_numbers = #tpu.dot_dimension_numbers<[1], [0], [0], [1], [0, 0, 1, 1], [], []>} : vector<256x3xbf16>, vector<3x32xbf16>, vector<256x32xf32> -> vector<256x32xf32>
    %145 = arith.addf %139, %144 : vector<256x32xf32>
    %c0_155 = arith.constant 0 : index
    %c0_156 = arith.constant 0 : index
    %c0_157 = arith.constant 0 : index
    %c1_158 = arith.constant 1 : index
    %c0_159 = arith.constant 0 : index
    %146 = vector.load %arg3[%c0_155, %c0_156, %c0_157, %c1_158, %c0_159] : memref<1x1x18x18x3xbf16, #tpu.memory_space<vmem>>, vector<1x1x18x16x3xbf16>
    %147 = vector.shape_cast %146 : vector<1x1x18x16x3xbf16> to vector<18x16x3xbf16>
    %148 = vector.broadcast %5 : bf16 to vector<18x16x3xbf16>
    %149 = arith.mulf %147, %148 : vector<18x16x3xbf16>
    %150 = vector.extract_strided_slice %149 {offsets = [0, 0, 0], sizes = [16, 16, 3], strides = [1, 1, 1]} : vector<18x16x3xbf16> to vector<16x16x3xbf16>
    %151 = vector.shape_cast %150 : vector<16x16x3xbf16> to vector<256x3xbf16>
    %c2_160 = arith.constant 2 : index
    %c0_161 = arith.constant 0 : index
    %c1_162 = arith.constant 1 : index
    %c0_163 = arith.constant 0 : index
    %c0_164 = arith.constant 0 : index
    %152 = vector.load %arg4[%c2_160, %c0_161, %c1_162, %c0_163, %c0_164] : memref<3x3x3x3x32xbf16, #tpu.memory_space<vmem>>, vector<1x1x1x3x32xbf16>
    %153 = vector.shape_cast %152 : vector<1x1x1x3x32xbf16> to vector<3x32xbf16>
    %cst_165 = arith.constant dense<0.000000e+00> : vector<256x32xf32>
    %154 = tpu.matmul %151, %153, %cst_165 {dimension_numbers = #tpu.dot_dimension_numbers<[1], [0], [0], [1], [0, 0, 1, 1], [], []>} : vector<256x3xbf16>, vector<3x32xbf16>, vector<256x32xf32> -> vector<256x32xf32>
    %155 = arith.addf %145, %154 : vector<256x32xf32>
    %156 = vector.extract_strided_slice %149 {offsets = [1, 0, 0], sizes = [16, 16, 3], strides = [1, 1, 1]} : vector<18x16x3xbf16> to vector<16x16x3xbf16>
    %157 = vector.shape_cast %156 : vector<16x16x3xbf16> to vector<256x3xbf16>
    %c2_166 = arith.constant 2 : index
    %c1_167 = arith.constant 1 : index
    %c1_168 = arith.constant 1 : index
    %c0_169 = arith.constant 0 : index
    %c0_170 = arith.constant 0 : index
    %158 = vector.load %arg4[%c2_166, %c1_167, %c1_168, %c0_169, %c0_170] : memref<3x3x3x3x32xbf16, #tpu.memory_space<vmem>>, vector<1x1x1x3x32xbf16>
    %159 = vector.shape_cast %158 : vector<1x1x1x3x32xbf16> to vector<3x32xbf16>
    %cst_171 = arith.constant dense<0.000000e+00> : vector<256x32xf32>
    %160 = tpu.matmul %157, %159, %cst_171 {dimension_numbers = #tpu.dot_dimension_numbers<[1], [0], [0], [1], [0, 0, 1, 1], [], []>} : vector<256x3xbf16>, vector<3x32xbf16>, vector<256x32xf32> -> vector<256x32xf32>
    %161 = arith.addf %155, %160 : vector<256x32xf32>
    %162 = vector.extract_strided_slice %149 {offsets = [2, 0, 0], sizes = [16, 16, 3], strides = [1, 1, 1]} : vector<18x16x3xbf16> to vector<16x16x3xbf16>
    %163 = vector.shape_cast %162 : vector<16x16x3xbf16> to vector<256x3xbf16>
    %c2_172 = arith.constant 2 : index
    %c2_173 = arith.constant 2 : index
    %c1_174 = arith.constant 1 : index
    %c0_175 = arith.constant 0 : index
    %c0_176 = arith.constant 0 : index
    %164 = vector.load %arg4[%c2_172, %c2_173, %c1_174, %c0_175, %c0_176] : memref<3x3x3x3x32xbf16, #tpu.memory_space<vmem>>, vector<1x1x1x3x32xbf16>
    %165 = vector.shape_cast %164 : vector<1x1x1x3x32xbf16> to vector<3x32xbf16>
    %cst_177 = arith.constant dense<0.000000e+00> : vector<256x32xf32>
    %166 = tpu.matmul %163, %165, %cst_177 {dimension_numbers = #tpu.dot_dimension_numbers<[1], [0], [0], [1], [0, 0, 1, 1], [], []>} : vector<256x3xbf16>, vector<3x32xbf16>, vector<256x32xf32> -> vector<256x32xf32>
    %167 = arith.addf %161, %166 : vector<256x32xf32>
    %c0_178 = arith.constant 0 : index
    %c0_179 = arith.constant 0 : index
    %c0_180 = arith.constant 0 : index
    %c2_181 = arith.constant 2 : index
    %c0_182 = arith.constant 0 : index
    %168 = vector.load %arg3[%c0_178, %c0_179, %c0_180, %c2_181, %c0_182] : memref<1x1x18x18x3xbf16, #tpu.memory_space<vmem>>, vector<1x1x18x16x3xbf16>
    %169 = vector.shape_cast %168 : vector<1x1x18x16x3xbf16> to vector<18x16x3xbf16>
    %170 = vector.broadcast %5 : bf16 to vector<18x16x3xbf16>
    %171 = arith.mulf %169, %170 : vector<18x16x3xbf16>
    %172 = vector.extract_strided_slice %171 {offsets = [0, 0, 0], sizes = [16, 16, 3], strides = [1, 1, 1]} : vector<18x16x3xbf16> to vector<16x16x3xbf16>
    %173 = vector.shape_cast %172 : vector<16x16x3xbf16> to vector<256x3xbf16>
    %c2_183 = arith.constant 2 : index
    %c0_184 = arith.constant 0 : index
    %c2_185 = arith.constant 2 : index
    %c0_186 = arith.constant 0 : index
    %c0_187 = arith.constant 0 : index
    %174 = vector.load %arg4[%c2_183, %c0_184, %c2_185, %c0_186, %c0_187] : memref<3x3x3x3x32xbf16, #tpu.memory_space<vmem>>, vector<1x1x1x3x32xbf16>
    %175 = vector.shape_cast %174 : vector<1x1x1x3x32xbf16> to vector<3x32xbf16>
    %cst_188 = arith.constant dense<0.000000e+00> : vector<256x32xf32>
    %176 = tpu.matmul %173, %175, %cst_188 {dimension_numbers = #tpu.dot_dimension_numbers<[1], [0], [0], [1], [0, 0, 1, 1], [], []>} : vector<256x3xbf16>, vector<3x32xbf16>, vector<256x32xf32> -> vector<256x32xf32>
    %177 = arith.addf %167, %176 : vector<256x32xf32>
    %178 = vector.extract_strided_slice %171 {offsets = [1, 0, 0], sizes = [16, 16, 3], strides = [1, 1, 1]} : vector<18x16x3xbf16> to vector<16x16x3xbf16>
    %179 = vector.shape_cast %178 : vector<16x16x3xbf16> to vector<256x3xbf16>
    %c2_189 = arith.constant 2 : index
    %c1_190 = arith.constant 1 : index
    %c2_191 = arith.constant 2 : index
    %c0_192 = arith.constant 0 : index
    %c0_193 = arith.constant 0 : index
    %180 = vector.load %arg4[%c2_189, %c1_190, %c2_191, %c0_192, %c0_193] : memref<3x3x3x3x32xbf16, #tpu.memory_space<vmem>>, vector<1x1x1x3x32xbf16>
    %181 = vector.shape_cast %180 : vector<1x1x1x3x32xbf16> to vector<3x32xbf16>
    %cst_194 = arith.constant dense<0.000000e+00> : vector<256x32xf32>
    %182 = tpu.matmul %179, %181, %cst_194 {dimension_numbers = #tpu.dot_dimension_numbers<[1], [0], [0], [1], [0, 0, 1, 1], [], []>} : vector<256x3xbf16>, vector<3x32xbf16>, vector<256x32xf32> -> vector<256x32xf32>
    %183 = arith.addf %177, %182 : vector<256x32xf32>
    %184 = vector.extract_strided_slice %171 {offsets = [2, 0, 0], sizes = [16, 16, 3], strides = [1, 1, 1]} : vector<18x16x3xbf16> to vector<16x16x3xbf16>
    %185 = vector.shape_cast %184 : vector<16x16x3xbf16> to vector<256x3xbf16>
    %c2_195 = arith.constant 2 : index
    %c2_196 = arith.constant 2 : index
    %c2_197 = arith.constant 2 : index
    %c0_198 = arith.constant 0 : index
    %c0_199 = arith.constant 0 : index
    %186 = vector.load %arg4[%c2_195, %c2_196, %c2_197, %c0_198, %c0_199] : memref<3x3x3x3x32xbf16, #tpu.memory_space<vmem>>, vector<1x1x1x3x32xbf16>
    %187 = vector.shape_cast %186 : vector<1x1x1x3x32xbf16> to vector<3x32xbf16>
    %cst_200 = arith.constant dense<0.000000e+00> : vector<256x32xf32>
    %188 = tpu.matmul %185, %187, %cst_200 {dimension_numbers = #tpu.dot_dimension_numbers<[1], [0], [0], [1], [0, 0, 1, 1], [], []>} : vector<256x3xbf16>, vector<3x32xbf16>, vector<256x32xf32> -> vector<256x32xf32>
    %189 = arith.addf %183, %188 : vector<256x32xf32>
    %c0_201 = arith.constant 0 : index
    %c0_202 = arith.constant 0 : index
    %190 = vector.load %arg5[%c0_201, %c0_202] : memref<1x32xf32, #tpu.memory_space<vmem>>, vector<1x32xf32>
    %191 = vector.broadcast %190 : vector<1x32xf32> to vector<256x32xf32>
    %192 = arith.addf %189, %191 : vector<256x32xf32>
    %cst_203 = arith.constant 0.000000e+00 : f32
    %193 = vector.broadcast %cst_203 : f32 to vector<256x32xf32>
    %194 = arith.cmpf ogt, %192, %193 : vector<256x32xf32>
    %cst_204 = arith.constant 0.00999999977 : f32
    %195 = vector.broadcast %cst_204 : f32 to vector<256x32xf32>
    %196 = arith.mulf %195, %192 : vector<256x32xf32>
    %197 = arith.select %194, %192, %196 : vector<256x32xi1>, vector<256x32xf32>
    %c0_205 = arith.constant 0 : index
    %c0_206 = arith.constant 0 : index
    %198 = vector.load %arg6[%c0_205, %c0_206] : memref<1x32xf32, #tpu.memory_space<vmem>>, vector<1x32xf32>
    %199 = vector.broadcast %198 : vector<1x32xf32> to vector<256x32xf32>
    %200 = arith.mulf %197, %199 : vector<256x32xf32>
    %c0_207 = arith.constant 0 : index
    %c0_208 = arith.constant 0 : index
    %201 = vector.load %arg7[%c0_207, %c0_208] : memref<1x32xf32, #tpu.memory_space<vmem>>, vector<1x32xf32>
    %202 = vector.broadcast %201 : vector<1x32xf32> to vector<256x32xf32>
    %203 = arith.addf %200, %202 : vector<256x32xf32>
    %204 = vector.shape_cast %203 : vector<256x32xf32> to vector<1x1x16x16x32xf32>
    %205 = arith.truncf %204 : vector<1x1x16x16x32xf32> to vector<1x1x16x16x32xbf16>
    %cst_209 = arith.constant 0.000000e+00 : bf16
    %206 = vector.broadcast %cst_209 : bf16 to vector<1x1x1x18x32xbf16>
    %cst_210 = arith.constant 0.000000e+00 : bf16
    %207 = vector.broadcast %cst_210 : bf16 to vector<1x1x16x1x32xbf16>
    %c0_211 = arith.constant 0 : index
    %c0_212 = arith.constant 0 : index
    %c0_213 = arith.constant 0 : index
    %c0_214 = arith.constant 0 : index
    %c0_215 = arith.constant 0 : index
    %208 = vector.load %arg8[%c0_211, %c0_212, %c0_213, %c0_214, %c0_215] : memref<1x1x18x18x32xbf16, #tpu.memory_space<vmem>>, vector<1x1x1x18x32xbf16>
    tpu.vector_store %arg8[%c0_211, %c0_212, %c0_213, %c0_214, %c0_215], %206 {strides = array<i32>} : memref<1x1x18x18x32xbf16, #tpu.memory_space<vmem>>, vector<1x1x1x18x32xbf16>,
    %c0_216 = arith.constant 0 : index
    %c0_217 = arith.constant 0 : index
    %c17 = arith.constant 17 : index
    %c0_218 = arith.constant 0 : index
    %c0_219 = arith.constant 0 : index
    %209 = vector.load %arg8[%c0_216, %c0_217, %c17, %c0_218, %c0_219] : memref<1x1x18x18x32xbf16, #tpu.memory_space<vmem>>, vector<1x1x1x18x32xbf16>
    tpu.vector_store %arg8[%c0_216, %c0_217, %c17, %c0_218, %c0_219], %206 {strides = array<i32>} : memref<1x1x18x18x32xbf16, #tpu.memory_space<vmem>>, vector<1x1x1x18x32xbf16>,
    %c0_220 = arith.constant 0 : index
    %c0_221 = arith.constant 0 : index
    %c1_222 = arith.constant 1 : index
    %c0_223 = arith.constant 0 : index
    %c0_224 = arith.constant 0 : index
    %210 = vector.load %arg8[%c0_220, %c0_221, %c1_222, %c0_223, %c0_224] : memref<1x1x18x18x32xbf16, #tpu.memory_space<vmem>>, vector<1x1x16x1x32xbf16>
    tpu.vector_store %arg8[%c0_220, %c0_221, %c1_222, %c0_223, %c0_224], %207 {strides = array<i32>} : memref<1x1x18x18x32xbf16, #tpu.memory_space<vmem>>, vector<1x1x16x1x32xbf16>,
    %c0_225 = arith.constant 0 : index
    %c0_226 = arith.constant 0 : index
    %c1_227 = arith.constant 1 : index
    %c17_228 = arith.constant 17 : index
    %c0_229 = arith.constant 0 : index
    %211 = vector.load %arg8[%c0_225, %c0_226, %c1_227, %c17_228, %c0_229] : memref<1x1x18x18x32xbf16, #tpu.memory_space<vmem>>, vector<1x1x16x1x32xbf16>
    tpu.vector_store %arg8[%c0_225, %c0_226, %c1_227, %c17_228, %c0_229], %207 {strides = array<i32>} : memref<1x1x18x18x32xbf16, #tpu.memory_space<vmem>>, vector<1x1x16x1x32xbf16>,
    %c0_230 = arith.constant 0 : index
    %c0_231 = arith.constant 0 : index
    %c1_232 = arith.constant 1 : index
    %c1_233 = arith.constant 1 : index
    %c0_234 = arith.constant 0 : index
    %212 = vector.load %arg8[%c0_230, %c0_231, %c1_232, %c1_233, %c0_234] : memref<1x1x18x18x32xbf16, #tpu.memory_space<vmem>>, vector<1x1x16x16x32xbf16>
    tpu.vector_store %arg8[%c0_230, %c0_231, %c1_232, %c1_233, %c0_234], %205 {strides = array<i32>} : memref<1x1x18x18x32xbf16, #tpu.memory_space<vmem>>, vector<1x1x16x16x32xbf16>,
    %c0_235 = arith.constant 0 : index
    %c0_236 = arith.constant 0 : index
    %c0_237 = arith.constant 0 : index
    %c0_238 = arith.constant 0 : index
    %c0_239 = arith.constant 0 : index
    %213 = vector.load %arg2[%c0_235, %c0_236, %c0_237, %c0_238, %c0_239] : memref<1x1x18x18x3xbf16, #tpu.memory_space<vmem>>, vector<1x1x18x18x3xbf16>
    %214 = vector.shape_cast %213 : vector<1x1x18x18x3xbf16> to vector<18x18x3xbf16>
    %c0_240 = arith.constant 0 : index
    %c0_241 = arith.constant 0 : index
    %c0_242 = arith.constant 0 : index
    %215 = vector.load %arg9[%c0_240, %c0_241, %c0_242] : memref<18x18x3xbf16, #tpu.memory_space<vmem>>, vector<18x18x3xbf16>
    tpu.vector_store %arg9[%c0_240, %c0_241, %c0_242], %214 {strides = array<i32>} : memref<18x18x3xbf16, #tpu.memory_space<vmem>>, vector<18x18x3xbf16>,
    return
  }
  func.func @transform_0(%arg0: i32, %arg1: i32) -> (i32, i32, i32, i32, i32) {
    %c0_i32 = arith.constant 0 : i32
    %c0_i32_0 = arith.constant 0 : i32
    %c0_i32_1 = arith.constant 0 : i32
    %c0_i32_2 = arith.constant 0 : i32
    return %arg0, %arg1, %c0_i32, %c0_i32_0, %c0_i32_1 : i32, i32, i32, i32, i32
  }
  func.func @transform_1(%arg0: i32, %arg1: i32) -> (i32, i32, i32, i32, i32) {
    %c1_i32 = arith.constant 1 : i32
    %0 = arith.addi %arg1, %c1_i32 : i32
    %c3_i32 = arith.constant 3 : i32
    %1 = arith.minsi %0, %c3_i32 : i32
    %c0_i32 = arith.constant 0 : i32
    %c0_i32_0 = arith.constant 0 : i32
    %c0_i32_1 = arith.constant 0 : i32
    %c0_i32_2 = arith.constant 0 : i32
    return %arg0, %1, %c0_i32, %c0_i32_0, %c0_i32_1 : i32, i32, i32, i32, i32
  }
  func.func @transform_2(%arg0: i32, %arg1: i32) -> (i32, i32, i32, i32, i32) {
    %c0_i32 = arith.constant 0 : i32
    %c0_i32_0 = arith.constant 0 : i32
    %c0_i32_1 = arith.constant 0 : i32
    %c0_i32_2 = arith.constant 0 : i32
    %c0_i32_3 = arith.constant 0 : i32
    %c0_i32_4 = arith.constant 0 : i32
    return %c0_i32, %c0_i32_0, %c0_i32_1, %c0_i32_2, %c0_i32_3 : i32, i32, i32, i32, i32
  }
  func.func @transform_3(%arg0: i32, %arg1: i32) -> (i32, i32) {
    %c0_i32 = arith.constant 0 : i32
    %c0_i32_0 = arith.constant 0 : i32
    %c0_i32_1 = arith.constant 0 : i32
    return %c0_i32, %c0_i32_0 : i32, i32
  }
  func.func @transform_4(%arg0: i32, %arg1: i32) -> (i32, i32) {
    %c0_i32 = arith.constant 0 : i32
    %c0_i32_0 = arith.constant 0 : i32
    %c0_i32_1 = arith.constant 0 : i32
    return %c0_i32, %c0_i32_0 : i32, i32
  }
  func.func @transform_5(%arg0: i32, %arg1: i32) -> (i32, i32) {
    %c0_i32 = arith.constant 0 : i32
    %c0_i32_0 = arith.constant 0 : i32
    %c0_i32_1 = arith.constant 0 : i32
    return %c0_i32, %c0_i32_0 : i32, i32
  }
  func.func @transform_6(%arg0: i32, %arg1: i32) -> (i32, i32, i32, i32, i32) {
    %c0_i32 = arith.constant 0 : i32
    %c0_i32_0 = arith.constant 0 : i32
    %c0_i32_1 = arith.constant 0 : i32
    %c0_i32_2 = arith.constant 0 : i32
    return %arg0, %arg1, %c0_i32, %c0_i32_0, %c0_i32_1 : i32, i32, i32, i32, i32
  }
}

</mosaic_0001>

<bundles_post_ra>
// kernel: tpu_custom_call.1
= control target key start
LH: loop header
LB: loop body
LE: loop exit
PB: predicated region body
PF: predicated region fallthrough
CT: control target
= control target key end

     0   :  { %s12618_s21 = smov 0   ;;  %s12620_s22 = smov 0   ;;  %s17802_s0 = inlined_call_operand.vmem [shape: bf16[2,4,18,18,3], index: 0, kind: input, shape index: {}]   ;;  %s17803_s1 = inlined_call_operand.vmem [shape: bf16[2,4,18,18,3], index: 1, kind: input, shape index: {}]   ;;  %s17804_s2 = inlined_call_operand.vmem [shape: bf16[3,3,3,3,32], index: 2, kind: input, shape index: {}]   ;;  %s17805_s3 = inlined_call_operand.vmem [shape: f32[1,32], index: 3, kind: input, shape index: {}]   ;;  %s17806_s4 = inlined_call_operand.vmem [shape: f32[1,32], index: 4, kind: input, shape index: {}]   ;;  %s17807_s5 = inlined_call_operand.vmem [shape: f32[1,32], index: 5, kind: input, shape index: {}]   ;;  %s17808_s6 = inlined_call_operand.vmem [shape: bf16[2,4,18,18,32], index: 6, kind: output, shape index: {}]  }
   0x1   :  { %s12622_s23 = smov 0   ;;  %s12624_s24 = smov 0  }
   0x2   :  { %s12626_s25 = smov 0  }
   0x3 LB: > { %s25_s26 = sadd.s32 1, %s12570_s23  ;;  %s28_s27 = sadd.s32 1, %s12574_s24  ;;  %s12578_s25 = sphi %s12626_s25, %s16_s25   ;;  %s12574_s24 = sphi %s12624_s24, %s18385_s24   ;;  %s12570_s23 = sphi %s12622_s23, %s18384_s23   ;;  %s12566_s22 = sphi %s12620_s22, %s18383_s22   ;;  %s12562_s21 = sphi %s12618_s21, %s18382_s21  }
   0x4   : > { %p26_p0 = scmp.ge.s32.totalorder %s25_s26, 4  ;;  %p10146_p1 = scmp.ge.s32.totalorder %s12578_s25, 1 }
   0x5   : > { %p260_p2 = scmp.lt.s32.totalorder %s12578_s25, 9 }
   0x6   : > { %s18387_s26 = smov (%p26_p0, %s25_s26), 0  ;;  %s18389_s27 = smov (!%p26_p0, %s28_s27), %s12574_s24 }
   0x7   : > { %p261_p3 = pnand %p10146_p1, %p260_p2  ;;  %p30_p4 = scmp.ge.s32.totalorder %s18389_s27, 2 }
   0x9   : > { %s18391_s27 = smov (%p30_p4, %s18389_s27), 0  ;;  %264 = sbr.rel (%p261_p3) target bundleno = 1196 (0x4ac), region = 44 }
   0xe   : > { %p310_p5 = scmp.lt.s32.totalorder %s12566_s22, 1  ;;  %p312_p6 = scmp.lt.s32.totalorder %s12562_s21, 3 }
   0xf   : > { %s319_s28 = sadd.s32 1, %s12562_s21  ;;  %p10153_p8 = scmp.ne.s32.totalorder %s12562_s21, 0 }
  0x10   : > { %s18393_s22 = smov (!%p310_p5, %s12566_s22), 1  ;;  %p320_p7 = scmp.lt.s32.totalorder %s319_s28, 3 }
  0x11   : > { %s313_s29 = scalar_select %p312_p6, %s12562_s21, 3 }
  0x12   : > { %s12424_s30 = smul.u32 216, %s18393_s22  ;;  %s18395_s28 = smov (!%p320_p7, %s319_s28), 3 }
  0x13   : > { %s12423_s7 = smul.u32 54, %s313_s29  ;;  %s18397_s28 = smov (!%p320_p7, %s18395_s28), 3 }
  0x14   : > { %s12425_s16 = smul.u32 54, %s18397_s28 }
  0x15   : > { %s316_s8 = sadd.s32 %s12424_s30, %s12423_s7  ;;  %347 = sbr.rel (%p10153_p8) target bundleno = 54 (0x36), region = 48 }
  0x16   : > { %s10147_s9 = sshll.u32 %s316_s8, 2  ;;  %s328_s17 = sadd.s32 %s12425_s16, %s12424_s30 }
  0x17   : > { %s12658_s12 = scalar_lea.vmem %s17802_s0, %s10147_s9  ;;  %s12663_s15 = scalar_lea.vmem %s17808_s6, %s10147_s9 }
  0x18   : > { %s10151_s18 = sshll.u32 %s328_s17, 2 }
  0x19   : > { %s12668_s22 = scalar_lea.vmem %s17803_s1, %s10151_s18 }
  0x1a   : > { %vm348_vm0 = vcmask 19456   ;;  %vm351_vm1 = vcmask 16384   ;;  %v12580_v0 = vmov 0  }
  0x1b   : > { %349 = vst.msk [vmem:[#allocation2] sm:$0xf] %vm348_vm0, %v12580_v0  ;;  %350 = vst.msk [vmem:[#allocation2 + $0x4] sm:$0xf] %vm348_vm0, %v12580_v0 }
  0x1c   : > { %353 = vst.msk [vmem:[#allocation2 + $0xc] sm:$0xf] %vm348_vm0, %v12580_v0  ;;  %354 = vst.msk [vmem:[#allocation2 + $0x10] sm:$0xf] %vm348_vm0, %v12580_v0 }
  0x1d   : > { %356 = vst.msk [vmem:[#allocation2 + $0x18] sm:$0xf] %vm348_vm0, %v12580_v0  ;;  %357 = vst.msk [vmem:[#allocation2 + $0x1c] sm:$0xf] %vm348_vm0, %v12580_v0 }
  0x1e   : > { %359 = vst.msk [vmem:[#allocation2 + $0x24] sm:$0xf] %vm348_vm0, %v12580_v0  ;;  %360 = vst.msk [vmem:[#allocation2 + $0x28] sm:$0xf] %vm348_vm0, %v12580_v0 }
  0x1f   : > { %362 = vst.msk [vmem:[#allocation2 + $0x30] sm:$0xf] %vm348_vm0, %v12580_v0  ;;  %363 = vst.msk [vmem:[#allocation2 + $0x34] sm:$0xf] %vm348_vm0, %v12580_v0 }
  0x20   : > { %365 = vst.msk [vmem:[#allocation2 + $0x3c] sm:$0xf] %vm348_vm0, %v12580_v0  ;;  %366 = vst.msk [vmem:[#allocation2 + $0x40] sm:$0xf] %vm348_vm0, %v12580_v0 }
  0x21   : > { %368 = vst.msk [vmem:[#allocation2 + $0x48] sm:$0xf] %vm348_vm0, %v12580_v0  ;;  %369 = vst.msk [vmem:[#allocation2 + $0x4c] sm:$0xf] %vm348_vm0, %v12580_v0 }
  0x22   : > { %371 = vst.msk [vmem:[#allocation2 + $0x54] sm:$0xf] %vm348_vm0, %v12580_v0  ;;  %372 = vst.msk [vmem:[#allocation2 + $0x58] sm:$0xf] %vm348_vm0, %v12580_v0 }
  0x23   : > { %374 = vst.msk [vmem:[#allocation2 + $0x60] sm:$0xf] %vm348_vm0, %v12580_v0  ;;  %375 = vst.msk [vmem:[#allocation2 + $0x64] sm:$0xf] %vm348_vm0, %v12580_v0 }
  0x24   : > { %377 = vst.msk [vmem:[#allocation2 + $0x6c] sm:$0xf] %vm348_vm0, %v12580_v0  ;;  %378 = vst.msk [vmem:[#allocation2 + $0x70] sm:$0xf] %vm348_vm0, %v12580_v0 }
  0x25   : > { %380 = vst.msk [vmem:[#allocation2 + $0x78] sm:$0xf] %vm348_vm0, %v12580_v0  ;;  %381 = vst.msk [vmem:[#allocation2 + $0x7c] sm:$0xf] %vm348_vm0, %v12580_v0 }
  0x26   : > { %383 = vst.msk [vmem:[#allocation2 + $0x84] sm:$0xf] %vm348_vm0, %v12580_v0  ;;  %384 = vst.msk [vmem:[#allocation2 + $0x88] sm:$0xf] %vm348_vm0, %v12580_v0 }
  0x27   : > { %386 = vst.msk [vmem:[#allocation2 + $0x90] sm:$0xf] %vm348_vm0, %v12580_v0  ;;  %387 = vst.msk [vmem:[#allocation2 + $0x94] sm:$0xf] %vm348_vm0, %v12580_v0 }
  0x28   : > { %389 = vst.msk [vmem:[#allocation2 + $0x9c] sm:$0xf] %vm348_vm0, %v12580_v0  ;;  %390 = vst.msk [vmem:[#allocation2 + $0xa0] sm:$0xf] %vm348_vm0, %v12580_v0 }
  0x29   : > { %392 = vst.msk [vmem:[#allocation2 + $0xa8] sm:$0xf] %vm348_vm0, %v12580_v0  ;;  %393 = vst.msk [vmem:[#allocation2 + $0xac] sm:$0xf] %vm348_vm0, %v12580_v0 }
  0x2a   : > { %395 = vst.msk [vmem:[#allocation2 + $0xb4] sm:$0xf] %vm348_vm0, %v12580_v0  ;;  %396 = vst.msk [vmem:[#allocation2 + $0xb8] sm:$0xf] %vm348_vm0, %v12580_v0 }
  0x2b   : > { %398 = vst.msk [vmem:[#allocation2 + $0xc0] sm:$0xf] %vm348_vm0, %v12580_v0  ;;  %399 = vst.msk [vmem:[#allocation2 + $0xc4] sm:$0xf] %vm348_vm0, %v12580_v0 }
  0x2c   : > { %401 = vst.msk [vmem:[#allocation2 + $0xcc] sm:$0xf] %vm348_vm0, %v12580_v0  ;;  %402 = vst.msk [vmem:[#allocation2 + $0xd0] sm:$0xf] %vm348_vm0, %v12580_v0 }
  0x2d   : > { %352 = vst.msk [vmem:[#allocation2 + $0x8] sm:$0x1] %vm351_vm1, %v12580_v0  ;;  %355 = vst.msk [vmem:[#allocation2 + $0x14] sm:$0x1] %vm351_vm1, %v12580_v0 }
  0x2e   : > { %358 = vst.msk [vmem:[#allocation2 + $0x20] sm:$0x1] %vm351_vm1, %v12580_v0  ;;  %361 = vst.msk [vmem:[#allocation2 + $0x2c] sm:$0x1] %vm351_vm1, %v12580_v0 }
  0x2f   : > { %364 = vst.msk [vmem:[#allocation2 + $0x38] sm:$0x1] %vm351_vm1, %v12580_v0  ;;  %367 = vst.msk [vmem:[#allocation2 + $0x44] sm:$0x1] %vm351_vm1, %v12580_v0 }
  0x30   : > { %370 = vst.msk [vmem:[#allocation2 + $0x50] sm:$0x1] %vm351_vm1, %v12580_v0  ;;  %373 = vst.msk [vmem:[#allocation2 + $0x5c] sm:$0x1] %vm351_vm1, %v12580_v0 }
  0x31   : > { %376 = vst.msk [vmem:[#allocation2 + $0x68] sm:$0x1] %vm351_vm1, %v12580_v0  ;;  %379 = vst.msk [vmem:[#allocation2 + $0x74] sm:$0x1] %vm351_vm1, %v12580_v0 }
  0x32   : > { %382 = vst.msk [vmem:[#allocation2 + $0x80] sm:$0x1] %vm351_vm1, %v12580_v0  ;;  %385 = vst.msk [vmem:[#allocation2 + $0x8c] sm:$0x1] %vm351_vm1, %v12580_v0 }
  0x33   : > { %388 = vst.msk [vmem:[#allocation2 + $0x98] sm:$0x1] %vm351_vm1, %v12580_v0  ;;  %391 = vst.msk [vmem:[#allocation2 + $0xa4] sm:$0x1] %vm351_vm1, %v12580_v0 }
  0x34   : > { %394 = vst.msk [vmem:[#allocation2 + $0xb0] sm:$0x1] %vm351_vm1, %v12580_v0  ;;  %397 = vst.msk [vmem:[#allocation2 + $0xbc] sm:$0x1] %vm351_vm1, %v12580_v0 }
  0x35   : > { %400 = vst.msk [vmem:[#allocation2 + $0xc8] sm:$0x1] %vm351_vm1, %v12580_v0  ;;  %403 = vst.msk [vmem:[#allocation2 + $0xd4] sm:$0x1] %vm351_vm1, %v12580_v0 }
  0x36 PF: > { %v10154_v1 = vld [vmem:[%s17804_s2 + $0x6] sm:$0x3]  ;;  %vm584_vm2 = vcmask 1040384   ;;  %vm585_vm3 = vcmask 1041408   ;;  %v12728_v2 = vld [vmem:[#allocation2 + $0xc] sm:$0xff]   ;;  %v12581_v3 = vmov 65535  }
  0x37   : > { %v586_v4 = vsel %vm584_vm2, 4294967295, %v12581_v3  ;;  %vm535_vm4 = vcmask 23552   ;;  %v12734_v6 = vld [vmem:[#allocation2 + $0xc] sm:$0xf]  ;;  %vm9970_vm5 = vcmask 19456   ;;  %v12759_v18 = vld [vmem:[#allocation2 + $0x18] sm:$0xff]  }
  0x38   : > { %v12730_v5 = vsel %vm585_vm3, %v586_v4, 0  ;;  %11505 = vmatprep.mubr.msk.bf16.mxu0 %vm535_vm4, %v12728_v2  ;;  %v12737_v8 = vld [vmem:[#allocation2 + $0x10] sm:$0xf]  ;;  %v12739_v9 = vld [vmem:[#allocation2 + $0xc] sm:$0xe]  ;;  %v12767_v21 = vld [vmem:[#allocation2 + $0x78] sm:$0xff]  }
  0x39   : > { %17919 = vst [vmem:[#allocation3_spill] sm:$0xff] %v12730_v5  ;;  %v589_v7 = vand.u32 %v10154_v1, %v12730_v5  ;;  %17920 = vst [vmem:[#allocation4_spill] sm:$0xff] %v12737_v8  ;;  %v9919_v10 = vld [vmem:[%s12658_s12 + $0xc] sm:$0xf]  ;;  %v9920_v11 = vld [vmem:[%s12658_s12 + $0x10] sm:$0xf] }
  0x3a   : > { %17921 = vst [vmem:[#allocation5_spill] sm:$0xff] %v12739_v9  ;;  %9975 = vst.msk [vmem:[#allocation2 + $0xc] sm:$0xf] %vm9970_vm5, %v9919_v10  ;;  %v12744_v12 = vld [vmem:[#allocation2 + $0x6c] sm:$0xff]   ;;  %v12761_v19 = vld [vmem:[#allocation2 + $0x1c] sm:$0xf] }
  0x3b   : > { %11503 = vmatprep.subr.bf16.mxu0 %v589_v7  ;;  %12421 = vmatprep.subr.bf16.mxu1 %v589_v7  ;;  %9976 = vst.msk [vmem:[#allocation2 + $0x10] sm:$0xf] %vm9970_vm5, %v9920_v11  ;;  %v12747_v13 = vld [vmem:[#allocation2 + $0x6c] sm:$0xf]  ;;  %v12749_v14 = vld [vmem:[#allocation2 + $0x70] sm:$0xf] }
  0x3c   : > { %11504 = vmatpush3.bf16.msra.mxu0 %v589_v7  ;;  %12422 = vmatpush3.bf16.msra.mxu1 %v589_v7  ;;  %17922 = vst [vmem:[#allocation6_spill] sm:$0xff] %v12749_v14  ;;  %v12751_v15 = vld [vmem:[#allocation2 + $0x6c] sm:$0xe]  ;;  %v9944_v17 = vld [vmem:[%s12658_s12 + $0x70] sm:$0xf]  ;;  %17924 = vst [vmem:[#allocation8_spill] sm:$0xff] %v12761_v19 }
  0x3d   : > { %17923 = vst [vmem:[#allocation7_spill] sm:$0xff] %v12751_v15  ;;  %v9943_v16 = vld [vmem:[%s12658_s12 + $0x6c] sm:$0xf]  ;;  %11521 = vmatprep.mubr.msk.bf16.mxu1 %vm535_vm4, %v12744_v12  ;;  %10000 = vst.msk [vmem:[#allocation2 + $0x70] sm:$0xf] %vm9970_vm5, %v9944_v17  ;;  %v12783_v28 = vld [vmem:[#allocation2 + $0x24] sm:$0xff]  }
  0x3e   : > { %9999 = vst.msk [vmem:[#allocation2 + $0x6c] sm:$0xf] %vm9970_vm5, %v9943_v16  ;;  %v9923_v20 = vld [vmem:[%s12658_s12 + $0x1c] sm:$0xf]  ;;  %v452_v24 = vld [vmem:[%s17804_s2] sm:$0x3] }
  0x3f   : > { %9979 = vst.msk [vmem:[#allocation2 + $0x1c] sm:$0xf] %vm9970_vm5, %v9923_v20  ;;  %11506 = vmatmul.mubr.msk.bf16.vlgmr.msra.gmra.mxu0 %vm535_vm4, %v12759_v18  ;;  %v12769_v22 = vld [vmem:[#allocation2 + $0x7c] sm:$0xf]  ;;  %v10204_v25 = vld [vmem:[%s17804_s2 + $0xc] sm:$0x3]  ;;  %11522 = vmatmul.mubr.msk.bf16.vlgmr.msra.gmra.mxu1 %vm535_vm4, %v12767_v21  ;;  %v761_v26 = vand.u32 %v12730_v5, %v452_v24 }
  0x40   : > { %17925 = vst [vmem:[#allocation9_spill] sm:$0xff] %v12769_v22  ;;  %v9947_v23 = vld [vmem:[%s12658_s12 + $0x7c] sm:$0xf]  ;;  %v935_v27 = vand.u32 %v10204_v25, %v12730_v5  ;;  %v12785_v29 = vld [vmem:[#allocation2 + $0x28] sm:$0xf]  ;;  %11509 = vmatprep.mubr.msk.bf16.mxu0 %vm535_vm4, %v12783_v28  ;;  %v12799_v34 = vld [vmem:[#allocation2 + $0x30] sm:$0xff]  }
  0x41   : > { %10003 = vst.msk [vmem:[#allocation2 + $0x7c] sm:$0xf] %vm9970_vm5, %v9947_v23  ;;  %17926 = vst [vmem:[#allocation10_spill] sm:$0xff] %v12785_v29  ;;  %v9926_v30 = vld [vmem:[%s12658_s12 + $0x28] sm:$0xf]  ;;  %11537 = vmatprep.subr.bf16.mxu1 %v761_v26  ;;  %v12805_v37 = vld [vmem:[#allocation2 + $0x90] sm:$0xff]  }
  0x42   : > { %11571 = vmatprep.subr.bf16.mxu0 %v935_v27  ;;  %9982 = vst.msk [vmem:[#allocation2 + $0x28] sm:$0xf] %vm9970_vm5, %v9926_v30  ;;  %v12789_v31 = vld [vmem:[#allocation2 + $0x84] sm:$0xff]   ;;  %11538 = vmatpush3.bf16.msra.mxu1 %v761_v26  ;;  %v12801_v35 = vld [vmem:[#allocation2 + $0x34] sm:$0xf]  ;;  %v12813_v40 = vld [vmem:[#allocation2 + $0x3c] sm:$0xff]  }
  0x43   : > { %v12791_v32 = vld [vmem:[#allocation2 + $0x88] sm:$0xf]  ;;  %11572 = vmatpush3.bf16.msra.mxu0 %v935_v27  ;;  %11525 = vmatprep.mubr.msk.bf16.mxu1 %vm535_vm4, %v12789_v31  ;;  %17928 = vst [vmem:[#allocation12_spill] sm:$0xff] %v12801_v35  ;;  %v9929_v36 = vld [vmem:[%s12658_s12 + $0x34] sm:$0xf]  ;;  %v1212_v42 = vshrl.u32 %v12734_v6, 16 }
  0x44   : > { %17927 = vst [vmem:[#allocation11_spill] sm:$0xff] %v12791_v32  ;;  %v9950_v33 = vld [vmem:[%s12658_s12 + $0x88] sm:$0xf]  ;;  %9985 = vst.msk [vmem:[#allocation2 + $0x34] sm:$0xf] %vm9970_vm5, %v9929_v36  ;;  %v1225_v44 = vshrl.u32 %v12737_v8, 16 }
  0x45   : > { %10006 = vst.msk [vmem:[#allocation2 + $0x88] sm:$0xf] %vm9970_vm5, %v9950_v33  ;;  %v12809_v38 = vld [vmem:[#allocation2 + $0x94] sm:$0xf]  ;;  %v12815_v41 = vld [vmem:[#allocation2 + $0x40] sm:$0xf] }
  0x46   : > { %v9953_v39 = vld [vmem:[%s12658_s12 + $0x94] sm:$0xf]  ;;  %17929 = vst [vmem:[#allocation13_spill] sm:$0xff] %v12815_v41  ;;  %v9932_v43 = vld [vmem:[%s12658_s12 + $0x40] sm:$0xf]  ;;  %v12831_v48 = vld [vmem:[#allocation2 + $0x48] sm:$0xff]  }
  0x47   : > { %11510 = vmatmul.mubr.msk.bf16.gmra.mxu0 %vm535_vm4, %v12799_v34  ;;  %10009 = vst.msk [vmem:[#allocation2 + $0x94] sm:$0xf] %vm9970_vm5, %v9953_v39  ;;  %11526 = vmatmul.mubr.msk.bf16.gmra.mxu1 %vm535_vm4, %v12805_v37  ;;  %9988 = vst.msk [vmem:[#allocation2 + $0x40] sm:$0xf] %vm9970_vm5, %v9932_v43  ;;  %v12825_v45 = vld [vmem:[#allocation2 + $0x9c] sm:$0xff]   ;;  %v1215_v49 = vshll.u32 %v12734_v6, 16 }
  0x48   : > { %11513 = vmatprep.mubr.msk.bf16.mxu0 %vm535_vm4, %v12813_v40  ;;  %v12827_v46 = vld [vmem:[#allocation2 + $0xa0] sm:$0xf]  ;;  %11529 = vmatprep.mubr.msk.bf16.mxu1 %vm535_vm4, %v12825_v45  ;;  %v12836_v50 = vld [vmem:[#allocation2 + $0x4c] sm:$0xf]  ;;  %v1214_v54 = vrot.slane %v1212_v42, 4  ;;  %v12848_v56 = vld [vmem:[#allocation2 + $0x54] sm:$0xff]  }
  0x49   : > { %17930 = vst [vmem:[#allocation14_spill] sm:$0xff] %v12827_v46  ;;  %v9956_v47 = vld [vmem:[%s12658_s12 + $0xa0] sm:$0xf]  ;;  %17931 = vst [vmem:[#allocation15_spill] sm:$0xff] %v12836_v50  ;;  %v9935_v51 = vld [vmem:[%s12658_s12 + $0x4c] sm:$0xf] }
  0x4a   : > { %10012 = vst.msk [vmem:[#allocation2 + $0xa0] sm:$0xf] %vm9970_vm5, %v9956_v47  ;;  %9991 = vst.msk [vmem:[#allocation2 + $0x4c] sm:$0xf] %vm9970_vm5, %v9935_v51  ;;  %v12840_v52 = vld [vmem:[#allocation2 + $0xa8] sm:$0xff]   ;;  %v1217_v59 = vrot.slane %v1215_v49, 5 }
  0x4b   : > { %v12842_v53 = vld [vmem:[#allocation2 + $0xac] sm:$0xf]  ;;  %v12850_v57 = vld [vmem:[#allocation2 + $0x58] sm:$0xf]  ;;  %v1221_v61 = vshll.u32 %v12737_v8, 16  ;;  %v12867_v0 = vld [vmem:[#allocation2 + $0x60] sm:$0xff]  }
  0x4c   : > { %17932 = vst [vmem:[#allocation16_spill] sm:$0xff] %v12842_v53  ;;  %v9959_v55 = vld [vmem:[%s12658_s12 + $0xac] sm:$0xf]  ;;  %17933 = vst [vmem:[#allocation17_spill] sm:$0xff] %v12850_v57  ;;  %v9938_v58 = vld [vmem:[%s12658_s12 + $0x58] sm:$0xf]  ;;  %v1218_v11 = vor.u32 %v1217_v59, %v1214_v54 }
  0x4d   : > { %10015 = vst.msk [vmem:[#allocation2 + $0xac] sm:$0xf] %vm9970_vm5, %v9959_v55  ;;  %9994 = vst.msk [vmem:[#allocation2 + $0x58] sm:$0xf] %vm9970_vm5, %v9938_v58  ;;  %v12854_v60 = vld [vmem:[#allocation2 + $0xb4] sm:$0xff]   ;;  %v1227_v4 = vrot.slane %v1225_v44, 4 }
  0x4e   : > { %v12861_v62 = vld [vmem:[#allocation2 + $0xb8] sm:$0xf]  ;;  %v12869_v1 = vld [vmem:[#allocation2 + $0x64] sm:$0xf]  ;;  %v1223_v17 = vrot.slane %v1221_v61, 5  ;;  %v12895_v30 = vld [vmem:[#allocation2 + $0xcc] sm:$0xff]  }
  0x4f   : > { %11514 = vmatmul.mubr.msk.bf16.gmra.mxu0 %vm535_vm4, %v12831_v48  ;;  %11530 = vmatmul.mubr.msk.bf16.gmra.mxu1 %vm535_vm4, %v12840_v52  ;;  %17934 = vst [vmem:[#allocation18_spill] sm:$0xff] %v12861_v62  ;;  %v9962_v63 = vld [vmem:[%s12658_s12 + $0xb8] sm:$0xf]  ;;  %17935 = vst [vmem:[#allocation19_spill] sm:$0xff] %v12869_v1  ;;  %v9941_v3 = vld [vmem:[%s12658_s12 + $0x64] sm:$0xf] }
  0x50   : > { %11517 = vmatprep.mubr.msk.bf16.mxu0 %vm535_vm4, %v12848_v56  ;;  %11533 = vmatprep.mubr.msk.bf16.mxu1 %vm535_vm4, %v12854_v60  ;;  %10018 = vst.msk [vmem:[#allocation2 + $0xb8] sm:$0xf] %vm9970_vm5, %v9962_v63  ;;  %9997 = vst.msk [vmem:[#allocation2 + $0x64] sm:$0xf] %vm9970_vm5, %v9941_v3  ;;  %v12873_v6 = vld [vmem:[#allocation2 + $0xc0] sm:$0xff]   ;;  %v1219_v39 = vrot.slane %v1218_v11, 4  ;;  %v1228_v47 = vor.u32 %v1227_v4, %v1223_v17 }
  0x51   : > { %v12875_v7 = vld [vmem:[#allocation2 + $0xc4] sm:$0xf]  ;;  %v10222_v24 = vld [vmem:[%s17804_s2 + $0x2] sm:$0x3]  ;;  %v10255_v26 = vld [vmem:[%s17804_s2 + $0x8] sm:$0x3] }
  0x52   : > { %17936 = vst [vmem:[#allocation20_spill] sm:$0xff] %v12875_v7  ;;  %v9965_v10 = vld [vmem:[%s12658_s12 + $0xc4] sm:$0xf]  ;;  %v1670_v25 = vand.u32 %v10222_v24, %v12730_v5  ;;  %v1898_v27 = vand.u32 %v10255_v26, %v12730_v5  ;;  %v12897_v33 = vld [vmem:[#allocation2 + $0xcc] sm:$0xf]  ;;  %vm9973_vm7 = vcmask 16384  }
  0x53   : > { %10021 = vst.msk [vmem:[#allocation2 + $0xc4] sm:$0xf] %vm9970_vm5, %v9965_v10  ;;  %v12485_v16 = vld [vmem:[#allocation2] sm:$0xff]   ;;  %17938 = vst [vmem:[#allocation22_spill] sm:$0xff] %v12897_v33  ;;  %v12899_v36 = vld [vmem:[#allocation2 + $0xd0] sm:$0xf] }
  0x54   : > { %v12879_v20 = vld [vmem:[#allocation2 + $0x4] sm:$0xf]  ;;  %17939 = vst [vmem:[#allocation23_spill] sm:$0xff] %v12899_v36  ;;  %11605 = vmatprep.subr.bf16.mxu1 %v1670_v25  ;;  %v12903_v42 = vld [vmem:[#allocation2 + $0xcc] sm:$0xe]  ;;  %11639 = vmatprep.subr.bf16.mxu0 %v1898_v27  ;;  %v17942_v51 = vmov 0 }
  0x55   : > { %17937 = vst [vmem:[#allocation21_spill] sm:$0xff] %v12879_v20  ;;  %v9917_v23 = vld [vmem:[%s12658_s12 + $0x4] sm:$0xf]  ;;  %17940 = vst [vmem:[#allocation24_spill] sm:$0xff] %v12903_v42  ;;  %v9967_v43 = vld [vmem:[%s12658_s12 + $0xcc] sm:$0xf] }
  0x56   : > { %9972 = vst.msk [vmem:[#allocation2 + $0x4] sm:$0xf] %vm9970_vm5, %v9917_v23  ;;  %v9968_v44 = vld [vmem:[%s12658_s12 + $0xd0] sm:$0xf]  ;;  %10023 = vst.msk [vmem:[#allocation2 + $0xcc] sm:$0xf] %vm9970_vm5, %v9967_v43 }
  0x57   : > { %11518 = vmatmul.mubr.msk.bf16.gmra.mxu0 %vm535_vm4, %v12867_v0  ;;  %11534 = vmatmul.mubr.msk.bf16.gmra.mxu1 %vm535_vm4, %v12873_v6  ;;  %10024 = vst.msk [vmem:[#allocation2 + $0xd0] sm:$0xf] %vm9970_vm5, %v9968_v44  ;;  %vm1184_vm6 = vsmask.f32 3328  ;;  %v12910_v49 = vld [vmem:[#allocation2 + $0x8] sm:$0x1] }
  0x58   : > { %11573 = vmatprep.mubr.msk.bf16.mxu0 %vm535_vm4, %v12759_v18  ;;  %11539 = vmatprep.mubr.msk.bf16.mxu1 %vm535_vm4, %v12485_v16  ;;  %17941 = vst [vmem:[#allocation25_spill] sm:$0xff] %v12910_v49  ;;  %vm1185_vm8 = vsmask.f32 7440  ;;  %v9918_v54 = vld [vmem:[%s12658_s12 + $0x8] sm:$0x1]  ;;  %v1229_v59 = vrot.slane %v1228_v47, 4 }
  0x59   : > { %vm12912_vm9 = vmor %vm1184_vm6, %vm1185_vm8  ;;  %v12917_v55 = vld [vmem:[#allocation2 + $0x14] sm:$0x1]  ;;  %9974 = vst.msk [vmem:[#allocation2 + $0x8] sm:$0x1] %vm9973_vm7, %v9918_v54  ;;  %v1245_v3 = vshll.u32 %v12761_v19, 16  ;;  %v1249_v4 = vshrl.u32 %v12761_v19, 16 }
  0x5a   : > { %v17943_v51 = vsel %vm12912_vm9, 4294967295, %v17942_v51  ;;  %17945 = vst [vmem:[#allocation27_spill] sm:$0xff] %v12917_v55  ;;  %v1224_v58 = vsel %vm12912_vm9, %v1219_v39, %v1223_v17  ;;  %v1231_v61 = vshll.u32 %v12917_v55, 16  ;;  %v9921_v63 = vld [vmem:[%s12658_s12 + $0x14] sm:$0x1]  ;;  %v1269_v39 = vshll.u32 %v12785_v29, 16 }
  0x5b   : > { %17944 = vst [vmem:[#allocation26_spill] sm:$0xff] %v17943_v51  ;;  %9977 = vst.msk [vmem:[#allocation2 + $0x14] sm:$0x1] %vm9973_vm7, %v9921_v63  ;;  %v12931_v11 = vld [vmem:[#allocation2 + $0x20] sm:$0x1]  ;;  %v12945_v26 = vrot.slane %v1245_v3, 5 }
  0x5c   : > { %v1233_v10 = vrot.slane %v1231_v61, 5  ;;  %17946 = vst [vmem:[#allocation28_spill] sm:$0xff] %v12931_v11  ;;  %v9924_v16 = vld [vmem:[%s12658_s12 + $0x20] sm:$0x1]  ;;  %v10273_v17 = vld [vmem:[%s17804_s2 + $0xe] sm:$0x3] }
  0x5d   : > { %9980 = vst.msk [vmem:[#allocation2 + $0x20] sm:$0x1] %vm9973_vm7, %v9924_v16  ;;  %v10307_v24 = vld [vmem:[%s17804_s2 + $0x4] sm:$0x3]  ;;  %v1251_v43 = vrot.slane %v1249_v4, 4  ;;  %v1273_v54 = vshrl.u32 %v12785_v29, 16 }
  0x5e   : > { %v1234_v23 = vsel %vm12912_vm9, %v1229_v59, %v1233_v10  ;;  %v12956_v44 = vand.u32 %v10307_v24, %v12730_v5  ;;  %v12958_v47 = vld [vmem:[#allocation2 + $0x2c] sm:$0x1]  ;;  %v1136_v63 = vld [vmem:[#allocation2 + $0x18] sm:$0xf]  ;;  %v12970_v3 = vrot.slane %v1269_v39, 5  ;;  %v1197_v16 = vshll.u32 %v12879_v20, 16 }
  0x5f   : > { %11574 = vmatmul.mubr.msk.bf16.vlgmr.msra.gmra.mxu0 %vm535_vm4, %v12783_v28  ;;  %11540 = vmatmul.mubr.msk.bf16.vlgmr.msra.gmra.mxu1 %vm535_vm4, %v12728_v2  ;;  %v12952_v2 = vand.u32 %v10273_v17, %v12730_v5  ;;  %17949 = vst [vmem:[#allocation31_spill] sm:$0xff] %v12958_v47  ;;  %v9927_v59 = vld [vmem:[%s12658_s12 + $0x2c] sm:$0x1]  ;;  %v1252_v4 = vor.u32 %v1251_v43, %v12945_v26  ;;  %v12976_v17 = vld [vmem:[#allocation2 + $0x44] sm:$0x1]  ;;  %v1207_v39 = vshll.u32 %v12910_v49, 16 }
  0x60   : > { %11640 = vmatpush3.bf16.msra.mxu0 %v1898_v27  ;;  %11577 = vmatprep.mubr.msk.bf16.mxu0 %vm535_vm4, %v12799_v34  ;;  %v12949_v27 = vcombine.low %v1224_v58, %v1234_v23  ;;  %17948 = vst [vmem:[#allocation30_spill] sm:$0xff] %v12956_v44  ;;  %9983 = vst.msk [vmem:[#allocation2 + $0x2c] sm:$0x1] %vm9973_vm7, %v9927_v59  ;;  %v9930_v58 = vld [vmem:[%s12658_s12 + $0x38] sm:$0x1]  ;;  %v1201_v59 = vshrl.u32 %v12879_v20, 16 }
  0x61   : > { %11606 = vmatpush3.bf16.msra.mxu1 %v1670_v25  ;;  %11543 = vmatprep.mubr.msk.bf16.mxu1 %vm535_vm4, %v12759_v18  ;;  %17947 = vst [vmem:[#allocation29_spill] sm:$0xff] %v12952_v2  ;;  %v1130_v25 = vld [vmem:[#allocation2] sm:$0xf]  ;;  %v12964_v18 = vld [vmem:[#allocation2 + $0x38] sm:$0x1]  ;;  %v1236_v43 = vshrl.u32 %v1136_v63, 16 }
  0x62   : > { %11673 = vmatprep.subr.bf16.mxu1 %v12952_v2  ;;  %17950 = vst [vmem:[#allocation32_spill] sm:$0xff] %v12964_v18  ;;  %11707 = vmatprep.subr.bf16.mxu0 %v12956_v44  ;;  %9986 = vst.msk [vmem:[#allocation2 + $0x38] sm:$0x1] %vm9973_vm7, %v9930_v58  ;;  %v1188_v10 = vshrl.u32 %v1130_v25, 16  ;;  %v9933_v23 = vld [vmem:[%s12658_s12 + $0x44] sm:$0x1] }
  0x63   : > { %v1191_v24 = vshll.u32 %v1130_v25, 16  ;;  %v1275_v58 = vrot.slane %v1273_v54, 4  ;;  %9989 = vst.msk [vmem:[#allocation2 + $0x44] sm:$0x1] %vm9973_vm7, %v9933_v23  ;;  %v1239_v61 = vshll.u32 %v1136_v63, 16  ;;  %v17952_v25 = vrot.slane %v12737_v8, 5 }
  0x64   : > { %v12986_v42 = vld [vmem:[#allocation2 + $0x50] sm:$0x1]  ;;  %v1139_v54 = vld [vmem:[#allocation2 + $0x24] sm:$0xf]  ;;  %v1190_v23 = vrot.slane %v1188_v10, 4  ;;  %v12999_v63 = vrot.slane %v1252_v4, 4 }
  0x65   : > { %17951 = vst [vmem:[#allocation33_spill] sm:$0xff] %v12986_v42  ;;  %v9936_v36 = vld [vmem:[%s12658_s12 + $0x50] sm:$0x1]  ;;  %v12992_v15 = vrot.slane %v17952_v25, 4  ;;  %v1293_v19 = vshll.u32 %v12801_v35, 16  ;;  %v1193_v49 = vrot.slane %v1191_v24, 5  ;;  %v1276_v20 = vor.u32 %v1275_v58, %v12970_v3 }
  0x66   : > { %9992 = vst.msk [vmem:[#allocation2 + $0x50] sm:$0x1] %vm9973_vm7, %v9936_v36  ;;  %v1203_v33 = vrot.slane %v1201_v59, 4  ;;  %v13003_v25 = vld [vmem:[#allocation2 + $0x5c] sm:$0x1]  ;;  %v1238_v62 = vrot.slane %v1236_v43, 4 }
  0x67   : > { %11578 = vmatmul.mubr.msk.bf16.gmra.mxu0 %vm535_vm4, %v12813_v40  ;;  %11544 = vmatmul.mubr.msk.bf16.gmra.mxu1 %vm535_vm4, %v12783_v28  ;;  %17953 = vst [vmem:[#allocation34_spill] sm:$0xff] %v12992_v15  ;;  %v12997_v28 = vrot.slane %v1197_v16, 5  ;;  %v9939_v7 = vld [vmem:[%s12658_s12 + $0x5c] sm:$0x1]  ;;  %v1241_v36 = vrot.slane %v1239_v61, 5  ;;  %v1260_v10 = vshrl.u32 %v1139_v54, 16 }
  0x68   : > { %11581 = vmatprep.mubr.msk.bf16.mxu0 %vm535_vm4, %v12831_v48  ;;  %11547 = vmatprep.mubr.msk.bf16.mxu1 %vm535_vm4, %v12799_v34  ;;  %v13006_v34 = vrot.slane %v1207_v39, 5  ;;  %9995 = vst.msk [vmem:[#allocation2 + $0x5c] sm:$0x1] %vm9973_vm7, %v9939_v7  ;;  %v1263_v16 = vshll.u32 %v1139_v54, 16  ;;  %v13010_v53 = vld [vmem:[#allocation2 + $0x68] sm:$0x1]  ;;  %v1194_v7 = vor.u32 %v1193_v49, %v1190_v23 }
  0x69   : > { %v9942_v24 = vld [vmem:[%s12658_s12 + $0x68] sm:$0x1]  ;;  %v1142_v59 = vld [vmem:[#allocation2 + $0x30] sm:$0xf]  ;;  %v13016_v58 = vld [vmem:[#allocation2 + $0x74] sm:$0x1]  ;;  %v1204_v61 = vor.u32 %v1203_v33, %v12997_v28 }
  0x6a   : > { %9998 = vst.msk [vmem:[#allocation2 + $0x68] sm:$0x1] %vm9973_vm7, %v9942_v24  ;;  %17954 = vst [vmem:[#allocation35_spill] sm:$0xff] %v13016_v58  ;;  %v9945_v39 = vld [vmem:[%s12658_s12 + $0x74] sm:$0x1]  ;;  %v1255_v43 = vshll.u32 %v12931_v11, 16  ;;  %v1242_v24 = vor.u32 %v1241_v36, %v1238_v62 }
  0x6b   : > { %v13023_v54 = vrot.slane %v1276_v20, 4  ;;  %10001 = vst.msk [vmem:[#allocation2 + $0x74] sm:$0x1] %vm9973_vm7, %v9945_v39  ;;  %v1262_v4 = vrot.slane %v1260_v10, 4  ;;  %v1279_v29 = vshll.u32 %v12958_v47, 16  ;;  %v13029_v2 = vrot.slane %v1293_v19, 5 }
  0x6c   : > { %v1145_v46 = vld [vmem:[#allocation2 + $0x3c] sm:$0xf]  ;;  %v1265_v33 = vrot.slane %v1263_v16, 5  ;;  %v1284_v49 = vshrl.u32 %v1142_v59, 16  ;;  %v13033_v20 = vld [vmem:[#allocation2 + $0x80] sm:$0x1] }
  0x6d   : > { %17955 = vst [vmem:[#allocation36_spill] sm:$0xff] %v13033_v20  ;;  %v9948_v23 = vld [vmem:[%s12658_s12 + $0x80] sm:$0x1]  ;;  %v1287_v39 = vshll.u32 %v1142_v59, 16  ;;  %v1297_v11 = vshrl.u32 %v12801_v35, 16  ;;  %v13041_v19 = vrot.slane %v1194_v7, 4 }
  0x6e   : > { %10004 = vst.msk [vmem:[#allocation2 + $0x80] sm:$0x1] %vm9973_vm7, %v9948_v23  ;;  %v9951_v62 = vld [vmem:[%s12658_s12 + $0x8c] sm:$0x1]  ;;  %v13043_v36 = vrot.slane %v1204_v61, 4  ;;  %v1308_v10 = vshrl.u32 %v1145_v46, 16 }
  0x6f   : > { %11582 = vmatmul.mubr.msk.bf16.gmra.mxu0 %vm535_vm4, %v12848_v56  ;;  %11548 = vmatmul.mubr.msk.bf16.gmra.mxu1 %vm535_vm4, %v12813_v40  ;;  %v13038_v40 = vld [vmem:[#allocation2 + $0x8c] sm:$0x1]  ;;  %v13047_v16 = vrot.slane %v1242_v24, 4  ;;  %v13049_v59 = vrot.slane %v1255_v43, 5  ;;  %v1311_v35 = vshll.u32 %v1145_v46, 16  ;;  %v1317_v23 = vshll.u32 %v12815_v41, 16 }
  0x70   : > { %11585 = vmatprep.mubr.msk.bf16.mxu0 %vm535_vm4, %v12867_v0  ;;  %11551 = vmatprep.mubr.msk.bf16.mxu1 %vm535_vm4, %v12831_v48  ;;  %v1303_v48 = vshll.u32 %v12964_v18, 16  ;;  %10007 = vst.msk [vmem:[#allocation2 + $0x8c] sm:$0x1] %vm9973_vm7, %v9951_v62  ;;  %v1148_v47 = vld [vmem:[#allocation2 + $0x48] sm:$0xf]  ;;  %v13052_v44 = vrot.slane %v1279_v29, 5  ;;  %v1266_v62 = vor.u32 %v1265_v33, %v1262_v4 }
  0x71   : > { %v1321_v7 = vshrl.u32 %v12815_v41, 16  ;;  %v13055_v61 = vld [vmem:[#allocation2 + $0x98] sm:$0x1]  ;;  %v1286_v24 = vrot.slane %v1284_v49, 4  ;;  %v1289_v18 = vrot.slane %v1287_v39, 5  ;;  %v1299_v43 = vrot.slane %v1297_v11, 4 }
  0x72   : > { %v9954_v5 = vld [vmem:[%s12658_s12 + $0x98] sm:$0x1]  ;;  %v13063_v29 = vrot.slane %v1303_v48, 5  ;;  %v1310_v46 = vrot.slane %v1308_v10, 4  ;;  %v13065_v41 = vld [vmem:[#allocation2 + $0xa4] sm:$0x1] }
  0x73   : > { %10010 = vst.msk [vmem:[#allocation2 + $0x98] sm:$0x1] %vm9973_vm7, %v9954_v5  ;;  %17956 = vst [vmem:[#allocation37_spill] sm:$0xff] %v13065_v41  ;;  %v9957_v15 = vld [vmem:[%s12658_s12 + $0xa4] sm:$0x1]  ;;  %v1313_v55 = vrot.slane %v1311_v35, 5  ;;  %v1290_v41 = vor.u32 %v1289_v18, %v1286_v24 }
  0x74   : > { %v13070_v4 = vrot.slane %v1317_v23, 5  ;;  %v1332_v33 = vshrl.u32 %v1148_v47, 16  ;;  %v1404_v11 = vshrl.u32 %v12747_v13, 16  ;;  %10013 = vst.msk [vmem:[#allocation2 + $0xa4] sm:$0x1] %vm9973_vm7, %v9957_v15  ;;  %v1323_v5 = vrot.slane %v1321_v7, 4 }
  0x75   : > { %v1407_v49 = vshll.u32 %v12747_v13, 16  ;;  %v13077_v39 = vld [vmem:[#allocation2 + $0xb0] sm:$0x1]  ;;  %v13080_v10 = vrot.slane %v1266_v62, 4  ;;  %v1335_v35 = vshll.u32 %v1148_v47, 16  ;;  %v1413_v23 = vshll.u32 %v12749_v14, 16 }
  0x76   : > { %17957 = vst [vmem:[#allocation38_spill] sm:$0xff] %v13077_v39  ;;  %v9960_v48 = vld [vmem:[%s12658_s12 + $0xb0] sm:$0x1]  ;;  %v1300_v15 = vor.u32 %v1299_v43, %v13029_v2  ;;  %v13086_v7 = vld [vmem:[#allocation2 + $0xbc] sm:$0x1]  ;;  %v1314_v39 = vor.u32 %v1313_v55, %v1310_v46  ;;  %v1327_v62 = vshll.u32 %v12976_v17, 16  ;;  %v1324_v18 = vor.u32 %v1323_v5, %v13070_v4 }
  0x77   : > { %11586 = vmatmul.mubr.msk.bf16.gmra.mxu0 %vm535_vm4, %v12744_v12  ;;  %11552 = vmatmul.mubr.msk.bf16.gmra.mxu1 %vm535_vm4, %v12848_v56  ;;  %v1406_v56 = vrot.slane %v1404_v11, 4  ;;  %10016 = vst.msk [vmem:[#allocation2 + $0xb0] sm:$0x1] %vm9973_vm7, %v9960_v48  ;;  %v1409_v9 = vrot.slane %v1407_v49, 5  ;;  %17958 = vst [vmem:[#allocation39_spill] sm:$0xff] %v13086_v7  ;;  %v1415_v47 = vrot.slane %v1413_v23, 5 }
  0x78   : > { %11589 = vmatprep.mubr.msk.bf16.mxu0 %vm535_vm4, %v12767_v21  ;;  %11555 = vmatprep.mubr.msk.bf16.mxu1 %vm535_vm4, %v12867_v0  ;;  %v1417_v0 = vshrl.u32 %v12749_v14, 16  ;;  %v9963_v13 = vld [vmem:[%s12658_s12 + $0xbc] sm:$0x1]  ;;  %v13090_v8 = vld [vmem:[#allocation2 + $0x54] sm:$0xf]  ;;  %v1423_v11 = vshll.u32 %v13016_v58, 16 }
  0x79   : > { %10019 = vst.msk [vmem:[#allocation2 + $0xbc] sm:$0x1] %vm9973_vm7, %v9963_v13  ;;  %v13095_v24 = vrot.slane %v1332_v33, 4  ;;  %v1410_v43 = vor.u32 %v1409_v9, %v1406_v56  ;;  %v13097_v48 = vld [vmem:[#allocation2 + $0xc8] sm:$0x1]  ;;  %v1337_v55 = vrot.slane %v1335_v35, 5 }
  0x7a   : > { %v1419_v49 = vrot.slane %v1417_v0, 4  ;;  %17959 = vst [vmem:[#allocation40_spill] sm:$0xff] %v13097_v48  ;;  %v9966_v14 = vld [vmem:[%s12658_s12 + $0xc8] sm:$0x1]  ;;  %v1341_v46 = vshll.u32 %v12836_v50, 16  ;;  %v1345_v23 = vshrl.u32 %v12836_v50, 16 }
  0x7b   : > { %v1351_v13 = vshll.u32 %v12986_v42, 16  ;;  %10022 = vst.msk [vmem:[#allocation2 + $0xc8] sm:$0x1] %vm9973_vm7, %v9966_v14  ;;  %v1411_v9 = vrot.slane %v1410_v43, 4  ;;  %v1425_v5 = vrot.slane %v1423_v11, 5  ;;  %v13113_v35 = vrot.slane %v1290_v41, 4 }
  0x7c   : > { %v1420_v33 = vor.u32 %v1419_v49, %v1415_v47  ;;  %v13108_v56 = vld [vmem:[#allocation2] sm:$0xe]  ;;  %v13115_v58 = vrot.slane %v1300_v15, 4  ;;  %v13117_v48 = vrot.slane %v1327_v62, 5  ;;  %v1356_v14 = vshrl.u32 %v13090_v8, 16 }
  0x7d   : > { %17960 = vst [vmem:[#allocation41_spill] sm:$0xff] %v13108_v56  ;;  %v9916_v0 = vld [vmem:[%s12658_s12] sm:$0xf]  ;;  %v13123_v11 = vrot.slane %v1314_v39, 4  ;;  %v13125_v43 = vrot.slane %v1324_v18, 4  ;;  %v13129_v15 = vrot.slane %v1341_v46, 5  ;;  %v1338_v7 = vor.u32 %v1337_v55, %v13095_v24 }
  0x7e   : > { %9971 = vst.msk [vmem:[#allocation2] sm:$0xf] %vm9970_vm5, %v9916_v0  ;;  %v1154_v49 = vld [vmem:[#allocation2 + $0x60] sm:$0xf]  ;;  %v1421_v41 = vrot.slane %v1420_v33, 4  ;;  %v13131_v62 = vrot.slane %v1345_v23, 4 }
  0x7f   : > { %11590 = vmatmul.mubr.msk.bf16.gmra.mxu0 %vm535_vm4, %v12789_v31  ;;  %11556 = vmatmul.mubr.msk.bf16.gmra.mxu1 %vm535_vm4, %v12744_v12  ;;  %v1416_v12 = vsel %vm12912_vm9, %v1411_v9, %v1415_v47  ;;  %v13133_v56 = vld [vmem:[#allocation2 + $0x18] sm:$0xe]  ;;  %v1359_v39 = vshll.u32 %v13090_v8, 16  ;;  %v13143_v47 = vld [vmem:[#allocation2 + $0x24] sm:$0xe]  ;;  %v13146_v23 = vrot.slane %v1356_v14, 4  ;;  %v1200_v14 = vsel %vm12912_vm9, %v13041_v19, %v12997_v28 }
  0x80   : > { %11593 = vmatprep.mubr.msk.bf16.mxu0 %vm535_vm4, %v12805_v37  ;;  %11559 = vmatprep.mubr.msk.bf16.mxu1 %vm535_vm4, %v12767_v21  ;;  %17961 = vst [vmem:[#allocation42_spill] sm:$0xff] %v13133_v56  ;;  %v9922_v0 = vld [vmem:[%s12658_s12 + $0x18] sm:$0xf]  ;;  %v13137_v21 = vrot.slane %v1351_v13, 5  ;;  %v1426_v18 = vsel %vm12912_vm9, %v1421_v41, %v1425_v5  ;;  %v9925_v46 = vld [vmem:[%s12658_s12 + $0x24] sm:$0xf] }
  0x81   : > { %9978 = vst.msk [vmem:[#allocation2 + $0x18] sm:$0xf] %vm9970_vm5, %v9922_v0  ;;  %v1365_v9 = vshll.u32 %v12850_v57, 16  ;;  %v1369_v24 = vshrl.u32 %v12850_v57, 16  ;;  %v13150_v55 = vcombine.low %v1416_v12, %v1426_v18  ;;  %v1160_v13 = vld [vmem:[#allocation2 + $0x78] sm:$0xf]  ;;  %v1210_v12 = vsel %vm12912_vm9, %v13043_v36, %v13006_v34 }
  0x82   : > { %9981 = vst.msk [vmem:[#allocation2 + $0x24] sm:$0xf] %vm9970_vm5, %v9925_v46  ;;  %v1380_v8 = vshrl.u32 %v1154_v49, 16  ;;  %v1383_v33 = vshll.u32 %v1154_v49, 16  ;;  %v13153_v5 = vld [vmem:[#allocation2 + $0x30] sm:$0xe] }
  0x83   : > { %17962 = vst [vmem:[#allocation43_spill] sm:$0xff] %v13150_v55  ;;  %v9928_v41 = vld [vmem:[%s12658_s12 + $0x30] sm:$0xf]  ;;  %v1389_v0 = vshll.u32 %v12869_v1, 16  ;;  %v1393_v49 = vshrl.u32 %v12869_v1, 16  ;;  %v1428_v19 = vshrl.u32 %v1160_v13, 16 }
  0x84   : > { %9984 = vst.msk [vmem:[#allocation2 + $0x30] sm:$0xf] %vm9970_vm5, %v9928_v41  ;;  %v13169_v18 = vld [vmem:[#allocation2 + $0x3c] sm:$0xe]  ;;  %v1431_v56 = vshll.u32 %v1160_v13, 16  ;;  %v13184_v41 = vrot.slane %v1338_v7, 4  ;;  %v13193_v13 = vcombine.low %v1200_v14, %v1210_v12 }
  0x85   : > { %v9931_v46 = vld [vmem:[%s12658_s12 + $0x3c] sm:$0xf]  ;;  %v13179_v34 = vld [vmem:[#allocation2 + $0x48] sm:$0xe]  ;;  %v13186_v55 = vrot.slane %v1359_v39, 5  ;;  %v1437_v1 = vshll.u32 %v12769_v22, 16 }
  0x86   : > { %9987 = vst.msk [vmem:[#allocation2 + $0x3c] sm:$0xf] %vm9970_vm5, %v9931_v46  ;;  %v9934_v36 = vld [vmem:[%s12658_s12 + $0x48] sm:$0xf]  ;;  %v1441_v57 = vshrl.u32 %v12769_v22, 16  ;;  %v13199_v7 = vrot.slane %v1365_v9, 5 }
  0x87   : > { %11594 = vmatmul.mubr.msk.bf16.gmra.mxu0 %vm535_vm4, %v12825_v45  ;;  %11560 = vmatmul.mubr.msk.bf16.gmra.mxu1 %vm535_vm4, %v12789_v31  ;;  %v1163_v28 = vld [vmem:[#allocation2 + $0x84] sm:$0xf]  ;;  %9990 = vst.msk [vmem:[#allocation2 + $0x48] sm:$0xf] %vm9970_vm5, %v9934_v36  ;;  %v1371_v39 = vrot.slane %v1369_v24, 4  ;;  %v1382_v14 = vrot.slane %v1380_v8, 4 }
  0x88   : > { %11597 = vmatprep.mubr.msk.bf16.mxu0 %vm535_vm4, %v12840_v52  ;;  %11563 = vmatprep.mubr.msk.bf16.mxu1 %vm535_vm4, %v12805_v37  ;;  %v13201_v46 = vld [vmem:[#allocation2 + $0x54] sm:$0xe]  ;;  %v1348_v37 = vor.u32 %v13131_v62, %v13129_v15  ;;  %v1385_v12 = vrot.slane %v1383_v33, 5  ;;  %v13211_v31 = vld [vmem:[#allocation2 + $0x60] sm:$0xe]  ;;  %v13214_v24 = vrot.slane %v1389_v0, 5 }
  0x89   : > { %17963 = vst [vmem:[#allocation44_spill] sm:$0xff] %v13201_v46  ;;  %v9937_v22 = vld [vmem:[%s12658_s12 + $0x54] sm:$0xf]  ;;  %v9940_v9 = vld [vmem:[%s12658_s12 + $0x60] sm:$0xf]  ;;  %v1395_v46 = vrot.slane %v1393_v49, 4 }
  0x8a   : > { %9993 = vst.msk [vmem:[#allocation2 + $0x54] sm:$0xf] %vm9970_vm5, %v9937_v22  ;;  %v1430_v42 = vrot.slane %v1428_v19, 4  ;;  %v1433_v50 = vrot.slane %v1431_v56, 5  ;;  %9996 = vst.msk [vmem:[#allocation2 + $0x60] sm:$0xf] %vm9970_vm5, %v9940_v9  ;;  %v1372_v19 = vor.u32 %v1371_v39, %v13199_v7 }
  0x8b   : > { %v13225_v8 = vrot.slane %v1437_v1, 5  ;;  %v1443_v33 = vrot.slane %v1441_v57, 4  ;;  %v13227_v0 = vld [vmem:[#allocation2 + $0x78] sm:$0xe]  ;;  %v1452_v9 = vshrl.u32 %v1163_v28, 16  ;;  %v1455_v62 = vshll.u32 %v1163_v28, 16 }
  0x8c   : > { %17964 = vst [vmem:[#allocation45_spill] sm:$0xff] %v13227_v0  ;;  %v9946_v49 = vld [vmem:[%s12658_s12 + $0x78] sm:$0xf]  ;;  %v13239_v1 = vld [vmem:[#allocation2 + $0x84] sm:$0xe]  ;;  %v1349_v22 = vrot.slane %v1348_v37, 4  ;;  %v1330_v28 = vsel %vm12912_vm9, %v13125_v43, %v13117_v48  ;;  %v1344_v37 = vsel %vm12912_vm9, %v13184_v41, %v13129_v15  ;;  %v1396_v48 = vor.u32 %v1395_v46, %v13214_v24 }
  0x8d   : > { %10002 = vst.msk [vmem:[#allocation2 + $0x78] sm:$0xf] %vm9970_vm5, %v9946_v49  ;;  %17965 = vst [vmem:[#allocation46_spill] sm:$0xff] %v13239_v1  ;;  %v9949_v57 = vld [vmem:[%s12658_s12 + $0x84] sm:$0xf]  ;;  %v1375_v36 = vshll.u32 %v13003_v25, 16  ;;  %v1362_v49 = vor.u32 %v13186_v55, %v13146_v23  ;;  %v1386_v1 = vor.u32 %v1385_v12, %v1382_v14  ;;  %v1434_v23 = vor.u32 %v1433_v50, %v1430_v42 }
  0x8e   : > { %v1461_v56 = vshll.u32 %v12791_v32, 16  ;;  %v1465_v0 = vshrl.u32 %v12791_v32, 16  ;;  %10005 = vst.msk [vmem:[#allocation2 + $0x84] sm:$0xf] %vm9970_vm5, %v9949_v57  ;;  %v1166_v32 = vld [vmem:[#allocation2 + $0x90] sm:$0xf]  ;;  %v1444_v55 = vor.u32 %v1443_v33, %v13225_v8  ;;  %v1354_v46 = vsel %vm12912_vm9, %v1349_v22, %v13137_v21 }
  0x8f   : > { %11598 = vmatmul.mubr.msk.bf16.gmra.mxu0 %vm535_vm4, %v12854_v60  ;;  %v13261_v57 = vld [vmem:[#allocation2 + $0x90] sm:$0xe]  ;;  %11564 = vmatmul.mubr.msk.bf16.gmra.mxu1 %vm535_vm4, %v12825_v45  ;;  %v1399_v43 = vshll.u32 %v13010_v53, 16  ;;  %v1447_v15 = vshll.u32 %v13033_v20, 16  ;;  %v13269_v41 = vld [vmem:[#allocation2 + $0x9c] sm:$0xf] }
  0x90   : > { %11601 = vmatprep.mubr.msk.bf16.mxu0 %vm535_vm4, %v12873_v6  ;;  %17966 = vst [vmem:[#allocation47_spill] sm:$0xff] %v13261_v57  ;;  %v9952_v6 = vld [vmem:[%s12658_s12 + $0x90] sm:$0xf]  ;;  %11567 = vmatprep.mubr.msk.bf16.mxu1 %vm535_vm4, %v12840_v52  ;;  %v1454_v39 = vrot.slane %v1452_v9, 4  ;;  %v1457_v57 = vrot.slane %v1455_v62, 5  ;;  %v13281_v12 = vrot.slane %v1375_v36, 5 }
  0x91   : > { %10008 = vst.msk [vmem:[#allocation2 + $0x90] sm:$0xf] %vm9970_vm5, %v9952_v6  ;;  %v13275_v45 = vld [vmem:[#allocation2 + $0x9c] sm:$0xe]  ;;  %v13283_v20 = vrot.slane %v1461_v56, 5  ;;  %v1467_v6 = vrot.slane %v1465_v0, 4 }
  0x92   : > { %17967 = vst [vmem:[#allocation48_spill] sm:$0xff] %v13275_v45  ;;  %v9955_v14 = vld [vmem:[%s12658_s12 + $0x9c] sm:$0xf]  ;;  %v13286_v52 = vrot.slane %v1362_v49, 4  ;;  %v13288_v50 = vrot.slane %v1372_v19, 4  ;;  %v1476_v42 = vshrl.u32 %v1166_v32, 16  ;;  %v1458_v56 = vor.u32 %v1457_v57, %v1454_v39 }
  0x93   : > { %10011 = vst.msk [vmem:[#allocation2 + $0x9c] sm:$0xf] %vm9970_vm5, %v9955_v14  ;;  %v1479_v62 = vshll.u32 %v1166_v32, 16  ;;  %v13290_v33 = vrot.slane %v1386_v1, 4  ;;  %v13292_v9 = vrot.slane %v1396_v48, 4  ;;  %v13294_v45 = vrot.slane %v1399_v43, 5 }
  0x94   : > { %v13296_v21 = vrot.slane %v1447_v15, 5  ;;  %v13298_v36 = vld [vmem:[#allocation2 + $0xa8] sm:$0xf]  ;;  %v13300_v22 = vrot.slane %v1434_v23, 4  ;;  %v13302_v0 = vrot.slane %v1444_v55, 4  ;;  %v1471_v19 = vshll.u32 %v13038_v40, 16 }
  0x95   : > { %v1468_v32 = vor.u32 %v1467_v6, %v13283_v20  ;;  %v13308_v1 = vld [vmem:[#allocation2 + $0xb4] sm:$0xf]  ;;  %v13310_v49 = vld [vmem:[#allocation2 + $0xa8] sm:$0xe]  ;;  %v17968_v57 = vsel %vm12912_vm9, %v12999_v63, %v13049_v59  ;;  %v17970_v15 = vsel %vm12912_vm9, %v13023_v54, %v13052_v44  ;;  %v17971_v23 = vsel %vm12912_vm9, %v13080_v10, %v12970_v3  ;;  %s15126_s18 = scalar_select %p312_p6, 1.0, 0.0 }
  0x96   : > { %v9958_v48 = vld [vmem:[%s12658_s12 + $0xa8] sm:$0xf]  ;;  %v13337_v55 = vcombine.low %v17971_v23, %v17970_v15  ;;  %v1478_v63 = vrot.slane %v1476_v42, 4  ;;  %v1481_v59 = vrot.slane %v1479_v62, 5  ;;  %v13340_v39 = vld [vmem:[#allocation2 + $0xd4] sm:$0x1]  ;;  %v17973_v44 = vsel %vm12912_vm9, %v13113_v35, %v13029_v2 }
  0x97   : > { %11602 = vmatmul.mubr.msk.bf16.gmra.mxu0 %vm535_vm4, %v12895_v30  ;;  %v17969_v30 = vsel %vm12912_vm9, %v13047_v16, %v12945_v26  ;;  %10014 = vst.msk [vmem:[#allocation2 + $0xa8] sm:$0xf] %vm9970_vm5, %v9958_v48  ;;  %11568 = vmatmul.mubr.msk.bf16.gmra.mxu1 %vm535_vm4, %v12854_v60  ;;  %v17972_v26 = vsel %vm12912_vm9, %v13115_v58, %v13063_v29  ;;  %v9969_v29 = vld [vmem:[%s12658_s12 + $0xd4] sm:$0x1]  ;;  %v13370_v10 = vld [vmem:[#allocation2 + $0xb4] sm:$0xe]  ;;  %p407_p9 = scmp.ne.f32.partialorder %s15126_s18, %s15126_s18 }
  0x98   : > { %11641 = vmatprep.mubr.msk.bf16.mxu0 %vm535_vm4, %v12949_v27  ;;  %v13325_v43 = vcombine.low %v17969_v30, %v17968_v57  ;;  %v13354_v3 = vcombine.low %v17973_v44, %v17972_v26  ;;  %v17974_v54 = vsel %vm12912_vm9, %v13123_v11, %v13070_v4  ;;  %v13363_v60 = vcombine.low %v1344_v37, %v1354_v46  ;;  %v9961_v2 = vld [vmem:[%s12658_s12 + $0xb4] sm:$0xf]  ;;  %v10360_v42 = vld [vmem:[%s17804_s2 + $0x10] sm:$0x3]  ;;  %v17982_v48 = vld [vmem:[#allocation27_spill] sm:$0xff]  ;;  %s408_s21 = sshrl.u32 %s15126_s18, 16 }
  0x99   : > { %v13361_v16 = vcombine.low %v17974_v54, %v1330_v28  ;;  %v1368_v58 = vsel %vm12912_vm9, %v13286_v52, %v13199_v7  ;;  %11607 = vmatprep.mubr.msk.bf16.mxu1 %vm535_vm4, %v13193_v13  ;;  %v1459_v35 = vrot.slane %v1458_v56, 4  ;;  %v1485_v14 = vshll.u32 %v12809_v38, 16  ;;  %v10341_v28 = vld [vmem:[%s17804_s2 + $0xa] sm:$0x3]  ;;  %10025 = vst.msk [vmem:[#allocation2 + $0xd4] sm:$0x1] %vm9973_vm7, %v9969_v29 }
  0x9a   : > { %v1489_v4 = vshrl.u32 %v12809_v38, 16  ;;  %v1495_v11 = vshll.u32 %v13055_v61, 16  ;;  %10017 = vst.msk [vmem:[#allocation2 + $0xb4] sm:$0xf] %vm9970_vm5, %v9961_v2  ;;  %v1469_v7 = vrot.slane %v1468_v32, 4  ;;  %v1473_v37 = vrot.slane %v1471_v19, 5 }
  0x9b   : > { %v1500_v46 = vshrl.u32 %v13269_v41, 16  ;;  %v1503_v13 = vshll.u32 %v13269_v41, 16  ;;  %v1378_v6 = vsel %vm12912_vm9, %v13288_v50, %v13281_v12  ;;  %v1482_v52 = vor.u32 %v1481_v59, %v1478_v63  ;;  %v17985_v15 = vld [vmem:[#allocation3_spill] sm:$0xff]  ;;  %v17986_v63 = vld [vmem:[#allocation30_spill] sm:$0xff]  ;;  %s15166_s19 = sand.u32 1, %s408_s21 }
  0x9c   : > { %vm2387_vm10 = vcmask 1042432   ;;  %vm2388_vm11 = vcmask 1046532   ;;  %v1392_v62 = vsel %vm12912_vm9, %v13290_v33, %v13214_v24  ;;  %v1402_v41 = vsel %vm12912_vm9, %v13292_v9, %v13294_v45  ;;  %v17987_v2 = vld [vmem:[#allocation14_spill] sm:$0xff]  ;;  %s410_s20 = sadd.s32 32767, %s15166_s19 }
  0x9d   : > { %v1440_v12 = vsel %vm12912_vm9, %v13300_v22, %v13225_v8  ;;  %v1450_v50 = vsel %vm12912_vm9, %v13302_v0, %v13296_v21  ;;  %vm13408_vm12 = vmor %vm2387_vm10, %vm2388_vm11  ;;  %v17975_v56 = vmov 0  ;;  %v1464_v24 = vsel %vm12912_vm9, %v1459_v35, %v13283_v20  ;;  %v17978_v22 = vld [vmem:[#allocation4_spill] sm:$0xff]  ;;  %v17980_v0 = vld [vmem:[#allocation5_spill] sm:$0xff]  ;;  %s15200_s28 = sadd.s32 %s410_s20, %s15126_s18 }
  0x9e   : > { %v17976_v56 = vsel %vm13408_vm12, 4294967295, %v17975_v56  ;;  %v13415_v33 = vrot.slane %v1485_v14, 5  ;;  %v1491_v45 = vrot.slane %v1489_v4, 4  ;;  %v13417_v9 = vrot.slane %v1495_v11, 5  ;;  %v17984_v20 = vld [vmem:[#allocation34_spill] sm:$0xff]  ;;  %v17988_v11 = vld [vmem:[#allocation29_spill] sm:$0xff] }
  0x9f   : > { %17977 = vst [vmem:[#allocation49_spill] sm:$0xff] %v17976_v56  ;;  %11642 = vmatmul.mubr.msk.bf16.vlgmr.msra.gmra.mxu0 %vm535_vm4, %v13325_v43  ;;  %v13421_v8 = vrot.slane %v1500_v46, 4  ;;  %v17979_v21 = vrot.slane %v17978_v22, 5  ;;  %v17981_v19 = vrot.slane %v17980_v0, 9  ;;  %v17983_v57 = vrot.slane %v17982_v48, 5  ;;  %11608 = vmatmul.mubr.msk.bf16.vlgmr.msra.gmra.mxu1 %vm535_vm4, %v12949_v27  ;;  %v17992_v22 = vld [vmem:[#allocation12_spill] sm:$0xff] }
  0xa0   : > { %v13435_v23 = vand.u32 %v10341_v28, %v17985_v15  ;;  %11708 = vmatpush3.bf16.msra.mxu0 %v17986_v63  ;;  %11645 = vmatprep.mubr.msk.bf16.mxu0 %vm535_vm4, %v13337_v55  ;;  %v1474_v59 = vsel %vm12912_vm9, %v1469_v7, %v1473_v37  ;;  %v13442_v26 = vrot.slane %v1482_v52, 4  ;;  %v13444_v44 = vrot.slane %v1503_v13, 5  ;;  %v17989_v37 = vld [vmem:[#allocation37_spill] sm:$0xff]  ;;  %v17990_v52 = vld [vmem:[#allocation10_spill] sm:$0xff]  ;;  %v17993_v0 = vld [vmem:[#allocation32_spill] sm:$0xff]  ;;  %s412_s29 = sand.u32 4294901760, %s15200_s28 }
  0xa1   : > { %v2400_v32 = vsel %vm13408_vm12, %v17981_v19, %v17979_v21  ;;  %v2403_v30 = vsel %vm13408_vm12, %v17984_v20, %v17983_v57  ;;  %v13450_v29 = vcombine.low %v1368_v58, %v1378_v6  ;;  %v1509_v35 = vshll.u32 %v17987_v2, 16  ;;  %11674 = vmatpush3.bf16.msra.mxu1 %v17988_v11  ;;  %11611 = vmatprep.mubr.msk.bf16.mxu1 %vm535_vm4, %v13325_v43  ;;  %s18399_s29 = smov (%p407_p9, %s412_s29), 2143289344 }
  0xa2   : > { %v13446_v54 = vcombine.low %v2400_v32, %v2403_v30  ;;  %v1513_v14 = vshrl.u32 %v17987_v2, 16  ;;  %v13455_v4 = vand.u32 %v10360_v42, %v17985_v15  ;;  %v13460_v28 = vcombine.low %v1392_v62, %v1402_v41  ;;  %11741 = vmatprep.subr.bf16.mxu1 %v13435_v23  ;;  %v17991_v62 = vld [vmem:[#allocation31_spill] sm:$0xff]  ;;  %s415_s30 = sshrl.u32 %s18399_s29, 16 }
  0xa3   : > { %v1492_v7 = vor.u32 %v1491_v45, %v13415_v33  ;;  %v1519_v27 = vshll.u32 %v17989_v37, 16  ;;  %v10294_v58 = vrot.slane %v13143_v47, 9  ;;  %v13465_v46 = vcombine.low %v1440_v12, %v1450_v50  ;;  %s6122_s7 = sshll.u32 %s415_s30, 16 }
  0xa4   : > { %v13467_v13 = vcombine.low %v1464_v24, %v1474_v59  ;;  %v1524_v6 = vshrl.u32 %v13298_v36, 16  ;;  %11775 = vmatprep.subr.bf16.mxu0 %v13455_v4  ;;  %v2413_v42 = vrot.slane %v17990_v52, 5  ;;  %v2416_v41 = vrot.slane %v17991_v62, 5  ;;  %v17995_v59 = vld [vmem:[#allocation15_spill] sm:$0xff]  ;;  %s6123_s8 = sor.u32 %s6122_s7, %s415_s30 }
  0xa5   : > { %v10295_v45 = vrot.slane %v13153_v5, 9  ;;  %v2420_v21 = vrot.slane %v17992_v22, 5  ;;  %v2423_v47 = vrot.slane %v17993_v0, 5  ;;  %v1506_v12 = vor.u32 %v13444_v44, %v13421_v8  ;;  %v17994_v5 = vld [vmem:[#allocation13_spill] sm:$0xff] }
  0xa6   : > { %v2414_v50 = vsel %vm13408_vm12, %v10294_v58, %v2413_v42  ;;  %v2415_v24 = vrot.slane %v2413_v42, 4  ;;  %v10296_v19 = vrot.slane %v13169_v18, 9  ;;  %v13482_v32 = vrot.slane %v1492_v7, 4  ;;  %v17996_v42 = vld [vmem:[#allocation33_spill] sm:$0xff] }
  0xa7   : > { %v2421_v48 = vsel %vm13408_vm12, %v10295_v45, %v2420_v21  ;;  %v2422_v57 = vrot.slane %v2420_v21, 4  ;;  %v2427_v20 = vrot.slane %v17994_v5, 5  ;;  %11646 = vmatmul.mubr.msk.bf16.gmra.mxu0 %vm535_vm4, %v13354_v3  ;;  %v2430_v30 = vrot.slane %v12976_v17, 5  ;;  %11612 = vmatmul.mubr.msk.bf16.gmra.mxu1 %vm535_vm4, %v13337_v55  ;;  %v17997_v45 = vld [vmem:[#allocation44_spill] sm:$0xff]  ;;  %v17998_v21 = vld [vmem:[#allocation17_spill] sm:$0xff] }
  0xa8   : > { %v2417_v8 = vsel %vm13408_vm12, %v2415_v24, %v2416_v41  ;;  %v10297_v63 = vrot.slane %v13179_v34, 9  ;;  %v2434_v18 = vrot.slane %v17995_v59, 5  ;;  %11649 = vmatprep.mubr.msk.bf16.mxu0 %vm535_vm4, %v13361_v16  ;;  %v2437_v62 = vrot.slane %v17996_v42, 5  ;;  %11615 = vmatprep.mubr.msk.bf16.mxu1 %vm535_vm4, %v13354_v3 }
  0xa9   : > { %v13496_v44 = vcombine.low %v2414_v50, %v2417_v8  ;;  %v2424_v11 = vsel %vm13408_vm12, %v2422_v57, %v2423_v47  ;;  %v2428_v7 = vsel %vm13408_vm12, %v10296_v19, %v2427_v20  ;;  %v2429_v58 = vrot.slane %v2427_v20, 4 }
  0xaa   : > { %v13504_v17 = vcombine.low %v2421_v48, %v2424_v11  ;;  %v2435_v34 = vsel %vm13408_vm12, %v10297_v63, %v2434_v18  ;;  %v2436_v52 = vrot.slane %v2434_v18, 4  ;;  %v10298_v22 = vrot.slane %v17997_v45, 9  ;;  %v17999_v48 = vld [vmem:[#allocation19_spill] sm:$0xff] }
  0xab   : > { %v2431_v41 = vsel %vm13408_vm12, %v2429_v58, %v2430_v30  ;;  %v2441_v0 = vrot.slane %v17998_v21, 5  ;;  %v2444_v47 = vrot.slane %v13003_v25, 5  ;;  %v10299_v19 = vrot.slane %v13211_v31, 9  ;;  %v18003_v21 = vld [vmem:[#allocation36_spill] sm:$0xff] }
  0xac   : > { %v13516_v50 = vcombine.low %v2428_v7, %v2431_v41  ;;  %v2438_v24 = vsel %vm13408_vm12, %v2436_v52, %v2437_v62  ;;  %v2448_v57 = vrot.slane %v17999_v48, 5  ;;  %v2451_v30 = vrot.slane %v13010_v53, 5  ;;  %v18000_v7 = vld [vmem:[#allocation45_spill] sm:$0xff] }
  0xad   : > { %v13522_v5 = vcombine.low %v2435_v34, %v2438_v24  ;;  %v2442_v20 = vsel %vm13408_vm12, %v10298_v22, %v2441_v0  ;;  %v2443_v8 = vrot.slane %v2441_v0, 4  ;;  %v13527_v63 = vrot.slane %v1509_v35, 5  ;;  %v18001_v34 = vld [vmem:[#allocation9_spill] sm:$0xff]  ;;  %v18002_v35 = vld [vmem:[#allocation16_spill] sm:$0xff] }
  0xae   : > { %v1527_v25 = vshll.u32 %v13298_v36, 16  ;;  %v2449_v59 = vsel %vm13408_vm12, %v10299_v19, %v2448_v57  ;;  %v2450_v18 = vrot.slane %v2448_v57, 4  ;;  %v1515_v11 = vrot.slane %v1513_v14, 4  ;;  %v18005_v19 = vld [vmem:[#allocation11_spill] sm:$0xff] }
  0xaf   : > { %v2445_v31 = vsel %vm13408_vm12, %v2443_v8, %v2444_v47  ;;  %v10301_v58 = vrot.slane %v18000_v7, 9  ;;  %v2462_v52 = vrot.slane %v18001_v34, 5  ;;  %11650 = vmatmul.mubr.msk.bf16.gmra.mxu0 %vm535_vm4, %v13363_v60  ;;  %v13538_v53 = vrot.slane %v1506_v12, 4  ;;  %11616 = vmatmul.mubr.msk.bf16.gmra.mxu1 %vm535_vm4, %v13361_v16  ;;  %v18004_v47 = vld [vmem:[#allocation46_spill] sm:$0xff]  ;;  %v18011_v36 = vld [vmem:[#allocation39_spill] sm:$0xff] }
  0xb0   : > { %v1533_v42 = vshll.u32 %v18002_v35, 16  ;;  %v13541_v62 = vcombine.low %v2442_v20, %v2445_v31  ;;  %v2452_v41 = vsel %vm13408_vm12, %v2450_v18, %v2451_v30  ;;  %11653 = vmatprep.mubr.msk.bf16.mxu0 %vm535_vm4, %v13450_v29  ;;  %v2465_v0 = vrot.slane %v18003_v21, 5  ;;  %11619 = vmatprep.mubr.msk.bf16.mxu1 %vm535_vm4, %v13363_v60  ;;  %v18006_v30 = vld [vmem:[#allocation47_spill] sm:$0xff] }
  0xb1   : > { %v13547_v14 = vcombine.low %v2449_v59, %v2452_v41  ;;  %v2463_v45 = vsel %vm13408_vm12, %v10301_v58, %v2462_v52  ;;  %v2464_v22 = vrot.slane %v2462_v52, 4  ;;  %v1537_v12 = vshrl.u32 %v18002_v35, 16 }
  0xb2   : > { %v10302_v24 = vrot.slane %v18004_v47, 9  ;;  %v2469_v48 = vrot.slane %v18005_v19, 5  ;;  %v2472_v57 = vrot.slane %v13038_v40, 5  ;;  %v1516_v20 = vor.u32 %v1515_v11, %v13527_v63  ;;  %v18007_v11 = vld [vmem:[#allocation48_spill] sm:$0xff] }
  0xb3   : > { %v2466_v8 = vsel %vm13408_vm12, %v2464_v22, %v2465_v0  ;;  %v10303_v59 = vrot.slane %v18006_v30, 9  ;;  %v2476_v18 = vrot.slane %v12809_v38, 5  ;;  %v2479_v40 = vrot.slane %v13055_v61, 5 }
  0xb4   : > { %v13565_v31 = vcombine.low %v2463_v45, %v2466_v8  ;;  %v2470_v7 = vsel %vm13408_vm12, %v10302_v24, %v2469_v48  ;;  %v2471_v58 = vrot.slane %v2469_v48, 4  ;;  %v10304_v41 = vrot.slane %v18007_v11, 9  ;;  %v18009_v8 = vld [vmem:[#allocation43_spill] sm:$0xff] }
  0xb5   : > { %v2477_v34 = vsel %vm13408_vm12, %v10303_v59, %v2476_v18  ;;  %v2478_v52 = vrot.slane %v2476_v18, 4  ;;  %v2483_v22 = vrot.slane %v17987_v2, 5  ;;  %v2486_v38 = vrot.slane %v17989_v37, 5 }
  0xb6   : > { %v2473_v21 = vsel %vm13408_vm12, %v2471_v58, %v2472_v57  ;;  %v10305_v45 = vrot.slane %v13310_v49, 9  ;;  %v2490_v0 = vrot.slane %v18002_v35, 5  ;;  %v18008_v57 = vld [vmem:[#allocation38_spill] sm:$0xff]  ;;  %v1521_v30 = vrot.slane %v1519_v27, 5 }
  0xb7   : > { %v13579_v47 = vcombine.low %v2470_v7, %v2473_v21  ;;  %v2480_v61 = vsel %vm13408_vm12, %v2478_v52, %v2479_v40  ;;  %v2484_v24 = vsel %vm13408_vm12, %v10304_v41, %v2483_v22  ;;  %v2485_v19 = vrot.slane %v2483_v22, 4  ;;  %11654 = vmatmul.mubr.msk.bf16.gmra.mxu0 %vm535_vm4, %v13460_v28  ;;  %11620 = vmatmul.mubr.msk.bf16.gmra.mxu1 %vm535_vm4, %v13450_v29  ;;  %v18010_v58 = vld [vmem:[#allocation18_spill] sm:$0xff] }
  0xb8   : > { %v13587_v2 = vcombine.low %v2477_v34, %v2480_v61  ;;  %v2491_v48 = vsel %vm13408_vm12, %v10305_v45, %v2490_v0  ;;  %v2492_v49 = vrot.slane %v2490_v0, 4  ;;  %v2493_v35 = vrot.slane %v18008_v57, 5  ;;  %11657 = vmatprep.mubr.msk.bf16.mxu0 %vm535_vm4, %v18009_v8  ;;  %11623 = vmatprep.mubr.msk.bf16.mxu1 %vm535_vm4, %v13460_v28 }
  0xb9   : > { %v1548_v59 = vshrl.u32 %v13308_v1, 16  ;;  %v1551_v18 = vshll.u32 %v13308_v1, 16  ;;  %v2487_v7 = vsel %vm13408_vm12, %v2485_v19, %v2486_v38  ;;  %v1557_v40 = vshll.u32 %v18010_v58, 16  ;;  %v1178_v19 = vld [vmem:[#allocation2 + $0xc0] sm:$0xf] }
  0xba   : > { %v1561_v34 = vshrl.u32 %v18010_v58, 16  ;;  %v13604_v52 = vcombine.low %v2484_v24, %v2487_v7  ;;  %v2494_v37 = vsel %vm13408_vm12, %v2492_v49, %v2493_v35  ;;  %v1526_v1 = vrot.slane %v1524_v6, 4 }
  0xbb   : > { %v1529_v27 = vrot.slane %v1527_v25, 5  ;;  %v1535_v11 = vrot.slane %v1533_v42, 5  ;;  %v13612_v41 = vcombine.low %v2491_v48, %v2494_v37  ;;  %v1517_v22 = vrot.slane %v1516_v20, 4 }
  0xbc   : > { %v1539_v21 = vrot.slane %v1537_v12, 4  ;;  %v10306_v38 = vrot.slane %v13370_v10, 9  ;;  %v2497_v45 = vrot.slane %v18010_v58, 5  ;;  %v1488_v0 = vsel %vm12912_vm9, %v13442_v26, %v13415_v33 }
  0xbd   : > { %v1550_v61 = vrot.slane %v1548_v59, 4  ;;  %v1553_v24 = vrot.slane %v1551_v18, 5  ;;  %v2500_v6 = vrot.slane %v18011_v36, 5  ;;  %v1559_v25 = vrot.slane %v1557_v40, 5 }
  0xbe   : > { %v1563_v42 = vrot.slane %v1561_v34, 4  ;;  %v2498_v20 = vsel %vm13408_vm12, %v10306_v38, %v2497_v45  ;;  %v2499_v12 = vrot.slane %v2497_v45, 4  ;;  %v1498_v10 = vsel %vm12912_vm9, %v13482_v32, %v13417_v9  ;;  %v18012_v32 = vld [vmem:[#allocation20_spill] sm:$0xff] }
  0xbf   : > { %v1512_v33 = vsel %vm12912_vm9, %v13538_v53, %v13527_v63  ;;  %v1530_v26 = vor.u32 %v1529_v27, %v1526_v1  ;;  %v1543_v48 = vshll.u32 %v18008_v57, 16  ;;  %11658 = vmatmul.mubr.msk.bf16.gmra.mxu0 %vm535_vm4, %v13465_v46  ;;  %v1522_v49 = vsel %vm12912_vm9, %v1517_v22, %v1521_v30  ;;  %11624 = vmatmul.mubr.msk.bf16.gmra.mxu1 %vm535_vm4, %v18009_v8 }
  0xc0   : > { %v1540_v35 = vor.u32 %v1539_v21, %v1535_v11  ;;  %v1866_v59 = vshrl.u32 %v1178_v19, 16  ;;  %v2501_v18 = vsel %vm13408_vm12, %v2499_v12, %v2500_v6  ;;  %11661 = vmatprep.mubr.msk.bf16.mxu0 %vm535_vm4, %v13467_v13  ;;  %v1869_v9 = vshll.u32 %v1178_v19, 16  ;;  %11627 = vmatprep.mubr.msk.bf16.mxu1 %vm535_vm4, %v13465_v46 }
  0xc1   : > { %v1875_v63 = vshll.u32 %v18012_v32, 16  ;;  %v1879_v53 = vshrl.u32 %v18012_v32, 16  ;;  %v13642_v57 = vcombine.low %v2498_v20, %v2501_v18  ;;  %v1554_v7 = vor.u32 %v1553_v24, %v1550_v61  ;;  %v18013_v20 = vld [vmem:[#allocation40_spill] sm:$0xff] }
  0xc2   : > { %v1564_v30 = vor.u32 %v1563_v42, %v1559_v25  ;;  %v1567_v58 = vshll.u32 %v18011_v36, 16  ;;  %v13649_v40 = vcombine.low %v1488_v0, %v1498_v10  ;;  %v13651_v34 = vcombine.low %v1512_v33, %v1522_v49 }
  0xc3   : > { %v1531_v37 = vrot.slane %v1530_v26, 4  ;;  %v1541_v1 = vrot.slane %v1540_v35, 4  ;;  %v1545_v27 = vrot.slane %v1543_v48, 5  ;;  %v1868_v22 = vrot.slane %v1866_v59, 4 }
  0xc4   : > { %v1871_v21 = vrot.slane %v1869_v9, 5  ;;  %v1877_v38 = vrot.slane %v1875_v63, 5  ;;  %v1881_v45 = vrot.slane %v1879_v53, 4  ;;  %v1555_v19 = vrot.slane %v1554_v7, 4  ;;  %v18015_v9 = vld [vmem:[#allocation41_spill] sm:$0xff] }
  0xc5   : > { %v1565_v6 = vrot.slane %v1564_v30, 4  ;;  %v1569_v61 = vrot.slane %v1567_v58, 5  ;;  %v1536_v24 = vsel %vm12912_vm9, %v1531_v37, %v1535_v11  ;;  %v1546_v0 = vsel %vm12912_vm9, %v1541_v1, %v1545_v27  ;;  %v18014_v11 = vld [vmem:[#allocation21_spill] sm:$0xff]  ;;  %v18017_v27 = vld [vmem:[#allocation8_spill] sm:$0xff] }
  0xc6   : > { %v1872_v36 = vor.u32 %v1871_v21, %v1868_v22  ;;  %v1882_v42 = vor.u32 %v1881_v45, %v1877_v38  ;;  %v1885_v12 = vshll.u32 %v18013_v20, 16  ;;  %v1560_v10 = vsel %vm12912_vm9, %v1555_v19, %v1559_v25  ;;  %v18016_v7 = vld [vmem:[#allocation25_spill] sm:$0xff]  ;;  %v18018_v45 = vld [vmem:[#allocation42_spill] sm:$0xff] }
  0xc7   : > { %11662 = vmatmul.mubr.msk.bf16.gmra.mxu0 %vm535_vm4, %v13649_v40  ;;  %11628 = vmatmul.mubr.msk.bf16.gmra.mxu1 %vm535_vm4, %v13467_v13  ;;  %v1570_v33 = vsel %vm12912_vm9, %v1565_v6, %v1569_v61  ;;  %v2392_v26 = vrot.slane %v18014_v11, 5  ;;  %v13671_v48 = vcombine.low %v1536_v24, %v1546_v0  ;;  %v10291_v63 = vrot.slane %v18015_v9, 9  ;;  %v18019_v61 = vld [vmem:[#allocation28_spill] sm:$0xff]  ;;  %v10378_v11 = vld [vmem:[%s17804_s2 + $0x12] sm:$0x3] }
  0xc8   : > { %11665 = vmatprep.mubr.msk.bf16.mxu0 %vm535_vm4, %v13651_v34  ;;  %11631 = vmatprep.mubr.msk.bf16.mxu1 %vm535_vm4, %v13649_v40  ;;  %v13673_v49 = vcombine.low %v1560_v10, %v1570_v33  ;;  %v1873_v35 = vrot.slane %v1872_v36, 4  ;;  %v1883_v59 = vrot.slane %v1882_v42, 4  ;;  %v1887_v18 = vrot.slane %v1885_v12, 5  ;;  %v10411_v42 = vld [vmem:[%s17804_s2 + $0x18] sm:$0x3] }
  0xc9   : > { %v2394_v53 = vrot.slane %v2392_v26, 4  ;;  %v2395_v25 = vrot.slane %v18016_v7, 5  ;;  %v2393_v37 = vsel %vm13408_vm12, %v10291_v63, %v2392_v26  ;;  %v2406_v22 = vrot.slane %v18017_v27, 5  ;;  %v13712_v12 = vld [vmem:[#allocation2 + $0xc0] sm:$0xe]  ;;  %v18024_v7 = vld [vmem:[#allocation23_spill] sm:$0xff] }
  0xca   : > { %v1878_v30 = vsel %vm12912_vm9, %v1873_v35, %v1877_v38  ;;  %v1888_v58 = vsel %vm12912_vm9, %v1883_v59, %v1887_v18  ;;  %v10293_v19 = vrot.slane %v18018_v45, 9  ;;  %v2409_v24 = vrot.slane %v18019_v61, 5  ;;  %v9964_v10 = vld [vmem:[%s12658_s12 + $0xc0] sm:$0xf]  ;;  %v18022_v35 = vld [vmem:[#allocation35_spill] sm:$0xff] }
  0xcb   : > { %v2396_v1 = vsel %vm13408_vm12, %v2394_v53, %v2395_v25  ;;  %v13694_v21 = vcombine.low %v1878_v30, %v1888_v58  ;;  %v2408_v6 = vrot.slane %v2406_v22, 4  ;;  %10020 = vst.msk [vmem:[#allocation2 + $0xc0] sm:$0xf] %vm9970_vm5, %v9964_v10  ;;  %v13722_v26 = vand.u32 %v10411_v42, %v17985_v15 }
  0xcc   : > { %v10308_v38 = vcombine.low %v2393_v37, %v2396_v1  ;;  %v2407_v0 = vsel %vm13408_vm12, %v10293_v19, %v2406_v22  ;;  %v2458_v59 = vrot.slane %v18022_v35, 5  ;;  %v2103_v25 = vshll.u32 %v18024_v7, 16 }
  0xcd   : > { %v2410_v36 = vsel %vm13408_vm12, %v2408_v6, %v2409_v24  ;;  %v2107_v30 = vshrl.u32 %v18024_v7, 16  ;;  %vm9292_vm13 = vcmask 253952   ;;  %vm9300_vm14 = vsmask.f32 256 }
  0xce   : > { %v13716_v33 = vcombine.low %v2407_v0, %v2410_v36  ;;  %v2113_v36 = vshll.u32 %v13340_v39, 16  ;;  %vm9289_vm15 = vcmask 257024   ;;  %vm17046_vm0 = vmand %vm9292_vm13, %vm9300_vm14  ;;  %vm9350_vm1 = vsmask.f32 7938 }
  0xcf   : > { %11666 = vmatmul.mubr.msk.bf16.gmra.mxu0 %vm535_vm4, %v13671_v48  ;;  %11632 = vmatmul.mubr.msk.bf16.gmra.mxu1 %vm535_vm4, %v13651_v34  ;;  %vm17071_vm2 = vmand %vm9292_vm13, %vm9350_vm1  ;;  %vm9480_vm6 = vsmask.f32 4368 }
  0xd0   : > { %11669 = vmatprep.mubr.msk.bf16.mxu0 %vm535_vm4, %v13673_v49  ;;  %11635 = vmatprep.mubr.msk.bf16.mxu1 %vm535_vm4, %v13671_v48  ;;  %vm17425_vm10 = vmand %vm9289_vm15, %vm9350_vm1 }
  0xd1   : > { %vm17443_vm11 = vmor %vm9300_vm14, %vm9480_vm6 }
  0xd7   : > { %11670 = vmatmul.mubr.msk.bf16.gmra.mxu0 %vm535_vm4, %v13694_v21  ;;  %11636 = vmatmul.mubr.msk.bf16.gmra.mxu1 %vm535_vm4, %v13673_v49 }
  0xd8   : > { %11709 = vmatprep.mubr.msk.bf16.mxu0 %vm535_vm4, %v10308_v38  ;;  %11675 = vmatprep.mubr.msk.bf16.mxu1 %vm535_vm4, %v13325_v43  ;;  %v13727_v43 = vand.u32 %v10378_v11, %v17985_v15  ;;  %v2105_v38 = vrot.slane %v2103_v25, 5 }
  0xdf   : > { %11710 = vmatmul.mubr.msk.bf16.vlgmr.msra.gmra.mxu0 %vm535_vm4, %v13446_v54  ;;  %11676 = vmatmul.mubr.msk.bf16.vlgmr.msra.gmra.mxu1 %vm535_vm4, %v13337_v55  ;;  %v18020_v55 = vld [vmem:[#allocation6_spill] sm:$0xff] }
  0xe0   : > { %11776 = vmatpush3.bf16.msra.mxu0 %v13455_v4  ;;  %11713 = vmatprep.mubr.msk.bf16.mxu0 %vm535_vm4, %v13716_v33 }
  0xe1   : > { %11843 = vmatprep.subr.bf16.mxu0 %v13722_v26  ;;  %11742 = vmatpush3.bf16.msra.mxu1 %v13435_v23  ;;  %v18021_v23 = vld [vmem:[#allocation7_spill] sm:$0xff] }
  0xe2   : > { %11679 = vmatprep.mubr.msk.bf16.mxu1 %vm535_vm4, %v13354_v3  ;;  %11809 = vmatprep.subr.bf16.mxu1 %v13727_v43  ;;  %v2455_v3 = vrot.slane %v18020_v55, 5  ;;  %v10300_v4 = vrot.slane %v18021_v23, 9 }
  0xe7   : > { %11714 = vmatmul.mubr.msk.bf16.gmra.mxu0 %vm535_vm4, %v13496_v44  ;;  %11680 = vmatmul.mubr.msk.bf16.gmra.mxu1 %vm535_vm4, %v13361_v16  ;;  %v2457_v16 = vrot.slane %v2455_v3, 4 }
  0xe8   : > { %11717 = vmatprep.mubr.msk.bf16.mxu0 %vm535_vm4, %v13504_v17  ;;  %11683 = vmatprep.mubr.msk.bf16.mxu1 %vm535_vm4, %v13363_v60  ;;  %v2456_v60 = vsel %vm13408_vm12, %v10300_v4, %v2455_v3 }
  0xef   : > { %11718 = vmatmul.mubr.msk.bf16.gmra.mxu0 %vm535_vm4, %v13516_v50  ;;  %11684 = vmatmul.mubr.msk.bf16.gmra.mxu1 %vm535_vm4, %v13450_v29  ;;  %v2459_v29 = vsel %vm13408_vm12, %v2457_v16, %v2458_v59 }
  0xf0   : > { %11721 = vmatprep.mubr.msk.bf16.mxu0 %vm535_vm4, %v13522_v5  ;;  %11687 = vmatprep.mubr.msk.bf16.mxu1 %vm535_vm4, %v13460_v28  ;;  %v13770_v28 = vcombine.low %v2456_v60, %v2459_v29 }
  0xf7   : > { %11722 = vmatmul.mubr.msk.bf16.gmra.mxu0 %vm535_vm4, %v13541_v62  ;;  %11688 = vmatmul.mubr.msk.bf16.gmra.mxu1 %vm535_vm4, %v18009_v8 }
  0xf8   : > { %11725 = vmatprep.mubr.msk.bf16.mxu0 %vm535_vm4, %v13547_v14  ;;  %11691 = vmatprep.mubr.msk.bf16.mxu1 %vm535_vm4, %v13465_v46  ;;  %v18023_v46 = vld [vmem:[#allocation22_spill] sm:$0xff] }
  0xf9   : > { %v2094_v8 = vshrl.u32 %v18023_v46, 16  ;;  %v2097_v53 = vshll.u32 %v18023_v46, 16 }
  0xfb   : > { %v2096_v27 = vrot.slane %v2094_v8, 4  ;;  %v2099_v22 = vrot.slane %v2097_v53, 5 }
  0xfd   : > { %v2100_v24 = vor.u32 %v2099_v22, %v2096_v27  ;;  %v10447_v22 = vld [vmem:[%s17804_s2 + $0x14] sm:$0x3] }
  0xff   : > { %v13772_v18 = vpop.f32.mrf.mxu0  ;;  %11726 = vmatmul.mubr.msk.bf16.gmra.mxu0 %vm535_vm4, %v13770_v28  ;;  %v13778_v9 = vpop.f32.mrf.mxu1  ;;  %11692 = vmatmul.mubr.msk.bf16.gmra.mxu1 %vm535_vm4, %v13467_v13  ;;  %v2101_v3 = vrot.slane %v2100_v24, 4  ;;  %v10429_v24 = vld [vmem:[%s17804_s2 + $0x1e] sm:$0x3] }
 0x100   : > { %11729 = vmatprep.mubr.msk.bf16.mxu0 %vm535_vm4, %v13565_v31  ;;  %11695 = vmatprep.mubr.msk.bf16.mxu1 %vm535_vm4, %v13649_v40  ;;  %v2109_v40 = vrot.slane %v2107_v30, 4 }
 0x101   : > { %v13782_v63 = vpop.f32.mrf.mxu0  ;;  %v13790_v58 = vpop.f32.mrf.mxu1  ;;  %v2106_v59 = vsel %vm12912_vm9, %v2101_v3, %v2105_v38  ;;  %v13881_v3 = vand.u32 %v10447_v22, %v17985_v15 }
 0x102   : > { %v2110_v0 = vor.u32 %v2109_v40, %v2105_v38 }
 0x103   : > { %v13792_v37 = vpop.f32.mrf.mxu0  ;;  %v13794_v1 = vpop.f32.mrf.mxu1  ;;  %18025 = vst [vmem:[#allocation4_spill] sm:$0xff] %v13881_v3 }
 0x104   : > { %v2111_v23 = vrot.slane %v2110_v0, 4 }
 0x105   : > { %v13796_v13 = vpop.f32.mrf.mxu0  ;;  %v13798_v45 = vpop.f32.mrf.mxu1 }
 0x107   : > { %v13800_v19 = vpop.f32.mrf.mxu0  ;;  %11730 = vmatmul.mubr.msk.bf16.gmra.mxu0 %vm535_vm4, %v13579_v47  ;;  %v13806_v6 = vpop.f32.mrf.mxu1  ;;  %11696 = vmatmul.mubr.msk.bf16.gmra.mxu1 %vm535_vm4, %v13651_v34  ;;  %v2115_v34 = vrot.slane %v2113_v36, 5 }
 0x108   : > { %11733 = vmatprep.mubr.msk.bf16.mxu0 %vm535_vm4, %v13587_v2  ;;  %11699 = vmatprep.mubr.msk.bf16.mxu1 %vm535_vm4, %v13671_v48 }
 0x109   : > { %v13810_v61 = vpop.f32.mrf.mxu0  ;;  %v13815_v42 = vpop.f32.mrf.mxu1  ;;  %v2116_v60 = vsel %vm12912_vm9, %v2111_v23, %v2115_v34  ;;  %v13888_v34 = vand.u32 %v10429_v24, %v17985_v15 }
 0x10b   : > { %v13817_v10 = vpop.f32.mrf.mxu0  ;;  %v13819_v11 = vpop.f32.mrf.mxu1  ;;  %18027 = vst [vmem:[#allocation27_spill] sm:$0xff] %v13888_v34 }
 0x10d   : > { %v13821_v55 = vpop.f32.mrf.mxu0  ;;  %v13823_v4 = vpop.f32.mrf.mxu1 }
 0x10f   : > { %v13825_v16 = vpop.f32.mrf.mxu0  ;;  %11734 = vmatmul.mubr.msk.bf16.gmra.mxu0 %vm535_vm4, %v13604_v52  ;;  %v13831_v48 = vpop.f32.mrf.mxu1  ;;  %11700 = vmatmul.mubr.msk.bf16.gmra.mxu1 %vm535_vm4, %v13673_v49  ;;  %v10274_v49 = vcombine.low %v2106_v59, %v2116_v60 }
 0x110   : > { %11737 = vmatprep.mubr.msk.bf16.mxu0 %vm535_vm4, %v13612_v41  ;;  %11703 = vmatprep.mubr.msk.bf16.mxu1 %vm535_vm4, %v13694_v21 }
 0x111   : > { %v13835_v35 = vpop.f32.mrf.mxu0  ;;  %v13843_v29 = vpop.f32.mrf.mxu1 }
 0x113   : > { %v13845_v46 = vpop.f32.mrf.mxu0  ;;  %v13847_v8 = vpop.f32.mrf.mxu1 }
 0x115   : > { %v13849_v53 = vpop.f32.mrf.mxu0  ;;  %v13851_v25 = vpop.f32.mrf.mxu1 }
 0x117   : > { %v13853_v30 = vpop.f32.mrf.mxu0  ;;  %11738 = vmatmul.mubr.msk.bf16.gmra.mxu0 %vm535_vm4, %v13642_v57  ;;  %v13859_v21 = vpop.f32.mrf.mxu1  ;;  %11704 = vmatmul.mubr.msk.bf16.gmra.mxu1 %vm535_vm4, %v10274_v49 }
 0x118   : > { %11777 = vmatprep.mubr.msk.bf16.mxu0 %vm535_vm4, %v13716_v33  ;;  %11743 = vmatprep.mubr.msk.bf16.mxu1 %vm535_vm4, %v13446_v54 }
 0x119   : > { %v13862_v27 = vpop.f32.mrf.mxu0  ;;  %v13869_v38 = vpop.f32.mrf.mxu1 }
 0x11b   : > { %v13871_v40 = vpop.f32.mrf.mxu0  ;;  %v13876_v0 = vpop.f32.mrf.mxu1 }
 0x11d   : > { %v13878_v36 = vpop.f32.mrf.mxu0  ;;  %v13883_v54 = vpop.f32.mrf.mxu1 }
 0x11e   : > { %18026 = vst [vmem:[#allocation5_spill] sm:$0xff] %v13883_v54 }
 0x11f   : > { %v11575_v23 = vpop.f32.mrf.mxu0  ;;  %11778 = vmatmul.mubr.msk.bf16.vlgmr.msra.gmra.mxu0 %vm535_vm4, %v13496_v44  ;;  %v11541_v59 = vpop.f32.mrf.mxu1  ;;  %11744 = vmatmul.mubr.msk.bf16.vlgmr.msra.gmra.mxu1 %vm535_vm4, %v13716_v33 }
 0x120   : > { %11844 = vmatpush3.bf16.msra.mxu0 %v13722_v26  ;;  %11781 = vmatprep.mubr.msk.bf16.mxu0 %vm535_vm4, %v13504_v17  ;;  %v806_v49 = vadd.f32 %v11541_v59, %v13772_v18 }
 0x121   : > { %v971_v60 = vpop.f32.mrf.mxu0  ;;  %11911 = vmatprep.subr.bf16.mxu0 %v13881_v3  ;;  %11810 = vmatpush3.bf16.msra.mxu1 %v13727_v43  ;;  %v797_v22 = vpop.f32.mrf.mxu1 }
 0x122   : > { %11747 = vmatprep.mubr.msk.bf16.mxu1 %vm535_vm4, %v13496_v44  ;;  %11877 = vmatprep.subr.bf16.mxu1 %v13888_v34  ;;  %v13901_v26 = vadd.f32 %v11575_v23, %v806_v49  ;;  %v798_v33 = vadd.f32 %v797_v22, %v13782_v63  ;;  %v13917_v49 = vld [vmem:[%s12658_s12 + $0x1c] sm:$0xf] }
 0x123   : > { %v11576_v24 = vpop.f32.mrf.mxu0  ;;  %v11542_v51 = vpop.f32.mrf.mxu1  ;;  %18030 = vst [vmem:[#allocation14_spill] sm:$0xff] %v13917_v49 }
 0x124   : > { %v13904_v3 = vadd.f32 %v971_v60, %v798_v33  ;;  %v809_v43 = vadd.f32 %v11542_v51, %v13792_v37  ;;  %v13920_v51 = vld [vmem:[%s12658_s12 + $0x20] sm:$0x1] }
 0x125   : > { %v974_v54 = vpop.f32.mrf.mxu0  ;;  %v800_v18 = vpop.f32.mrf.mxu1  ;;  %18031 = vst [vmem:[#allocation29_spill] sm:$0xff] %v13920_v51  ;;  %v5271_v33 = vrot.slane %v13920_v51, 5 }
 0x126   : > { %18028 = vst [vmem:[#allocation34_spill] sm:$0xff] %v13904_v3  ;;  %v13909_v44 = vadd.f32 %v11576_v24, %v809_v43  ;;  %v801_v23 = vadd.f32 %v800_v18, %v13796_v13  ;;  %v5188_v13 = vld [vmem:[%s12658_s12 + $0x18] sm:$0xe]  ;;  %v5268_v24 = vrot.slane %v13917_v49, 5 }
 0x127   : > { %v11579_v59 = vpop.f32.mrf.mxu0  ;;  %11782 = vmatmul.mubr.msk.bf16.gmra.mxu0 %vm535_vm4, %v13516_v50  ;;  %v11545_v63 = vpop.f32.mrf.mxu1  ;;  %11748 = vmatmul.mubr.msk.bf16.gmra.mxu1 %vm535_vm4, %v13504_v17  ;;  %v10518_v17 = vrot.slane %v5188_v13, 9 }
 0x128   : > { %18029 = vst [vmem:[#allocation30_spill] sm:$0xff] %v13909_v44  ;;  %11785 = vmatprep.mubr.msk.bf16.mxu0 %vm535_vm4, %v13522_v5  ;;  %v13922_v37 = vadd.f32 %v974_v54, %v801_v23  ;;  %v822_v22 = vadd.f32 %v11545_v63, %v13800_v19  ;;  %11751 = vmatprep.mubr.msk.bf16.mxu1 %vm535_vm4, %v13516_v50  ;;  %v5270_v34 = vrot.slane %v5268_v24, 4 }
 0x129   : > { %v987_v60 = vpop.f32.mrf.mxu0  ;;  %v813_v43 = vpop.f32.mrf.mxu1  ;;  %v5269_v19 = vsel %vm13408_vm12, %v10518_v17, %v5268_v24 }
 0x12a   : > { %18032 = vst [vmem:[#allocation37_spill] sm:$0xff] %v13922_v37  ;;  %v13930_v44 = vadd.f32 %v11579_v59, %v822_v22  ;;  %v814_v3 = vadd.f32 %v813_v43, %v13810_v61  ;;  %v5272_v51 = vsel %vm13408_vm12, %v5270_v34, %v5271_v33 }
 0x12b   : > { %v11580_v18 = vpop.f32.mrf.mxu0  ;;  %v11546_v54 = vpop.f32.mrf.mxu1  ;;  %v13942_v59 = vcombine.low %v5269_v19, %v5272_v51 }
 0x12c   : > { %v13935_v63 = vadd.f32 %v987_v60, %v814_v3  ;;  %v825_v50 = vadd.f32 %v11546_v54, %v13817_v10 }
 0x12d   : > { %v990_v23 = vpop.f32.mrf.mxu0  ;;  %v816_v49 = vpop.f32.mrf.mxu1  ;;  %18033 = vst [vmem:[#allocation10_spill] sm:$0xff] %v13942_v59 }
 0x12e   : > { %v13944_v61 = vadd.f32 %v11580_v18, %v825_v50  ;;  %v817_v22 = vadd.f32 %v816_v49, %v13821_v55 }
 0x12f   : > { %v11583_v37 = vpop.f32.mrf.mxu0  ;;  %11786 = vmatmul.mubr.msk.bf16.gmra.mxu0 %vm535_vm4, %v13541_v62  ;;  %v11549_v3 = vpop.f32.mrf.mxu1  ;;  %11752 = vmatmul.mubr.msk.bf16.gmra.mxu1 %vm535_vm4, %v13522_v5 }
 0x130   : > { %11789 = vmatprep.mubr.msk.bf16.mxu0 %vm535_vm4, %v13547_v14  ;;  %v13951_v34 = vadd.f32 %v990_v23, %v817_v22  ;;  %v838_v60 = vadd.f32 %v11549_v3, %v13825_v16  ;;  %11755 = vmatprep.mubr.msk.bf16.mxu1 %vm535_vm4, %v13541_v62 }
 0x131   : > { %v1003_v10 = vpop.f32.mrf.mxu0  ;;  %v829_v51 = vpop.f32.mrf.mxu1 }
 0x132   : > { %v13956_v24 = vadd.f32 %v11583_v37, %v838_v60  ;;  %v830_v55 = vadd.f32 %v829_v51, %v13835_v35 }
 0x133   : > { %v11584_v13 = vpop.f32.mrf.mxu0  ;;  %v11550_v49 = vpop.f32.mrf.mxu1 }
 0x134   : > { %v13959_v43 = vadd.f32 %v1003_v10, %v830_v55  ;;  %v841_v5 = vadd.f32 %v11550_v49, %v13845_v46  ;;  %v2801_v55 = vrot.slane %v18012_v32, 5  ;;  %v2804_v32 = vrot.slane %v18013_v20, 5 }
 0x135   : > { %v1006_v33 = vpop.f32.mrf.mxu0  ;;  %v832_v18 = vpop.f32.mrf.mxu1 }
 0x136   : > { %v13964_v16 = vadd.f32 %v11584_v13, %v841_v5  ;;  %v833_v62 = vadd.f32 %v832_v18, %v13849_v53 }
 0x137   : > { %v11587_v17 = vpop.f32.mrf.mxu0  ;;  %11790 = vmatmul.mubr.msk.bf16.gmra.mxu0 %vm535_vm4, %v13770_v28  ;;  %v11553_v37 = vpop.f32.mrf.mxu1  ;;  %11756 = vmatmul.mubr.msk.bf16.gmra.mxu1 %vm535_vm4, %v13547_v14 }
 0x138   : > { %11793 = vmatprep.mubr.msk.bf16.mxu0 %vm535_vm4, %v13565_v31  ;;  %v13971_v54 = vadd.f32 %v1006_v33, %v833_v62  ;;  %v854_v46 = vadd.f32 %v11553_v37, %v13853_v30  ;;  %11759 = vmatprep.mubr.msk.bf16.mxu1 %vm535_vm4, %v13770_v28  ;;  %v2803_v37 = vrot.slane %v2801_v55, 4 }
 0x139   : > { %v1019_v35 = vpop.f32.mrf.mxu0  ;;  %v845_v23 = vpop.f32.mrf.mxu1 }
 0x13a   : > { %v13976_v50 = vadd.f32 %v11587_v17, %v854_v46  ;;  %v846_v53 = vadd.f32 %v845_v23, %v13862_v27 }
 0x13b   : > { %v11588_v19 = vpop.f32.mrf.mxu0  ;;  %v11554_v22 = vpop.f32.mrf.mxu1 }
 0x13c   : > { %v13979_v10 = vadd.f32 %v1019_v35, %v846_v53  ;;  %v857_v14 = vadd.f32 %v11554_v22, %v13871_v40  ;;  %v2805_v53 = vsel %vm13408_vm12, %v2803_v37, %v2804_v32 }
 0x13d   : > { %v1022_v3 = vpop.f32.mrf.mxu0  ;;  %v848_v60 = vpop.f32.mrf.mxu1 }
 0x13e   : > { %v13984_v30 = vadd.f32 %v11588_v19, %v857_v14  ;;  %v849_v28 = vadd.f32 %v848_v60, %v13878_v36  ;;  %v18034_v14 = vld [vmem:[#allocation24_spill] sm:$0xff] }
 0x13f   : > { %v11591_v51 = vpop.f32.mrf.mxu0  ;;  %11794 = vmatmul.mubr.msk.bf16.gmra.mxu0 %vm535_vm4, %v13579_v47  ;;  %v11557_v13 = vpop.f32.mrf.mxu1  ;;  %11760 = vmatmul.mubr.msk.bf16.gmra.mxu1 %vm535_vm4, %v13565_v31  ;;  %v10340_v31 = vrot.slane %v13712_v12, 9  ;;  %v10359_v60 = vrot.slane %v18034_v14, 9  ;;  %v10498_v14 = vld [vmem:[%s17804_s2 + $0x20] sm:$0x3] }
 0x140   : > { %11797 = vmatprep.mubr.msk.bf16.mxu0 %vm535_vm4, %v13587_v2  ;;  %v13992_v40 = vadd.f32 %v1022_v3, %v849_v28  ;;  %v870_v49 = vadd.f32 %v11557_v13, %v13778_v9  ;;  %11763 = vmatprep.mubr.msk.bf16.mxu1 %vm535_vm4, %v13579_v47  ;;  %v3015_v47 = vrot.slane %v18024_v7, 5 }
 0x141   : > { %v1035_v27 = vpop.f32.mrf.mxu0  ;;  %v861_v33 = vpop.f32.mrf.mxu1 }
 0x142   : > { %v13997_v36 = vadd.f32 %v11591_v51, %v870_v49  ;;  %v862_v18 = vadd.f32 %v861_v33, %v13790_v58  ;;  %v3017_v51 = vrot.slane %v3015_v47, 4 }
 0x143   : > { %v11592_v5 = vpop.f32.mrf.mxu0  ;;  %v11558_v17 = vpop.f32.mrf.mxu1 }
 0x144   : > { %v14002_v35 = vadd.f32 %v1035_v27, %v862_v18  ;;  %v873_v9 = vadd.f32 %v11558_v17, %v13794_v1  ;;  %v2802_v1 = vsel %vm13408_vm12, %v10340_v31, %v2801_v55  ;;  %v3018_v27 = vrot.slane %v13340_v39, 5 }
 0x145   : > { %v1038_v62 = vpop.f32.mrf.mxu0  ;;  %v864_v46 = vpop.f32.mrf.mxu1  ;;  %v10342_v13 = vcombine.low %v2802_v1, %v2805_v53  ;;  %v3016_v39 = vsel %vm13408_vm12, %v10359_v60, %v3015_v47  ;;  %v12488_v47 = vld [vmem:[%s12658_s12 + $0xc] sm:$0xff]   ;;  %v12487_v1 = vld [vmem:[%s12658_s12] sm:$0xff]  }
 0x146   : > { %v14008_v19 = vadd.f32 %v11592_v5, %v873_v9  ;;  %v865_v58 = vadd.f32 %v864_v46, %v13798_v45 }
 0x147   : > { %v11595_v23 = vpop.f32.mrf.mxu0  ;;  %11798 = vmatmul.mubr.msk.bf16.gmra.mxu0 %vm535_vm4, %v13604_v52  ;;  %v11561_v12 = vpop.f32.mrf.mxu1  ;;  %11764 = vmatmul.mubr.msk.bf16.gmra.mxu1 %vm535_vm4, %v13587_v2 }
 0x148   : > { %11801 = vmatprep.mubr.msk.bf16.mxu0 %vm535_vm4, %v13612_v41  ;;  %v14019_v22 = vadd.f32 %v1038_v62, %v865_v58  ;;  %v886_v7 = vadd.f32 %v11561_v12, %v13806_v6  ;;  %11767 = vmatprep.mubr.msk.bf16.mxu1 %vm535_vm4, %v13604_v52 }
 0x149   : > { %v1051_v20 = vpop.f32.mrf.mxu0  ;;  %v877_v45 = vpop.f32.mrf.mxu1 }
 0x14a   : > { %v14025_v2 = vadd.f32 %v11595_v23, %v886_v7  ;;  %v878_v28 = vadd.f32 %v877_v45, %v13815_v42  ;;  %v3019_v42 = vsel %vm13408_vm12, %v3017_v51, %v3018_v27 }
 0x14b   : > { %v11596_v3 = vpop.f32.mrf.mxu0  ;;  %v11562_v55 = vpop.f32.mrf.mxu1  ;;  %v10361_v9 = vcombine.low %v3016_v39, %v3019_v42 }
 0x14c   : > { %v14029_v33 = vadd.f32 %v1051_v20, %v878_v28  ;;  %v889_v6 = vadd.f32 %v11562_v55, %v13819_v11  ;;  %v14071_v28 = vld [vmem:[%s12658_s12 + $0x18] sm:$0xff]  }
 0x14d   : > { %v1054_v49 = vpop.f32.mrf.mxu0  ;;  %v880_v5 = vpop.f32.mrf.mxu1 }
 0x14e   : > { %v14034_v18 = vadd.f32 %v11596_v3, %v889_v6  ;;  %v881_v17 = vadd.f32 %v880_v5, %v13823_v4  ;;  %v14083_v6 = vand.u32 %v10498_v14, %v17985_v15  ;;  %v3998_v14 = vld [vmem:[%s12658_s12] sm:$0xf] }
 0x14f   : > { %v11599_v52 = vpop.f32.mrf.mxu0  ;;  %11802 = vmatmul.mubr.msk.bf16.gmra.mxu0 %vm535_vm4, %v13642_v57  ;;  %v11565_v62 = vpop.f32.mrf.mxu1  ;;  %11768 = vmatmul.mubr.msk.bf16.gmra.mxu1 %vm535_vm4, %v13612_v41 }
 0x150   : > { %11805 = vmatprep.mubr.msk.bf16.mxu0 %vm535_vm4, %v10342_v13  ;;  %v14044_v31 = vadd.f32 %v1054_v49, %v881_v17  ;;  %v902_v37 = vadd.f32 %v11565_v62, %v13831_v48  ;;  %11771 = vmatprep.mubr.msk.bf16.mxu1 %vm535_vm4, %v13642_v57  ;;  %v18037_v62 = vld [vmem:[#allocation5_spill] sm:$0xff] }
 0x151   : > { %v1067_v11 = vpop.f32.mrf.mxu0  ;;  %v893_v4 = vpop.f32.mrf.mxu1 }
 0x152   : > { %v14049_v46 = vadd.f32 %v11599_v52, %v902_v37  ;;  %v894_v23 = vadd.f32 %v893_v4, %v13843_v29  ;;  %v18038_v37 = vld [vmem:[#allocation4_spill] sm:$0xff] }
 0x153   : > { %v11600_v32 = vpop.f32.mrf.mxu0  ;;  %v11566_v58 = vpop.f32.mrf.mxu1 }
 0x154   : > { %v14053_v20 = vadd.f32 %v1067_v11, %v894_v23  ;;  %v905_v41 = vadd.f32 %v11566_v58, %v13847_v8  ;;  %v18039_v23 = vld [vmem:[#allocation27_spill] sm:$0xff] }
 0x155   : > { %v1070_v12 = vpop.f32.mrf.mxu0  ;;  %v896_v48 = vpop.f32.mrf.mxu1 }
 0x156   : > { %v14058_v57 = vadd.f32 %v11600_v32, %v905_v41  ;;  %v897_v7 = vadd.f32 %v896_v48, %v13851_v25  ;;  %v14108_v41 = vld [vmem:[%s12658_s12 + $0x30] sm:$0xff]  }
 0x157   : > { %v11603_v53 = vpop.f32.mrf.mxu0  ;;  %11806 = vmatmul.mubr.msk.bf16.gmra.mxu0 %vm535_vm4, %v10361_v9  ;;  %v11569_v29 = vpop.f32.mrf.mxu1  ;;  %11772 = vmatmul.mubr.msk.bf16.gmra.mxu1 %vm535_vm4, %v10342_v13  ;;  %v14077_v13 = vld [vmem:[%s12658_s12 + $0x24] sm:$0xff]   ;;  %18040 = vst [vmem:[#allocation32_spill] sm:$0xff] %v14108_v41 }
 0x158   : > { %11845 = vmatprep.mubr.msk.bf16.mxu0 %vm535_vm4, %v12488_v47  ;;  %v14063_v3 = vadd.f32 %v1070_v12, %v897_v7  ;;  %v918_v8 = vadd.f32 %v11569_v29, %v13859_v21  ;;  %11811 = vmatprep.mubr.msk.bf16.mxu1 %vm535_vm4, %v12487_v1  ;;  %18035 = vst [vmem:[#allocation31_spill] sm:$0xff] %v14077_v13  ;;  %v10480_v21 = vld [vmem:[%s17804_s2 + $0x1a] sm:$0x3]  ;;  %v18042_v1 = vld [vmem:[#allocation34_spill] sm:$0xff] }
 0x159   : > { %v1083_v45 = vpop.f32.mrf.mxu0  ;;  %v909_v60 = vpop.f32.mrf.mxu1 }
 0x15a   : > { %v14073_v25 = vadd.f32 %v11603_v53, %v918_v8  ;;  %v910_v27 = vadd.f32 %v909_v60, %v13869_v38  ;;  %v14091_v38 = vand.u32 %v10480_v21, %v17985_v15  ;;  %v14115_v53 = vld [vmem:[%s12658_s12 + $0x3c] sm:$0xff]  }
 0x15b   : > { %v11604_v51 = vpop.f32.mrf.mxu0  ;;  %v11570_v55 = vpop.f32.mrf.mxu1  ;;  %18043 = vst [vmem:[#allocation15_spill] sm:$0xff] %v14115_v53 }
 0x15c   : > { %v14085_v5 = vadd.f32 %v1083_v45, %v910_v27  ;;  %v921_v52 = vadd.f32 %v11570_v55, %v13876_v0  ;;  %18036 = vst [vmem:[#allocation12_spill] sm:$0xff] %v14091_v38  ;;  %v18045_v45 = vld [vmem:[#allocation30_spill] sm:$0xff]  ;;  %v3999_v27 = vld [vmem:[%s12658_s12 + $0x4] sm:$0xf]  ;;  %v18047_v55 = vld [vmem:[#allocation37_spill] sm:$0xff] }
 0x15d   : > { %v1086_v49 = vpop.f32.mrf.mxu0  ;;  %v912_v17 = vpop.f32.mrf.mxu1 }
 0x15e   : > { %v14093_v42 = vadd.f32 %v11604_v51, %v921_v52  ;;  %v913_v11 = vadd.f32 %v912_v17, %v18037_v62  ;;  %v4056_v62 = vshll.u32 %v3998_v14, 16 }
 0x15f   : > { %v11643_v39 = vpop.f32.mrf.mxu0  ;;  %11846 = vmatmul.mubr.msk.bf16.vlgmr.msra.gmra.mxu0 %vm535_vm4, %v14071_v28  ;;  %v11609_v0 = vpop.f32.mrf.mxu1  ;;  %11812 = vmatmul.mubr.msk.bf16.vlgmr.msra.gmra.mxu1 %vm535_vm4, %v12488_v47 }
 0x160   : > { %11912 = vmatpush3.bf16.msra.mxu0 %v18038_v37  ;;  %11849 = vmatprep.mubr.msk.bf16.mxu0 %vm535_vm4, %v14077_v13  ;;  %v14101_v32 = vadd.f32 %v1086_v49, %v913_v11  ;;  %v1835_v9 = vadd.f32 %v11609_v0, %v13901_v26  ;;  %v4001_v11 = vld [vmem:[%s12658_s12 + $0xc] sm:$0xf] }
 0x161   : > { %v1934_v4 = vpop.f32.mrf.mxu0  ;;  %11979 = vmatprep.subr.bf16.mxu0 %v14083_v6  ;;  %11878 = vmatpush3.bf16.msra.mxu1 %v18039_v23  ;;  %v1706_v58 = vpop.f32.mrf.mxu1 }
 0x162   : > { %11815 = vmatprep.mubr.msk.bf16.mxu1 %vm535_vm4, %v14071_v28  ;;  %11945 = vmatprep.subr.bf16.mxu1 %v14091_v38  ;;  %v14111_v47 = vadd.f32 %v11643_v39, %v1835_v9  ;;  %v1833_v48 = vadd.f32 %v1706_v58, %v18042_v1  ;;  %v4053_v39 = vshrl.u32 %v3998_v14, 16  ;;  %v4066_v9 = vshrl.u32 %v3999_v27, 16 }
 0x163   : > { %v11644_v12 = vpop.f32.mrf.mxu0  ;;  %v11610_v7 = vpop.f32.mrf.mxu1 }
 0x164   : > { %18041 = vst [vmem:[#allocation13_spill] sm:$0xff] %v14111_v47  ;;  %v14117_v29 = vadd.f32 %v1934_v4, %v1833_v48  ;;  %v1836_v8 = vadd.f32 %v11610_v7, %v18045_v45  ;;  %v4062_v4 = vshll.u32 %v3999_v27, 16  ;;  %v14144_v7 = vld [vmem:[%s12658_s12 + $0x54] sm:$0xff]   ;;  %v4077_v45 = vshrl.u32 %v4001_v11, 16 }
 0x165   : > { %v1937_v26 = vpop.f32.mrf.mxu0  ;;  %v1709_v60 = vpop.f32.mrf.mxu1  ;;  %18051 = vst [vmem:[#allocation9_spill] sm:$0xff] %v14144_v7 }
 0x166   : > { %18044 = vst [vmem:[#allocation33_spill] sm:$0xff] %v14117_v29  ;;  %v14124_v21 = vadd.f32 %v11644_v12, %v1836_v8  ;;  %v1834_v49 = vadd.f32 %v1709_v60, %v18047_v55  ;;  %v14138_v12 = vld [vmem:[%s12658_s12 + $0x48] sm:$0xff]   ;;  %v4080_v8 = vshll.u32 %v4001_v11, 16  ;;  %v4055_v60 = vrot.slane %v4053_v39, 4 }
 0x167   : > { %v11647_v51 = vpop.f32.mrf.mxu0  ;;  %11850 = vmatmul.mubr.msk.bf16.gmra.mxu0 %vm535_vm4, %v14108_v41  ;;  %v11613_v52 = vpop.f32.mrf.mxu1  ;;  %11816 = vmatmul.mubr.msk.bf16.gmra.mxu1 %vm535_vm4, %v14077_v13  ;;  %18049 = vst [vmem:[#allocation19_spill] sm:$0xff] %v14138_v12  ;;  %v4058_v55 = vrot.slane %v4056_v62, 5  ;;  %v4004_v62 = vld [vmem:[%s12658_s12 + $0x18] sm:$0xf] }
 0x168   : > { %18046 = vst [vmem:[#allocation44_spill] sm:$0xff] %v14124_v21  ;;  %11853 = vmatprep.mubr.msk.bf16.mxu0 %vm535_vm4, %v14115_v53  ;;  %v14132_v37 = vadd.f32 %v1937_v26, %v1834_v49  ;;  %v1839_v0 = vadd.f32 %v11613_v52, %v13930_v44  ;;  %11819 = vmatprep.mubr.msk.bf16.mxu1 %vm535_vm4, %v14108_v41  ;;  %v4002_v26 = vld [vmem:[%s12658_s12 + $0x10] sm:$0xf]  ;;  %v14150_v52 = vrot.slane %v4062_v4, 5 }
 0x169   : > { %v1950_v17 = vpop.f32.mrf.mxu0  ;;  %v1722_v23 = vpop.f32.mrf.mxu1  ;;  %v4086_v59 = vshll.u32 %v4002_v26, 16  ;;  %v4090_v11 = vshrl.u32 %v4002_v26, 16 }
 0x16a   : > { %18048 = vst [vmem:[#allocation17_spill] sm:$0xff] %v14132_v37  ;;  %v14140_v1 = vadd.f32 %v11647_v51, %v1839_v0  ;;  %v1837_v48 = vadd.f32 %v1722_v23, %v13935_v63  ;;  %v4068_v51 = vrot.slane %v4066_v9, 4  ;;  %v4000_v23 = vld [vmem:[%s12658_s12 + $0x8] sm:$0x1]  ;;  %v4011_v37 = vld [vmem:[%s12658_s12 + $0x34] sm:$0xf] }
 0x16b   : > { %v11648_v58 = vpop.f32.mrf.mxu0  ;;  %v11614_v44 = vpop.f32.mrf.mxu1 }
 0x16c   : > { %18050 = vst [vmem:[#allocation45_spill] sm:$0xff] %v14140_v1  ;;  %v14147_v27 = vadd.f32 %v1950_v17, %v1837_v48  ;;  %v1840_v49 = vadd.f32 %v11614_v44, %v13944_v61  ;;  %v4079_v61 = vrot.slane %v4077_v45, 4  ;;  %v4082_v17 = vrot.slane %v4080_v8, 5  ;;  %v4003_v45 = vld [vmem:[%s12658_s12 + $0x14] sm:$0x1] }
 0x16d   : > { %v1953_v14 = vpop.f32.mrf.mxu0  ;;  %v1725_v0 = vpop.f32.mrf.mxu1  ;;  %v4059_v48 = vor.u32 %v4058_v55, %v4055_v60  ;;  %v4072_v44 = vshll.u32 %v4000_v23, 16  ;;  %v4092_v60 = vrot.slane %v4090_v11, 4  ;;  %v4104_v55 = vshll.u32 %v4004_v62, 16 }
 0x16e   : > { %18052 = vst [vmem:[#allocation16_spill] sm:$0xff] %v14147_v27  ;;  %v14155_v56 = vadd.f32 %v11648_v58, %v1840_v49  ;;  %v1838_v39 = vadd.f32 %v1725_v0, %v13951_v34  ;;  %v4069_v34 = vor.u32 %v4068_v51, %v14150_v52  ;;  %v14171_v0 = vld [vmem:[%s12658_s12 + $0x60] sm:$0xff]   ;;  %v4083_v51 = vor.u32 %v4082_v17, %v4079_v61 }
 0x16f   : > { %v11651_v63 = vpop.f32.mrf.mxu0  ;;  %11854 = vmatmul.mubr.msk.bf16.gmra.mxu0 %vm535_vm4, %v14138_v12  ;;  %v11617_v4 = vpop.f32.mrf.mxu1  ;;  %11820 = vmatmul.mubr.msk.bf16.gmra.mxu1 %vm535_vm4, %v14115_v53  ;;  %18055 = vst [vmem:[#allocation11_spill] sm:$0xff] %v14171_v0  ;;  %v14181_v27 = vrot.slane %v4059_v48, 4  ;;  %v14188_v53 = vrot.slane %v4072_v44, 5  ;;  %v4106_v48 = vrot.slane %v4104_v55, 5 }
 0x170   : > { %18053 = vst [vmem:[#allocation36_spill] sm:$0xff] %v14155_v56  ;;  %11857 = vmatprep.mubr.msk.bf16.mxu0 %vm535_vm4, %v14144_v7  ;;  %v14163_v26 = vadd.f32 %v1953_v14, %v1838_v39  ;;  %v1843_v58 = vadd.f32 %v11617_v4, %v13956_v24  ;;  %11823 = vmatprep.mubr.msk.bf16.mxu1 %vm535_vm4, %v14138_v12  ;;  %v14173_v56 = vrot.slane %v4086_v59, 5  ;;  %v4101_v14 = vshrl.u32 %v4004_v62, 16  ;;  %v14179_v4 = vld [vmem:[%s12658_s12 + $0x6c] sm:$0xff]   ;;  %v4008_v62 = vld [vmem:[%s12658_s12 + $0x28] sm:$0xf] }
 0x171   : > { %v1966_v9 = vpop.f32.mrf.mxu0  ;;  %v1738_v8 = vpop.f32.mrf.mxu1  ;;  %18057 = vst [vmem:[#allocation48_spill] sm:$0xff] %v14179_v4  ;;  %v4096_v12 = vshll.u32 %v4003_v45, 16  ;;  %v14186_v11 = vrot.slane %v4069_v34, 4  ;;  %v18059_v45 = vld [vmem:[#allocation14_spill] sm:$0xff]  ;;  %v14201_v34 = vrot.slane %v4083_v51, 4 }
 0x172   : > { %18054 = vst [vmem:[#allocation46_spill] sm:$0xff] %v14163_v26  ;;  %v14175_v39 = vadd.f32 %v11651_v63, %v1843_v58  ;;  %v1841_v24 = vadd.f32 %v1738_v8, %v13959_v43  ;;  %v4007_v63 = vld [vmem:[%s12658_s12 + $0x24] sm:$0xf]  ;;  %v4093_v61 = vor.u32 %v4092_v60, %v14173_v56  ;;  %v4103_v17 = vrot.slane %v4101_v14, 4  ;;  %v12526_v51 = vld [vmem:[%s12658_s12 + $0x8c] sm:$0x1] }
 0x173   : > { %v11652_v49 = vpop.f32.mrf.mxu0  ;;  %v11618_v23 = vpop.f32.mrf.mxu1  ;;  %v4114_v44 = vshrl.u32 %v18059_v45, 16  ;;  %v4125_v14 = vshrl.u32 %v4007_v63, 16  ;;  %v4128_v55 = vshll.u32 %v4007_v63, 16 }
 0x174   : > { %18056 = vst [vmem:[#allocation47_spill] sm:$0xff] %v14175_v39  ;;  %v14183_v1 = vadd.f32 %v1966_v9, %v1841_v24  ;;  %v1844_v59 = vadd.f32 %v11618_v23, %v13964_v16  ;;  %v4110_v9 = vshll.u32 %v18059_v45, 16  ;;  %v4138_v23 = vshrl.u32 %v4008_v62, 16  ;;  %v18065_v39 = vld [vmem:[#allocation29_spill] sm:$0xff] }
 0x175   : > { %v1969_v26 = vpop.f32.mrf.mxu0  ;;  %v1741_v58 = vpop.f32.mrf.mxu1  ;;  %v14215_v45 = vrot.slane %v4096_v12, 5 }
 0x176   : > { %18058 = vst [vmem:[#allocation38_spill] sm:$0xff] %v14183_v1  ;;  %v14196_v8 = vadd.f32 %v11652_v49, %v1844_v59  ;;  %v1842_v16 = vadd.f32 %v1741_v58, %v13971_v54  ;;  %v4134_v49 = vshll.u32 %v4008_v62, 16  ;;  %v14218_v1 = vld [vmem:[%s12658_s12 + $0x78] sm:$0xff]   ;;  %v4107_v62 = vor.u32 %v4106_v48, %v4103_v17  ;;  %v14233_v58 = vld [vmem:[%s12658_s12 + $0x84] sm:$0xff]  }
 0x177   : > { %v11655_v43 = vpop.f32.mrf.mxu0  ;;  %11858 = vmatmul.mubr.msk.bf16.gmra.mxu0 %vm535_vm4, %v14171_v0  ;;  %v11621_v24 = vpop.f32.mrf.mxu1  ;;  %11824 = vmatmul.mubr.msk.bf16.gmra.mxu1 %vm535_vm4, %v14144_v7  ;;  %18063 = vst [vmem:[#allocation39_spill] sm:$0xff] %v14218_v1  ;;  %v4120_v7 = vshll.u32 %v18065_v39, 16  ;;  %v4140_v17 = vrot.slane %v4138_v23, 4 }
 0x178   : > { %18060 = vst [vmem:[#allocation43_spill] sm:$0xff] %v14196_v8  ;;  %11861 = vmatprep.mubr.msk.bf16.mxu0 %vm535_vm4, %v14179_v4  ;;  %v14206_v54 = vadd.f32 %v1969_v26, %v1842_v16  ;;  %v1847_v59 = vadd.f32 %v11621_v24, %v13976_v50  ;;  %11827 = vmatprep.mubr.msk.bf16.mxu1 %vm535_vm4, %v14171_v0  ;;  %v14224_v26 = vrot.slane %v4093_v61, 4  ;;  %v14226_v16 = vrot.slane %v4110_v9, 5  ;;  %v4010_v24 = vld [vmem:[%s12658_s12 + $0x30] sm:$0xf] }
 0x179   : > { %v1982_v60 = vpop.f32.mrf.mxu0  ;;  %v1754_v8 = vpop.f32.mrf.mxu1  ;;  %v4116_v0 = vrot.slane %v4114_v44, 4  ;;  %v4127_v50 = vrot.slane %v4125_v14, 4  ;;  %v4130_v61 = vrot.slane %v4128_v55, 5  ;;  %v14237_v41 = vrot.slane %v4134_v49, 5  ;;  %v4009_v9 = vld [vmem:[%s12658_s12 + $0x2c] sm:$0x1] }
 0x17a   : > { %18061 = vst [vmem:[#allocation18_spill] sm:$0xff] %v14206_v54  ;;  %v14229_v54 = vadd.f32 %v11655_v43, %v1847_v59  ;;  %v1845_v12 = vadd.f32 %v1754_v8, %v13979_v10  ;;  %v4149_v10 = vshrl.u32 %v4010_v24, 16  ;;  %v4152_v8 = vshll.u32 %v4010_v24, 16  ;;  %v4013_v24 = vld [vmem:[%s12658_s12 + $0x3c] sm:$0xf] }
 0x17b   : > { %v11656_v63 = vpop.f32.mrf.mxu0  ;;  %v11622_v21 = vpop.f32.mrf.mxu1  ;;  %v14258_v49 = vrot.slane %v4107_v62, 4  ;;  %v4117_v23 = vor.u32 %v4116_v0, %v14226_v16 }
 0x17c   : > { %18064 = vst [vmem:[#allocation20_spill] sm:$0xff] %v14229_v54  ;;  %v14239_v48 = vadd.f32 %v1982_v60, %v1845_v12  ;;  %v1848_v43 = vadd.f32 %v11622_v21, %v13984_v30  ;;  %v4158_v30 = vshll.u32 %v4011_v37, 16  ;;  %v4162_v21 = vshrl.u32 %v4011_v37, 16 }
 0x17d   : > { %v1985_v29 = vpop.f32.mrf.mxu0  ;;  %v1757_v59 = vpop.f32.mrf.mxu1  ;;  %v14264_v60 = vrot.slane %v4120_v7, 5  ;;  %v4131_v37 = vor.u32 %v4130_v61, %v4127_v50  ;;  %v14274_v7 = vld [vmem:[%s12658_s12 + $0x90] sm:$0xff]  }
 0x17e   : > { %18066 = vst [vmem:[#allocation40_spill] sm:$0xff] %v14239_v48  ;;  %v14253_v14 = vadd.f32 %v11656_v63, %v1848_v43  ;;  %v1846_v55 = vadd.f32 %v1757_v59, %v13992_v40  ;;  %v4141_v63 = vor.u32 %v4140_v17, %v14237_v41  ;;  %v4144_v40 = vshll.u32 %v4009_v9, 16  ;;  %v4014_v43 = vld [vmem:[%s12658_s12 + $0x40] sm:$0xf] }
 0x17f   : > { %v11659_v44 = vpop.f32.mrf.mxu0  ;;  %11862 = vmatmul.mubr.msk.bf16.gmra.mxu0 %vm535_vm4, %v14218_v1  ;;  %v11625_v12 = vpop.f32.mrf.mxu1  ;;  %11828 = vmatmul.mubr.msk.bf16.gmra.mxu1 %vm535_vm4, %v14179_v4  ;;  %v4151_v59 = vrot.slane %v4149_v10, 4  ;;  %v14276_v50 = vrot.slane %v4158_v30, 5  ;;  %v4164_v61 = vrot.slane %v4162_v21, 4  ;;  %v4173_v17 = vshrl.u32 %v4013_v24, 16 }
 0x180   : > { %18067 = vst [vmem:[#allocation21_spill] sm:$0xff] %v14253_v14  ;;  %11865 = vmatprep.mubr.msk.bf16.mxu0 %vm535_vm4, %v14233_v58  ;;  %v14268_v62 = vadd.f32 %v1985_v29, %v1846_v55  ;;  %v1851_v0 = vadd.f32 %v11625_v12, %v13997_v36  ;;  %11831 = vmatprep.mubr.msk.bf16.mxu1 %vm535_vm4, %v14218_v1  ;;  %v4154_v14 = vrot.slane %v4152_v8, 5  ;;  %v4176_v9 = vshll.u32 %v4013_v24, 16  ;;  %v14282_v36 = vld [vmem:[%s12658_s12 + $0x9c] sm:$0xff]   ;;  %v4012_v55 = vld [vmem:[%s12658_s12 + $0x38] sm:$0x1] }
 0x181   : > { %v1998_v39 = vpop.f32.mrf.mxu0  ;;  %v1770_v48 = vpop.f32.mrf.mxu1  ;;  %v4182_v12 = vshll.u32 %v4014_v43, 16  ;;  %v4186_v10 = vshrl.u32 %v4014_v43, 16  ;;  %v4113_v30 = vsel %vm12912_vm9, %v14258_v49, %v14226_v16  ;;  %v4118_v21 = vrot.slane %v4117_v23, 4 }
 0x182   : > { %18068 = vst [vmem:[#allocation41_spill] sm:$0xff] %v14268_v62  ;;  %v14278_v4 = vadd.f32 %v11659_v44, %v1851_v0  ;;  %v1849_v29 = vadd.f32 %v1770_v48, %v14002_v35  ;;  %v4132_v1 = vrot.slane %v4131_v37, 4  ;;  %v4146_v24 = vrot.slane %v4144_v40, 5 }
 0x183   : > { %v11660_v54 = vpop.f32.mrf.mxu0  ;;  %v11626_v8 = vpop.f32.mrf.mxu1  ;;  %v4142_v48 = vrot.slane %v4141_v63, 4  ;;  %v4155_v0 = vor.u32 %v4154_v14, %v4151_v59  ;;  %v4165_v47 = vor.u32 %v4164_v61, %v14276_v50  ;;  %v4168_v13 = vshll.u32 %v4012_v55, 16 }
 0x184   : > { %18069 = vst [vmem:[#allocation25_spill] sm:$0xff] %v14278_v4  ;;  %v14289_v44 = vadd.f32 %v1998_v39, %v1849_v29  ;;  %v1852_v35 = vadd.f32 %v11626_v8, %v14008_v19  ;;  %v4016_v4 = vld [vmem:[%s12658_s12 + $0x48] sm:$0xf]  ;;  %v4175_v16 = vrot.slane %v4173_v17, 4  ;;  %v4178_v49 = vrot.slane %v4176_v9, 5  ;;  %v14332_v8 = vld [vmem:[%s12658_s12 + $0xb4] sm:$0xff]  }
 0x185   : > { %v2001_v62 = vpop.f32.mrf.mxu0  ;;  %v1773_v38 = vpop.f32.mrf.mxu1  ;;  %v4015_v19 = vld [vmem:[%s12658_s12 + $0x44] sm:$0x1]  ;;  %v14302_v14 = vrot.slane %v4182_v12, 5  ;;  %v4188_v37 = vrot.slane %v4186_v10, 4  ;;  %v4200_v59 = vshll.u32 %v4016_v4, 16  ;;  %v4147_v9 = vsel %vm12912_vm9, %v4142_v48, %v4146_v24  ;;  %v14322_v12 = vld [vmem:[%s12658_s12 + $0xa8] sm:$0xff]  }
 0x186   : > { %v14296_v23 = vadd.f32 %v11660_v54, %v1852_v35  ;;  %v1850_v39 = vadd.f32 %v1773_v38, %v14019_v22  ;;  %v4123_v54 = vsel %vm12912_vm9, %v4118_v21, %v14264_v60  ;;  %v4137_v22 = vsel %vm12912_vm9, %v4132_v1, %v14237_v41 }
 0x187   : > { %v11663_v43 = vpop.f32.mrf.mxu0  ;;  %11866 = vmatmul.mubr.msk.bf16.gmra.mxu0 %vm535_vm4, %v14274_v7  ;;  %v11629_v63 = vpop.f32.mrf.mxu1  ;;  %11832 = vmatmul.mubr.msk.bf16.gmra.mxu1 %vm535_vm4, %v14233_v58  ;;  %v4197_v38 = vshrl.u32 %v4016_v4, 16  ;;  %v14319_v29 = vrot.slane %v4155_v0, 4  ;;  %v14324_v41 = vrot.slane %v4165_v47, 4  ;;  %v14326_v1 = vrot.slane %v4168_v13, 5 }
 0x188   : > { %11869 = vmatprep.mubr.msk.bf16.mxu0 %vm535_vm4, %v14282_v36  ;;  %v14312_v61 = vadd.f32 %v2001_v62, %v1850_v39  ;;  %v1855_v17 = vadd.f32 %v11629_v63, %v14025_v2  ;;  %11835 = vmatprep.mubr.msk.bf16.mxu1 %vm535_vm4, %v14274_v7  ;;  %v4179_v4 = vor.u32 %v4178_v49, %v4175_v16  ;;  %v4192_v62 = vshll.u32 %v4015_v19, 16 }
 0x189   : > { %v2014_v40 = vpop.f32.mrf.mxu0  ;;  %v1786_v60 = vpop.f32.mrf.mxu1  ;;  %v4189_v21 = vor.u32 %v4188_v37, %v14302_v14  ;;  %v18070_v47 = vsel %vm12912_vm9, %v14186_v11, %v14188_v53  ;;  %v18071_v13 = vsel %vm12912_vm9, %v14181_v27, %v14150_v52  ;;  %v18073_v0 = vsel %vm12912_vm9, %v14201_v34, %v14173_v56  ;;  %v4017_v53 = vld [vmem:[%s12658_s12 + $0x4c] sm:$0xf]  ;;  %v4020_v37 = vld [vmem:[%s12658_s12 + $0x58] sm:$0xf] }
 0x18a   : > { %v14328_v2 = vadd.f32 %v11663_v43, %v1855_v17  ;;  %v1853_v10 = vadd.f32 %v1786_v60, %v14029_v33  ;;  %v14345_v48 = vcombine.low %v18071_v13, %v18070_v47  ;;  %v18072_v33 = vsel %vm12912_vm9, %v14224_v26, %v14215_v45  ;;  %v4019_v45 = vld [vmem:[%s12658_s12 + $0x54] sm:$0xf] }
 0x18b   : > { %v11664_v55 = vpop.f32.mrf.mxu0  ;;  %v11630_v24 = vpop.f32.mrf.mxu1  ;;  %v14357_v43 = vcombine.low %v18073_v0, %v18072_v33  ;;  %v4199_v11 = vrot.slane %v4197_v38, 4  ;;  %v4202_v16 = vrot.slane %v4200_v59, 5  ;;  %v14363_v52 = vcombine.low %v4113_v30, %v4123_v54  ;;  %v4023_v38 = vld [vmem:[%s12658_s12 + $0x64] sm:$0xf] }
 0x18c   : > { %v14360_v49 = vadd.f32 %v2014_v40, %v1853_v10  ;;  %v1856_v27 = vadd.f32 %v11630_v24, %v14034_v18  ;;  %v14365_v39 = vcombine.low %v4137_v22, %v4147_v9  ;;  %v4161_v56 = vsel %vm12912_vm9, %v14319_v29, %v14276_v50  ;;  %v4022_v22 = vld [vmem:[%s12658_s12 + $0x60] sm:$0xf]  ;;  %v14395_v9 = vld [vmem:[%s12658_s12 + $0x50] sm:$0x1] }
 0x18d   : > { %v2017_v35 = vpop.f32.mrf.mxu0  ;;  %v1789_v26 = vpop.f32.mrf.mxu1  ;;  %v4171_v18 = vsel %vm12912_vm9, %v14324_v41, %v14326_v1  ;;  %v14378_v34 = vrot.slane %v4179_v4, 4  ;;  %v14380_v30 = vrot.slane %v4192_v62, 5  ;;  %v14388_v54 = vrot.slane %v4189_v21, 4  ;;  %v14403_v24 = vld [vmem:[%s12658_s12 + $0xc0] sm:$0xff]  }
 0x18e   : > { %v14383_v63 = vadd.f32 %v11664_v55, %v1856_v27  ;;  %v1854_v40 = vadd.f32 %v1789_v26, %v14044_v31  ;;  %v4206_v50 = vshll.u32 %v4017_v53, 16  ;;  %v4203_v29 = vor.u32 %v4202_v16, %v4199_v11 }
 0x18f   : > { %v11667_v19 = vpop.f32.mrf.mxu0  ;;  %11870 = vmatmul.mubr.msk.bf16.gmra.mxu0 %vm535_vm4, %v14322_v12  ;;  %v11633_v59 = vpop.f32.mrf.mxu1  ;;  %11836 = vmatmul.mubr.msk.bf16.gmra.mxu1 %vm535_vm4, %v14282_v36  ;;  %v4210_v60 = vshrl.u32 %v4017_v53, 16  ;;  %v4221_v55 = vshrl.u32 %v4019_v45, 16  ;;  %v4224_v31 = vshll.u32 %v4019_v45, 16  ;;  %v4230_v4 = vshll.u32 %v4020_v37, 16 }
 0x190   : > { %11873 = vmatprep.mubr.msk.bf16.mxu0 %vm535_vm4, %v14332_v8  ;;  %v14397_v41 = vadd.f32 %v2017_v35, %v1854_v40  ;;  %v1859_v1 = vadd.f32 %v11633_v59, %v14049_v46  ;;  %11839 = vmatprep.mubr.msk.bf16.mxu1 %vm535_vm4, %v14322_v12  ;;  %v4234_v62 = vshrl.u32 %v4020_v37, 16  ;;  %v4245_v47 = vshrl.u32 %v4022_v22, 16 }
 0x191   : > { %v2030_v17 = vpop.f32.mrf.mxu0  ;;  %v1802_v10 = vpop.f32.mrf.mxu1  ;;  %v4248_v13 = vshll.u32 %v4022_v22, 16  ;;  %v4254_v33 = vshll.u32 %v4023_v38, 16  ;;  %v4258_v0 = vshrl.u32 %v4023_v38, 16  ;;  %v14408_v11 = vrot.slane %v4206_v50, 5 }
 0x192   : > { %v14405_v53 = vadd.f32 %v11667_v19, %v1859_v1  ;;  %v1857_v35 = vadd.f32 %v1802_v10, %v14053_v20  ;;  %v4216_v46 = vshll.u32 %v14395_v9, 16  ;;  %v14411_v45 = vrot.slane %v4203_v29, 4  ;;  %v4021_v19 = vld [vmem:[%s12658_s12 + $0x5c] sm:$0x1]  ;;  %v4024_v9 = vld [vmem:[%s12658_s12 + $0x68] sm:$0x1] }
 0x193   : > { %v11668_v21 = vpop.f32.mrf.mxu0  ;;  %v11634_v16 = vpop.f32.mrf.mxu1  ;;  %v4212_v26 = vrot.slane %v4210_v60, 4  ;;  %v4223_v37 = vrot.slane %v4221_v55, 4  ;;  %v4226_v40 = vrot.slane %v4224_v31, 5  ;;  %v14417_v38 = vrot.slane %v4230_v4, 5 }
 0x194   : > { %v14413_v59 = vadd.f32 %v2030_v17, %v1857_v35  ;;  %v1860_v22 = vadd.f32 %v11634_v16, %v14058_v57  ;;  %v4236_v20 = vrot.slane %v4234_v62, 4  ;;  %v4247_v10 = vrot.slane %v4245_v47, 4  ;;  %v10566_v16 = vld [vmem:[%s17804_s2 + $0x1c] sm:$0x3] }
 0x195   : > { %v2033_v27 = vpop.f32.mrf.mxu0  ;;  %v1805_v50 = vpop.f32.mrf.mxu1  ;;  %v4250_v29 = vrot.slane %v4248_v13, 5  ;;  %v14422_v60 = vrot.slane %v4254_v33, 5  ;;  %v4260_v55 = vrot.slane %v4258_v0, 4  ;;  %v14429_v31 = vcombine.low %v4161_v56, %v4171_v18  ;;  %v4025_v18 = vld [vmem:[%s12658_s12 + $0x6c] sm:$0xf] }
 0x196   : > { %v14424_v17 = vadd.f32 %v11668_v21, %v1860_v22  ;;  %v1858_v57 = vadd.f32 %v1805_v50, %v14063_v3  ;;  %v4213_v21 = vor.u32 %v4212_v26, %v14408_v11  ;;  %v4240_v56 = vshll.u32 %v4021_v19, 16 }
 0x197   : > { %v11671_v1 = vpop.f32.mrf.mxu0  ;;  %11874 = vmatmul.mubr.msk.bf16.gmra.mxu0 %vm535_vm4, %v14403_v24  ;;  %v11637_v62 = vpop.f32.mrf.mxu1  ;;  %11840 = vmatmul.mubr.msk.bf16.gmra.mxu1 %vm535_vm4, %v14332_v8  ;;  %v4237_v0 = vor.u32 %v4236_v20, %v14417_v38  ;;  %v4264_v35 = vshll.u32 %v4024_v9, 16  ;;  %v4026_v20 = vld [vmem:[%s12658_s12 + $0x70] sm:$0xf]  ;;  %v4269_v50 = vshrl.u32 %v4025_v18, 16  ;;  %v4272_v9 = vshll.u32 %v4025_v18, 16 }
 0x198   : > { %11913 = vmatprep.mubr.msk.bf16.mxu0 %vm535_vm4, %v14345_v48  ;;  %v4227_v48 = vor.u32 %v4226_v40, %v4223_v37  ;;  %v14443_v13 = vadd.f32 %v2033_v27, %v1858_v57  ;;  %v1863_v33 = vadd.f32 %v11637_v62, %v14073_v25  ;;  %11879 = vmatprep.mubr.msk.bf16.mxu1 %vm535_vm4, %v14071_v28  ;;  %v14456_v37 = vrot.slane %v4216_v46, 5  ;;  %v10532_v57 = vld [vmem:[%s17804_s2 + $0x16] sm:$0x3] }
 0x199   : > { %v2046_v47 = vpop.f32.mrf.mxu0  ;;  %v1818_v22 = vpop.f32.mrf.mxu1  ;;  %v4251_v25 = vor.u32 %v4250_v29, %v4247_v10  ;;  %v4261_v40 = vor.u32 %v4260_v55, %v14422_v60  ;;  %v14466_v46 = vrot.slane %v4213_v21, 4  ;;  %v14470_v29 = vrot.slane %v4240_v56, 5 }
 0x19a   : > { %v14459_v28 = vadd.f32 %v11671_v1, %v1863_v33  ;;  %v1861_v19 = vadd.f32 %v1818_v22, %v14085_v5  ;;  %v14468_v10 = vrot.slane %v4227_v48, 4  ;;  %v14473_v1 = vand.u32 %v10566_v16, %v17985_v15  ;;  %v4028_v22 = vld [vmem:[%s12658_s12 + $0x78] sm:$0xf] }
 0x19b   : > { %v11672_v26 = vpop.f32.mrf.mxu0  ;;  %v11638_v62 = vpop.f32.mrf.mxu1  ;;  %v14478_v18 = vrot.slane %v4237_v0, 4  ;;  %v14480_v33 = vrot.slane %v4264_v35, 5  ;;  %v4252_v21 = vrot.slane %v4251_v25, 4  ;;  %v4262_v48 = vrot.slane %v4261_v40, 4  ;;  %v18079_v25 = vld [vmem:[#allocation31_spill] sm:$0xff] }
 0x19c   : > { %18074 = vst [vmem:[#allocation8_spill] sm:$0xff] %v14459_v28  ;;  %18075 = vst [vmem:[#allocation42_spill] sm:$0xff] %v14473_v1  ;;  %v14475_v5 = vadd.f32 %v2046_v47, %v1861_v19  ;;  %v1864_v55 = vadd.f32 %v11638_v62, %v14093_v42  ;;  %v4278_v56 = vshll.u32 %v4026_v20, 16  ;;  %v4029_v28 = vld [vmem:[%s12658_s12 + $0x7c] sm:$0xf]  ;;  %v14487_v16 = vand.u32 %v10532_v57, %v17985_v15  ;;  %v18080_v62 = vld [vmem:[#allocation13_spill] sm:$0xff] }
 0x19d   : > { %v2049_v4 = vpop.f32.mrf.mxu0  ;;  %v1821_v27 = vpop.f32.mrf.mxu1  ;;  %v4271_v0 = vrot.slane %v4269_v50, 4  ;;  %v4274_v35 = vrot.slane %v4272_v9, 5  ;;  %v4282_v57 = vshrl.u32 %v4026_v20, 16  ;;  %v18081_v9 = vld [vmem:[#allocation12_spill] sm:$0xff]  ;;  %v4306_v15 = vshrl.u32 %v4029_v28, 16 }
 0x19e   : > { %18076 = vst [vmem:[#allocation28_spill] sm:$0xff] %v14475_v5  ;;  %18077 = vst [vmem:[#allocation6_spill] sm:$0xff] %v14487_v16  ;;  %v14489_v47 = vadd.f32 %v11672_v26, %v1864_v55  ;;  %v1862_v42 = vadd.f32 %v1821_v27, %v14101_v32  ;;  %v4219_v26 = vsel %vm12912_vm9, %v14466_v46, %v14456_v37  ;;  %v4293_v32 = vshrl.u32 %v4028_v22, 16  ;;  %v18082_v55 = vld [vmem:[#allocation32_spill] sm:$0xff] }
 0x19f   : > { %v11711_v3 = vpop.f32.mrf.mxu0  ;;  %11914 = vmatmul.mubr.msk.bf16.vlgmr.msra.gmra.mxu0 %vm535_vm4, %v14357_v43  ;;  %v11677_v19 = vpop.f32.mrf.mxu1  ;;  %11880 = vmatmul.mubr.msk.bf16.vlgmr.msra.gmra.mxu1 %vm535_vm4, %v18079_v25  ;;  %v4296_v27 = vshll.u32 %v4028_v22, 16  ;;  %v4027_v25 = vld [vmem:[%s12658_s12 + $0x74] sm:$0x1]  ;;  %v4233_v20 = vsel %vm12912_vm9, %v14468_v10, %v14417_v38  ;;  %v4257_v46 = vsel %vm12912_vm9, %v4252_v21, %v14422_v60  ;;  %v14520_v22 = vrot.slane %v4278_v56, 5 }
 0x1a0   : > { %18078 = vst [vmem:[#allocation7_spill] sm:$0xff] %v14489_v47  ;;  %11980 = vmatpush3.bf16.msra.mxu0 %v14083_v6  ;;  %11917 = vmatprep.mubr.msk.bf16.mxu0 %vm535_vm4, %v14363_v52  ;;  %v14502_v6 = vadd.f32 %v2049_v4, %v1862_v42  ;;  %v2291_v50 = vadd.f32 %v11677_v19, %v18080_v62  ;;  %v4302_v47 = vshll.u32 %v4029_v28, 16  ;;  %v18084_v42 = vld [vmem:[#allocation33_spill] sm:$0xff]  ;;  %v4031_v62 = vld [vmem:[%s12658_s12 + $0x84] sm:$0xf]  ;;  %v4295_v60 = vrot.slane %v4293_v32, 4 }
 0x1a1   : > { %v2637_v40 = vpop.f32.mrf.mxu0  ;;  %12047 = vmatprep.subr.bf16.mxu0 %v14473_v1  ;;  %11946 = vmatpush3.bf16.msra.mxu1 %v18081_v9  ;;  %v2162_v5 = vpop.f32.mrf.mxu1  ;;  %v4243_v4 = vsel %vm12912_vm9, %v14478_v18, %v14470_v29  ;;  %v4267_v38 = vsel %vm12912_vm9, %v4262_v48, %v14480_v33  ;;  %v4275_v10 = vor.u32 %v4274_v35, %v4271_v0  ;;  %v4284_v9 = vrot.slane %v4282_v57, 4  ;;  %v18085_v1 = vld [vmem:[#allocation44_spill] sm:$0xff]  ;;  %v4032_v57 = vld [vmem:[%s12658_s12 + $0x88] sm:$0xf] }
 0x1a2   : > { %11883 = vmatprep.mubr.msk.bf16.mxu1 %vm535_vm4, %v18082_v55  ;;  %12013 = vmatprep.subr.bf16.mxu1 %v14487_v16  ;;  %v14523_v28 = vadd.f32 %v11711_v3, %v2291_v50  ;;  %v2289_v19 = vadd.f32 %v2162_v5, %v18084_v42  ;;  %v4288_v55 = vshll.u32 %v4027_v25, 16  ;;  %v4298_v21 = vrot.slane %v4296_v27, 5  ;;  %v4030_v3 = vld [vmem:[%s12658_s12 + $0x80] sm:$0x1] }
 0x1a3   : > { %v11712_v37 = vpop.f32.mrf.mxu0  ;;  %v11678_v29 = vpop.f32.mrf.mxu1  ;;  %v14534_v50 = vrot.slane %v4302_v47, 5  ;;  %v4308_v5 = vrot.slane %v4306_v15, 4  ;;  %v18086_v33 = vsel %vm12912_vm9, %v14388_v54, %v14380_v30  ;;  %v18089_v15 = vsel %vm12912_vm9, %v14411_v45, %v14408_v11  ;;  %v18092_v30 = vld [vmem:[#allocation17_spill] sm:$0xff]  ;;  %v18094_v11 = vld [vmem:[#allocation15_spill] sm:$0xff] }
 0x1a4   : > { %18083 = vst [vmem:[#allocation35_spill] sm:$0xff] %v14523_v28  ;;  %v14530_v56 = vadd.f32 %v2637_v40, %v2289_v19  ;;  %v2292_v16 = vadd.f32 %v11678_v29, %v18085_v1  ;;  %v18087_v1 = vsel %vm12912_vm9, %v14378_v34, %v14302_v14  ;;  %v14555_v47 = vcombine.low %v18089_v15, %v4219_v26  ;;  %v18097_v19 = vld [vmem:[#allocation19_spill] sm:$0xff]  ;;  %v4035_v29 = vld [vmem:[%s12658_s12 + $0x94] sm:$0xf]  ;;  %v18099_v15 = vld [vmem:[#allocation16_spill] sm:$0xff] }
 0x1a5   : > { %v2640_v18 = vpop.f32.mrf.mxu0  ;;  %v2165_v42 = vpop.f32.mrf.mxu1  ;;  %v14548_v48 = vcombine.low %v18087_v1, %v18086_v33  ;;  %v4317_v0 = vshrl.u32 %v4031_v62, 16  ;;  %v4320_v35 = vshll.u32 %v4031_v62, 16  ;;  %v14562_v14 = vcombine.low %v4233_v20, %v4243_v4  ;;  %v18096_v4 = vld [vmem:[#allocation45_spill] sm:$0xff] }
 0x1a6   : > { %18090 = vst [vmem:[#allocation23_spill] sm:$0xff] %v14555_v47  ;;  %v14557_v40 = vadd.f32 %v11712_v37, %v2292_v16  ;;  %v2290_v54 = vadd.f32 %v2165_v42, %v18092_v30  ;;  %v14564_v34 = vcombine.low %v4257_v46, %v4267_v38  ;;  %v14569_v26 = vrot.slane %v4275_v10, 4  ;;  %v4034_v37 = vld [vmem:[%s12658_s12 + $0x90] sm:$0xf]  ;;  %v4033_v30 = vld [vmem:[%s12658_s12 + $0x8c] sm:$0x1] }
 0x1a7   : > { %v11715_v28 = vpop.f32.mrf.mxu0  ;;  %11918 = vmatmul.mubr.msk.bf16.gmra.mxu0 %vm535_vm4, %v14365_v39  ;;  %18088 = vst [vmem:[#allocation22_spill] sm:$0xff] %v14548_v48  ;;  %v11681_v32 = vpop.f32.mrf.mxu1  ;;  %11884 = vmatmul.mubr.msk.bf16.gmra.mxu1 %vm535_vm4, %v18094_v11  ;;  %v4285_v16 = vor.u32 %v4284_v9, %v14520_v22  ;;  %v14572_v27 = vrot.slane %v4288_v55, 5  ;;  %v4312_v25 = vshll.u32 %v4030_v3, 16  ;;  %v4299_v38 = vor.u32 %v4298_v21, %v4295_v60 }
 0x1a8   : > { %18091 = vst [vmem:[#allocation24_spill] sm:$0xff] %v14557_v40  ;;  %11921 = vmatprep.mubr.msk.bf16.mxu0 %vm535_vm4, %v14429_v31  ;;  %18093 = vst [vmem:[#allocation5_spill] sm:$0xff] %v14564_v34  ;;  %v14575_v20 = vadd.f32 %v2640_v18, %v2290_v54  ;;  %v2295_v46 = vadd.f32 %v11681_v32, %v18096_v4  ;;  %11887 = vmatprep.mubr.msk.bf16.mxu1 %vm535_vm4, %v18097_v19  ;;  %v4319_v33 = vrot.slane %v4317_v0, 4 }
 0x1a9   : > { %v2653_v45 = vpop.f32.mrf.mxu0  ;;  %v4309_v62 = vor.u32 %v4308_v5, %v14534_v50  ;;  %v2178_v10 = vpop.f32.mrf.mxu1  ;;  %v4322_v9 = vrot.slane %v4320_v35, 5  ;;  %v4326_v55 = vshll.u32 %v4032_v57, 16  ;;  %v4330_v1 = vshrl.u32 %v4032_v57, 16  ;;  %v18101_v35 = vld [vmem:[#allocation36_spill] sm:$0xff] }
 0x1aa   : > { %18095 = vst [vmem:[#allocation4_spill] sm:$0xff] %v14575_v20  ;;  %v14582_v3 = vadd.f32 %v11715_v28, %v2295_v46  ;;  %v2293_v18 = vadd.f32 %v2178_v10, %v18099_v15  ;;  %v4341_v54 = vshrl.u32 %v4034_v37, 16  ;;  %v4344_v32 = vshll.u32 %v4034_v37, 16 }
 0x1ab   : > { %v11716_v42 = vpop.f32.mrf.mxu0  ;;  %v11682_v11 = vpop.f32.mrf.mxu1  ;;  %v14586_v19 = vrot.slane %v4285_v16, 4  ;;  %v14588_v60 = vrot.slane %v4312_v25, 5  ;;  %v4350_v21 = vshll.u32 %v4035_v29, 16  ;;  %v4354_v5 = vshrl.u32 %v4035_v29, 16 }
 0x1ac   : > { %18098 = vst [vmem:[#allocation27_spill] sm:$0xff] %v14582_v3  ;;  %v14590_v0 = vadd.f32 %v2653_v45, %v2293_v18  ;;  %v2296_v57 = vadd.f32 %v11682_v11, %v18101_v35  ;;  %v14593_v28 = vrot.slane %v4299_v38, 4  ;;  %v14595_v46 = vrot.slane %v4309_v62, 4  ;;  %v18103_v45 = vld [vmem:[#allocation46_spill] sm:$0xff]  ;;  %v4036_v38 = vld [vmem:[%s12658_s12 + $0x98] sm:$0x1] }
 0x1ad   : > { %v2656_v4 = vpop.f32.mrf.mxu0  ;;  %v2181_v10 = vpop.f32.mrf.mxu1  ;;  %v4323_v16 = vor.u32 %v4322_v9, %v4319_v33  ;;  %v14599_v37 = vrot.slane %v4326_v55, 5  ;;  %v4332_v25 = vrot.slane %v4330_v1, 4  ;;  %v4336_v3 = vshll.u32 %v4033_v30, 16  ;;  %v4037_v30 = vld [vmem:[%s12658_s12 + $0x9c] sm:$0xf] }
 0x1ae   : > { %18100 = vst [vmem:[#allocation34_spill] sm:$0xff] %v14590_v0  ;;  %v14601_v29 = vadd.f32 %v11716_v42, %v2296_v57  ;;  %v2294_v18 = vadd.f32 %v2181_v10, %v18103_v45  ;;  %v4343_v62 = vrot.slane %v4341_v54, 4  ;;  %v4346_v11 = vrot.slane %v4344_v32, 5  ;;  %v18104_v0 = vld [vmem:[#allocation9_spill] sm:$0xff]  ;;  %v18106_v32 = vld [vmem:[#allocation47_spill] sm:$0xff] }
 0x1af   : > { %v11719_v15 = vpop.f32.mrf.mxu0  ;;  %11922 = vmatmul.mubr.msk.bf16.gmra.mxu0 %vm535_vm4, %v14548_v48  ;;  %v11685_v35 = vpop.f32.mrf.mxu1  ;;  %11888 = vmatmul.mubr.msk.bf16.gmra.mxu1 %vm535_vm4, %v18104_v0  ;;  %v4281_v42 = vsel %vm12912_vm9, %v14569_v26, %v14520_v22  ;;  %v4291_v9 = vsel %vm12912_vm9, %v14586_v19, %v14572_v27  ;;  %v14617_v55 = vrot.slane %v4350_v21, 5  ;;  %v4356_v1 = vrot.slane %v4354_v5, 4  ;;  %v18107_v57 = vld [vmem:[#allocation11_spill] sm:$0xff]  ;;  %v4038_v27 = vld [vmem:[%s12658_s12 + $0xa0] sm:$0xf] }
 0x1b0   : > { %18102 = vst [vmem:[#allocation30_spill] sm:$0xff] %v14601_v29  ;;  %11925 = vmatprep.mubr.msk.bf16.mxu0 %vm535_vm4, %v14555_v47  ;;  %v14620_v54 = vadd.f32 %v2656_v4, %v2294_v18  ;;  %v2299_v0 = vadd.f32 %v11685_v35, %v18106_v32  ;;  %11891 = vmatprep.mubr.msk.bf16.mxu1 %vm535_vm4, %v18107_v57  ;;  %v14634_v21 = vrot.slane %v4323_v16, 4  ;;  %v14637_v10 = vrot.slane %v4336_v3, 5  ;;  %v4040_v18 = vld [vmem:[%s12658_s12 + $0xa8] sm:$0xf]  ;;  %v18109_v32 = vld [vmem:[#allocation38_spill] sm:$0xff] }
 0x1b1   : > { %v2669_v33 = vpop.f32.mrf.mxu0  ;;  %v4305_v22 = vsel %vm12912_vm9, %v14593_v28, %v14534_v50  ;;  %v4315_v26 = vsel %vm12912_vm9, %v14595_v46, %v14588_v60  ;;  %v2194_v19 = vpop.f32.mrf.mxu1  ;;  %v4333_v5 = vor.u32 %v4332_v25, %v14599_v37  ;;  %v4360_v45 = vshll.u32 %v4036_v38, 16  ;;  %v18111_v3 = vld [vmem:[#allocation43_spill] sm:$0xff] }
 0x1b2   : > { %18105 = vst [vmem:[#allocation37_spill] sm:$0xff] %v14620_v54  ;;  %v14640_v35 = vadd.f32 %v11719_v15, %v2299_v0  ;;  %v2297_v50 = vadd.f32 %v2194_v19, %v18109_v32  ;;  %v4347_v28 = vor.u32 %v4346_v11, %v4343_v62  ;;  %v4365_v57 = vshrl.u32 %v4037_v30, 16  ;;  %v4041_v54 = vld [vmem:[%s12658_s12 + $0xac] sm:$0xf] }
 0x1b3   : > { %v11720_v4 = vpop.f32.mrf.mxu0  ;;  %v11686_v29 = vpop.f32.mrf.mxu1  ;;  %v4357_v46 = vor.u32 %v4356_v1, %v14617_v55  ;;  %v4368_v47 = vshll.u32 %v4037_v30, 16  ;;  %v4374_v16 = vshll.u32 %v4038_v27, 16  ;;  %v4378_v20 = vshrl.u32 %v4038_v27, 16  ;;  %v18113_v30 = vld [vmem:[#allocation18_spill] sm:$0xff] }
 0x1b4   : > { %18108 = vst [vmem:[#allocation14_spill] sm:$0xff] %v14640_v35  ;;  %v14645_v48 = vadd.f32 %v2669_v33, %v2297_v50  ;;  %v2300_v25 = vadd.f32 %v11686_v29, %v18111_v3  ;;  %v4389_v38 = vshrl.u32 %v4040_v18, 16  ;;  %v4392_v40 = vshll.u32 %v4040_v18, 16  ;;  %v18114_v50 = vld [vmem:[#allocation48_spill] sm:$0xff] }
 0x1b5   : > { %v2672_v60 = vpop.f32.mrf.mxu0  ;;  %v2197_v15 = vpop.f32.mrf.mxu1  ;;  %v4334_v62 = vrot.slane %v4333_v5, 4  ;;  %v4362_v11 = vrot.slane %v4360_v45, 5  ;;  %v4398_v19 = vshll.u32 %v4041_v54, 16  ;;  %v4402_v32 = vshrl.u32 %v4041_v54, 16 }
 0x1b6   : > { %18110 = vst [vmem:[#allocation29_spill] sm:$0xff] %v14645_v48  ;;  %v14650_v1 = vadd.f32 %v11720_v4, %v2300_v25  ;;  %v2298_v27 = vadd.f32 %v2197_v15, %v18113_v30  ;;  %v4348_v29 = vrot.slane %v4347_v28, 4  ;;  %v4367_v33 = vrot.slane %v4365_v57, 4  ;;  %v18115_v4 = vld [vmem:[#allocation20_spill] sm:$0xff]  ;;  %v18116_v15 = vld [vmem:[#allocation39_spill] sm:$0xff] }
 0x1b7   : > { %v11723_v0 = vpop.f32.mrf.mxu0  ;;  %11926 = vmatmul.mubr.msk.bf16.gmra.mxu0 %vm535_vm4, %v14562_v14  ;;  %v11689_v18 = vpop.f32.mrf.mxu1  ;;  %11892 = vmatmul.mubr.msk.bf16.gmra.mxu1 %vm535_vm4, %v18114_v50  ;;  %v4358_v48 = vrot.slane %v4357_v46, 4  ;;  %v4370_v5 = vrot.slane %v4368_v47, 5  ;;  %v14657_v45 = vrot.slane %v4374_v16, 5  ;;  %v4380_v54 = vrot.slane %v4378_v20, 4  ;;  %v4039_v28 = vld [vmem:[%s12658_s12 + $0xa4] sm:$0x1] }
 0x1b8   : > { %18112 = vst [vmem:[#allocation31_spill] sm:$0xff] %v14650_v1  ;;  %11929 = vmatprep.mubr.msk.bf16.mxu0 %vm535_vm4, %v14564_v34  ;;  %v14659_v35 = vadd.f32 %v2672_v60, %v2298_v27  ;;  %v2303_v25 = vadd.f32 %v11689_v18, %v18115_v4  ;;  %11895 = vmatprep.mubr.msk.bf16.mxu1 %vm535_vm4, %v18116_v15  ;;  %v4391_v57 = vrot.slane %v4389_v38, 4  ;;  %v4394_v30 = vrot.slane %v4392_v40, 5  ;;  %v18117_v16 = vld [vmem:[#allocation40_spill] sm:$0xff]  ;;  %v4044_v18 = vld [vmem:[%s12658_s12 + $0xb8] sm:$0xf] }
 0x1b9   : > { %v2685_v3 = vpop.f32.mrf.mxu0  ;;  %v2210_v1 = vpop.f32.mrf.mxu1  ;;  %v14665_v34 = vcombine.low %v4281_v42, %v4291_v9  ;;  %v14667_v47 = vcombine.low %v4305_v22, %v4315_v26  ;;  %v14669_v20 = vrot.slane %v4398_v19, 5  ;;  %v4404_v60 = vrot.slane %v4402_v32, 4  ;;  %v4042_v42 = vld [vmem:[%s12658_s12 + $0xb0] sm:$0x1]  ;;  %v4043_v9 = vld [vmem:[%s12658_s12 + $0xb4] sm:$0xf] }
 0x1ba   : > { %v14671_v46 = vadd.f32 %v11723_v0, %v2303_v25  ;;  %v2301_v27 = vadd.f32 %v2210_v1, %v18117_v16  ;;  %v4329_v38 = vsel %vm12912_vm9, %v14634_v21, %v14599_v37  ;;  %v4339_v40 = vsel %vm12912_vm9, %v4334_v62, %v14637_v10  ;;  %v18118_v37 = vld [vmem:[#allocation21_spill] sm:$0xff] }
 0x1bb   : > { %v11724_v50 = vpop.f32.mrf.mxu0  ;;  %v11690_v22 = vpop.f32.mrf.mxu1  ;;  %v4353_v0 = vsel %vm12912_vm9, %v4348_v29, %v14617_v55  ;;  %v4363_v19 = vsel %vm12912_vm9, %v4358_v48, %v4362_v11  ;;  %v4371_v32 = vor.u32 %v4370_v5, %v4367_v33  ;;  %v4384_v1 = vshll.u32 %v4039_v28, 16  ;;  %v18119_v33 = vld [vmem:[#allocation41_spill] sm:$0xff] }
 0x1bc   : > { %v14689_v4 = vadd.f32 %v2685_v3, %v2301_v27  ;;  %v2304_v21 = vadd.f32 %v11690_v22, %v18118_v37  ;;  %v4381_v10 = vor.u32 %v4380_v54, %v14657_v45  ;;  %v4395_v62 = vor.u32 %v4394_v30, %v4391_v57 }
 0x1bd   : > { %v2688_v26 = vpop.f32.mrf.mxu0  ;;  %v2213_v25 = vpop.f32.mrf.mxu1  ;;  %v4405_v55 = vor.u32 %v4404_v60, %v14669_v20  ;;  %v4408_v29 = vshll.u32 %v4042_v42, 16  ;;  %v4413_v16 = vshrl.u32 %v4043_v9, 16  ;;  %v4416_v48 = vshll.u32 %v4043_v9, 16  ;;  %v18120_v9 = vld [vmem:[#allocation25_spill] sm:$0xff] }
 0x1be   : > { %v14696_v11 = vadd.f32 %v11724_v50, %v2304_v21  ;;  %v2302_v3 = vadd.f32 %v2213_v25, %v18119_v33  ;;  %v4422_v5 = vshll.u32 %v4044_v18, 16  ;;  %v4426_v54 = vshrl.u32 %v4044_v18, 16 }
 0x1bf   : > { %v11727_v15 = vpop.f32.mrf.mxu0  ;;  %11930 = vmatmul.mubr.msk.bf16.gmra.mxu0 %vm535_vm4, %v14665_v34  ;;  %v11693_v28 = vpop.f32.mrf.mxu1  ;;  %11896 = vmatmul.mubr.msk.bf16.gmra.mxu1 %vm535_vm4, %v14233_v58  ;;  %v14703_v30 = vcombine.low %v4329_v38, %v4339_v40  ;;  %v14705_v60 = vcombine.low %v4353_v0, %v4363_v19  ;;  %v4372_v27 = vrot.slane %v4371_v32, 4  ;;  %v4386_v50 = vrot.slane %v4384_v1, 5  ;;  %v4045_v32 = vld [vmem:[%s12658_s12 + $0xbc] sm:$0x1] }
 0x1c0   : > { %11933 = vmatprep.mubr.msk.bf16.mxu0 %vm535_vm4, %v14667_v47  ;;  %v14707_v42 = vadd.f32 %v2688_v26, %v2302_v3  ;;  %v2307_v22 = vadd.f32 %v11693_v28, %v18120_v9  ;;  %11899 = vmatprep.mubr.msk.bf16.mxu1 %vm535_vm4, %v14274_v7  ;;  %v4382_v18 = vrot.slane %v4381_v10, 4  ;;  %v4396_v37 = vrot.slane %v4395_v62, 4 }
 0x1c1   : > { %v2701_v57 = vpop.f32.mrf.mxu0  ;;  %v2226_v21 = vpop.f32.mrf.mxu1  ;;  %v4406_v58 = vrot.slane %v4405_v55, 4  ;;  %v4410_v33 = vrot.slane %v4408_v29, 5  ;;  %v4415_v38 = vrot.slane %v4413_v16, 4  ;;  %v4418_v40 = vrot.slane %v4416_v48, 5 }
 0x1c2   : > { %v14712_v0 = vadd.f32 %v11727_v15, %v2307_v22  ;;  %v2305_v19 = vadd.f32 %v2226_v21, %v14289_v44  ;;  %v4424_v26 = vrot.slane %v4422_v5, 5  ;;  %v4428_v1 = vrot.slane %v4426_v54, 4 }
 0x1c3   : > { %v11728_v25 = vpop.f32.mrf.mxu0  ;;  %v11694_v3 = vpop.f32.mrf.mxu1  ;;  %v4377_v10 = vsel %vm12912_vm9, %v4372_v27, %v14657_v45  ;;  %v4387_v44 = vsel %vm12912_vm9, %v4382_v18, %v4386_v50  ;;  %v4401_v15 = vsel %vm12912_vm9, %v4396_v37, %v14669_v20  ;;  %v4411_v29 = vsel %vm12912_vm9, %v4406_v58, %v4410_v33 }
 0x1c4   : > { %v14716_v9 = vadd.f32 %v2701_v57, %v2305_v19  ;;  %v2308_v7 = vadd.f32 %v11694_v3, %v14296_v23  ;;  %v4432_v23 = vshll.u32 %v4045_v32, 16  ;;  %v4419_v48 = vor.u32 %v4418_v40, %v4415_v38 }
 0x1c5   : > { %v2704_v28 = vpop.f32.mrf.mxu0  ;;  %v2229_v62 = vpop.f32.mrf.mxu1  ;;  %v4429_v5 = vor.u32 %v4428_v1, %v4424_v26  ;;  %v14745_v18 = vcombine.low %v4401_v15, %v4411_v29 }
 0x1c6   : > { %v14731_v16 = vadd.f32 %v11728_v25, %v2308_v7  ;;  %v2306_v45 = vadd.f32 %v2229_v62, %v14312_v61  ;;  %v14743_v61 = vcombine.low %v4377_v10, %v4387_v44  ;;  %v4434_v37 = vrot.slane %v4432_v23, 5  ;;  %v12504_v23 = vld [vmem:[%s12658_s12 + $0xcc] sm:$0xff]  }
 0x1c7   : > { %v11731_v55 = vpop.f32.mrf.mxu0  ;;  %11934 = vmatmul.mubr.msk.bf16.gmra.mxu0 %vm535_vm4, %v14703_v30  ;;  %v11697_v54 = vpop.f32.mrf.mxu1  ;;  %11900 = vmatmul.mubr.msk.bf16.gmra.mxu1 %vm535_vm4, %v14282_v36  ;;  %v4420_v36 = vrot.slane %v4419_v48, 4  ;;  %v4430_v58 = vrot.slane %v4429_v5, 4 }
 0x1c8   : > { %11937 = vmatprep.mubr.msk.bf16.mxu0 %vm535_vm4, %v14705_v60  ;;  %v14738_v27 = vadd.f32 %v2704_v28, %v2306_v45  ;;  %v2311_v20 = vadd.f32 %v11697_v54, %v14328_v2  ;;  %11903 = vmatprep.mubr.msk.bf16.mxu1 %vm535_vm4, %v14322_v12 }
 0x1c9   : > { %v2717_v57 = vpop.f32.mrf.mxu0  ;;  %v2242_v50 = vpop.f32.mrf.mxu1  ;;  %v4435_v3 = vsel %vm12912_vm9, %v4430_v58, %v4434_v37  ;;  %v10585_v58 = vld [vmem:[%s17804_s2 + $0x22] sm:$0x3] }
 0x1ca   : > { %v14747_v21 = vadd.f32 %v11731_v55, %v2311_v20  ;;  %v2309_v25 = vadd.f32 %v2242_v50, %v14360_v49  ;;  %v4425_v49 = vsel %vm12912_vm9, %v4420_v36, %v4424_v26  ;;  %v18121_v20 = vld [vmem:[#allocation8_spill] sm:$0xff] }
 0x1cb   : > { %v11732_v22 = vpop.f32.mrf.mxu0  ;;  %v11698_v33 = vpop.f32.mrf.mxu1  ;;  %v14771_v55 = vcombine.low %v4425_v49, %v4435_v3  ;;  %v10603_v50 = vld [vmem:[%s17804_s2 + $0x24] sm:$0x3] }
 0x1cc   : > { %v14750_v40 = vadd.f32 %v2717_v57, %v2309_v25  ;;  %v2312_v2 = vadd.f32 %v11698_v33, %v14383_v63  ;;  %v18122_v25 = vld [vmem:[#allocation28_spill] sm:$0xff] }
 0x1cd   : > { %v2720_v38 = vpop.f32.mrf.mxu0  ;;  %v2245_v12 = vpop.f32.mrf.mxu1 }
 0x1ce   : > { %v14755_v32 = vadd.f32 %v11732_v22, %v2312_v2  ;;  %v2310_v1 = vadd.f32 %v2245_v12, %v14397_v41  ;;  %v18123_v2 = vld [vmem:[#allocation3_spill] sm:$0xff] }
 0x1cf   : > { %v11735_v19 = vpop.f32.mrf.mxu0  ;;  %11938 = vmatmul.mubr.msk.bf16.gmra.mxu0 %vm535_vm4, %v14743_v61  ;;  %v11701_v63 = vpop.f32.mrf.mxu1  ;;  %11904 = vmatmul.mubr.msk.bf16.gmra.mxu1 %vm535_vm4, %v14332_v8  ;;  %v14803_v12 = vand.u32 %v10603_v50, %v18123_v2 }
 0x1d0   : > { %11941 = vmatprep.mubr.msk.bf16.mxu0 %vm535_vm4, %v14745_v18  ;;  %v14766_v7 = vadd.f32 %v2720_v38, %v2310_v1  ;;  %v2315_v10 = vadd.f32 %v11701_v63, %v14405_v53  ;;  %11907 = vmatprep.mubr.msk.bf16.mxu1 %vm535_vm4, %v14403_v24  ;;  %v14811_v63 = vand.u32 %v10585_v58, %v18123_v2  ;;  %v18131_v58 = vld [vmem:[#allocation23_spill] sm:$0xff] }
 0x1d1   : > { %v2733_v28 = vpop.f32.mrf.mxu0  ;;  %v2258_v41 = vpop.f32.mrf.mxu1 }
 0x1d2   : > { %v14773_v26 = vadd.f32 %v11735_v19, %v2315_v10  ;;  %v2313_v44 = vadd.f32 %v2258_v41, %v14413_v59  ;;  %v18124_v19 = vld [vmem:[#allocation7_spill] sm:$0xff]  ;;  %v18125_v41 = vld [vmem:[#allocation42_spill] sm:$0xff] }
 0x1d3   : > { %v11736_v62 = vpop.f32.mrf.mxu0  ;;  %v11702_v15 = vpop.f32.mrf.mxu1 }
 0x1d4   : > { %v14777_v8 = vadd.f32 %v2733_v28, %v2313_v44  ;;  %v2316_v45 = vadd.f32 %v11702_v15, %v14424_v17 }
 0x1d5   : > { %v2736_v29 = vpop.f32.mrf.mxu0  ;;  %v2261_v48 = vpop.f32.mrf.mxu1 }
 0x1d6   : > { %v14782_v24 = vadd.f32 %v11736_v62, %v2316_v45  ;;  %v2314_v5 = vadd.f32 %v2261_v48, %v14443_v13  ;;  %v18127_v45 = vld [vmem:[#allocation6_spill] sm:$0xff] }
 0x1d7   : > { %v11739_v53 = vpop.f32.mrf.mxu0  ;;  %11942 = vmatmul.mubr.msk.bf16.gmra.mxu0 %vm535_vm4, %v14771_v55  ;;  %v11705_v59 = vpop.f32.mrf.mxu1  ;;  %11908 = vmatmul.mubr.msk.bf16.gmra.mxu1 %vm535_vm4, %v12504_v23 }
 0x1d8   : > { %11981 = vmatprep.mubr.msk.bf16.mxu0 %vm535_vm4, %v14363_v52  ;;  %v14788_v57 = vadd.f32 %v2736_v29, %v2314_v5  ;;  %v2319_v17 = vadd.f32 %v11705_v59, %v18121_v20  ;;  %11947 = vmatprep.mubr.msk.bf16.mxu1 %vm535_vm4, %v14357_v43  ;;  %v18126_v29 = vld [vmem:[#allocation35_spill] sm:$0xff]  ;;  %v18128_v20 = vld [vmem:[#allocation24_spill] sm:$0xff] }
 0x1d9   : > { %v2749_v54 = vpop.f32.mrf.mxu0  ;;  %v2274_v22 = vpop.f32.mrf.mxu1 }
 0x1da   : > { %v14796_v37 = vadd.f32 %v11739_v53, %v2319_v17  ;;  %v2317_v36 = vadd.f32 %v2274_v22, %v18122_v25  ;;  %v18130_v25 = vld [vmem:[#allocation4_spill] sm:$0xff] }
 0x1db   : > { %v11740_v13 = vpop.f32.mrf.mxu0  ;;  %v11706_v33 = vpop.f32.mrf.mxu1 }
 0x1dc   : > { %v14805_v43 = vadd.f32 %v2749_v54, %v2317_v36  ;;  %v2320_v1 = vadd.f32 %v11706_v33, %v18124_v19  ;;  %v18132_v19 = vld [vmem:[#allocation27_spill] sm:$0xff] }
 0x1dd   : > { %v2752_v38 = vpop.f32.mrf.mxu0  ;;  %v2277_v49 = vpop.f32.mrf.mxu1 }
 0x1de   : > { %v14813_v28 = vadd.f32 %v11740_v13, %v2320_v1  ;;  %v2318_v10 = vadd.f32 %v2277_v49, %v14502_v6  ;;  %v18129_v13 = vld [vmem:[#allocation22_spill] sm:$0xff] }
 0x1df   : > { %v11779_v3 = vpop.f32.mrf.mxu0  ;;  %11982 = vmatmul.mubr.msk.bf16.vlgmr.msra.gmra.mxu0 %vm535_vm4, %v14365_v39  ;;  %v11745_v62 = vpop.f32.mrf.mxu1  ;;  %11948 = vmatmul.mubr.msk.bf16.vlgmr.msra.gmra.mxu1 %vm535_vm4, %v14363_v52 }
 0x1e0   : > { %12048 = vmatpush3.bf16.msra.mxu0 %v18125_v41  ;;  %11985 = vmatprep.mubr.msk.bf16.mxu0 %vm535_vm4, %v14429_v31  ;;  %v14822_v15 = vadd.f32 %v2752_v38, %v2318_v10  ;;  %v2980_v23 = vadd.f32 %v11745_v62, %v18126_v29  ;;  %v18133_v41 = vld [vmem:[#allocation34_spill] sm:$0xff] }
 0x1e1   : > { %v3065_v44 = vpop.f32.mrf.mxu0  ;;  %12115 = vmatprep.subr.bf16.mxu0 %v14803_v12  ;;  %12014 = vmatpush3.bf16.msra.mxu1 %v18127_v45  ;;  %v2851_v6 = vpop.f32.mrf.mxu1  ;;  %v18134_v45 = vld [vmem:[#allocation30_spill] sm:$0xff] }
 0x1e2   : > { %11951 = vmatprep.mubr.msk.bf16.mxu1 %vm535_vm4, %v14365_v39  ;;  %12081 = vmatprep.subr.bf16.mxu1 %v14811_v63  ;;  %v14829_v53 = vadd.f32 %v11779_v3, %v2980_v23  ;;  %v2978_v52 = vadd.f32 %v2851_v6, %v14530_v56 }
 0x1e3   : > { %v11780_v48 = vpop.f32.mrf.mxu0  ;;  %v11746_v5 = vpop.f32.mrf.mxu1 }
 0x1e4   : > { %v14832_v54 = vadd.f32 %v3065_v44, %v2978_v52  ;;  %v2981_v17 = vadd.f32 %v11746_v5, %v18128_v20  ;;  %v18135_v5 = vld [vmem:[#allocation37_spill] sm:$0xff] }
 0x1e5   : > { %v3068_v59 = vpop.f32.mrf.mxu0  ;;  %v2854_v50 = vpop.f32.mrf.mxu1  ;;  %v18136_v20 = vld [vmem:[#allocation5_spill] sm:$0xff] }
 0x1e6   : > { %v14837_v39 = vadd.f32 %v11780_v48, %v2981_v17  ;;  %v2979_v36 = vadd.f32 %v2854_v50, %v18130_v25 }
 0x1e7   : > { %v11783_v22 = vpop.f32.mrf.mxu0  ;;  %11986 = vmatmul.mubr.msk.bf16.gmra.mxu0 %vm535_vm4, %v18129_v13  ;;  %v11749_v33 = vpop.f32.mrf.mxu1  ;;  %11952 = vmatmul.mubr.msk.bf16.gmra.mxu1 %vm535_vm4, %v14429_v31 }
 0x1e8   : > { %11989 = vmatprep.mubr.msk.bf16.mxu0 %vm535_vm4, %v18131_v58  ;;  %v14844_v38 = vadd.f32 %v3068_v59, %v2979_v36  ;;  %v2984_v1 = vadd.f32 %v11749_v33, %v18132_v19  ;;  %11955 = vmatprep.mubr.msk.bf16.mxu1 %vm535_vm4, %v18129_v13  ;;  %v18137_v13 = vld [vmem:[#allocation14_spill] sm:$0xff]  ;;  %v18138_v19 = vld [vmem:[#allocation29_spill] sm:$0xff] }
 0x1e9   : > { %v3081_v56 = vpop.f32.mrf.mxu0  ;;  %v2867_v49 = vpop.f32.mrf.mxu1 }
 0x1ea   : > { %v14849_v10 = vadd.f32 %v11783_v22, %v2984_v1  ;;  %v2982_v62 = vadd.f32 %v2867_v49, %v18133_v41  ;;  %v4046_v49 = vld [vmem:[%s12658_s12 + $0xc0] sm:$0xf] }
 0x1eb   : > { %v11784_v3 = vpop.f32.mrf.mxu0  ;;  %v11750_v44 = vpop.f32.mrf.mxu1 }
 0x1ec   : > { %v14852_v23 = vadd.f32 %v3081_v56, %v2982_v62  ;;  %v2985_v31 = vadd.f32 %v11750_v44, %v18134_v45  ;;  %v18140_v44 = vld [vmem:[#allocation31_spill] sm:$0xff] }
 0x1ed   : > { %v3084_v29 = vpop.f32.mrf.mxu0  ;;  %v2870_v6 = vpop.f32.mrf.mxu1 }
 0x1ee   : > { %v14857_v52 = vadd.f32 %v11784_v3, %v2985_v31  ;;  %v2983_v59 = vadd.f32 %v2870_v6, %v18135_v5  ;;  %v14874_v3 = vld [vmem:[%s12658_s12 + $0xc4] sm:$0xf]  ;;  %v4734_v6 = vshll.u32 %v4046_v49, 16 }
 0x1ef   : > { %v11787_v48 = vpop.f32.mrf.mxu0  ;;  %11990 = vmatmul.mubr.msk.bf16.gmra.mxu0 %vm535_vm4, %v14562_v14  ;;  %v11753_v17 = vpop.f32.mrf.mxu1  ;;  %11956 = vmatmul.mubr.msk.bf16.gmra.mxu1 %vm535_vm4, %v18131_v58  ;;  %18139 = vst [vmem:[#allocation13_spill] sm:$0xff] %v14874_v3  ;;  %v4744_v5 = vshrl.u32 %v14874_v3, 16 }
 0x1f0   : > { %11993 = vmatprep.mubr.msk.bf16.mxu0 %vm535_vm4, %v18136_v20  ;;  %v14864_v22 = vadd.f32 %v3084_v29, %v2983_v59  ;;  %v2988_v25 = vadd.f32 %v11753_v17, %v18137_v13  ;;  %11959 = vmatprep.mubr.msk.bf16.mxu1 %vm535_vm4, %v14562_v14  ;;  %v4731_v14 = vshrl.u32 %v4046_v49, 16 }
 0x1f1   : > { %v3097_v50 = vpop.f32.mrf.mxu0  ;;  %v2883_v36 = vpop.f32.mrf.mxu1 }
 0x1f2   : > { %v14869_v56 = vadd.f32 %v11787_v48, %v2988_v25  ;;  %v2986_v1 = vadd.f32 %v2883_v36, %v18138_v19  ;;  %v4740_v48 = vshll.u32 %v14874_v3, 16 }
 0x1f3   : > { %v11788_v33 = vpop.f32.mrf.mxu0  ;;  %v11754_v41 = vpop.f32.mrf.mxu1 }
 0x1f4   : > { %v14876_v58 = vadd.f32 %v3097_v50, %v2986_v1  ;;  %v2989_v29 = vadd.f32 %v11754_v41, %v18140_v44  ;;  %v4736_v1 = vrot.slane %v4734_v6, 5  ;;  %v14895_v49 = vrot.slane %v4740_v48, 5  ;;  %v4049_v44 = vld [vmem:[%s12658_s12 + $0xcc] sm:$0xf] }
 0x1f5   : > { %v3100_v62 = vpop.f32.mrf.mxu0  ;;  %v2886_v45 = vpop.f32.mrf.mxu1  ;;  %v4746_v41 = vrot.slane %v4744_v5, 4  ;;  %v4959_v3 = vshrl.u32 %v4049_v44, 16  ;;  %v4962_v5 = vshll.u32 %v4049_v44, 16 }
 0x1f6   : > { %v14883_v59 = vadd.f32 %v11788_v33, %v2989_v29  ;;  %v2987_v17 = vadd.f32 %v2886_v45, %v14659_v35  ;;  %v4733_v35 = vrot.slane %v4731_v14, 4  ;;  %v14902_v45 = vld [vmem:[%s12658_s12 + $0xc8] sm:$0x1] }
 0x1f7   : > { %v11791_v31 = vpop.f32.mrf.mxu0  ;;  %11994 = vmatmul.mubr.msk.bf16.gmra.mxu0 %vm535_vm4, %v14665_v34  ;;  %v11757_v50 = vpop.f32.mrf.mxu1  ;;  %11960 = vmatmul.mubr.msk.bf16.gmra.mxu1 %vm535_vm4, %v18136_v20  ;;  %18141 = vst [vmem:[#allocation12_spill] sm:$0xff] %v14902_v45 }
 0x1f8   : > { %11997 = vmatprep.mubr.msk.bf16.mxu0 %vm535_vm4, %v14667_v47  ;;  %v14890_v25 = vadd.f32 %v3100_v62, %v2987_v17  ;;  %v2992_v36 = vadd.f32 %v11757_v50, %v14671_v46  ;;  %11963 = vmatprep.mubr.msk.bf16.mxu1 %vm535_vm4, %v14665_v34  ;;  %v4050_v46 = vld [vmem:[%s12658_s12 + $0xd0] sm:$0xf]  ;;  %v4737_v48 = vor.u32 %v4736_v1, %v4733_v35 }
 0x1f9   : > { %v3113_v13 = vpop.f32.mrf.mxu0  ;;  %v2899_v33 = vpop.f32.mrf.mxu1 }
 0x1fa   : > { %v14898_v29 = vadd.f32 %v11791_v31, %v2992_v36  ;;  %v2990_v20 = vadd.f32 %v2899_v33, %v14689_v4  ;;  %v4747_v31 = vor.u32 %v4746_v41, %v14895_v49  ;;  %v4750_v4 = vshll.u32 %v14902_v45, 16 }
 0x1fb   : > { %v11792_v19 = vpop.f32.mrf.mxu0  ;;  %v11758_v62 = vpop.f32.mrf.mxu1  ;;  %v4738_v44 = vrot.slane %v4737_v48, 4 }
 0x1fc   : > { %v14905_v50 = vadd.f32 %v3113_v13, %v2990_v20  ;;  %v2993_v34 = vadd.f32 %v11758_v62, %v14696_v11  ;;  %v4968_v11 = vshll.u32 %v4050_v46, 16  ;;  %v4972_v13 = vshrl.u32 %v4050_v46, 16 }
 0x1fd   : > { %v3116_v17 = vpop.f32.mrf.mxu0  ;;  %v2902_v14 = vpop.f32.mrf.mxu1  ;;  %v4964_v46 = vrot.slane %v4962_v5, 5 }
 0x1fe   : > { %v14912_v36 = vadd.f32 %v11792_v19, %v2993_v34  ;;  %v2991_v33 = vadd.f32 %v2902_v14, %v14707_v42  ;;  %v4961_v19 = vrot.slane %v4959_v3, 4  ;;  %v4748_v34 = vrot.slane %v4747_v31, 4 }
 0x1ff   : > { %v11795_v6 = vpop.f32.mrf.mxu0  ;;  %11998 = vmatmul.mubr.msk.bf16.gmra.mxu0 %vm535_vm4, %v14703_v30  ;;  %v11761_v20 = vpop.f32.mrf.mxu1  ;;  %11964 = vmatmul.mubr.msk.bf16.gmra.mxu1 %vm535_vm4, %v14667_v47  ;;  %v4752_v14 = vrot.slane %v4750_v4, 5 }
 0x200   : > { %18142 = vst [vmem:[#allocation32_spill] sm:$0xff] %v14912_v36  ;;  %12001 = vmatprep.mubr.msk.bf16.mxu0 %vm535_vm4, %v14705_v60  ;;  %v14919_v35 = vadd.f32 %v3116_v17, %v2991_v33  ;;  %v2996_v1 = vadd.f32 %v11761_v20, %v14712_v0  ;;  %11967 = vmatprep.mubr.msk.bf16.mxu1 %vm535_vm4, %v14703_v30  ;;  %v14927_v36 = vrot.slane %v4968_v11, 5  ;;  %v4974_v17 = vrot.slane %v4972_v13, 4  ;;  %v4051_v0 = vld [vmem:[%s12658_s12 + $0xd4] sm:$0x1] }
 0x201   : > { %v3129_v62 = vpop.f32.mrf.mxu0  ;;  %v2915_v42 = vpop.f32.mrf.mxu1  ;;  %v4965_v31 = vor.u32 %v4964_v46, %v4961_v19  ;;  %v4978_v11 = vshll.u32 %v4051_v0, 16  ;;  %v12506_v46 = vld [vmem:[%s12658_s12 + $0x4] sm:$0xf] }
 0x202   : > { %18143 = vst [vmem:[#allocation33_spill] sm:$0xff] %v14919_v35  ;;  %v14924_v45 = vadd.f32 %v11795_v6, %v2996_v1  ;;  %v2994_v47 = vadd.f32 %v2915_v42, %v14716_v9  ;;  %v4743_v9 = vsel %vm12912_vm9, %v4738_v44, %v14895_v49  ;;  %v4753_v6 = vsel %vm12912_vm9, %v4748_v34, %v4752_v14 }
 0x203   : > { %v11796_v41 = vpop.f32.mrf.mxu0  ;;  %v11762_v33 = vpop.f32.mrf.mxu1  ;;  %v14955_v34 = vcombine.low %v4743_v9, %v4753_v6  ;;  %v4966_v14 = vrot.slane %v4965_v31, 4 }
 0x204   : > { %v14930_v20 = vadd.f32 %v3129_v62, %v2994_v47  ;;  %v2997_v30 = vadd.f32 %v11762_v33, %v14731_v16  ;;  %v4975_v16 = vor.u32 %v4974_v17, %v14927_v36  ;;  %v12505_v62 = vld [vmem:[%s12658_s12 + $0x10] sm:$0xf]  ;;  %v4980_v33 = vrot.slane %v4978_v11, 5 }
 0x205   : > { %v3132_v35 = vpop.f32.mrf.mxu0  ;;  %v2918_v3 = vpop.f32.mrf.mxu1  ;;  %v5261_v1 = vrot.slane %v12505_v62, 5 }
 0x206   : > { %v14940_v4 = vadd.f32 %v11796_v41, %v2997_v30  ;;  %v2995_v5 = vadd.f32 %v2918_v3, %v14738_v27  ;;  %v5187_v27 = vld [vmem:[%s12658_s12 + $0xc] sm:$0xe] }
 0x207   : > { %v11799_v48 = vpop.f32.mrf.mxu0  ;;  %12002 = vmatmul.mubr.msk.bf16.gmra.mxu0 %vm535_vm4, %v14743_v61  ;;  %v11765_v13 = vpop.f32.mrf.mxu1  ;;  %11968 = vmatmul.mubr.msk.bf16.gmra.mxu1 %vm535_vm4, %v14705_v60  ;;  %v5254_v60 = vrot.slane %v12506_v46, 5  ;;  %v5263_v3 = vrot.slane %v5261_v1, 4 }
 0x208   : > { %12005 = vmatprep.mubr.msk.bf16.mxu0 %vm535_vm4, %v14745_v18  ;;  %v14949_v19 = vadd.f32 %v3132_v35, %v2995_v5  ;;  %v3000_v42 = vadd.f32 %v11765_v13, %v14747_v21  ;;  %11971 = vmatprep.mubr.msk.bf16.mxu1 %vm535_vm4, %v14743_v61  ;;  %v4976_v35 = vrot.slane %v4975_v16, 4  ;;  %v5186_v21 = vld [vmem:[%s12658_s12] sm:$0xe]  ;;  %v10517_v61 = vrot.slane %v5187_v27, 9  ;;  %v12507_v5 = vld [vmem:[%s12658_s12 + $0x14] sm:$0x1] }
 0x209   : > { %v3145_v49 = vpop.f32.mrf.mxu0  ;;  %v2931_v41 = vpop.f32.mrf.mxu1  ;;  %v5264_v13 = vrot.slane %v12507_v5, 5  ;;  %v12508_v16 = vld [vmem:[%s12658_s12 + $0x8] sm:$0x1] }
 0x20a   : > { %v14958_v47 = vadd.f32 %v11799_v48, %v3000_v42  ;;  %v2998_v17 = vadd.f32 %v2931_v41, %v14750_v40  ;;  %v10516_v40 = vrot.slane %v5186_v21, 9  ;;  %v5256_v48 = vrot.slane %v5254_v60, 4  ;;  %v12509_v21 = vld [vmem:[%s12658_s12 + $0x28] sm:$0xf] }
 0x20b   : > { %v11800_v44 = vpop.f32.mrf.mxu0  ;;  %v11766_v0 = vpop.f32.mrf.mxu1  ;;  %v5257_v11 = vrot.slane %v12508_v16, 5  ;;  %v12510_v16 = vld [vmem:[%s12658_s12 + $0x2c] sm:$0x1] }
 0x20c   : > { %v14963_v62 = vadd.f32 %v3145_v49, %v2998_v17  ;;  %v3001_v9 = vadd.f32 %v11766_v0, %v14755_v32  ;;  %v4971_v32 = vsel %vm12912_vm9, %v4966_v14, %v14927_v36  ;;  %v4981_v49 = vsel %vm12912_vm9, %v4976_v35, %v4980_v33  ;;  %v5189_v14 = vld [vmem:[%s12658_s12 + $0x24] sm:$0xe] }
 0x20d   : > { %v3148_v30 = vpop.f32.mrf.mxu0  ;;  %v2934_v6 = vpop.f32.mrf.mxu1  ;;  %v5275_v0 = vrot.slane %v12509_v21, 5  ;;  %v10499_v33 = vcombine.low %v4971_v32, %v4981_v49  ;;  %v5190_v49 = vld [vmem:[%s12658_s12 + $0x30] sm:$0xe] }
 0x20e   : > { %v14969_v42 = vadd.f32 %v11800_v44, %v3001_v9  ;;  %v2999_v27 = vadd.f32 %v2934_v6, %v14766_v7  ;;  %v5262_v44 = vsel %vm13408_vm12, %v10517_v61, %v5261_v1  ;;  %v5265_v7 = vsel %vm13408_vm12, %v5263_v3, %v5264_v13 }
 0x20f   : > { %v11803_v31 = vpop.f32.mrf.mxu0  ;;  %12006 = vmatmul.mubr.msk.bf16.gmra.mxu0 %vm535_vm4, %v14771_v55  ;;  %v11769_v41 = vpop.f32.mrf.mxu1  ;;  %11972 = vmatmul.mubr.msk.bf16.gmra.mxu1 %vm535_vm4, %v14745_v18  ;;  %v5255_v1 = vsel %vm13408_vm12, %v10516_v40, %v5254_v60  ;;  %v5258_v61 = vsel %vm13408_vm12, %v5256_v48, %v5257_v11  ;;  %v14999_v13 = vcombine.low %v5262_v44, %v5265_v7  ;;  %v10519_v9 = vrot.slane %v5189_v14, 9 }
 0x210   : > { %12009 = vmatprep.mubr.msk.bf16.mxu0 %vm535_vm4, %v14955_v34  ;;  %v14986_v5 = vadd.f32 %v3148_v30, %v2999_v27  ;;  %v3004_v36 = vadd.f32 %v11769_v41, %v14773_v26  ;;  %11975 = vmatprep.mubr.msk.bf16.mxu1 %vm535_vm4, %v14771_v55  ;;  %v5277_v6 = vrot.slane %v5275_v0, 4  ;;  %v5278_v27 = vrot.slane %v12510_v16, 5  ;;  %v12511_v41 = vld [vmem:[%s12658_s12 + $0x34] sm:$0xf] }
 0x211   : > { %v3161_v46 = vpop.f32.mrf.mxu0  ;;  %v2947_v35 = vpop.f32.mrf.mxu1  ;;  %v10533_v40 = vcombine.low %v5255_v1, %v5258_v61  ;;  %v5276_v7 = vsel %vm13408_vm12, %v10519_v9, %v5275_v0 }
 0x212   : > { %v14996_v3 = vadd.f32 %v11803_v31, %v3004_v36  ;;  %v3002_v30 = vadd.f32 %v2947_v35, %v14777_v8  ;;  %v5279_v21 = vsel %vm13408_vm12, %v5277_v6, %v5278_v27  ;;  %v12512_v36 = vld [vmem:[%s12658_s12 + $0x40] sm:$0xf]  ;;  %v10636_v6 = vld [vmem:[%s17804_s2 + $0x2a] sm:$0x3] }
 0x213   : > { %v11804_v18 = vpop.f32.mrf.mxu0  ;;  %v11770_v26 = vpop.f32.mrf.mxu1  ;;  %v15032_v9 = vcombine.low %v5276_v7, %v5279_v21  ;;  %v18145_v7 = vld [vmem:[#allocation10_spill] sm:$0xff] }
 0x214   : > { %v15002_v32 = vadd.f32 %v3161_v46, %v3002_v30  ;;  %v3005_v60 = vadd.f32 %v11770_v26, %v14782_v24  ;;  %v5282_v46 = vrot.slane %v12511_v41, 5  ;;  %v10520_v30 = vrot.slane %v5190_v49, 9 }
 0x215   : > { %v3164_v55 = vpop.f32.mrf.mxu0  ;;  %v2950_v31 = vpop.f32.mrf.mxu1 }
 0x216   : > { %v15006_v8 = vadd.f32 %v11804_v18, %v3005_v60  ;;  %v3003_v11 = vadd.f32 %v2950_v31, %v14788_v57  ;;  %v5289_v57 = vrot.slane %v12512_v36, 5  ;;  %v5191_v18 = vld [vmem:[%s12658_s12 + $0x3c] sm:$0xe]  ;;  %v12514_v31 = vld [vmem:[%s12658_s12 + $0x44] sm:$0x1]  ;;  %v5283_v21 = vsel %vm13408_vm12, %v10520_v30, %v5282_v46 }
 0x217   : > { %v11807_v48 = vpop.f32.mrf.mxu0  ;;  %12010 = vmatmul.mubr.msk.bf16.gmra.mxu0 %vm535_vm4, %v10499_v33  ;;  %v11773_v44 = vpop.f32.mrf.mxu1  ;;  %11976 = vmatmul.mubr.msk.bf16.gmra.mxu1 %vm535_vm4, %v14955_v34  ;;  %v10654_v34 = vld [vmem:[%s17804_s2 + $0x30] sm:$0x3]  ;;  %v12513_v33 = vld [vmem:[%s12658_s12 + $0x38] sm:$0x1]  ;;  %v10521_v60 = vrot.slane %v5191_v18, 9  ;;  %v15049_v36 = vand.u32 %v10636_v6, %v18123_v2 }
 0x218   : > { %12049 = vmatprep.mubr.msk.bf16.mxu0 %vm535_vm4, %v14999_v13  ;;  %v15020_v14 = vadd.f32 %v3164_v55, %v3003_v11  ;;  %v3008_v35 = vadd.f32 %v11773_v44, %v14796_v37  ;;  %12015 = vmatprep.mubr.msk.bf16.mxu1 %vm535_vm4, %v10533_v40  ;;  %v5285_v1 = vrot.slane %v12513_v33, 5  ;;  %v5284_v37 = vrot.slane %v5282_v46, 4 }
 0x219   : > { %v3177_v24 = vpop.f32.mrf.mxu0  ;;  %v2963_v0 = vpop.f32.mrf.mxu1  ;;  %v5291_v40 = vrot.slane %v5289_v57, 4  ;;  %v5292_v11 = vrot.slane %v12514_v31, 5 }
 0x21a   : > { %v15029_v26 = vadd.f32 %v11807_v48, %v3008_v35  ;;  %v3006_v55 = vadd.f32 %v2963_v0, %v14805_v43  ;;  %v15039_v48 = vand.u32 %v10654_v34, %v18123_v2  ;;  %v12515_v34 = vld [vmem:[%s12658_s12 + $0x4c] sm:$0xf] }
 0x21b   : > { %v11808_v61 = vpop.f32.mrf.mxu0  ;;  %v11774_v16 = vpop.f32.mrf.mxu1  ;;  %v5296_v46 = vrot.slane %v12515_v34, 5  ;;  %v12518_v34 = vld [vmem:[%s12658_s12 + $0x5c] sm:$0x1] }
 0x21c   : > { %v15041_v49 = vadd.f32 %v3177_v24, %v3006_v55  ;;  %v3009_v43 = vadd.f32 %v11774_v16, %v14813_v28  ;;  %v5286_v28 = vsel %vm13408_vm12, %v5284_v37, %v5285_v1  ;;  %v5192_v24 = vld [vmem:[%s12658_s12 + $0x48] sm:$0xe]  ;;  %v12517_v37 = vld [vmem:[%s12658_s12 + $0x50] sm:$0x1] }
 0x21d   : > { %v3180_v27 = vpop.f32.mrf.mxu0  ;;  %v2966_v41 = vpop.f32.mrf.mxu1 }
 0x21e   : > { %v15051_v35 = vadd.f32 %v11808_v61, %v3009_v43  ;;  %v3007_v18 = vadd.f32 %v2966_v41, %v14822_v15  ;;  %v5290_v15 = vsel %vm13408_vm12, %v10521_v60, %v5289_v57  ;;  %v12516_v61 = vld [vmem:[%s12658_s12 + $0x58] sm:$0xf]  ;;  %v5299_v57 = vrot.slane %v12517_v37, 5 }
 0x21f   : > { %v11847_v44 = vpop.f32.mrf.mxu0  ;;  %12050 = vmatmul.mubr.msk.bf16.vlgmr.msra.gmra.mxu0 %vm535_vm4, %v18145_v7  ;;  %v11813_v33 = vpop.f32.mrf.mxu1  ;;  %12016 = vmatmul.mubr.msk.bf16.vlgmr.msra.gmra.mxu1 %vm535_vm4, %v14999_v13  ;;  %v5303_v30 = vrot.slane %v12516_v61, 5  ;;  %v5193_v13 = vld [vmem:[%s12658_s12 + $0x54] sm:$0xe]  ;;  %v15077_v60 = vcombine.low %v5283_v21, %v5286_v28  ;;  %v12519_v61 = vld [vmem:[%s12658_s12 + $0x64] sm:$0xf] }
 0x220   : > { %12116 = vmatpush3.bf16.msra.mxu0 %v14803_v12  ;;  %12053 = vmatprep.mubr.msk.bf16.mxu0 %vm535_vm4, %v15032_v9  ;;  %v5293_v12 = vsel %vm13408_vm12, %v5291_v40, %v5292_v11  ;;  %v15069_v1 = vadd.f32 %v3180_v27, %v3007_v18  ;;  %v3556_v55 = vadd.f32 %v11813_v33, %v14829_v53  ;;  %v10522_v40 = vrot.slane %v5192_v24, 9 }
 0x221   : > { %v3633_v0 = vpop.f32.mrf.mxu0  ;;  %12183 = vmatprep.subr.bf16.mxu0 %v15039_v48  ;;  %12082 = vmatpush3.bf16.msra.mxu1 %v14811_v63  ;;  %v3427_v6 = vpop.f32.mrf.mxu1  ;;  %v15083_v31 = vcombine.low %v5290_v15, %v5293_v12  ;;  %v5298_v63 = vrot.slane %v5296_v46, 4  ;;  %v10523_v41 = vrot.slane %v5193_v13, 9  ;;  %v5305_v18 = vrot.slane %v5303_v30, 4 }
 0x222   : > { %12019 = vmatprep.mubr.msk.bf16.mxu1 %vm535_vm4, %v18145_v7  ;;  %12149 = vmatprep.subr.bf16.mxu1 %v15049_v36  ;;  %v15080_v27 = vadd.f32 %v11847_v44, %v3556_v55  ;;  %v3554_v53 = vadd.f32 %v3427_v6, %v14832_v54  ;;  %v5306_v33 = vrot.slane %v12518_v34, 5  ;;  %v5297_v54 = vsel %vm13408_vm12, %v10522_v40, %v5296_v46  ;;  %v12520_v6 = vld [vmem:[%s12658_s12 + $0x70] sm:$0xf] }
 0x223   : > { %v11848_v16 = vpop.f32.mrf.mxu0  ;;  %v11814_v11 = vpop.f32.mrf.mxu1  ;;  %v5310_v55 = vrot.slane %v12519_v61, 5  ;;  %v5304_v37 = vsel %vm13408_vm12, %v10523_v41, %v5303_v30 }
 0x224   : > { %v15086_v21 = vadd.f32 %v3633_v0, %v3554_v53  ;;  %v3557_v28 = vadd.f32 %v11814_v11, %v14837_v39  ;;  %v5300_v39 = vsel %vm13408_vm12, %v5298_v63, %v5299_v57  ;;  %v5194_v0 = vld [vmem:[%s12658_s12 + $0x60] sm:$0xe]  ;;  %v5195_v53 = vld [vmem:[%s12658_s12 + $0x6c] sm:$0xe]  ;;  %v12521_v63 = vld [vmem:[%s12658_s12 + $0x68] sm:$0x1] }
 0x225   : > { %v3636_v43 = vpop.f32.mrf.mxu0  ;;  %v3430_v24 = vpop.f32.mrf.mxu1  ;;  %v5313_v11 = vrot.slane %v12521_v63, 5  ;;  %v15116_v30 = vcombine.low %v5297_v54, %v5300_v39  ;;  %v10524_v41 = vrot.slane %v5194_v0, 9  ;;  %v10525_v61 = vrot.slane %v5195_v53, 9 }
 0x226   : > { %v15093_v15 = vadd.f32 %v11848_v16, %v3557_v28  ;;  %v3555_v12 = vadd.f32 %v3430_v24, %v14844_v38  ;;  %v5307_v38 = vsel %vm13408_vm12, %v5305_v18, %v5306_v33  ;;  %v5317_v16 = vrot.slane %v12520_v6, 5  ;;  %v12522_v6 = vld [vmem:[%s12658_s12 + $0x74] sm:$0x1] }
 0x227   : > { %v11851_v44 = vpop.f32.mrf.mxu0  ;;  %12054 = vmatmul.mubr.msk.bf16.gmra.mxu0 %vm535_vm4, %v15077_v60  ;;  %v11817_v13 = vpop.f32.mrf.mxu1  ;;  %12020 = vmatmul.mubr.msk.bf16.gmra.mxu1 %vm535_vm4, %v15032_v9  ;;  %v15121_v33 = vcombine.low %v5304_v37, %v5307_v38  ;;  %v5320_v63 = vrot.slane %v12522_v6, 5  ;;  %v5311_v0 = vsel %vm13408_vm12, %v10524_v41, %v5310_v55  ;;  %v12524_v41 = vld [vmem:[%s12658_s12 + $0x88] sm:$0xf]  ;;  %v12525_v6 = vld [vmem:[%s12658_s12 + $0x80] sm:$0x1] }
 0x228   : > { %12057 = vmatprep.mubr.msk.bf16.mxu0 %vm535_vm4, %v15083_v31  ;;  %v15109_v40 = vadd.f32 %v3636_v43, %v3555_v12  ;;  %v3560_v57 = vadd.f32 %v11817_v13, %v14849_v10  ;;  %12023 = vmatprep.mubr.msk.bf16.mxu1 %vm535_vm4, %v15077_v60  ;;  %v5312_v10 = vrot.slane %v5310_v55, 4  ;;  %v5319_v13 = vrot.slane %v5317_v16, 4 }
 0x229   : > { %v3649_v46 = vpop.f32.mrf.mxu0  ;;  %v3443_v34 = vpop.f32.mrf.mxu1 }
 0x22a   : > { %v15118_v18 = vadd.f32 %v11851_v44, %v3560_v57  ;;  %v3558_v43 = vadd.f32 %v3443_v34, %v14852_v23  ;;  %v12523_v57 = vld [vmem:[%s12658_s12 + $0x7c] sm:$0xf] }
 0x22b   : > { %v11852_v28 = vpop.f32.mrf.mxu0  ;;  %v11818_v24 = vpop.f32.mrf.mxu1  ;;  %v5324_v53 = vrot.slane %v12523_v57, 5 }
 0x22c   : > { %v15128_v54 = vadd.f32 %v3649_v46, %v3558_v43  ;;  %v3561_v44 = vadd.f32 %v11818_v24, %v14857_v52  ;;  %v5314_v52 = vsel %vm13408_vm12, %v5312_v10, %v5313_v11  ;;  %v5196_v46 = vld [vmem:[%s12658_s12 + $0x78] sm:$0xe]  ;;  %v5331_v43 = vrot.slane %v12524_v41, 5  ;;  %v5197_v10 = vld [vmem:[%s12658_s12 + $0x84] sm:$0xe] }
 0x22d   : > { %v3652_v12 = vpop.f32.mrf.mxu0  ;;  %v3446_v39 = vpop.f32.mrf.mxu1  ;;  %v10527_v41 = vrot.slane %v5197_v10, 9 }
 0x22e   : > { %v15135_v37 = vadd.f32 %v11852_v28, %v3561_v44  ;;  %v3559_v38 = vadd.f32 %v3446_v39, %v14864_v22  ;;  %v5318_v28 = vsel %vm13408_vm12, %v10525_v61, %v5317_v16  ;;  %v5321_v22 = vsel %vm13408_vm12, %v5319_v13, %v5320_v63 }
 0x22f   : > { %v11855_v23 = vpop.f32.mrf.mxu0  ;;  %12058 = vmatmul.mubr.msk.bf16.gmra.mxu0 %vm535_vm4, %v15116_v30  ;;  %v11821_v34 = vpop.f32.mrf.mxu1  ;;  %12024 = vmatmul.mubr.msk.bf16.gmra.mxu1 %vm535_vm4, %v15083_v31  ;;  %v5327_v44 = vrot.slane %v12525_v6, 5  ;;  %v15159_v16 = vcombine.low %v5311_v0, %v5314_v52  ;;  %v10526_v61 = vrot.slane %v5196_v46, 9  ;;  %v5333_v6 = vrot.slane %v5331_v43, 4 }
 0x230   : > { %12061 = vmatprep.mubr.msk.bf16.mxu0 %vm535_vm4, %v15121_v33  ;;  %v15152_v24 = vadd.f32 %v3652_v12, %v3559_v38  ;;  %v3564_v11 = vadd.f32 %v11821_v34, %v14869_v56  ;;  %12027 = vmatprep.mubr.msk.bf16.mxu1 %vm535_vm4, %v15116_v30  ;;  %v15164_v12 = vcombine.low %v5318_v28, %v5321_v22  ;;  %v5326_v38 = vrot.slane %v5324_v53, 4 }
 0x231   : > { %v3665_v55 = vpop.f32.mrf.mxu0  ;;  %v3459_v39 = vpop.f32.mrf.mxu1  ;;  %v5334_v0 = vrot.slane %v12526_v51, 5  ;;  %v5325_v28 = vsel %vm13408_vm12, %v10526_v61, %v5324_v53  ;;  %v12528_v61 = vld [vmem:[%s12658_s12 + $0xa0] sm:$0xf] }
 0x232   : > { %v15161_v13 = vadd.f32 %v11855_v23, %v3564_v11  ;;  %v3562_v63 = vadd.f32 %v3459_v39, %v14876_v58  ;;  %18146 = vst [vmem:[#allocation44_spill] sm:$0xff] %v15164_v12  ;;  %v5328_v51 = vsel %vm13408_vm12, %v5326_v38, %v5327_v44  ;;  %v5199_v38 = vld [vmem:[%s12658_s12 + $0x9c] sm:$0xe] }
 0x233   : > { %v11856_v57 = vpop.f32.mrf.mxu0  ;;  %v11822_v56 = vpop.f32.mrf.mxu1 }
 0x234   : > { %v15169_v52 = vadd.f32 %v3665_v55, %v3562_v63  ;;  %v3565_v23 = vadd.f32 %v11822_v56, %v14883_v59  ;;  %v5198_v59 = vld [vmem:[%s12658_s12 + $0x90] sm:$0xe]  ;;  %v12527_v55 = vld [vmem:[%s12658_s12 + $0x94] sm:$0xf]  ;;  %v5345_v63 = vrot.slane %v12528_v61, 5 }
 0x235   : > { %v3668_v34 = vpop.f32.mrf.mxu0  ;;  %v3462_v46 = vpop.f32.mrf.mxu1  ;;  %v5338_v10 = vrot.slane %v12527_v55, 5 }
 0x236   : > { %v15177_v22 = vadd.f32 %v11856_v57, %v3565_v23  ;;  %v3563_v11 = vadd.f32 %v3462_v46, %v14890_v25  ;;  %v5332_v25 = vsel %vm13408_vm12, %v10527_v41, %v5331_v43  ;;  %v5335_v57 = vsel %vm13408_vm12, %v5333_v6, %v5334_v0  ;;  %v12529_v23 = vld [vmem:[%s12658_s12 + $0x98] sm:$0x1] }
 0x237   : > { %v11859_v58 = vpop.f32.mrf.mxu0  ;;  %12062 = vmatmul.mubr.msk.bf16.gmra.mxu0 %vm535_vm4, %v15159_v16  ;;  %v11825_v39 = vpop.f32.mrf.mxu1  ;;  %12028 = vmatmul.mubr.msk.bf16.gmra.mxu1 %vm535_vm4, %v15121_v33  ;;  %v5341_v46 = vrot.slane %v12529_v23, 5  ;;  %v15203_v6 = vcombine.low %v5325_v28, %v5328_v51  ;;  %v10528_v0 = vrot.slane %v5198_v59, 9  ;;  %v5347_v23 = vrot.slane %v5345_v63, 4  ;;  %v18152_v51 = vld [vmem:[#allocation32_spill] sm:$0xff] }
 0x238   : > { %18147 = vst [vmem:[#allocation17_spill] sm:$0xff] %v15177_v22  ;;  %12065 = vmatprep.mubr.msk.bf16.mxu0 %vm535_vm4, %v15164_v12  ;;  %v15193_v56 = vadd.f32 %v3668_v34, %v3563_v11  ;;  %v3568_v44 = vadd.f32 %v11825_v39, %v14898_v29  ;;  %12031 = vmatprep.mubr.msk.bf16.mxu1 %vm535_vm4, %v15159_v16  ;;  %v5340_v11 = vrot.slane %v5338_v10, 4  ;;  %v12530_v22 = vld [vmem:[%s12658_s12 + $0xa4] sm:$0x1] }
 0x239   : > { %v3681_v53 = vpop.f32.mrf.mxu0  ;;  %v3475_v43 = vpop.f32.mrf.mxu1  ;;  %18149 = vst [vmem:[#allocation45_spill] sm:$0xff] %v15203_v6  ;;  %v15208_v29 = vcombine.low %v5332_v25, %v5335_v57  ;;  %v5348_v28 = vrot.slane %v12530_v22, 5  ;;  %v5339_v57 = vsel %vm13408_vm12, %v10528_v0, %v5338_v10 }
 0x23a   : > { %18148 = vst [vmem:[#allocation15_spill] sm:$0xff] %v15193_v56  ;;  %v15205_v55 = vadd.f32 %v11859_v58, %v3568_v44  ;;  %v3566_v34 = vadd.f32 %v3475_v43, %v14905_v50  ;;  %v10529_v56 = vrot.slane %v5199_v38, 9  ;;  %v18154_v38 = vld [vmem:[#allocation33_spill] sm:$0xff]  ;;  %v5342_v22 = vsel %vm13408_vm12, %v5340_v11, %v5341_v46 }
 0x23b   : > { %v11860_v41 = vpop.f32.mrf.mxu0  ;;  %v11826_v39 = vpop.f32.mrf.mxu1  ;;  %v5349_v0 = vsel %vm13408_vm12, %v5347_v23, %v5348_v28 }
 0x23c   : > { %18150 = vst [vmem:[#allocation19_spill] sm:$0xff] %v15205_v55  ;;  %v15214_v58 = vadd.f32 %v3681_v53, %v3566_v34  ;;  %v3569_v50 = vadd.f32 %v11826_v39, %v18152_v51  ;;  %v5200_v53 = vld [vmem:[%s12658_s12 + $0xa8] sm:$0xe]  ;;  %v12531_v34 = vld [vmem:[%s12658_s12 + $0xac] sm:$0xf] }
 0x23d   : > { %v3684_v61 = vpop.f32.mrf.mxu0  ;;  %v3478_v59 = vpop.f32.mrf.mxu1  ;;  %v5352_v39 = vrot.slane %v12531_v34, 5  ;;  %v12533_v34 = vld [vmem:[%s12658_s12 + $0xb0] sm:$0x1] }
 0x23e   : > { %18151 = vst [vmem:[#allocation16_spill] sm:$0xff] %v15214_v58  ;;  %v15221_v44 = vadd.f32 %v11860_v41, %v3569_v50  ;;  %v3567_v43 = vadd.f32 %v3478_v59, %v18154_v38  ;;  %v5346_v41 = vsel %vm13408_vm12, %v10529_v56, %v5345_v63  ;;  %v12532_v50 = vld [vmem:[%s12658_s12 + $0xb8] sm:$0xf]  ;;  %v5201_v38 = vld [vmem:[%s12658_s12 + $0xb4] sm:$0xe]  ;;  %v15249_v63 = vcombine.low %v5339_v57, %v5342_v22 }
 0x23f   : > { %v11863_v25 = vpop.f32.mrf.mxu0  ;;  %12066 = vmatmul.mubr.msk.bf16.gmra.mxu0 %vm535_vm4, %v15203_v6  ;;  %v11829_v51 = vpop.f32.mrf.mxu1  ;;  %12032 = vmatmul.mubr.msk.bf16.gmra.mxu1 %vm535_vm4, %v15164_v12  ;;  %v5359_v46 = vrot.slane %v12532_v50, 5  ;;  %v10530_v56 = vrot.slane %v5200_v53, 9  ;;  %v10531_v50 = vrot.slane %v5201_v38, 9 }
 0x240   : > { %18153 = vst [vmem:[#allocation36_spill] sm:$0xff] %v15221_v44  ;;  %12069 = vmatprep.mubr.msk.bf16.mxu0 %vm535_vm4, %v15208_v29  ;;  %v15242_v11 = vadd.f32 %v3684_v61, %v3567_v43  ;;  %v3572_v59 = vadd.f32 %v11829_v51, %v14924_v45  ;;  %12035 = vmatprep.mubr.msk.bf16.mxu1 %vm535_vm4, %v15203_v6  ;;  %v5355_v44 = vrot.slane %v12533_v34, 5  ;;  %v5354_v43 = vrot.slane %v5352_v39, 4  ;;  %v12534_v6 = vld [vmem:[%s12658_s12 + $0xbc] sm:$0x1] }
 0x241   : > { %v3697_v10 = vpop.f32.mrf.mxu0  ;;  %v3491_v58 = vpop.f32.mrf.mxu1  ;;  %v15254_v61 = vcombine.low %v5346_v41, %v5349_v0  ;;  %v5362_v34 = vrot.slane %v12534_v6, 5  ;;  %v5353_v6 = vsel %vm13408_vm12, %v10530_v56, %v5352_v39 }
 0x242   : > { %18155 = vst [vmem:[#allocation46_spill] sm:$0xff] %v15242_v11  ;;  %v15251_v23 = vadd.f32 %v11863_v25, %v3572_v59  ;;  %v3570_v28 = vadd.f32 %v3491_v58, %v14930_v20  ;;  %v5361_v11 = vrot.slane %v5359_v46, 4  ;;  %v18156_v20 = vld [vmem:[#allocation13_spill] sm:$0xff] }
 0x243   : > { %v11864_v55 = vpop.f32.mrf.mxu0  ;;  %v11830_v45 = vpop.f32.mrf.mxu1  ;;  %v5663_v58 = vrot.slane %v18156_v20, 5  ;;  %v6087_v20 = vld [vmem:[%s12668_s22 + $0x4] sm:$0xf] }
 0x244   : > { %v15258_v12 = vadd.f32 %v3697_v10, %v3570_v28  ;;  %v3573_v57 = vadd.f32 %v11830_v45, %v14940_v4  ;;  %v5356_v4 = vsel %vm13408_vm12, %v5354_v43, %v5355_v44  ;;  %v5202_v10 = vld [vmem:[%s12658_s12 + $0xc0] sm:$0xe] }
 0x245   : > { %v3700_v51 = vpop.f32.mrf.mxu0  ;;  %v3494_v22 = vpop.f32.mrf.mxu1  ;;  %v18157_v44 = vld [vmem:[#allocation12_spill] sm:$0xff]  ;;  %v15286_v45 = vcombine.low %v5353_v6, %v5356_v4 }
 0x246   : > { %v15264_v53 = vadd.f32 %v11864_v55, %v3573_v57  ;;  %v3571_v41 = vadd.f32 %v3494_v22, %v14949_v19  ;;  %v5360_v55 = vsel %vm13408_vm12, %v10531_v50, %v5359_v46  ;;  %v5363_v19 = vsel %vm13408_vm12, %v5361_v11, %v5362_v34  ;;  %v6086_v22 = vld [vmem:[%s12668_s22] sm:$0xf] }
 0x247   : > { %v11867_v25 = vpop.f32.mrf.mxu0  ;;  %12070 = vmatmul.mubr.msk.bf16.gmra.mxu0 %vm535_vm4, %v15249_v63  ;;  %v11833_v0 = vpop.f32.mrf.mxu1  ;;  %12036 = vmatmul.mubr.msk.bf16.gmra.mxu1 %vm535_vm4, %v15208_v29  ;;  %v5666_v56 = vrot.slane %v18157_v44, 5  ;;  %v10565_v46 = vrot.slane %v5202_v10, 9  ;;  %v5665_v50 = vrot.slane %v5663_v58, 4 }
 0x248   : > { %12073 = vmatprep.mubr.msk.bf16.mxu0 %vm535_vm4, %v15254_v61  ;;  %v15280_v38 = vadd.f32 %v3700_v51, %v3571_v41  ;;  %v3576_v39 = vadd.f32 %v11833_v0, %v14958_v47  ;;  %12039 = vmatprep.mubr.msk.bf16.mxu1 %vm535_vm4, %v15249_v63  ;;  %v15291_v51 = vcombine.low %v5360_v55, %v5363_v19  ;;  %v15295_v41 = vstv %s6123_s8 }
 0x249   : > { %v3713_v59 = vpop.f32.mrf.mxu0  ;;  %v3507_v28 = vpop.f32.mrf.mxu1 }
 0x24a   : > { %v15288_v57 = vadd.f32 %v11867_v25, %v3576_v39  ;;  %v3574_v11 = vadd.f32 %v3507_v28, %v14963_v62  ;;  %v5664_v62 = vsel %vm13408_vm12, %v10565_v46, %v5663_v58  ;;  %v5667_v25 = vsel %vm13408_vm12, %v5665_v50, %v5666_v56 }
 0x24b   : > { %v11868_v43 = vpop.f32.mrf.mxu0  ;;  %v11834_v34 = vpop.f32.mrf.mxu1 }
 0x24c   : > { %v15297_v0 = vadd.f32 %v3713_v59, %v3574_v11  ;;  %v3577_v44 = vadd.f32 %v11834_v34, %v14969_v42  ;;  %v6126_v42 = vmul.bf16 %v15295_v41, %v6086_v22  ;;  %v6127_v59 = vmul.bf16 %v15295_v41, %v6087_v20  ;;  %v6088_v34 = vld [vmem:[%s12668_s22 + $0xc] sm:$0xf]  ;;  %v6089_v22 = vld [vmem:[%s12668_s22 + $0x10] sm:$0xf] }
 0x24d   : > { %v3716_v47 = vpop.f32.mrf.mxu0  ;;  %v3510_v6 = vpop.f32.mrf.mxu1 }
 0x24e   : > { %v15306_v10 = vadd.f32 %v11868_v43, %v3577_v44  ;;  %v3575_v55 = vadd.f32 %v3510_v6, %v14986_v5  ;;  %v15320_v43 = vcombine.low %v5664_v62, %v5667_v25  ;;  %v10604_v11 = vcombine.low %v6126_v42, %v6127_v59  ;;  %v6091_v6 = vld [vmem:[%s12668_s22 + $0x1c] sm:$0xf] }
 0x24f   : > { %v11871_v4 = vpop.f32.mrf.mxu0  ;;  %12074 = vmatmul.mubr.msk.bf16.gmra.mxu0 %vm535_vm4, %v15286_v45  ;;  %v11837_v19 = vpop.f32.mrf.mxu1  ;;  %12040 = vmatmul.mubr.msk.bf16.gmra.mxu1 %vm535_vm4, %v15254_v61  ;;  %v6131_v42 = vmul.bf16 %v15295_v41, %v6091_v6  ;;  %v6095_v6 = vld [vmem:[%s12668_s22 + $0x34] sm:$0xf] }
 0x250   : > { %12077 = vmatprep.mubr.msk.bf16.mxu0 %vm535_vm4, %v15291_v51  ;;  %v15315_v39 = vadd.f32 %v3716_v47, %v3575_v55  ;;  %v3580_v5 = vadd.f32 %v11837_v19, %v14996_v3  ;;  %12043 = vmatprep.mubr.msk.bf16.mxu1 %vm535_vm4, %v15286_v45  ;;  %v6090_v47 = vld [vmem:[%s12668_s22 + $0x18] sm:$0xf] }
 0x251   : > { %v3729_v58 = vpop.f32.mrf.mxu0  ;;  %v3523_v56 = vpop.f32.mrf.mxu1 }
 0x252   : > { %18158 = vst [vmem:[#allocation9_spill] sm:$0xff] %v15315_v39  ;;  %v15322_v46 = vadd.f32 %v11871_v4, %v3580_v5  ;;  %v3578_v50 = vadd.f32 %v3523_v56, %v15002_v32  ;;  %v6128_v4 = vmul.bf16 %v15295_v41, %v6088_v34  ;;  %v6129_v32 = vmul.bf16 %v15295_v41, %v6089_v22  ;;  %v6092_v34 = vld [vmem:[%s12668_s22 + $0x24] sm:$0xf]  ;;  %v6093_v22 = vld [vmem:[%s12668_s22 + $0x28] sm:$0xf] }
 0x253   : > { %v11872_v28 = vpop.f32.mrf.mxu0  ;;  %v11838_v20 = vpop.f32.mrf.mxu1 }
 0x254   : > { %v15329_v55 = vadd.f32 %v3729_v58, %v3578_v50  ;;  %v3581_v3 = vadd.f32 %v11838_v20, %v15006_v8  ;;  %v6130_v8 = vmul.bf16 %v15295_v41, %v6090_v47  ;;  %v6094_v20 = vld [vmem:[%s12668_s22 + $0x30] sm:$0xf] }
 0x255   : > { %v3732_v44 = vpop.f32.mrf.mxu0  ;;  %v3526_v19 = vpop.f32.mrf.mxu1 }
 0x256   : > { %v15336_v62 = vadd.f32 %v11872_v28, %v3581_v3  ;;  %v3579_v25 = vadd.f32 %v3526_v19, %v15020_v14  ;;  %v10705_v14 = vld [vmem:[%s17804_s2 + $0x2c] sm:$0x3]  ;;  %v6904_v3 = vld [vmem:[%s12668_s22 + $0x10] sm:$0xf] }
 0x257   : > { %v11875_v39 = vpop.f32.mrf.mxu0  ;;  %12078 = vmatmul.mubr.msk.bf16.gmra.mxu0 %vm535_vm4, %v15320_v43  ;;  %v11841_v59 = vpop.f32.mrf.mxu1  ;;  %12044 = vmatmul.mubr.msk.bf16.gmra.mxu1 %vm535_vm4, %v15291_v51 }
 0x258   : > { %12117 = vmatprep.mubr.msk.bf16.mxu0 %vm535_vm4, %v10604_v11  ;;  %v15344_v5 = vadd.f32 %v3732_v44, %v3579_v25  ;;  %v3584_v56 = vadd.f32 %v11841_v59, %v15029_v26  ;;  %12083 = vmatprep.mubr.msk.bf16.mxu1 %vm535_vm4, %v18145_v7  ;;  %v15352_v11 = vcombine.low %v6128_v4, %v6129_v32  ;;  %v10672_v7 = vld [vmem:[%s17804_s2 + $0x26] sm:$0x3]  ;;  %v6905_v32 = vld [vmem:[%s12668_s22 + $0x14] sm:$0x1] }
 0x259   : > { %v3745_v58 = vpop.f32.mrf.mxu0  ;;  %v3539_v28 = vpop.f32.mrf.mxu1  ;;  %v15360_v26 = vcombine.low %v6130_v8, %v6131_v42  ;;  %v15368_v4 = vand.u32 %v10705_v14, %v18123_v2  ;;  %v6133_v8 = vmul.bf16 %v15295_v41, %v6093_v22  ;;  %v15381_v14 = vand.u32 %v10672_v7, %v18123_v2 }
 0x25a   : > { %v15357_v47 = vadd.f32 %v11875_v39, %v3584_v56  ;;  %v3582_v44 = vadd.f32 %v3539_v28, %v15041_v49  ;;  %v6132_v49 = vmul.bf16 %v15295_v41, %v6092_v34  ;;  %v6134_v28 = vmul.bf16 %v15295_v41, %v6094_v20 }
 0x25b   : > { %v11876_v50 = vpop.f32.mrf.mxu0  ;;  %v11842_v19 = vpop.f32.mrf.mxu1  ;;  %18160 = vst [vmem:[#allocation11_spill] sm:$0xff] %v15368_v4  ;;  %v15393_v22 = vmul.bf16 %v6905_v32, %v15295_v41 }
 0x25c   : > { %18159 = vst [vmem:[#allocation47_spill] sm:$0xff] %v15357_v47  ;;  %v15371_v59 = vadd.f32 %v3745_v58, %v3582_v44  ;;  %v3585_v39 = vadd.f32 %v11842_v19, %v15051_v35  ;;  %v6135_v47 = vmul.bf16 %v15295_v41, %v6095_v6  ;;  %v15384_v58 = vmul.bf16 %v6904_v3, %v15295_v41 }
 0x25d   : > { %v3748_v25 = vpop.f32.mrf.mxu0  ;;  %v3542_v42 = vpop.f32.mrf.mxu1  ;;  %v15407_v19 = vcombine.low %v6132_v49, %v6133_v8 }
 0x25e   : > { %v15386_v35 = vadd.f32 %v11876_v50, %v3585_v39  ;;  %v3583_v34 = vadd.f32 %v3542_v42, %v15069_v1  ;;  %v8235_v6 = vrot.slane %v15384_v58, 5  ;;  %v6097_v39 = vld [vmem:[%s12668_s22 + $0x40] sm:$0xf]  ;;  %v6098_v42 = vld [vmem:[%s12668_s22 + $0x48] sm:$0xf] }
 0x25f   : > { %v11915_v56 = vpop.f32.mrf.mxu0  ;;  %12118 = vmatmul.mubr.msk.bf16.vlgmr.msra.gmra.mxu0 %vm535_vm4, %v15352_v11  ;;  %v11881_v20 = vpop.f32.mrf.mxu1  ;;  %12084 = vmatmul.mubr.msk.bf16.vlgmr.msra.gmra.mxu1 %vm535_vm4, %v15032_v9  ;;  %v8238_v9 = vrot.slane %v15393_v22, 5 }
 0x260   : > { %18161 = vst [vmem:[#allocation38_spill] sm:$0xff] %v15386_v35  ;;  %12184 = vmatpush3.bf16.msra.mxu0 %v15039_v48  ;;  %12121 = vmatprep.mubr.msk.bf16.mxu0 %vm535_vm4, %v15360_v26  ;;  %v15398_v50 = vadd.f32 %v3748_v25, %v3583_v34  ;;  %v3968_v1 = vadd.f32 %v11881_v20, %v15080_v27  ;;  %v8143_v48 = vld [vmem:[%s12668_s22 + $0xc] sm:$0xe]  ;;  %v6096_v25 = vld [vmem:[%s12668_s22 + $0x3c] sm:$0xf]  ;;  %v8237_v34 = vrot.slane %v8235_v6, 4 }
 0x261   : > { %v4571_v44 = vpop.f32.mrf.mxu0  ;;  %12251 = vmatprep.subr.bf16.mxu0 %v15368_v4  ;;  %12150 = vmatpush3.bf16.msra.mxu1 %v15049_v36  ;;  %v3839_v7 = vpop.f32.mrf.mxu1  ;;  %v8161_v27 = vmul.bf16 %v8143_v48, %v15295_v41 }
 0x262   : > { %18162 = vst [vmem:[#allocation43_spill] sm:$0xff] %v15398_v50  ;;  %12087 = vmatprep.mubr.msk.bf16.mxu1 %vm535_vm4, %v15077_v60  ;;  %12217 = vmatprep.subr.bf16.mxu1 %v15381_v14  ;;  %v15412_v32 = vadd.f32 %v11915_v56, %v3968_v1  ;;  %v3966_v36 = vadd.f32 %v3839_v7, %v15086_v21  ;;  %v6099_v50 = vld [vmem:[%s12668_s22 + $0x4c] sm:$0xf] }
 0x263   : > { %v11916_v3 = vpop.f32.mrf.mxu0  ;;  %v15415_v60 = vcombine.low %v6134_v28, %v6135_v47  ;;  %v11882_v20 = vpop.f32.mrf.mxu1  ;;  %v10742_v35 = vrot.slane %v8161_v27, 9  ;;  %v8239_v48 = vsel %vm13408_vm12, %v8237_v34, %v8238_v9  ;;  %v6136_v21 = vmul.bf16 %v15295_v41, %v6096_v25 }
 0x264   : > { %v15420_v49 = vadd.f32 %v4571_v44, %v3966_v36  ;;  %v3969_v8 = vadd.f32 %v11882_v20, %v15093_v15  ;;  %v6137_v47 = vmul.bf16 %v15295_v41, %v6097_v39  ;;  %v6138_v28 = vmul.bf16 %v15295_v41, %v6098_v42  ;;  %v6101_v20 = vld [vmem:[%s12668_s22 + $0x58] sm:$0xf] }
 0x265   : > { %v4574_v4 = vpop.f32.mrf.mxu0  ;;  %v3842_v56 = vpop.f32.mrf.mxu1  ;;  %v8236_v44 = vsel %vm13408_vm12, %v10742_v35, %v8235_v6  ;;  %v6139_v9 = vmul.bf16 %v15295_v41, %v6099_v50 }
 0x266   : > { %v15432_v7 = vadd.f32 %v11916_v3, %v3969_v8  ;;  %v3967_v15 = vadd.f32 %v3842_v56, %v15109_v40  ;;  %v15438_v27 = vcombine.low %v8236_v44, %v8239_v48  ;;  %v15447_v39 = vcombine.low %v6136_v21, %v6137_v47  ;;  %v6102_v48 = vld [vmem:[%s12668_s22 + $0x60] sm:$0xf]  ;;  %v6103_v56 = vld [vmem:[%s12668_s22 + $0x64] sm:$0xf] }
 0x267   : > { %v11919_v1 = vpop.f32.mrf.mxu0  ;;  %12122 = vmatmul.mubr.msk.bf16.gmra.mxu0 %vm535_vm4, %v15407_v19  ;;  %v11885_v25 = vpop.f32.mrf.mxu1  ;;  %12088 = vmatmul.mubr.msk.bf16.gmra.mxu1 %vm535_vm4, %v15083_v31  ;;  %v15452_v34 = vcombine.low %v6138_v28, %v6139_v9  ;;  %v6100_v31 = vld [vmem:[%s12668_s22 + $0x54] sm:$0xf]  ;;  %v6143_v28 = vmul.bf16 %v15295_v41, %v6103_v56  ;;  %v6106_v56 = vld [vmem:[%s12668_s22 + $0x78] sm:$0xf] }
 0x268   : > { %12125 = vmatprep.mubr.msk.bf16.mxu0 %vm535_vm4, %v15415_v60  ;;  %18163 = vst [vmem:[#allocation18_spill] sm:$0xff] %v15438_v27  ;;  %v15442_v6 = vadd.f32 %v4574_v4, %v3967_v15  ;;  %v3972_v40 = vadd.f32 %v11885_v25, %v15118_v18  ;;  %12091 = vmatprep.mubr.msk.bf16.mxu1 %vm535_vm4, %v15116_v30 }
 0x269   : > { %v4587_v35 = vpop.f32.mrf.mxu0  ;;  %v3855_v3 = vpop.f32.mrf.mxu1 }
 0x26a   : > { %v15449_v50 = vadd.f32 %v11919_v1, %v3972_v40  ;;  %v3970_v42 = vadd.f32 %v3855_v3, %v15128_v54  ;;  %v6140_v1 = vmul.bf16 %v15295_v41, %v6100_v31  ;;  %v6141_v54 = vmul.bf16 %v15295_v41, %v6101_v20 }
 0x26b   : > { %v11920_v36 = vpop.f32.mrf.mxu0  ;;  %v11886_v8 = vpop.f32.mrf.mxu1 }
 0x26c   : > { %v15458_v18 = vadd.f32 %v4587_v35, %v3970_v42  ;;  %v3973_v30 = vadd.f32 %v11886_v8, %v15135_v37  ;;  %v6142_v37 = vmul.bf16 %v15295_v41, %v6102_v48  ;;  %v6105_v8 = vld [vmem:[%s12668_s22 + $0x70] sm:$0xf] }
 0x26d   : > { %v4590_v4 = vpop.f32.mrf.mxu0  ;;  %v3858_v44 = vpop.f32.mrf.mxu1 }
 0x26e   : > { %v15465_v21 = vadd.f32 %v11920_v36, %v3973_v30  ;;  %v3971_v47 = vadd.f32 %v3858_v44, %v15152_v24  ;;  %v15479_v36 = vcombine.low %v6140_v1, %v6141_v54  ;;  %v15484_v20 = vcombine.low %v6142_v37, %v6143_v28  ;;  %v6107_v30 = vld [vmem:[%s12668_s22 + $0x7c] sm:$0xf]  ;;  %v18167_v44 = vld [vmem:[#allocation17_spill] sm:$0xff] }
 0x26f   : > { %v11923_v15 = vpop.f32.mrf.mxu0  ;;  %12126 = vmatmul.mubr.msk.bf16.gmra.mxu0 %vm535_vm4, %v15447_v39  ;;  %v11889_v9 = vpop.f32.mrf.mxu1  ;;  %12092 = vmatmul.mubr.msk.bf16.gmra.mxu1 %vm535_vm4, %v15121_v33  ;;  %v6104_v33 = vld [vmem:[%s12668_s22 + $0x6c] sm:$0xf]  ;;  %v18169_v54 = vld [vmem:[#allocation15_spill] sm:$0xff]  ;;  %v6146_v28 = vmul.bf16 %v15295_v41, %v6106_v56 }
 0x270   : > { %12129 = vmatprep.mubr.msk.bf16.mxu0 %vm535_vm4, %v15452_v34  ;;  %v15474_v35 = vadd.f32 %v4590_v4, %v3971_v47  ;;  %v3976_v24 = vadd.f32 %v11889_v9, %v15161_v13  ;;  %12095 = vmatprep.mubr.msk.bf16.mxu1 %vm535_vm4, %v15159_v16  ;;  %18165 = vst [vmem:[#allocation20_spill] sm:$0xff] %v15484_v20 }
 0x271   : > { %v4603_v25 = vpop.f32.mrf.mxu0  ;;  %v3871_v40 = vpop.f32.mrf.mxu1 }
 0x272   : > { %v15481_v42 = vadd.f32 %v11923_v15, %v3976_v24  ;;  %v3974_v31 = vadd.f32 %v3871_v40, %v15169_v52  ;;  %v6144_v15 = vmul.bf16 %v15295_v41, %v6104_v33  ;;  %v6145_v52 = vmul.bf16 %v15295_v41, %v6105_v8  ;;  %v18170_v40 = vld [vmem:[#allocation44_spill] sm:$0xff]  ;;  %v18172_v33 = vld [vmem:[#allocation19_spill] sm:$0xff] }
 0x273   : > { %v11924_v3 = vpop.f32.mrf.mxu0  ;;  %v11890_v48 = vpop.f32.mrf.mxu1 }
 0x274   : > { %18164 = vst [vmem:[#allocation48_spill] sm:$0xff] %v15481_v42  ;;  %v15490_v13 = vadd.f32 %v4603_v25, %v3974_v31  ;;  %v3977_v16 = vadd.f32 %v11890_v48, %v18167_v44  ;;  %v6147_v25 = vmul.bf16 %v15295_v41, %v6107_v30  ;;  %v18173_v48 = vld [vmem:[#allocation45_spill] sm:$0xff]  ;;  %v15511_v56 = vcombine.low %v6144_v15, %v6145_v52  ;;  %v6900_v42 = vld [vmem:[%s12668_s22] sm:$0xf] }
 0x275   : > { %v4606_v4 = vpop.f32.mrf.mxu0  ;;  %v3874_v47 = vpop.f32.mrf.mxu1 }
 0x276   : > { %18166 = vst [vmem:[#allocation39_spill] sm:$0xff] %v15490_v13  ;;  %v15497_v1 = vadd.f32 %v11924_v3, %v3977_v16  ;;  %v3975_v37 = vadd.f32 %v3874_v47, %v18169_v54  ;;  %v18175_v47 = vld [vmem:[#allocation16_spill] sm:$0xff]  ;;  %v15516_v27 = vcombine.low %v6146_v28, %v6147_v25  ;;  %v18179_v25 = vld [vmem:[#allocation46_spill] sm:$0xff] }
 0x277   : > { %v11927_v9 = vpop.f32.mrf.mxu0  ;;  %12130 = vmatmul.mubr.msk.bf16.gmra.mxu0 %vm535_vm4, %v15479_v36  ;;  %v11893_v24 = vpop.f32.mrf.mxu1  ;;  %12096 = vmatmul.mubr.msk.bf16.gmra.mxu1 %vm535_vm4, %v18170_v40  ;;  %v6108_v40 = vld [vmem:[%s12668_s22 + $0x84] sm:$0xf] }
 0x278   : > { %18168 = vst [vmem:[#allocation40_spill] sm:$0xff] %v15497_v1  ;;  %12133 = vmatprep.mubr.msk.bf16.mxu0 %vm535_vm4, %v15484_v20  ;;  %v15506_v3 = vadd.f32 %v4606_v4, %v3975_v37  ;;  %v3980_v8 = vadd.f32 %v11893_v24, %v18172_v33  ;;  %12099 = vmatprep.mubr.msk.bf16.mxu1 %vm535_vm4, %v18173_v48  ;;  %v6109_v1 = vld [vmem:[%s12668_s22 + $0x88] sm:$0xf]  ;;  %v6111_v24 = vld [vmem:[%s12668_s22 + $0x94] sm:$0xf]  ;;  %v18177_v13 = vld [vmem:[#allocation36_spill] sm:$0xff] }
 0x279   : > { %v4619_v31 = vpop.f32.mrf.mxu0  ;;  %v3887_v44 = vpop.f32.mrf.mxu1  ;;  %v6149_v52 = vmul.bf16 %v15295_v41, %v6109_v1  ;;  %v6954_v1 = vmul.bf16 %v6900_v42, %v15295_v41 }
 0x27a   : > { %18171 = vst [vmem:[#allocation21_spill] sm:$0xff] %v15506_v3  ;;  %v15513_v30 = vadd.f32 %v11927_v9, %v3980_v8  ;;  %v3978_v54 = vadd.f32 %v3887_v44, %v18175_v47  ;;  %v6110_v3 = vld [vmem:[%s12668_s22 + $0x90] sm:$0xf]  ;;  %v6148_v9 = vmul.bf16 %v15295_v41, %v6108_v40 }
 0x27b   : > { %v11928_v16 = vpop.f32.mrf.mxu0  ;;  %v11894_v4 = vpop.f32.mrf.mxu1 }
 0x27c   : > { %18174 = vst [vmem:[#allocation41_spill] sm:$0xff] %v15513_v30  ;;  %v15522_v33 = vadd.f32 %v4619_v31, %v3978_v54  ;;  %v3981_v48 = vadd.f32 %v11894_v4, %v18177_v13  ;;  %v6150_v13 = vmul.bf16 %v15295_v41, %v6110_v3  ;;  %v6151_v31 = vmul.bf16 %v15295_v41, %v6111_v24  ;;  %v6901_v3 = vld [vmem:[%s12668_s22 + $0x4] sm:$0xf]  ;;  %v6112_v24 = vld [vmem:[%s12668_s22 + $0x9c] sm:$0xf] }
 0x27d   : > { %v4622_v37 = vpop.f32.mrf.mxu0  ;;  %v3890_v20 = vpop.f32.mrf.mxu1  ;;  %v15546_v4 = vcombine.low %v6148_v9, %v6149_v52  ;;  %v7009_v9 = vshrl.u32 %v6954_v1, 16  ;;  %v7012_v52 = vshll.u32 %v6954_v1, 16  ;;  %v6903_v1 = vld [vmem:[%s12668_s22 + $0xc] sm:$0xf] }
 0x27e   : > { %18176 = vst [vmem:[#allocation25_spill] sm:$0xff] %v15522_v33  ;;  %v15530_v28 = vadd.f32 %v11928_v16, %v3981_v48  ;;  %v3979_v8 = vadd.f32 %v3890_v20, %v18179_v25  ;;  %v12535_v48 = vld [vmem:[%s12658_s12 + $0xd0] sm:$0xf]  ;;  %v15560_v33 = vmul.bf16 %v6901_v3, %v15295_v41 }
 0x27f   : > { %v11931_v15 = vpop.f32.mrf.mxu0  ;;  %12134 = vmatmul.mubr.msk.bf16.gmra.mxu0 %vm535_vm4, %v15511_v56  ;;  %v11897_v44 = vpop.f32.mrf.mxu1  ;;  %12100 = vmatmul.mubr.msk.bf16.gmra.mxu1 %vm535_vm4, %v15208_v29  ;;  %v6113_v29 = vld [vmem:[%s12668_s22 + $0xa0] sm:$0xf]  ;;  %v5877_v25 = vrot.slane %v12535_v48, 5 }
 0x280   : > { %18178 = vst [vmem:[#allocation8_spill] sm:$0xff] %v15530_v28  ;;  %12137 = vmatprep.mubr.msk.bf16.mxu0 %vm535_vm4, %v15516_v27  ;;  %v15540_v16 = vadd.f32 %v4622_v37, %v3979_v8  ;;  %v3984_v20 = vadd.f32 %v11897_v44, %v15251_v23  ;;  %12103 = vmatprep.mubr.msk.bf16.mxu1 %vm535_vm4, %v15249_v63  ;;  %v6114_v8 = vld [vmem:[%s12668_s22 + $0xa8] sm:$0xf]  ;;  %v6115_v23 = vld [vmem:[%s12668_s22 + $0xac] sm:$0xf]  ;;  %18182 = vst [vmem:[#allocation7_spill] sm:$0xff] %v15560_v33 }
 0x281   : > { %v4635_v47 = vpop.f32.mrf.mxu0  ;;  %v3903_v54 = vpop.f32.mrf.mxu1  ;;  %v15554_v37 = vcombine.low %v6150_v13, %v6151_v31  ;;  %v5203_v44 = vld [vmem:[%s12658_s12 + $0xcc] sm:$0xe]  ;;  %v6155_v3 = vmul.bf16 %v15295_v41, %v6115_v23  ;;  %v7014_v23 = vrot.slane %v7012_v52, 5 }
 0x282   : > { %18180 = vst [vmem:[#allocation28_spill] sm:$0xff] %v15540_v16  ;;  %v15551_v28 = vadd.f32 %v11931_v15, %v3984_v20  ;;  %v3982_v42 = vadd.f32 %v3903_v54, %v15258_v12  ;;  %v6152_v12 = vmul.bf16 %v15295_v41, %v6112_v24  ;;  %v6153_v20 = vmul.bf16 %v15295_v41, %v6113_v29  ;;  %v12536_v24 = vld [vmem:[%s12658_s12 + $0xd4] sm:$0x1] }
 0x283   : > { %v11932_v40 = vpop.f32.mrf.mxu0  ;;  %v11898_v63 = vpop.f32.mrf.mxu1  ;;  %v6154_v54 = vmul.bf16 %v15295_v41, %v6114_v8  ;;  %v10584_v48 = vrot.slane %v5203_v44, 9  ;;  %v7011_v8 = vrot.slane %v7009_v9, 4  ;;  %v7022_v44 = vshrl.u32 %v15560_v33, 16 }
 0x284   : > { %18181 = vst [vmem:[#allocation3_spill] sm:$0xff] %v15551_v28  ;;  %v15562_v30 = vadd.f32 %v4635_v47, %v3982_v42  ;;  %v3985_v15 = vadd.f32 %v11898_v63, %v15264_v53  ;;  %v5879_v47 = vrot.slane %v5877_v25, 4  ;;  %v5880_v42 = vrot.slane %v12536_v24, 5 }
 0x285   : > { %v4638_v16 = vpop.f32.mrf.mxu0  ;;  %v3906_v13 = vpop.f32.mrf.mxu1  ;;  %v15589_v24 = vcombine.low %v6152_v12, %v6153_v20 }
 0x286   : > { %v15572_v28 = vadd.f32 %v11932_v40, %v3985_v15  ;;  %v3983_v53 = vadd.f32 %v3906_v13, %v15280_v38  ;;  %v7018_v40 = vshll.u32 %v15560_v33, 16  ;;  %v6902_v13 = vld [vmem:[%s12668_s22 + $0x8] sm:$0x1]  ;;  %v6116_v33 = vld [vmem:[%s12668_s22 + $0xb4] sm:$0xf] }
 0x287   : > { %v11935_v31 = vpop.f32.mrf.mxu0  ;;  %12138 = vmatmul.mubr.msk.bf16.gmra.mxu0 %vm535_vm4, %v15546_v4  ;;  %v11901_v63 = vpop.f32.mrf.mxu1  ;;  %12104 = vmatmul.mubr.msk.bf16.gmra.mxu1 %vm535_vm4, %v15254_v61  ;;  %v6957_v61 = vmul.bf16 %v6903_v1, %v15295_v41  ;;  %v6117_v1 = vld [vmem:[%s12668_s22 + $0xb8] sm:$0xf] }
 0x288   : > { %18183 = vst [vmem:[#allocation42_spill] sm:$0xff] %v15572_v28  ;;  %12141 = vmatprep.mubr.msk.bf16.mxu0 %vm535_vm4, %v15554_v37  ;;  %v15582_v38 = vadd.f32 %v4638_v16, %v3983_v53  ;;  %v3988_v15 = vadd.f32 %v11901_v63, %v15288_v57  ;;  %12107 = vmatprep.mubr.msk.bf16.mxu1 %vm535_vm4, %v15286_v45  ;;  %v6118_v63 = vld [vmem:[%s12668_s22 + $0xc0] sm:$0xf] }
 0x289   : > { %v4651_v29 = vpop.f32.mrf.mxu0  ;;  %v3919_v9 = vpop.f32.mrf.mxu1  ;;  %v15591_v28 = vcombine.low %v6154_v54, %v6155_v3  ;;  %v15599_v57 = vsel %vm13408_vm12, %v10584_v48, %v5877_v25  ;;  %v15603_v45 = vsel %vm13408_vm12, %v5879_v47, %v5880_v42  ;;  %v6120_v54 = vld [vmem:[%s12668_s22 + $0xcc] sm:$0xf]  ;;  %v6121_v3 = vld [vmem:[%s12668_s22 + $0xd0] sm:$0xf]  ;;  %v7033_v47 = vshrl.u32 %v6957_v61, 16 }
 0x28a   : > { %18184 = vst [vmem:[#allocation35_spill] sm:$0xff] %v15582_v38  ;;  %v15594_v16 = vadd.f32 %v11935_v31, %v3988_v15  ;;  %v3986_v53 = vadd.f32 %v3919_v9, %v15297_v0  ;;  %v6119_v38 = vld [vmem:[%s12668_s22 + $0xc4] sm:$0xf]  ;;  %v15611_v31 = vmul.bf16 %v6902_v13, %v15295_v41  ;;  %v7015_v15 = vor.u32 %v7014_v23, %v7011_v8 }
 0x28b   : > { %v11936_v52 = vpop.f32.mrf.mxu0  ;;  %18185 = vst [vmem:[#allocation6_spill] sm:$0xff] %v15591_v28  ;;  %v11902_v12 = vpop.f32.mrf.mxu1  ;;  %v15613_v0 = vrot.slane %v7018_v40, 5  ;;  %v7024_v9 = vrot.slane %v7022_v44, 4  ;;  %v7036_v42 = vshll.u32 %v6957_v61, 16  ;;  %v6156_v13 = vmul.bf16 %v15295_v41, %v6116_v33  ;;  %v18190_v44 = vld [vmem:[#allocation9_spill] sm:$0xff] }
 0x28c   : > { %18186 = vst [vmem:[#allocation24_spill] sm:$0xff] %v15594_v16  ;;  %18187 = vst [vmem:[#allocation22_spill] sm:$0xff] %v15611_v31  ;;  %v15615_v25 = vadd.f32 %v4651_v29, %v3986_v53  ;;  %v3989_v48 = vadd.f32 %v11902_v12, %v15306_v10  ;;  %v6157_v8 = vmul.bf16 %v15295_v41, %v6117_v1  ;;  %v6906_v12 = vld [vmem:[%s12668_s22 + $0x18] sm:$0xf] }
 0x28d   : > { %v4654_v20 = vpop.f32.mrf.mxu0  ;;  %v3922_v17 = vpop.f32.mrf.mxu1  ;;  %v6158_v23 = vmul.bf16 %v15295_v41, %v6118_v63  ;;  %v6159_v29 = vmul.bf16 %v15295_v41, %v6119_v38  ;;  %v6160_v61 = vmul.bf16 %v15295_v41, %v6120_v54  ;;  %v6161_v53 = vmul.bf16 %v15295_v41, %v6121_v3 }
 0x28e   : > { %18188 = vst [vmem:[#allocation4_spill] sm:$0xff] %v15615_v25  ;;  %v15624_v40 = vadd.f32 %v11936_v52, %v3989_v48  ;;  %v3987_v10 = vadd.f32 %v3922_v17, %v18190_v44  ;;  %v6907_v25 = vld [vmem:[%s12668_s22 + $0x1c] sm:$0xf]  ;;  %v10586_v38 = vcombine.low %v15599_v57, %v15603_v45  ;;  %v15637_v52 = vrot.slane %v7015_v15, 4 }
 0x28f   : > { %v11939_v16 = vpop.f32.mrf.mxu0  ;;  %12142 = vmatmul.mubr.msk.bf16.gmra.mxu0 %vm535_vm4, %v15589_v24  ;;  %v11905_v33 = vpop.f32.mrf.mxu1  ;;  %12108 = vmatmul.mubr.msk.bf16.gmra.mxu1 %vm535_vm4, %v15291_v51  ;;  %v7025_v17 = vor.u32 %v7024_v9, %v15613_v0  ;;  %v7028_v63 = vshll.u32 %v15611_v31, 16  ;;  %v7035_v3 = vrot.slane %v7033_v47, 4  ;;  %v7038_v44 = vrot.slane %v7036_v42, 5 }
 0x290   : > { %18189 = vst [vmem:[#allocation23_spill] sm:$0xff] %v15624_v40  ;;  %12145 = vmatprep.mubr.msk.bf16.mxu0 %vm535_vm4, %v15591_v28  ;;  %v15641_v48 = vadd.f32 %v4654_v20, %v3987_v10  ;;  %v3992_v54 = vadd.f32 %v11905_v33, %v15322_v46  ;;  %12111 = vmatprep.mubr.msk.bf16.mxu1 %vm535_vm4, %v15320_v43  ;;  %v7042_v9 = vshll.u32 %v15384_v58, 16 }
 0x291   : > { %v4667_v1 = vpop.f32.mrf.mxu0  ;;  %v3935_v51 = vpop.f32.mrf.mxu1  ;;  %v15646_v28 = vcombine.low %v6156_v13, %v6157_v8  ;;  %v15648_v57 = vcombine.low %v6158_v23, %v6159_v29  ;;  %v6960_v45 = vmul.bf16 %v6906_v12, %v15295_v41  ;;  %v15652_v15 = vmul.bf16 %v6907_v25, %v15295_v41  ;;  %v6909_v29 = vld [vmem:[%s12668_s22 + $0x24] sm:$0xf]  ;;  %v6910_v12 = vld [vmem:[%s12668_s22 + $0x28] sm:$0xf] }
 0x292   : > { %v15654_v20 = vadd.f32 %v11939_v16, %v3992_v54  ;;  %v3990_v46 = vadd.f32 %v3935_v51, %v15329_v55  ;;  %v15657_v43 = vcombine.low %v6160_v61, %v6161_v53  ;;  %v15660_v13 = vrot.slane %v7025_v17, 4 }
 0x293   : > { %v11940_v40 = vpop.f32.mrf.mxu0  ;;  %18191 = vst [vmem:[#allocation27_spill] sm:$0xff] %v15648_v57  ;;  %18192 = vst [vmem:[#allocation34_spill] sm:$0xff] %v15652_v15  ;;  %v11906_v47 = vpop.f32.mrf.mxu1  ;;  %v15662_v8 = vrot.slane %v7028_v63, 5  ;;  %v7046_v23 = vshrl.u32 %v15384_v58, 16  ;;  %v7052_v25 = vshll.u32 %v15393_v22, 16  ;;  %v7039_v53 = vor.u32 %v7038_v44, %v7035_v3 }
 0x294   : > { %18193 = vst [vmem:[#allocation30_spill] sm:$0xff] %v15654_v20  ;;  %18194 = vst [vmem:[#allocation37_spill] sm:$0xff] %v15657_v43  ;;  %v15667_v16 = vadd.f32 %v4667_v1, %v3990_v46  ;;  %v3993_v55 = vadd.f32 %v11906_v47, %v15336_v62  ;;  %v6908_v58 = vld [vmem:[%s12668_s22 + $0x20] sm:$0x1]  ;;  %v7057_v63 = vshrl.u32 %v6960_v45, 16  ;;  %v7060_v22 = vshll.u32 %v6960_v45, 16 }
 0x295   : > { %v4670_v42 = vpop.f32.mrf.mxu0  ;;  %v3938_v33 = vpop.f32.mrf.mxu1  ;;  %v7066_v1 = vshll.u32 %v15652_v15, 16  ;;  %v7070_v54 = vshrl.u32 %v15652_v15, 16  ;;  %v15685_v3 = vrot.slane %v7042_v9, 5  ;;  %v6963_v44 = vmul.bf16 %v6909_v29, %v15295_v41 }
 0x296   : > { %18195 = vst [vmem:[#allocation5_spill] sm:$0xff] %v15667_v16  ;;  %v15680_v62 = vadd.f32 %v11940_v40, %v3993_v55  ;;  %v3991_v51 = vadd.f32 %v3938_v33, %v15344_v5  ;;  %v7048_v40 = vrot.slane %v7046_v23, 4  ;;  %v15693_v55 = vrot.slane %v7052_v25, 5  ;;  %v18200_v33 = vld [vmem:[#allocation47_spill] sm:$0xff]  ;;  %v10757_v23 = vld [vmem:[%s17804_s2 + $0x28] sm:$0x3] }
 0x297   : > { %v11943_v17 = vpop.f32.mrf.mxu0  ;;  %12146 = vmatmul.mubr.msk.bf16.gmra.mxu0 %vm535_vm4, %v15646_v28  ;;  %v11909_v46 = vpop.f32.mrf.mxu1  ;;  %12112 = vmatmul.mubr.msk.bf16.gmra.mxu1 %vm535_vm4, %v10586_v38  ;;  %v15696_v5 = vmul.bf16 %v6910_v12, %v15295_v41  ;;  %v15703_v38 = vrot.slane %v7039_v53, 4  ;;  %v15706_v61 = vmul.bf16 %v6908_v58, %v15295_v41  ;;  %v7059_v45 = vrot.slane %v7057_v63, 4  ;;  %v10723_v58 = vld [vmem:[%s17804_s2 + $0x32] sm:$0x3] }
 0x298   : > { %18197 = vst [vmem:[#allocation14_spill] sm:$0xff] %v15680_v62  ;;  %12185 = vmatprep.mubr.msk.bf16.mxu0 %vm535_vm4, %v15360_v26  ;;  %v15698_v9 = vadd.f32 %v4670_v42, %v3991_v51  ;;  %v3996_v29 = vadd.f32 %v11909_v46, %v18200_v33  ;;  %12151 = vmatprep.mubr.msk.bf16.mxu1 %vm535_vm4, %v15352_v11  ;;  %v7062_v42 = vrot.slane %v7060_v22, 5  ;;  %v15711_v51 = vrot.slane %v7066_v1, 5  ;;  %v6912_v33 = vld [vmem:[%s12668_s22 + $0x30] sm:$0xf] }
 0x299   : > { %v4683_v47 = vpop.f32.mrf.mxu0  ;;  %18198 = vst [vmem:[#allocation29_spill] sm:$0xff] %v15696_v5  ;;  %18201 = vst [vmem:[#allocation10_spill] sm:$0xff] %v15706_v61  ;;  %v3951_v25 = vpop.f32.mrf.mxu1  ;;  %v7072_v46 = vrot.slane %v7070_v54, 4  ;;  %v7081_v15 = vshrl.u32 %v6963_v44, 16  ;;  %v7084_v31 = vshll.u32 %v6963_v44, 16  ;;  %v7049_v63 = vor.u32 %v7048_v40, %v15685_v3 }
 0x29a   : > { %18199 = vst [vmem:[#allocation31_spill] sm:$0xff] %v15698_v9  ;;  %v15714_v11 = vadd.f32 %v11943_v17, %v3996_v29  ;;  %v3994_v53 = vadd.f32 %v3951_v25, %v15371_v59  ;;  %v6913_v9 = vld [vmem:[%s12668_s22 + $0x34] sm:$0xf]  ;;  %v15723_v22 = vand.u32 %v10757_v23, %v18123_v2  ;;  %v7090_v1 = vshll.u32 %v15696_v5, 16 }
 0x29b   : > { %v11944_v12 = vpop.f32.mrf.mxu0  ;;  %v11910_v43 = vpop.f32.mrf.mxu1  ;;  %v7094_v17 = vshrl.u32 %v15696_v5, 16  ;;  %v18203_v59 = vld [vmem:[#allocation38_spill] sm:$0xff]  ;;  %v7076_v25 = vshll.u32 %v15706_v61, 16  ;;  %v6966_v44 = vmul.bf16 %v6912_v33, %v15295_v41  ;;  %v7063_v40 = vor.u32 %v7062_v42, %v7059_v45  ;;  %v18206_v5 = vld [vmem:[#allocation11_spill] sm:$0xff] }
 0x29c   : > { %18202 = vst [vmem:[#allocation32_spill] sm:$0xff] %v15714_v11  ;;  %v15727_v54 = vadd.f32 %v4683_v47, %v3994_v53  ;;  %v3997_v29 = vadd.f32 %v11910_v43, %v18203_v59  ;;  %v6911_v11 = vld [vmem:[%s12668_s22 + $0x2c] sm:$0x1]  ;;  %v7073_v23 = vor.u32 %v7072_v46, %v15711_v51  ;;  %v15737_v57 = vand.u32 %v10723_v58, %v18123_v2  ;;  %v18205_v53 = vld [vmem:[#allocation43_spill] sm:$0xff] }
 0x29d   : > { %v4686_v62 = vpop.f32.mrf.mxu0  ;;  %v3954_v16 = vpop.f32.mrf.mxu1  ;;  %v15740_v47 = vmul.bf16 %v6913_v9, %v15295_v41  ;;  %v7083_v33 = vrot.slane %v7081_v15, 4  ;;  %v7086_v61 = vrot.slane %v7084_v31, 5  ;;  %v7050_v46 = vrot.slane %v7049_v63, 4 }
 0x29e   : > { %v15742_v43 = vadd.f32 %v11944_v12, %v3997_v29  ;;  %v3995_v59 = vadd.f32 %v3954_v16, %v18205_v53  ;;  %v15752_v9 = vmul.bf16 %v6911_v11, %v15295_v41  ;;  %v15754_v12 = vrot.slane %v7090_v1, 5 }
 0x29f   : > { %v11983_v20 = vpop.f32.mrf.mxu0  ;;  %12186 = vmatmul.mubr.msk.bf16.vlgmr.msra.gmra.mxu0 %vm535_vm4, %v15407_v19  ;;  %18204 = vst [vmem:[#allocation33_spill] sm:$0xff] %v15740_v47  ;;  %v11949_v45 = vpop.f32.mrf.mxu1  ;;  %12152 = vmatmul.mubr.msk.bf16.vlgmr.msra.gmra.mxu1 %vm535_vm4, %v15360_v26  ;;  %v7096_v16 = vrot.slane %v7094_v17, 4  ;;  %v7105_v26 = vshrl.u32 %v6966_v44, 16  ;;  %v7108_v31 = vshll.u32 %v6966_v44, 16  ;;  %v7064_v29 = vrot.slane %v7063_v40, 4 }
 0x2a0   : > { %12252 = vmatpush3.bf16.msra.mxu0 %v18206_v5  ;;  %12189 = vmatprep.mubr.msk.bf16.mxu0 %vm535_vm4, %v15415_v60  ;;  %18207 = vst [vmem:[#allocation13_spill] sm:$0xff] %v15752_v9  ;;  %v15756_v5 = vadd.f32 %v4686_v62, %v3995_v59  ;;  %v4928_v58 = vadd.f32 %v11949_v45, %v15412_v32  ;;  %v7078_v11 = vrot.slane %v7076_v25, 5  ;;  %v7114_v1 = vshll.u32 %v15740_v47, 16 }
 0x2a1   : > { %v5027_v42 = vpop.f32.mrf.mxu0  ;;  %12319 = vmatprep.subr.bf16.mxu0 %v15723_v22  ;;  %12218 = vmatpush3.bf16.msra.mxu1 %v15381_v14  ;;  %v4799_v15 = vpop.f32.mrf.mxu1  ;;  %v7118_v62 = vshrl.u32 %v15740_v47, 16  ;;  %v7074_v17 = vrot.slane %v7073_v23, 4  ;;  %v7087_v53 = vor.u32 %v7086_v61, %v7083_v33  ;;  %v7045_v25 = vsel %vm12912_vm9, %v15703_v38, %v15685_v3  ;;  %v6915_v33 = vld [vmem:[%s12668_s22 + $0x3c] sm:$0xf] }
 0x2a2   : > { %12155 = vmatprep.mubr.msk.bf16.mxu1 %vm535_vm4, %v15407_v19  ;;  %12285 = vmatprep.subr.bf16.mxu1 %v15737_v57  ;;  %v15765_v32 = vadd.f32 %v11983_v20, %v4928_v58  ;;  %v4926_v14 = vadd.f32 %v4799_v15, %v15420_v49  ;;  %v6914_v19 = vld [vmem:[%s12668_s22 + $0x38] sm:$0x1]  ;;  %v7055_v40 = vsel %vm12912_vm9, %v7050_v46, %v15693_v55  ;;  %v7100_v20 = vshll.u32 %v15752_v9, 16 }
 0x2a3   : > { %v11984_v63 = vpop.f32.mrf.mxu0  ;;  %v11950_v59 = vpop.f32.mrf.mxu1  ;;  %v7097_v45 = vor.u32 %v7096_v16, %v15754_v12  ;;  %v7107_v61 = vrot.slane %v7105_v26, 4  ;;  %v7110_v23 = vrot.slane %v7108_v31, 5  ;;  %v7069_v3 = vsel %vm12912_vm9, %v7064_v29, %v15711_v51  ;;  %v6916_v51 = vld [vmem:[%s12668_s22 + $0x40] sm:$0xf] }
 0x2a4   : > { %v15778_v58 = vadd.f32 %v5027_v42, %v4926_v14  ;;  %v4929_v49 = vadd.f32 %v11950_v59, %v15432_v7  ;;  %v15788_v55 = vmul.bf16 %v6914_v19, %v15295_v41  ;;  %v15790_v38 = vrot.slane %v7114_v1, 5  ;;  %v6918_v14 = vld [vmem:[%s12668_s22 + $0x48] sm:$0xf] }
 0x2a5   : > { %v5030_v44 = vpop.f32.mrf.mxu0  ;;  %v4802_v15 = vpop.f32.mrf.mxu1  ;;  %v7120_v7 = vrot.slane %v7118_v62, 4  ;;  %v7079_v16 = vsel %vm12912_vm9, %v7074_v17, %v7078_v11  ;;  %v15799_v26 = vrot.slane %v7087_v53, 4  ;;  %v15816_v1 = vrot.slane %v7097_v45, 4 }
 0x2a6   : > { %18208 = vst [vmem:[#allocation12_spill] sm:$0xff] %v15788_v55  ;;  %v15792_v42 = vadd.f32 %v11984_v63, %v4929_v49  ;;  %v4927_v46 = vadd.f32 %v4802_v15, %v15442_v6  ;;  %v18209_v6 = vsel %vm12912_vm9, %v15660_v13, %v15662_v8  ;;  %v18210_v63 = vsel %vm12912_vm9, %v15637_v52, %v15613_v0  ;;  %v6919_v52 = vld [vmem:[%s12668_s22 + $0x4c] sm:$0xf]  ;;  %v6917_v49 = vld [vmem:[%s12668_s22 + $0x44] sm:$0x1] }
 0x2a7   : > { %v11987_v47 = vpop.f32.mrf.mxu0  ;;  %12190 = vmatmul.mubr.msk.bf16.gmra.mxu0 %vm535_vm4, %v15447_v39  ;;  %v11953_v31 = vpop.f32.mrf.mxu1  ;;  %12156 = vmatmul.mubr.msk.bf16.gmra.mxu1 %vm535_vm4, %v15415_v60  ;;  %v15814_v11 = vcombine.low %v18210_v63, %v18209_v6  ;;  %v15818_v62 = vrot.slane %v7100_v20, 5  ;;  %v6969_v60 = vmul.bf16 %v6915_v33, %v15295_v41  ;;  %v15827_v13 = vcombine.low %v7045_v25, %v7055_v40 }
 0x2a8   : > { %12193 = vmatprep.mubr.msk.bf16.mxu0 %vm535_vm4, %v15452_v34  ;;  %v15822_v17 = vadd.f32 %v5030_v44, %v4927_v46  ;;  %v4932_v53 = vadd.f32 %v11953_v31, %v15449_v50  ;;  %12159 = vmatprep.mubr.msk.bf16.mxu1 %vm535_vm4, %v15447_v39  ;;  %v7111_v0 = vor.u32 %v7110_v23, %v7107_v61  ;;  %v7124_v20 = vshll.u32 %v15788_v55, 16 }
 0x2a9   : > { %v5043_v29 = vpop.f32.mrf.mxu0  ;;  %v4815_v8 = vpop.f32.mrf.mxu1  ;;  %v15830_v59 = vcombine.low %v7069_v3, %v7079_v16  ;;  %v7121_v45 = vor.u32 %v7120_v7, %v15790_v38  ;;  %v15836_v44 = vmul.bf16 %v6916_v51, %v15295_v41  ;;  %v7093_v25 = vsel %vm12912_vm9, %v15799_v26, %v15754_v12 }
 0x2aa   : > { %v15838_v50 = vadd.f32 %v11987_v47, %v4932_v53  ;;  %v4930_v39 = vadd.f32 %v4815_v8, %v15458_v18  ;;  %v6972_v40 = vmul.bf16 %v6918_v14, %v15295_v41  ;;  %v7103_v33 = vsel %vm12912_vm9, %v15816_v1, %v15818_v62  ;;  %v6921_v1 = vld [vmem:[%s12668_s22 + $0x54] sm:$0xf]  ;;  %v18214_v62 = vld [vmem:[#allocation20_spill] sm:$0xff] }
 0x2ab   : > { %v11988_v19 = vpop.f32.mrf.mxu0  ;;  %18211 = vst [vmem:[#allocation17_spill] sm:$0xff] %v15836_v44  ;;  %v11954_v61 = vpop.f32.mrf.mxu1  ;;  %v7129_v15 = vshrl.u32 %v6969_v60, 16  ;;  %v7132_v47 = vshll.u32 %v6969_v60, 16  ;;  %v15851_v3 = vmul.bf16 %v6919_v52, %v15295_v41  ;;  %v7112_v7 = vrot.slane %v7111_v0, 4  ;;  %v6920_v60 = vld [vmem:[%s12668_s22 + $0x50] sm:$0x1] }
 0x2ac   : > { %v15853_v18 = vadd.f32 %v5043_v29, %v4930_v39  ;;  %v4933_v12 = vadd.f32 %v11954_v61, %v15465_v21  ;;  %v15857_v46 = vmul.bf16 %v6917_v49, %v15295_v41  ;;  %v7122_v51 = vrot.slane %v7121_v45, 4  ;;  %v6922_v61 = vld [vmem:[%s12668_s22 + $0x58] sm:$0xf] }
 0x2ad   : > { %v5046_v23 = vpop.f32.mrf.mxu0  ;;  %18212 = vst [vmem:[#allocation15_spill] sm:$0xff] %v15851_v3  ;;  %v4818_v16 = vpop.f32.mrf.mxu1  ;;  %v7126_v31 = vrot.slane %v7124_v20, 5  ;;  %v7138_v6 = vshll.u32 %v15836_v44, 16  ;;  %v7142_v63 = vshrl.u32 %v15836_v44, 16  ;;  %v7153_v14 = vshrl.u32 %v6972_v40, 16 }
 0x2ae   : > { %18213 = vst [vmem:[#allocation44_spill] sm:$0xff] %v15857_v46  ;;  %v15864_v29 = vadd.f32 %v11988_v19, %v4933_v12  ;;  %v4931_v21 = vadd.f32 %v4818_v16, %v15474_v35  ;;  %v7156_v53 = vshll.u32 %v6972_v40, 16  ;;  %v7131_v8 = vrot.slane %v7129_v15, 4  ;;  %v18215_v35 = vld [vmem:[#allocation48_spill] sm:$0xff] }
 0x2af   : > { %v11991_v26 = vpop.f32.mrf.mxu0  ;;  %12194 = vmatmul.mubr.msk.bf16.gmra.mxu0 %vm535_vm4, %v15479_v36  ;;  %v11957_v0 = vpop.f32.mrf.mxu1  ;;  %12160 = vmatmul.mubr.msk.bf16.gmra.mxu1 %vm535_vm4, %v15452_v34  ;;  %v7134_v45 = vrot.slane %v7132_v47, 5  ;;  %v7162_v20 = vshll.u32 %v15851_v3, 16  ;;  %v7166_v19 = vshrl.u32 %v15851_v3, 16  ;;  %v7117_v40 = vsel %vm12912_vm9, %v7112_v7, %v15790_v38 }
 0x2b0   : > { %12197 = vmatprep.mubr.msk.bf16.mxu0 %vm535_vm4, %v18214_v62  ;;  %v15874_v49 = vadd.f32 %v5046_v23, %v4931_v21  ;;  %v4936_v39 = vadd.f32 %v11957_v0, %v18215_v35  ;;  %12163 = vmatprep.mubr.msk.bf16.mxu1 %vm535_vm4, %v15479_v36  ;;  %v6975_v34 = vmul.bf16 %v6921_v1, %v15295_v41  ;;  %v15886_v16 = vrot.slane %v7138_v6, 5  ;;  %v18217_v36 = vld [vmem:[#allocation39_spill] sm:$0xff]  ;;  %v18220_v6 = vld [vmem:[#allocation40_spill] sm:$0xff] }
 0x2b1   : > { %v5059_v52 = vpop.f32.mrf.mxu0  ;;  %v4831_v15 = vpop.f32.mrf.mxu1  ;;  %v7127_v12 = vsel %vm12912_vm9, %v7122_v51, %v7126_v31  ;;  %v7144_v23 = vrot.slane %v7142_v63, 4  ;;  %v15889_v21 = vmul.bf16 %v6920_v60, %v15295_v41  ;;  %v7155_v3 = vrot.slane %v7153_v14, 4 }
 0x2b2   : > { %v15891_v0 = vadd.f32 %v11991_v26, %v4936_v39  ;;  %v4934_v35 = vadd.f32 %v4831_v15, %v18217_v36  ;;  %v7158_v38 = vrot.slane %v7156_v53, 5  ;;  %v7135_v1 = vor.u32 %v7134_v45, %v7131_v8  ;;  %v6924_v36 = vld [vmem:[%s12668_s22 + $0x60] sm:$0xf] }
 0x2b3   : > { %v11992_v47 = vpop.f32.mrf.mxu0  ;;  %18216 = vst [vmem:[#allocation19_spill] sm:$0xff] %v15889_v21  ;;  %v11958_v7 = vpop.f32.mrf.mxu1  ;;  %v15894_v55 = vrot.slane %v7162_v20, 5  ;;  %v7168_v9 = vrot.slane %v7166_v19, 4  ;;  %v15897_v51 = vmul.bf16 %v6922_v61, %v15295_v41  ;;  %v7177_v26 = vshrl.u32 %v6975_v34, 16  ;;  %v18222_v19 = vld [vmem:[#allocation21_spill] sm:$0xff] }
 0x2b4   : > { %v15899_v31 = vadd.f32 %v5059_v52, %v4934_v35  ;;  %v4937_v63 = vadd.f32 %v11958_v7, %v18220_v6  ;;  %v7180_v60 = vshll.u32 %v6975_v34, 16  ;;  %v15904_v53 = vcombine.low %v7093_v25, %v7103_v33  ;;  %v6925_v25 = vld [vmem:[%s12668_s22 + $0x64] sm:$0xf]  ;;  %v6923_v6 = vld [vmem:[%s12668_s22 + $0x5c] sm:$0x1] }
 0x2b5   : > { %v5062_v44 = vpop.f32.mrf.mxu0  ;;  %18218 = vst [vmem:[#allocation45_spill] sm:$0xff] %v15897_v51  ;;  %v4834_v39 = vpop.f32.mrf.mxu1  ;;  %v15906_v8 = vcombine.low %v7117_v40, %v7127_v12  ;;  %v7145_v45 = vor.u32 %v7144_v23, %v15886_v16  ;;  %v7148_v52 = vshll.u32 %v15857_v46, 16  ;;  %v7159_v34 = vor.u32 %v7158_v38, %v7155_v3  ;;  %v18224_v3 = vld [vmem:[#allocation41_spill] sm:$0xff] }
 0x2b6   : > { %18219 = vst [vmem:[#allocation16_spill] sm:$0xff] %v15899_v31  ;;  %v15910_v20 = vadd.f32 %v11992_v47, %v4937_v63  ;;  %v4935_v61 = vadd.f32 %v4834_v39, %v18222_v19  ;;  %v7172_v15 = vshll.u32 %v15889_v21, 16  ;;  %v15920_v12 = vrot.slane %v7135_v1, 4 }
 0x2b7   : > { %v11995_v14 = vpop.f32.mrf.mxu0  ;;  %12198 = vmatmul.mubr.msk.bf16.gmra.mxu0 %vm535_vm4, %v15511_v56  ;;  %v11961_v33 = vpop.f32.mrf.mxu1  ;;  %12164 = vmatmul.mubr.msk.bf16.gmra.mxu1 %vm535_vm4, %v18214_v62  ;;  %v7169_v47 = vor.u32 %v7168_v9, %v15894_v55  ;;  %v7186_v23 = vshll.u32 %v15897_v51, 16  ;;  %v7190_v35 = vshrl.u32 %v15897_v51, 16  ;;  %v7179_v63 = vrot.slane %v7177_v26, 4 }
 0x2b8   : > { %18221 = vst [vmem:[#allocation36_spill] sm:$0xff] %v15910_v20  ;;  %12201 = vmatprep.mubr.msk.bf16.mxu0 %vm535_vm4, %v15516_v27  ;;  %v15925_v7 = vadd.f32 %v5062_v44, %v4935_v61  ;;  %v4940_v38 = vadd.f32 %v11961_v33, %v18224_v3  ;;  %12167 = vmatprep.mubr.msk.bf16.mxu1 %vm535_vm4, %v15511_v56  ;;  %v7182_v39 = vrot.slane %v7180_v60, 5  ;;  %v7146_v1 = vrot.slane %v7145_v45, 4  ;;  %v18227_v61 = vld [vmem:[#allocation25_spill] sm:$0xff] }
 0x2b9   : > { %v5075_v40 = vpop.f32.mrf.mxu0  ;;  %v4847_v62 = vpop.f32.mrf.mxu1  ;;  %v7150_v21 = vrot.slane %v7148_v52, 5  ;;  %v6978_v9 = vmul.bf16 %v6924_v36, %v15295_v41  ;;  %v15933_v46 = vmul.bf16 %v6925_v25, %v15295_v41  ;;  %v7160_v3 = vrot.slane %v7159_v34, 4  ;;  %v18230_v25 = vld [vmem:[#allocation8_spill] sm:$0xff] }
 0x2ba   : > { %18223 = vst [vmem:[#allocation46_spill] sm:$0xff] %v15925_v7  ;;  %v15935_v44 = vadd.f32 %v11995_v14, %v4940_v38  ;;  %v4938_v33 = vadd.f32 %v4847_v62, %v18227_v61  ;;  %v7174_v56 = vrot.slane %v7172_v15, 5  ;;  %v7170_v60 = vrot.slane %v7169_v47, 4  ;;  %v6927_v15 = vld [vmem:[%s12668_s22 + $0x6c] sm:$0xf]  ;;  %v18232_v61 = vld [vmem:[#allocation28_spill] sm:$0xff] }
 0x2bb   : > { %v11996_v19 = vpop.f32.mrf.mxu0  ;;  %18225 = vst [vmem:[#allocation9_spill] sm:$0xff] %v15933_v46  ;;  %v11962_v51 = vpop.f32.mrf.mxu1  ;;  %v15939_v7 = vmul.bf16 %v6923_v6, %v15295_v41  ;;  %v15941_v45 = vrot.slane %v7186_v23, 5  ;;  %v7192_v52 = vrot.slane %v7190_v35, 4  ;;  %v7141_v14 = vsel %vm12912_vm9, %v15920_v12, %v15886_v16  ;;  %v6926_v47 = vld [vmem:[%s12668_s22 + $0x68] sm:$0x1] }
 0x2bc   : > { %18226 = vst [vmem:[#allocation47_spill] sm:$0xff] %v15935_v44  ;;  %v15943_v36 = vadd.f32 %v5075_v40, %v4938_v33  ;;  %v4941_v20 = vadd.f32 %v11962_v51, %v18230_v25  ;;  %v7183_v34 = vor.u32 %v7182_v39, %v7179_v63  ;;  %v7201_v23 = vshrl.u32 %v6978_v9, 16  ;;  %v6928_v25 = vld [vmem:[%s12668_s22 + $0x70] sm:$0xf] }
 0x2bd   : > { %v5078_v26 = vpop.f32.mrf.mxu0  ;;  %18228 = vst [vmem:[#allocation38_spill] sm:$0xff] %v15939_v7  ;;  %v4850_v38 = vpop.f32.mrf.mxu1  ;;  %v7204_v35 = vshll.u32 %v6978_v9, 16  ;;  %v7210_v40 = vshll.u32 %v15933_v46, 16  ;;  %v7214_v51 = vshrl.u32 %v15933_v46, 16  ;;  %v7151_v16 = vsel %vm12912_vm9, %v7146_v1, %v7150_v21 }
 0x2be   : > { %18229 = vst [vmem:[#allocation43_spill] sm:$0xff] %v15943_v36  ;;  %v15956_v6 = vadd.f32 %v11996_v19, %v4941_v20  ;;  %v4939_v33 = vadd.f32 %v4850_v38, %v18232_v61  ;;  %v7165_v12 = vsel %vm12912_vm9, %v7160_v3, %v15894_v55  ;;  %v7175_v20 = vsel %vm12912_vm9, %v7170_v60, %v7174_v56  ;;  %v18234_v38 = vld [vmem:[#allocation3_spill] sm:$0xff] }
 0x2bf   : > { %v11999_v62 = vpop.f32.mrf.mxu0  ;;  %12202 = vmatmul.mubr.msk.bf16.gmra.mxu0 %vm535_vm4, %v15546_v4  ;;  %v11965_v63 = vpop.f32.mrf.mxu1  ;;  %12168 = vmatmul.mubr.msk.bf16.gmra.mxu1 %vm535_vm4, %v15516_v27  ;;  %v7193_v19 = vor.u32 %v7192_v52, %v15941_v45  ;;  %v7196_v9 = vshll.u32 %v15939_v7, 16  ;;  %v6981_v21 = vmul.bf16 %v6927_v15, %v15295_v41  ;;  %v15979_v27 = vrot.slane %v7183_v34, 4 }
 0x2c0   : > { %18231 = vst [vmem:[#allocation11_spill] sm:$0xff] %v15956_v6  ;;  %12205 = vmatprep.mubr.msk.bf16.mxu0 %vm535_vm4, %v15554_v37  ;;  %v15974_v1 = vadd.f32 %v5078_v26, %v4939_v33  ;;  %v4944_v55 = vadd.f32 %v11965_v63, %v18234_v38  ;;  %12171 = vmatprep.mubr.msk.bf16.mxu1 %vm535_vm4, %v15546_v4  ;;  %v7203_v52 = vrot.slane %v7201_v23, 4  ;;  %v7206_v61 = vrot.slane %v7204_v35, 5  ;;  %v6930_v26 = vld [vmem:[%s12668_s22 + $0x78] sm:$0xf] }
 0x2c1   : > { %v5091_v39 = vpop.f32.mrf.mxu0  ;;  %v15982_v3 = vmul.bf16 %v6926_v47, %v15295_v41  ;;  %v4863_v56 = vpop.f32.mrf.mxu1  ;;  %v15984_v7 = vrot.slane %v7210_v40, 5  ;;  %v7216_v15 = vrot.slane %v7214_v51, 4  ;;  %v15990_v4 = vcombine.low %v7141_v14, %v7151_v16  ;;  %v18239_v51 = vld [vmem:[#allocation42_spill] sm:$0xff] }
 0x2c2   : > { %18233 = vst [vmem:[#allocation20_spill] sm:$0xff] %v15974_v1  ;;  %v15987_v33 = vadd.f32 %v11999_v62, %v4944_v55  ;;  %v4942_v63 = vadd.f32 %v4863_v56, %v15562_v30  ;;  %v15993_v34 = vmul.bf16 %v6928_v25, %v15295_v41  ;;  %v15995_v46 = vcombine.low %v7165_v12, %v7175_v20  ;;  %v6929_v55 = vld [vmem:[%s12668_s22 + $0x74] sm:$0x1]  ;;  %v18241_v25 = vld [vmem:[#allocation35_spill] sm:$0xff] }
 0x2c3   : > { %18235 = vst [vmem:[#allocation48_spill] sm:$0xff] %v15982_v3  ;;  %v12000_v60 = vpop.f32.mrf.mxu0  ;;  %v11966_v47 = vpop.f32.mrf.mxu1  ;;  %v7198_v23 = vrot.slane %v7196_v9, 5  ;;  %v7225_v35 = vshrl.u32 %v6981_v21, 16  ;;  %v7228_v40 = vshll.u32 %v6981_v21, 16  ;;  %v7194_v62 = vrot.slane %v7193_v19, 4  ;;  %v18242_v56 = vld [vmem:[#allocation6_spill] sm:$0xff] }
 0x2c4   : > { %18236 = vst [vmem:[#allocation39_spill] sm:$0xff] %v15987_v33  ;;  %18237 = vst [vmem:[#allocation40_spill] sm:$0xff] %v15993_v34  ;;  %v15997_v1 = vadd.f32 %v5091_v39, %v4942_v63  ;;  %v4945_v6 = vadd.f32 %v11966_v47, %v18239_v51  ;;  %v6931_v33 = vld [vmem:[%s12668_s22 + $0x7c] sm:$0xf]  ;;  %v6984_v30 = vmul.bf16 %v6930_v26, %v15295_v41  ;;  %v7220_v9 = vshll.u32 %v15982_v3, 16 }
 0x2c5   : > { %v5094_v38 = vpop.f32.mrf.mxu0  ;;  %v4866_v14 = vpop.f32.mrf.mxu1  ;;  %v7189_v12 = vsel %vm12912_vm9, %v15979_v27, %v15941_v45  ;;  %v7207_v20 = vor.u32 %v7206_v61, %v7203_v52  ;;  %v7217_v39 = vor.u32 %v7216_v15, %v15984_v7  ;;  %v7234_v26 = vshll.u32 %v15993_v34, 16  ;;  %v18246_v15 = vld [vmem:[#allocation24_spill] sm:$0xff]  ;;  %v6934_v3 = vld [vmem:[%s12668_s22 + $0x88] sm:$0xf] }
 0x2c6   : > { %18238 = vst [vmem:[#allocation21_spill] sm:$0xff] %v15997_v1  ;;  %v16011_v19 = vadd.f32 %v12000_v60, %v4945_v6  ;;  %v4943_v21 = vadd.f32 %v4866_v14, %v18241_v25  ;;  %v7238_v63 = vshrl.u32 %v15993_v34, 16  ;;  %v16021_v27 = vmul.bf16 %v6929_v55, %v15295_v41 }
 0x2c7   : > { %v12003_v16 = vpop.f32.mrf.mxu0  ;;  %12206 = vmatmul.mubr.msk.bf16.gmra.mxu0 %vm535_vm4, %v15589_v24  ;;  %v11969_v47 = vpop.f32.mrf.mxu1  ;;  %12172 = vmatmul.mubr.msk.bf16.gmra.mxu1 %vm535_vm4, %v15554_v37  ;;  %v7227_v52 = vrot.slane %v7225_v35, 4  ;;  %v7230_v6 = vrot.slane %v7228_v40, 5  ;;  %v16024_v60 = vmul.bf16 %v6931_v33, %v15295_v41  ;;  %v7249_v14 = vshrl.u32 %v6984_v30, 16 }
 0x2c8   : > { %18240 = vst [vmem:[#allocation41_spill] sm:$0xff] %v16011_v19  ;;  %12209 = vmatprep.mubr.msk.bf16.mxu0 %vm535_vm4, %v18242_v56  ;;  %18243 = vst [vmem:[#allocation25_spill] sm:$0xff] %v16021_v27  ;;  %v16026_v61 = vadd.f32 %v5094_v38, %v4943_v21  ;;  %v4948_v51 = vadd.f32 %v11969_v47, %v18246_v15  ;;  %12175 = vmatprep.mubr.msk.bf16.mxu1 %vm535_vm4, %v15589_v24  ;;  %v7252_v37 = vshll.u32 %v6984_v30, 16  ;;  %v18248_v21 = vld [vmem:[#allocation4_spill] sm:$0xff] }
 0x2c9   : > { %v5107_v45 = vpop.f32.mrf.mxu0  ;;  %18244 = vst [vmem:[#allocation8_spill] sm:$0xff] %v16024_v60  ;;  %v4879_v25 = vpop.f32.mrf.mxu1  ;;  %v7199_v35 = vsel %vm12912_vm9, %v7194_v62, %v7198_v23  ;;  %v16033_v40 = vrot.slane %v7207_v20, 4  ;;  %v16035_v33 = vrot.slane %v7217_v39, 4  ;;  %v16037_v38 = vrot.slane %v7220_v9, 5  ;;  %v6933_v30 = vld [vmem:[%s12668_s22 + $0x84] sm:$0xf] }
 0x2ca   : > { %18245 = vst [vmem:[#allocation28_spill] sm:$0xff] %v16026_v61  ;;  %v16039_v55 = vadd.f32 %v12003_v16, %v4948_v51  ;;  %v4946_v47 = vadd.f32 %v4879_v25, %v18248_v21  ;;  %v16042_v15 = vrot.slane %v7234_v26, 5  ;;  %v7240_v24 = vrot.slane %v7238_v63, 4  ;;  %v18250_v16 = vld [vmem:[#allocation23_spill] sm:$0xff]  ;;  %v6932_v51 = vld [vmem:[%s12668_s22 + $0x80] sm:$0x1] }
 0x2cb   : > { %v12004_v34 = vpop.f32.mrf.mxu0  ;;  %v11970_v61 = vpop.f32.mrf.mxu1  ;;  %v7231_v1 = vor.u32 %v7230_v6, %v7227_v52  ;;  %v7244_v23 = vshll.u32 %v16021_v27, 16  ;;  %v7258_v62 = vshll.u32 %v16024_v60, 16  ;;  %v7262_v20 = vshrl.u32 %v16024_v60, 16  ;;  %v18257_v52 = vld [vmem:[#allocation30_spill] sm:$0xff] }
 0x2cc   : > { %18247 = vst [vmem:[#allocation3_spill] sm:$0xff] %v16039_v55  ;;  %v16049_v39 = vadd.f32 %v5107_v45, %v4946_v47  ;;  %v4949_v9 = vadd.f32 %v11970_v61, %v18250_v16  ;;  %v7251_v25 = vrot.slane %v7249_v14, 4  ;;  %v7254_v26 = vrot.slane %v7252_v37, 5  ;;  %v18254_v37 = vld [vmem:[#allocation27_spill] sm:$0xff]  ;;  %v6937_v27 = vld [vmem:[%s12668_s22 + $0x94] sm:$0xf] }
 0x2cd   : > { %v5110_v19 = vpop.f32.mrf.mxu0  ;;  %v4882_v21 = vpop.f32.mrf.mxu1  ;;  %v16055_v55 = vcombine.low %v7189_v12, %v7199_v35  ;;  %v6987_v45 = vmul.bf16 %v6933_v30, %v15295_v41  ;;  %v16063_v6 = vmul.bf16 %v6934_v3, %v15295_v41  ;;  %v7241_v35 = vor.u32 %v7240_v24, %v16042_v15 }
 0x2ce   : > { %18249 = vst [vmem:[#allocation42_spill] sm:$0xff] %v16049_v39  ;;  %v16065_v61 = vadd.f32 %v12004_v34, %v4949_v9  ;;  %v4947_v14 = vadd.f32 %v4882_v21, %v15641_v48  ;;  %v16077_v34 = vrot.slane %v7231_v1, 4  ;;  %v16080_v48 = vmul.bf16 %v6932_v51, %v15295_v41  ;;  %v6936_v9 = vld [vmem:[%s12668_s22 + $0x90] sm:$0xf] }
 0x2cf   : > { %v12007_v63 = vpop.f32.mrf.mxu0  ;;  %12210 = vmatmul.mubr.msk.bf16.gmra.mxu0 %vm535_vm4, %v15646_v28  ;;  %18251 = vst [vmem:[#allocation35_spill] sm:$0xff] %v16055_v55  ;;  %18252 = vst [vmem:[#allocation6_spill] sm:$0xff] %v16063_v6  ;;  %v11973_v47 = vpop.f32.mrf.mxu1  ;;  %12176 = vmatmul.mubr.msk.bf16.gmra.mxu1 %vm535_vm4, %v18242_v56  ;;  %v16082_v30 = vrot.slane %v7258_v62, 5  ;;  %v7264_v16 = vrot.slane %v7262_v20, 4  ;;  %v16090_v24 = vrot.slane %v7244_v23, 5  ;;  %v7255_v56 = vor.u32 %v7254_v26, %v7251_v25  ;;  %v18263_v26 = vld [vmem:[#allocation37_spill] sm:$0xff] }
 0x2d0   : > { %18253 = vst [vmem:[#allocation24_spill] sm:$0xff] %v16065_v61  ;;  %12213 = vmatprep.mubr.msk.bf16.mxu0 %vm535_vm4, %v18254_v37  ;;  %18255 = vst [vmem:[#allocation4_spill] sm:$0xff] %v16080_v48  ;;  %v16085_v21 = vadd.f32 %v5110_v19, %v4947_v14  ;;  %v4952_v12 = vadd.f32 %v11973_v47, %v18257_v52  ;;  %12179 = vmatprep.mubr.msk.bf16.mxu1 %vm535_vm4, %v15646_v28  ;;  %v6935_v61 = vld [vmem:[%s12668_s22 + $0x8c] sm:$0x1]  ;;  %v7273_v51 = vshrl.u32 %v6987_v45, 16 }
 0x2d1   : > { %v5123_v3 = vpop.f32.mrf.mxu0  ;;  %v4895_v1 = vpop.f32.mrf.mxu1  ;;  %v7276_v39 = vshll.u32 %v6987_v45, 16  ;;  %v7282_v62 = vshll.u32 %v16063_v6, 16  ;;  %v7286_v20 = vshrl.u32 %v16063_v6, 16  ;;  %v18259_v14 = vld [vmem:[#allocation5_spill] sm:$0xff]  ;;  %v16099_v47 = vrot.slane %v7241_v35, 4  ;;  %v18261_v35 = vld [vmem:[#allocation14_spill] sm:$0xff] }
 0x2d2   : > { %18256 = vst [vmem:[#allocation23_spill] sm:$0xff] %v16085_v21  ;;  %v16096_v19 = vadd.f32 %v12007_v63, %v4952_v12  ;;  %v4950_v52 = vadd.f32 %v4895_v1, %v18259_v14  ;;  %v6990_v28 = vmul.bf16 %v6936_v9, %v15295_v41  ;;  %v7265_v45 = vor.u32 %v7264_v16, %v16082_v30 }
 0x2d3   : > { %v12008_v60 = vpop.f32.mrf.mxu0  ;;  %v11974_v23 = vpop.f32.mrf.mxu1  ;;  %v7268_v21 = vshll.u32 %v16080_v48, 16  ;;  %v16109_v63 = vmul.bf16 %v6937_v27, %v15295_v41  ;;  %v16114_v9 = vrot.slane %v7255_v56, 4  ;;  %v16117_v14 = vmul.bf16 %v6935_v61, %v15295_v41 }
 0x2d4   : > { %18258 = vst [vmem:[#allocation27_spill] sm:$0xff] %v16096_v19  ;;  %v16111_v12 = vadd.f32 %v5123_v3, %v4950_v52  ;;  %v4953_v1 = vadd.f32 %v11974_v23, %v18261_v35  ;;  %v7275_v16 = vrot.slane %v7273_v51, 4  ;;  %v7278_v48 = vrot.slane %v7276_v39, 5  ;;  %v6939_v35 = vld [vmem:[%s12668_s22 + $0x9c] sm:$0xf] }
 0x2d5   : > { %v5126_v25 = vpop.f32.mrf.mxu0  ;;  %18262 = vst [vmem:[#allocation5_spill] sm:$0xff] %v16117_v14  ;;  %v4898_v6 = vpop.f32.mrf.mxu1  ;;  %v16121_v27 = vrot.slane %v7282_v62, 5  ;;  %v7288_v3 = vrot.slane %v7286_v20, 4  ;;  %v7297_v56 = vshrl.u32 %v6990_v28, 16  ;;  %v16135_v51 = vrot.slane %v7268_v21, 5 }
 0x2d6   : > { %18260 = vst [vmem:[#allocation30_spill] sm:$0xff] %v16111_v12  ;;  %v16123_v52 = vadd.f32 %v12008_v60, %v4953_v1  ;;  %v18265_v12 = vld [vmem:[#allocation31_spill] sm:$0xff]  ;;  %v7306_v62 = vshll.u32 %v16109_v63, 16  ;;  %v7310_v20 = vshrl.u32 %v16109_v63, 16  ;;  %v18267_v1 = vld [vmem:[#allocation32_spill] sm:$0xff]  ;;  %v7266_v21 = vrot.slane %v7265_v45, 4 }
 0x2d7   : > { %v12011_v19 = vpop.f32.mrf.mxu0  ;;  %12214 = vmatmul.mubr.msk.bf16.gmra.mxu0 %vm535_vm4, %v18263_v26  ;;  %v4951_v23 = vadd.f32 %v4898_v6, %v18265_v12  ;;  %v11977_v26 = vpop.f32.mrf.mxu1  ;;  %12180 = vmatmul.mubr.msk.bf16.gmra.mxu1 %vm535_vm4, %v18254_v37  ;;  %v6938_v60 = vld [vmem:[%s12668_s22 + $0x98] sm:$0x1]  ;;  %v7300_v6 = vshll.u32 %v6990_v28, 16  ;;  %v7261_v37 = vsel %vm12912_vm9, %v16114_v9, %v16082_v30  ;;  %v10810_v28 = vld [vmem:[%s17804_s2 + $0x34] sm:$0x3]  ;;  %v7279_v44 = vor.u32 %v7278_v48, %v7275_v16 }
 0x2d8   : > { %18264 = vst [vmem:[#allocation14_spill] sm:$0xff] %v16123_v52  ;;  %12253 = vmatprep.mubr.msk.bf16.mxu0 %vm535_vm4, %v15827_v13  ;;  %v4956_v61 = vadd.f32 %v11977_v26, %v18267_v1  ;;  %12219 = vmatprep.mubr.msk.bf16.mxu1 %vm535_vm4, %v15814_v11  ;;  %v6940_v26 = vld [vmem:[%s12668_s22 + $0xa0] sm:$0xf]  ;;  %v6993_v11 = vmul.bf16 %v6939_v35, %v15295_v41  ;;  %v7299_v45 = vrot.slane %v7297_v56, 4  ;;  %v10791_v9 = vld [vmem:[%s17804_s2 + $0x2e] sm:$0x3] }
 0x2d9   : > { %v5139_v39 = vpop.f32.mrf.mxu0  ;;  %v16140_v12 = vadd.f32 %v5126_v25, %v4951_v23  ;;  %v4911_v52 = vpop.f32.mrf.mxu1  ;;  %v7289_v25 = vor.u32 %v7288_v3, %v16121_v27  ;;  %v7292_v23 = vshll.u32 %v16117_v14, 16  ;;  %v16160_v30 = vmul.bf16 %v6938_v60, %v15295_v41 }
 0x2da   : > { %v16156_v1 = vadd.f32 %v12011_v19, %v4956_v61  ;;  %v7302_v3 = vrot.slane %v7300_v6, 5  ;;  %v16165_v31 = vrot.slane %v7306_v62, 5  ;;  %v7312_v14 = vrot.slane %v7310_v20, 4 }
 0x2db   : > { %18266 = vst [vmem:[#allocation37_spill] sm:$0xff] %v16140_v12  ;;  %v12012_v36 = vpop.f32.mrf.mxu0  ;;  %v4954_v12 = vadd.f32 %v4911_v52, %v15727_v54  ;;  %v11978_v48 = vpop.f32.mrf.mxu1  ;;  %v16168_v35 = vand.u32 %v10810_v28, %v18123_v2  ;;  %v7271_v52 = vsel %vm12912_vm9, %v7266_v21, %v16135_v51  ;;  %v16177_v61 = vmul.bf16 %v6940_v26, %v15295_v41 }
 0x2dc   : > { %v4957_v54 = vadd.f32 %v11978_v48, %v15742_v43  ;;  %v16181_v6 = vrot.slane %v7292_v23, 5  ;;  %v7321_v62 = vshrl.u32 %v6993_v11, 16  ;;  %v7324_v20 = vshll.u32 %v6993_v11, 16 }
 0x2dd   : > { %v5142_v16 = vpop.f32.mrf.mxu0  ;;  %v16170_v19 = vadd.f32 %v5139_v39, %v4954_v12  ;;  %v4914_v56 = vpop.f32.mrf.mxu1  ;;  %v16184_v39 = vand.u32 %v10791_v9, %v18123_v2  ;;  %v16192_v51 = vrot.slane %v7279_v44, 4  ;;  %v16194_v21 = vrot.slane %v7289_v25, 4 }
 0x2de   : > { %v16186_v43 = vadd.f32 %v12012_v36, %v4957_v54  ;;  %v4955_v12 = vadd.f32 %v4914_v56, %v15756_v5  ;;  %v18268_v5 = vsel %vm12912_vm9, %v16035_v33, %v16037_v38  ;;  %v7303_v44 = vor.u32 %v7302_v3, %v7299_v45  ;;  %v6941_v38 = vld [vmem:[%s12668_s22 + $0xa4] sm:$0x1] }
 0x2df   : > { %v12051_v60 = vpop.f32.mrf.mxu0  ;;  %12254 = vmatmul.mubr.msk.bf16.vlgmr.msra.gmra.mxu0 %vm535_vm4, %v15830_v59  ;;  %v12017_v28 = vpop.f32.mrf.mxu1  ;;  %12220 = vmatmul.mubr.msk.bf16.vlgmr.msra.gmra.mxu1 %vm535_vm4, %v15827_v13  ;;  %v7313_v25 = vor.u32 %v7312_v14, %v16165_v31  ;;  %v7316_v23 = vshll.u32 %v16160_v30, 16  ;;  %v16233_v11 = vcombine.low %v7261_v37, %v7271_v52  ;;  %v16235_v45 = vrot.slane %v7321_v62, 4  ;;  %v6942_v37 = vld [vmem:[%s12668_s22 + $0xa8] sm:$0xf] }
 0x2e0   : > { %12320 = vmatpush3.bf16.msra.mxu0 %v15723_v22  ;;  %12257 = vmatprep.mubr.msk.bf16.mxu0 %vm535_vm4, %v15904_v53  ;;  %v18269_v22 = vsel %vm12912_vm9, %v16033_v40, %v15984_v7  ;;  %v16213_v13 = vadd.f32 %v5142_v16, %v4955_v12  ;;  %v5628_v26 = vadd.f32 %v12017_v28, %v15765_v32  ;;  %v7330_v32 = vshll.u32 %v16177_v61, 16  ;;  %v6943_v28 = vld [vmem:[%s12668_s22 + $0xac] sm:$0xf] }
 0x2e1   : > { %v5713_v2 = vpop.f32.mrf.mxu0  ;;  %v16208_v36 = vcombine.low %v18269_v22, %v18268_v5  ;;  %12387 = vmatprep.subr.bf16.mxu0 %v16168_v35  ;;  %12286 = vmatpush3.bf16.msra.mxu1 %v15737_v57  ;;  %v18270_v7 = vsel %vm12912_vm9, %v16099_v47, %v16090_v24  ;;  %v18271_v40 = vsel %vm12912_vm9, %v16077_v34, %v16042_v15  ;;  %v5499_v14 = vpop.f32.mrf.mxu1  ;;  %v16237_v9 = vrot.slane %v7324_v20, 5  ;;  %v8154_v15 = vld [vmem:[%s12668_s22 + $0x90] sm:$0xe] }
 0x2e2   : > { %12223 = vmatprep.mubr.msk.bf16.mxu1 %vm535_vm4, %v15830_v59  ;;  %v16229_v33 = vcombine.low %v18271_v40, %v18270_v7  ;;  %v7334_v24 = vshrl.u32 %v16177_v61, 16  ;;  %12353 = vmatprep.subr.bf16.mxu1 %v16184_v39  ;;  %v16242_v34 = vadd.f32 %v12051_v60, %v5628_v26  ;;  %v5626_v47 = vadd.f32 %v5499_v14, %v15778_v58  ;;  %v8155_v60 = vld [vmem:[%s12668_s22 + $0x9c] sm:$0xe]  ;;  %v8156_v14 = vld [vmem:[%s12668_s22 + $0xa8] sm:$0xe] }
 0x2e3   : > { %v12052_v57 = vpop.f32.mrf.mxu0  ;;  %v12018_v16 = vpop.f32.mrf.mxu1  ;;  %v16253_v54 = vrot.slane %v7303_v44, 4  ;;  %v16255_v52 = vrot.slane %v7313_v25, 4  ;;  %v16257_v56 = vrot.slane %v7316_v23, 5  ;;  %v16260_v58 = vmul.bf16 %v6941_v38, %v15295_v41 }
 0x2e4   : > { %v16263_v62 = vadd.f32 %v5713_v2, %v5626_v47  ;;  %v5629_v20 = vadd.f32 %v12018_v16, %v15792_v42  ;;  %v16266_v12 = vrot.slane %v7330_v32, 5  ;;  %v8172_v5 = vmul.bf16 %v8154_v15, %v15295_v41  ;;  %v6944_v2 = vld [vmem:[%s12668_s22 + $0xb0] sm:$0x1] }
 0x2e5   : > { %v5716_v3 = vpop.f32.mrf.mxu0  ;;  %v5502_v22 = vpop.f32.mrf.mxu1  ;;  %v16274_v23 = vrot.slane %v7334_v24, 4  ;;  %v8312_v26 = vrot.slane %v16109_v63, 5  ;;  %v8315_v42 = vrot.slane %v16160_v30, 5  ;;  %v8173_v32 = vmul.bf16 %v8155_v60, %v15295_v41 }
 0x2e6   : > { %v16279_v7 = vadd.f32 %v12052_v57, %v5629_v20  ;;  %v5627_v40 = vadd.f32 %v5502_v22, %v15822_v17  ;;  %v10753_v38 = vrot.slane %v8172_v5, 9  ;;  %v16289_v63 = vmul.bf16 %v6943_v28, %v15295_v41 }
 0x2e7   : > { %v12055_v44 = vpop.f32.mrf.mxu0  ;;  %12258 = vmatmul.mubr.msk.bf16.gmra.mxu0 %vm535_vm4, %v15906_v8  ;;  %v12021_v15 = vpop.f32.mrf.mxu1  ;;  %12224 = vmatmul.mubr.msk.bf16.gmra.mxu1 %vm535_vm4, %v15904_v53  ;;  %v8314_v30 = vrot.slane %v8312_v26, 4  ;;  %v8319_v57 = vrot.slane %v16177_v61, 5  ;;  %v8322_v17 = vrot.slane %v16260_v58, 5  ;;  %v16299_v60 = vmul.bf16 %v6944_v2, %v15295_v41 }
 0x2e8   : > { %12261 = vmatprep.mubr.msk.bf16.mxu0 %vm535_vm4, %v15990_v4  ;;  %v16293_v47 = vadd.f32 %v5716_v3, %v5627_v40  ;;  %v5632_v16 = vadd.f32 %v12021_v15, %v15838_v50  ;;  %12227 = vmatprep.mubr.msk.bf16.mxu1 %vm535_vm4, %v15906_v8  ;;  %v8313_v28 = vsel %vm13408_vm12, %v10753_v38, %v8312_v26  ;;  %v10754_v25 = vrot.slane %v8173_v32, 9 }
 0x2e9   : > { %v5729_v24 = vpop.f32.mrf.mxu0  ;;  %v5515_v5 = vpop.f32.mrf.mxu1  ;;  %v8316_v61 = vsel %vm13408_vm12, %v8314_v30, %v8315_v42  ;;  %v8321_v3 = vrot.slane %v8319_v57, 4  ;;  %v8174_v40 = vmul.bf16 %v8156_v14, %v15295_v41  ;;  %v8326_v48 = vrot.slane %v16289_v63, 5  ;;  %v8157_v14 = vld [vmem:[%s12668_s22 + $0xb4] sm:$0xe] }
 0x2ea   : > { %18272 = vst [vmem:[#allocation31_spill] sm:$0xff] %v16293_v47  ;;  %v16306_v50 = vadd.f32 %v12055_v44, %v5632_v16  ;;  %v5630_v15 = vadd.f32 %v5515_v5, %v15853_v18  ;;  %v16310_v2 = vcombine.low %v8313_v28, %v8316_v61  ;;  %v8320_v47 = vsel %vm13408_vm12, %v10754_v25, %v8319_v57 }
 0x2eb   : > { %v12056_v22 = vpop.f32.mrf.mxu0  ;;  %v12022_v26 = vpop.f32.mrf.mxu1  ;;  %v8323_v42 = vsel %vm13408_vm12, %v8321_v3, %v8322_v17  ;;  %v10755_v32 = vrot.slane %v8174_v40, 9  ;;  %v8329_v44 = vrot.slane %v16299_v60, 5  ;;  %v8328_v28 = vrot.slane %v8326_v48, 4 }
 0x2ec   : > { %18274 = vst [vmem:[#allocation32_spill] sm:$0xff] %v16310_v2  ;;  %v16319_v18 = vadd.f32 %v5729_v24, %v5630_v15  ;;  %v5633_v30 = vadd.f32 %v12022_v26, %v15864_v29  ;;  %v16322_v16 = vcombine.low %v8320_v47, %v8323_v42  ;;  %v18276_v25 = vsel %vm12912_vm9, %v16194_v21, %v16181_v6  ;;  %v6945_v47 = vld [vmem:[%s12668_s22 + $0xb4] sm:$0xf]  ;;  %v6946_v6 = vld [vmem:[%s12668_s22 + $0xb8] sm:$0xf] }
 0x2ed   : > { %v5732_v38 = vpop.f32.mrf.mxu0  ;;  %v5518_v5 = vpop.f32.mrf.mxu1  ;;  %v18277_v24 = vsel %vm12912_vm9, %v16192_v51, %v16121_v27  ;;  %v7340_v29 = vshll.u32 %v16260_v58, 16  ;;  %v6996_v17 = vmul.bf16 %v6942_v37, %v15295_v41  ;;  %v8327_v3 = vsel %vm13408_vm12, %v10755_v32, %v8326_v48  ;;  %v6947_v21 = vld [vmem:[%s12668_s22 + $0xbc] sm:$0x1] }
 0x2ee   : > { %18275 = vst [vmem:[#allocation49_spill] sm:$0xff] %v16322_v16  ;;  %v16336_v57 = vcombine.low %v18277_v24, %v18276_v25  ;;  %v16343_v40 = vadd.f32 %v12056_v22, %v5633_v30  ;;  %v5631_v15 = vadd.f32 %v5518_v5, %v15874_v49  ;;  %v8330_v27 = vsel %vm13408_vm12, %v8328_v28, %v8329_v44 }
 0x2ef   : > { %v12059_v61 = vpop.f32.mrf.mxu0  ;;  %12262 = vmatmul.mubr.msk.bf16.gmra.mxu0 %vm535_vm4, %v15995_v46  ;;  %v8175_v51 = vmul.bf16 %v8157_v14, %v15295_v41  ;;  %v12025_v58 = vpop.f32.mrf.mxu1  ;;  %12228 = vmatmul.mubr.msk.bf16.gmra.mxu1 %vm535_vm4, %v15990_v4  ;;  %v7319_v48 = vsel %vm12912_vm9, %v16255_v52, %v16257_v56  ;;  %v18278_v22 = vor.u32 %v16237_v9, %v16235_v45  ;;  %v16378_v28 = vrot.slane %v7340_v29, 5 }
 0x2f0   : > { %12265 = vmatprep.mubr.msk.bf16.mxu0 %vm535_vm4, %v16055_v55  ;;  %v16368_v42 = vcombine.low %v8327_v3, %v8330_v27  ;;  %v16370_v32 = vadd.f32 %v5732_v38, %v5631_v15  ;;  %v5636_v44 = vadd.f32 %v12025_v58, %v15891_v0  ;;  %12231 = vmatprep.mubr.msk.bf16.mxu1 %vm535_vm4, %v15995_v46  ;;  %v18282_v0 = vld [vmem:[#allocation16_spill] sm:$0xff]  ;;  %v7345_v24 = vshrl.u32 %v6996_v17, 16 }
 0x2f1   : > { %v5745_v37 = vpop.f32.mrf.mxu0  ;;  %v16366_v26 = vrot.slane %v18278_v22, 4  ;;  %v7337_v14 = vor.u32 %v16274_v23, %v16266_v12  ;;  %v6999_v30 = vmul.bf16 %v6945_v47, %v15295_v41  ;;  %v5531_v52 = vpop.f32.mrf.mxu1  ;;  %v7000_v45 = vmul.bf16 %v6946_v6, %v15295_v41 }
 0x2f2   : > { %18279 = vst [vmem:[#allocation50_spill] sm:$0xff] %v16368_v42  ;;  %18280 = vst [vmem:[#allocation51_spill] sm:$0xff] %v16370_v32  ;;  %v16382_v9 = vmul.bf16 %v6947_v21, %v15295_v41  ;;  %v10756_v38 = vrot.slane %v8175_v51, 9  ;;  %v16384_v5 = vadd.f32 %v12059_v61, %v5636_v44  ;;  %v5634_v25 = vadd.f32 %v5531_v52, %v18282_v0  ;;  %v18284_v21 = vld [vmem:[#allocation36_spill] sm:$0xff] }
 0x2f3   : > { %v12060_v56 = vpop.f32.mrf.mxu0  ;;  %v7348_v3 = vshll.u32 %v6996_v17, 16  ;;  %v12026_v15 = vpop.f32.mrf.mxu1  ;;  %v7354_v47 = vshll.u32 %v16289_v63, 16  ;;  %v7358_v27 = vshrl.u32 %v16289_v63, 16  ;;  %v8333_v29 = vrot.slane %v7000_v45, 5 }
 0x2f4   : > { %18281 = vst [vmem:[#allocation52_spill] sm:$0xff] %v16384_v5  ;;  %v8336_v58 = vrot.slane %v16382_v9, 5  ;;  %v16390_v6 = vadd.f32 %v5745_v37, %v5634_v25  ;;  %v5637_v51 = vadd.f32 %v12026_v15, %v18284_v21  ;;  %v7369_v61 = vshrl.u32 %v6999_v30, 16  ;;  %v18286_v37 = vld [vmem:[#allocation46_spill] sm:$0xff]  ;;  %v6948_v21 = vld [vmem:[%s12668_s22 + $0xc0] sm:$0xf] }
 0x2f5   : > { %v5748_v23 = vpop.f32.mrf.mxu0  ;;  %v7372_v22 = vshll.u32 %v6999_v30, 16  ;;  %v5534_v44 = vpop.f32.mrf.mxu1  ;;  %v7378_v17 = vshll.u32 %v7000_v45, 16  ;;  %v7382_v0 = vshrl.u32 %v7000_v45, 16  ;;  %v8334_v63 = vsel %vm13408_vm12, %v10756_v38, %v8333_v29 }
 0x2f6   : > { %18283 = vst [vmem:[#allocation16_spill] sm:$0xff] %v16390_v6  ;;  %v8335_v49 = vrot.slane %v8333_v29, 4  ;;  %v16397_v42 = vadd.f32 %v12060_v56, %v5637_v51  ;;  %v5635_v25 = vadd.f32 %v5534_v44, %v18286_v37  ;;  %v7338_v30 = vrot.slane %v7337_v14, 4  ;;  %v6949_v29 = vld [vmem:[%s12668_s22 + $0xc4] sm:$0xf]  ;;  %v18287_v44 = vld [vmem:[#allocation47_spill] sm:$0xff] }
 0x2f7   : > { %v12063_v52 = vpop.f32.mrf.mxu0  ;;  %12266 = vmatmul.mubr.msk.bf16.gmra.mxu0 %vm535_vm4, %v16208_v36  ;;  %v7347_v15 = vrot.slane %v7345_v24, 4  ;;  %v12029_v16 = vpop.f32.mrf.mxu1  ;;  %12232 = vmatmul.mubr.msk.bf16.gmra.mxu1 %vm535_vm4, %v16055_v55  ;;  %v7350_v45 = vrot.slane %v7348_v3, 5  ;;  %v16405_v6 = vrot.slane %v7354_v47, 5  ;;  %v7360_v38 = vrot.slane %v7358_v27, 4 }
 0x2f8   : > { %18285 = vst [vmem:[#allocation36_spill] sm:$0xff] %v16397_v42  ;;  %12269 = vmatprep.mubr.msk.bf16.mxu0 %vm535_vm4, %v16229_v33  ;;  %v8337_v56 = vsel %vm13408_vm12, %v8335_v49, %v8336_v58  ;;  %v16410_v51 = vadd.f32 %v5748_v23, %v5635_v25  ;;  %v5640_v37 = vadd.f32 %v12029_v16, %v18287_v44  ;;  %v7371_v14 = vrot.slane %v7369_v61, 4  ;;  %v18289_v49 = vld [vmem:[#allocation43_spill] sm:$0xff] }
 0x2f9   : > { %v5761_v2 = vpop.f32.mrf.mxu0  ;;  %12235 = vmatprep.mubr.msk.bf16.mxu1 %vm535_vm4, %v16208_v36  ;;  %v16415_v24 = vcombine.low %v8334_v63, %v8337_v56  ;;  %v5547_v42 = vpop.f32.mrf.mxu1  ;;  %v7374_v3 = vrot.slane %v7372_v22, 5  ;;  %v16417_v47 = vrot.slane %v7378_v17, 5  ;;  %v7384_v27 = vrot.slane %v7382_v0, 4 }
 0x2fa   : > { %v7002_v55 = vmul.bf16 %v6948_v21, %v15295_v41  ;;  %v16420_v32 = vadd.f32 %v12063_v52, %v5640_v37  ;;  %v5638_v23 = vadd.f32 %v5547_v42, %v18289_v49  ;;  %v18290_v16 = vsel %vm12912_vm9, %v16253_v54, %v16165_v31  ;;  %v18292_v31 = vld [vmem:[#allocation11_spill] sm:$0xff] }
 0x2fb   : > { %18288 = vst [vmem:[#allocation46_spill] sm:$0xff] %v16415_v24  ;;  %v12064_v5 = vpop.f32.mrf.mxu0  ;;  %v16428_v58 = vcombine.low %v18290_v16, %v7319_v48  ;;  %v16431_v61 = vmul.bf16 %v6949_v29, %v15295_v41  ;;  %v12030_v22 = vpop.f32.mrf.mxu1  ;;  %v7333_v52 = vsel %vm12912_vm9, %v16366_v26, %v16266_v12  ;;  %v7351_v0 = vor.u32 %v7350_v45, %v7347_v15  ;;  %v6950_v15 = vld [vmem:[%s12668_s22 + $0xc8] sm:$0x1]  ;;  %v18296_v49 = vld [vmem:[#allocation39_spill] sm:$0xff] }
 0x2fc   : > { %v7361_v42 = vor.u32 %v7360_v38, %v16405_v6  ;;  %v7364_v63 = vshll.u32 %v16299_v60, 16  ;;  %v16439_v25 = vadd.f32 %v5761_v2, %v5638_v23  ;;  %v5641_v54 = vadd.f32 %v12030_v22, %v18292_v31  ;;  %v18294_v38 = vld [vmem:[#allocation20_spill] sm:$0xff] }
 0x2fd   : > { %18291 = vst [vmem:[#allocation47_spill] sm:$0xff] %v16431_v61  ;;  %v5764_v17 = vpop.f32.mrf.mxu0  ;;  %v7343_v48 = vsel %vm12912_vm9, %v7338_v30, %v16378_v28  ;;  %v7388_v21 = vshll.u32 %v16382_v9, 16  ;;  %v5550_v29 = vpop.f32.mrf.mxu1  ;;  %v7375_v12 = vor.u32 %v7374_v3, %v7371_v14  ;;  %v7385_v26 = vor.u32 %v7384_v27, %v16417_v47 }
 0x2fe   : > { %v7687_v60 = vshrl.u32 %v7002_v55, 16  ;;  %v7690_v2 = vshll.u32 %v7002_v55, 16  ;;  %v16450_v45 = vadd.f32 %v12064_v5, %v5641_v54  ;;  %v5639_v44 = vadd.f32 %v5550_v29, %v18294_v38 }
 0x2ff   : > { %v12067_v56 = vpop.f32.mrf.mxu0  ;;  %12270 = vmatmul.mubr.msk.bf16.gmra.mxu0 %vm535_vm4, %v16233_v11  ;;  %v7696_v28 = vshll.u32 %v16431_v61, 16  ;;  %v7700_v9 = vshrl.u32 %v16431_v61, 16  ;;  %v12033_v30 = vpop.f32.mrf.mxu1  ;;  %12236 = vmatmul.mubr.msk.bf16.gmra.mxu1 %vm535_vm4, %v16229_v33  ;;  %v16459_v14 = vcombine.low %v7333_v52, %v7343_v48  ;;  %v7352_v3 = vrot.slane %v7351_v0, 4 }
 0x300   : > { %18293 = vst [vmem:[#allocation43_spill] sm:$0xff] %v16450_v45  ;;  %12273 = vmatprep.mubr.msk.bf16.mxu0 %vm535_vm4, %v16336_v57  ;;  %v7362_v55 = vrot.slane %v7361_v42, 4  ;;  %v7366_v5 = vrot.slane %v7364_v63, 5  ;;  %v16461_v27 = vadd.f32 %v5764_v17, %v5639_v44  ;;  %v5644_v23 = vadd.f32 %v12033_v30, %v18296_v49  ;;  %12239 = vmatprep.mubr.msk.bf16.mxu1 %vm535_vm4, %v16233_v11  ;;  %v18298_v63 = vld [vmem:[#allocation21_spill] sm:$0xff]  ;;  %v8142_v30 = vld [vmem:[%s12668_s22] sm:$0xe] }
 0x301   : > { %v5777_v37 = vpop.f32.mrf.mxu0  ;;  %v7390_v16 = vrot.slane %v7388_v21, 5  ;;  %v16467_v22 = vmul.bf16 %v6950_v15, %v15295_v41  ;;  %v5563_v31 = vpop.f32.mrf.mxu1  ;;  %v7376_v29 = vrot.slane %v7375_v12, 4  ;;  %v7386_v52 = vrot.slane %v7385_v26, 4  ;;  %v18299_v21 = vld [vmem:[#allocation7_spill] sm:$0xff] }
 0x302   : > { %18295 = vst [vmem:[#allocation11_spill] sm:$0xff] %v16461_v27  ;;  %v7689_v48 = vrot.slane %v7687_v60, 4  ;;  %v7692_v0 = vrot.slane %v7690_v2, 5  ;;  %v16469_v42 = vadd.f32 %v12067_v56, %v5644_v23  ;;  %v5642_v17 = vadd.f32 %v5563_v31, %v18298_v63  ;;  %v18300_v27 = vld [vmem:[#allocation41_spill] sm:$0xff]  ;;  %v18302_v31 = vld [vmem:[#allocation3_spill] sm:$0xff] }
 0x303   : > { %18297 = vst [vmem:[#allocation20_spill] sm:$0xff] %v16467_v22  ;;  %v12068_v54 = vpop.f32.mrf.mxu0  ;;  %v16472_v38 = vrot.slane %v7696_v28, 5  ;;  %v7702_v44 = vrot.slane %v7700_v9, 4  ;;  %v12034_v49 = vpop.f32.mrf.mxu1  ;;  %v8228_v24 = vrot.slane %v18299_v21, 5  ;;  %v7357_v12 = vsel %vm12912_vm9, %v7352_v3, %v16405_v6  ;;  %v18301_v6 = vld [vmem:[#allocation28_spill] sm:$0xff] }
 0x304   : > { %v16476_v15 = vadd.f32 %v5777_v37, %v5642_v17  ;;  %v5645_v45 = vadd.f32 %v12034_v49, %v18300_v27  ;;  %v7367_v56 = vsel %vm12912_vm9, %v7362_v55, %v7366_v5  ;;  %v7381_v2 = vsel %vm12912_vm9, %v7376_v29, %v16417_v47  ;;  %v18305_v49 = vld [vmem:[#allocation42_spill] sm:$0xff] }
 0x305   : > { %v5780_v61 = vpop.f32.mrf.mxu0  ;;  %v5566_v26 = vpop.f32.mrf.mxu1  ;;  %v7391_v28 = vsel %vm12912_vm9, %v7386_v52, %v7390_v16  ;;  %v7693_v9 = vor.u32 %v7692_v0, %v7689_v48  ;;  %v8160_v37 = vmul.bf16 %v8142_v30, %v15295_v41  ;;  %v7703_v55 = vor.u32 %v7702_v44, %v16472_v38  ;;  %v18304_v44 = vld [vmem:[#allocation22_spill] sm:$0xff] }
 0x306   : > { %v16492_v27 = vadd.f32 %v12068_v54, %v5645_v45  ;;  %v5643_v3 = vadd.f32 %v5566_v26, %v18301_v6  ;;  %v7706_v5 = vshll.u32 %v16467_v22, 16  ;;  %v16506_v45 = vcombine.low %v7357_v12, %v7367_v56  ;;  %v6952_v56 = vld [vmem:[%s12668_s22 + $0xd0] sm:$0xf] }
 0x307   : > { %v12071_v60 = vpop.f32.mrf.mxu0  ;;  %12274 = vmatmul.mubr.msk.bf16.gmra.mxu0 %vm535_vm4, %v16428_v58  ;;  %v12037_v23 = vpop.f32.mrf.mxu1  ;;  %12240 = vmatmul.mubr.msk.bf16.gmra.mxu1 %vm535_vm4, %v16336_v57  ;;  %v16508_v54 = vcombine.low %v7381_v2, %v7391_v28  ;;  %v7694_v0 = vrot.slane %v7693_v9, 4  ;;  %v10741_v63 = vrot.slane %v8160_v37, 9  ;;  %v8230_v17 = vrot.slane %v8228_v24, 4  ;;  %v18307_v28 = vld [vmem:[#allocation24_spill] sm:$0xff] }
 0x308   : > { %12277 = vmatprep.mubr.msk.bf16.mxu0 %vm535_vm4, %v16459_v14  ;;  %v16501_v16 = vadd.f32 %v5780_v61, %v5643_v3  ;;  %v5648_v29 = vadd.f32 %v12037_v23, %v18302_v31  ;;  %12243 = vmatprep.mubr.msk.bf16.mxu1 %vm535_vm4, %v16428_v58  ;;  %18303 = vst [vmem:[#allocation39_spill] sm:$0xff] %v16506_v45  ;;  %v8231_v30 = vrot.slane %v18304_v44, 5  ;;  %v7704_v26 = vrot.slane %v7703_v55, 4  ;;  %v8144_v31 = vld [vmem:[%s12668_s22 + $0x18] sm:$0xe] }
 0x309   : > { %v5793_v47 = vpop.f32.mrf.mxu0  ;;  %v5579_v52 = vpop.f32.mrf.mxu1  ;;  %v7708_v6 = vrot.slane %v7706_v5, 5  ;;  %v8229_v55 = vsel %vm13408_vm12, %v10741_v63, %v8228_v24 }
 0x30a   : > { %v16511_v61 = vadd.f32 %v12071_v60, %v5648_v29  ;;  %v5646_v21 = vadd.f32 %v5579_v52, %v18305_v49  ;;  %v7699_v60 = vsel %vm12912_vm9, %v7694_v0, %v16472_v38  ;;  %v8232_v5 = vsel %vm13408_vm12, %v8230_v17, %v8231_v30  ;;  %v18309_v29 = vld [vmem:[#allocation23_spill] sm:$0xff]  ;;  %v6953_v49 = vld [vmem:[%s12668_s22 + $0xd4] sm:$0x1]  ;;  %v8159_v17 = vld [vmem:[%s12668_s22 + $0xcc] sm:$0xe] }
 0x30b   : > { %v12072_v48 = vpop.f32.mrf.mxu0  ;;  %v12038_v3 = vpop.f32.mrf.mxu1  ;;  %v7709_v44 = vsel %vm12912_vm9, %v7704_v26, %v7708_v6  ;;  %v18310_v0 = vld [vmem:[#allocation34_spill] sm:$0xff]  ;;  %v8177_v26 = vmul.bf16 %v8159_v17, %v15295_v41 }
 0x30c   : > { %v16515_v2 = vadd.f32 %v5793_v47, %v5646_v21  ;;  %v5649_v23 = vadd.f32 %v12038_v3, %v18307_v28  ;;  %v16537_v21 = vmul.bf16 %v6952_v56, %v15295_v41  ;;  %v8242_v63 = vrot.slane %v18310_v0, 5  ;;  %v18312_v3 = vld [vmem:[#allocation27_spill] sm:$0xff]  ;;  %v8145_v0 = vld [vmem:[%s12668_s22 + $0x24] sm:$0xe] }
 0x30d   : > { %v5796_v12 = vpop.f32.mrf.mxu0  ;;  %v5582_v9 = vpop.f32.mrf.mxu1 }
 0x30e   : > { %18306 = vst [vmem:[#allocation21_spill] sm:$0xff] %v16515_v2  ;;  %v16528_v47 = vadd.f32 %v12072_v48, %v5649_v23  ;;  %v5647_v52 = vadd.f32 %v5582_v9, %v18309_v29  ;;  %v8162_v48 = vmul.bf16 %v8144_v31, %v15295_v41  ;;  %v8851_v6 = vrot.slane %v16537_v21, 5  ;;  %v18314_v2 = vld [vmem:[#allocation10_spill] sm:$0xff] }
 0x30f   : > { %v12075_v37 = vpop.f32.mrf.mxu0  ;;  %12278 = vmatmul.mubr.msk.bf16.gmra.mxu0 %vm535_vm4, %v16506_v45  ;;  %v12041_v38 = vpop.f32.mrf.mxu1  ;;  %12244 = vmatmul.mubr.msk.bf16.gmra.mxu1 %vm535_vm4, %v16459_v14  ;;  %v16551_v9 = vcombine.low %v7699_v60, %v7709_v44  ;;  %v10758_v31 = vcombine.low %v8229_v55, %v8232_v5  ;;  %v16554_v29 = vmul.bf16 %v6953_v49, %v15295_v41  ;;  %v18315_v55 = vld [vmem:[#allocation14_spill] sm:$0xff] }
 0x310   : > { %18308 = vst [vmem:[#allocation7_spill] sm:$0xff] %v16528_v47  ;;  %12281 = vmatprep.mubr.msk.bf16.mxu0 %vm535_vm4, %v16508_v54  ;;  %v16544_v30 = vadd.f32 %v5796_v12, %v5647_v52  ;;  %v5652_v28 = vadd.f32 %v12041_v38, %v18312_v3  ;;  %12247 = vmatprep.mubr.msk.bf16.mxu1 %vm535_vm4, %v16506_v45  ;;  %v18313_v52 = vld [vmem:[#allocation30_spill] sm:$0xff]  ;;  %v10809_v3 = vrot.slane %v8177_v26, 9  ;;  %v8853_v22 = vrot.slane %v8851_v6, 4 }
 0x311   : > { %v5809_v24 = vpop.f32.mrf.mxu0  ;;  %v5595_v56 = vpop.f32.mrf.mxu1  ;;  %v8244_v47 = vrot.slane %v8242_v63, 4  ;;  %v8245_v45 = vrot.slane %v18314_v2, 5  ;;  %v8854_v60 = vrot.slane %v16554_v29, 5  ;;  %v8146_v49 = vld [vmem:[%s12668_s22 + $0x30] sm:$0xe] }
 0x312   : > { %18311 = vst [vmem:[#allocation41_spill] sm:$0xff] %v16544_v30  ;;  %v16556_v12 = vadd.f32 %v12075_v37, %v5652_v28  ;;  %v5650_v38 = vadd.f32 %v5595_v56, %v18313_v52  ;;  %v10743_v30 = vrot.slane %v8162_v48, 9  ;;  %v16568_v37 = vsel %vm13408_vm12, %v10809_v3, %v8851_v6  ;;  %v18319_v56 = vld [vmem:[#allocation37_spill] sm:$0xff] }
 0x313   : > { %v12076_v23 = vpop.f32.mrf.mxu0  ;;  %v12042_v10 = vpop.f32.mrf.mxu1  ;;  %18316 = vst [vmem:[#allocation28_spill] sm:$0xff] %v16568_v37  ;;  %v8163_v48 = vmul.bf16 %v8145_v0, %v15295_v41  ;;  %v16575_v2 = vsel %vm13408_vm12, %v8853_v22, %v8854_v60  ;;  %v18320_v52 = vld [vmem:[#allocation29_spill] sm:$0xff]  ;;  %v8164_v60 = vmul.bf16 %v8146_v49, %v15295_v41  ;;  %v18324_v37 = vld [vmem:[#allocation12_spill] sm:$0xff] }
 0x314   : > { %v16562_v44 = vadd.f32 %v5809_v24, %v5650_v38  ;;  %v5653_v5 = vadd.f32 %v12042_v10, %v18315_v55  ;;  %18317 = vst [vmem:[#allocation3_spill] sm:$0xff] %v16575_v2  ;;  %v8249_v6 = vrot.slane %v18320_v52, 5  ;;  %v8243_v22 = vsel %vm13408_vm12, %v10743_v30, %v8242_v63  ;;  %v18323_v2 = vld [vmem:[#allocation13_spill] sm:$0xff] }
 0x315   : > { %v5812_v17 = vpop.f32.mrf.mxu0  ;;  %v5598_v28 = vpop.f32.mrf.mxu1  ;;  %v10744_v38 = vrot.slane %v8163_v48, 9  ;;  %v8252_v63 = vrot.slane %v18323_v2, 5 }
 0x316   : > { %v16577_v24 = vadd.f32 %v12076_v23, %v5653_v5  ;;  %v5651_v10 = vadd.f32 %v5598_v28, %v18319_v56  ;;  %v8246_v23 = vsel %vm13408_vm12, %v8244_v47, %v8245_v45  ;;  %v8251_v49 = vrot.slane %v8249_v6, 4 }
 0x317   : > { %v12079_v26 = vpop.f32.mrf.mxu0  ;;  %12282 = vmatmul.mubr.msk.bf16.gmra.mxu0 %vm535_vm4, %v16551_v9  ;;  %v12045_v3 = vpop.f32.mrf.mxu1  ;;  %12248 = vmatmul.mubr.msk.bf16.gmra.mxu1 %vm535_vm4, %v16508_v54  ;;  %v16601_v47 = vcombine.low %v8243_v22, %v8246_v23 }
 0x318   : > { %18318 = vst [vmem:[#allocation22_spill] sm:$0xff] %v16577_v24  ;;  %12321 = vmatprep.mubr.msk.bf16.mxu0 %vm535_vm4, %v10758_v31  ;;  %v18321_v31 = vld [vmem:[#allocation33_spill] sm:$0xff]  ;;  %v16592_v5 = vadd.f32 %v5812_v17, %v5651_v10  ;;  %v5656_v28 = vadd.f32 %v12045_v3, %v16156_v1  ;;  %12287 = vmatprep.mubr.msk.bf16.mxu1 %vm535_vm4, %v15830_v59  ;;  %v8147_v17 = vld [vmem:[%s12668_s22 + $0x3c] sm:$0xe]  ;;  %v10745_v1 = vrot.slane %v8164_v60, 9  ;;  %v8259_v59 = vrot.slane %v18324_v37, 5 }
 0x319   : > { %v5825_v0 = vpop.f32.mrf.mxu0  ;;  %v8256_v55 = vrot.slane %v18321_v31, 5  ;;  %v5611_v56 = vpop.f32.mrf.mxu1  ;;  %v8148_v24 = vld [vmem:[%s12668_s22 + $0x48] sm:$0xe]  ;;  %v8165_v22 = vmul.bf16 %v8147_v17, %v15295_v41 }
 0x31a   : > { %18322 = vst [vmem:[#allocation42_spill] sm:$0xff] %v16592_v5  ;;  %v16598_v30 = vadd.f32 %v12079_v26, %v5656_v28  ;;  %v5654_v45 = vadd.f32 %v5611_v56, %v16170_v19  ;;  %v18325_v28 = vld [vmem:[#allocation18_spill] sm:$0xff]  ;;  %v8250_v19 = vsel %vm13408_vm12, %v10744_v38, %v8249_v6  ;;  %v18326_v37 = vld [vmem:[#allocation17_spill] sm:$0xff] }
 0x31b   : > { %v12080_v52 = vpop.f32.mrf.mxu0  ;;  %v12046_v10 = vpop.f32.mrf.mxu1  ;;  %v8258_v3 = vrot.slane %v8256_v55, 4  ;;  %v8257_v38 = vsel %vm13408_vm12, %v10745_v1, %v8256_v55  ;;  %v18328_v1 = vld [vmem:[#allocation44_spill] sm:$0xff] }
 0x31c   : > { %v16605_v5 = vadd.f32 %v5825_v0, %v5654_v45  ;;  %v5657_v48 = vadd.f32 %v12046_v10, %v16186_v43  ;;  %v8253_v43 = vsel %vm13408_vm12, %v8251_v49, %v8252_v63  ;;  %v8263_v0 = vrot.slane %v18326_v37, 5  ;;  %v18329_v37 = vld [vmem:[#allocation19_spill] sm:$0xff] }
 0x31d   : > { %v5828_v31 = vpop.f32.mrf.mxu0  ;;  %v5614_v2 = vpop.f32.mrf.mxu1  ;;  %v16637_v55 = vcombine.low %v8250_v19, %v8253_v43  ;;  %v10746_v10 = vrot.slane %v8165_v22, 9  ;;  %v8150_v22 = vld [vmem:[%s12668_s22 + $0x60] sm:$0xe] }
 0x31e   : > { %v16614_v23 = vadd.f32 %v12080_v52, %v5657_v48  ;;  %v5655_v60 = vadd.f32 %v5614_v2, %v16213_v13  ;;  %v8260_v13 = vsel %vm13408_vm12, %v8258_v3, %v8259_v59  ;;  %v18327_v52 = vld [vmem:[#allocation15_spill] sm:$0xff]  ;;  %v8266_v3 = vrot.slane %v18328_v1, 5  ;;  %v8149_v48 = vld [vmem:[%s12668_s22 + $0x54] sm:$0xe] }
 0x31f   : > { %v12119_v26 = vpop.f32.mrf.mxu0  ;;  %12322 = vmatmul.mubr.msk.bf16.vlgmr.msra.gmra.mxu0 %vm535_vm4, %v18325_v28  ;;  %v12085_v56 = vpop.f32.mrf.mxu1  ;;  %12288 = vmatmul.mubr.msk.bf16.vlgmr.msra.gmra.mxu1 %vm535_vm4, %v15904_v53  ;;  %v8270_v45 = vrot.slane %v18327_v52, 5  ;;  %v16643_v59 = vcombine.low %v8257_v38, %v8260_v13  ;;  %v8167_v38 = vmul.bf16 %v8149_v48, %v15295_v41  ;;  %v18332_v48 = vld [vmem:[#allocation9_spill] sm:$0xff] }
 0x320   : > { %12388 = vmatpush3.bf16.msra.mxu0 %v16168_v35  ;;  %12325 = vmatprep.mubr.msk.bf16.mxu0 %vm535_vm4, %v16601_v47  ;;  %v8166_v35 = vmul.bf16 %v8148_v24, %v15295_v41  ;;  %v16631_v17 = vadd.f32 %v5828_v31, %v5655_v60  ;;  %v6056_v63 = vadd.f32 %v12085_v56, %v16242_v34  ;;  %v8265_v34 = vrot.slane %v8263_v0, 4 }
 0x321   : > { %v6329_v6 = vpop.f32.mrf.mxu0  ;;  %12354 = vmatpush3.bf16.msra.mxu1 %v16184_v39  ;;  %12291 = vmatprep.mubr.msk.bf16.mxu1 %vm535_vm4, %v15906_v8  ;;  %v5927_v53 = vpop.f32.mrf.mxu1  ;;  %v8272_v8 = vrot.slane %v8270_v45, 4  ;;  %v8273_v56 = vrot.slane %v18329_v37, 5 }
 0x322   : > { %v16640_v24 = vadd.f32 %v12119_v26, %v6056_v63  ;;  %v6054_v31 = vadd.f32 %v5927_v53, %v16263_v62  ;;  %v10747_v60 = vrot.slane %v8166_v35, 9  ;;  %v8264_v62 = vsel %vm13408_vm12, %v10746_v10, %v8263_v0  ;;  %v18330_v35 = vld [vmem:[#allocation31_spill] sm:$0xff] }
 0x323   : > { %v12120_v49 = vpop.f32.mrf.mxu0  ;;  %v12086_v39 = vpop.f32.mrf.mxu1  ;;  %v8168_v10 = vmul.bf16 %v8150_v22, %v15295_v41 }
 0x324   : > { %v16647_v52 = vadd.f32 %v6329_v6, %v6054_v31  ;;  %v6057_v19 = vadd.f32 %v12086_v39, %v16279_v7  ;;  %v8267_v7 = vsel %vm13408_vm12, %v8265_v34, %v8266_v3  ;;  %v18331_v6 = vld [vmem:[#allocation45_spill] sm:$0xff]  ;;  %v8271_v0 = vsel %vm13408_vm12, %v10747_v60, %v8270_v45  ;;  %v18334_v60 = vld [vmem:[#allocation38_spill] sm:$0xff] }
 0x325   : > { %v6332_v2 = vpop.f32.mrf.mxu0  ;;  %v5930_v43 = vpop.f32.mrf.mxu1  ;;  %v8277_v53 = vrot.slane %v18331_v6, 5  ;;  %v8284_v39 = vrot.slane %v18332_v48, 5  ;;  %v10748_v45 = vrot.slane %v8167_v38, 9  ;;  %v10749_v6 = vrot.slane %v8168_v10, 9  ;;  %v8152_v38 = vld [vmem:[%s12668_s22 + $0x78] sm:$0xe] }
 0x326   : > { %v16656_v13 = vadd.f32 %v12120_v49, %v6057_v19  ;;  %v6055_v63 = vadd.f32 %v5930_v43, %v18330_v35  ;;  %v8274_v49 = vsel %vm13408_vm12, %v8272_v8, %v8273_v56  ;;  %v16677_v19 = vcombine.low %v8264_v62, %v8267_v7  ;;  %v8151_v35 = vld [vmem:[%s12668_s22 + $0x6c] sm:$0xe]  ;;  %v18339_v10 = vld [vmem:[#allocation51_spill] sm:$0xff] }
 0x327   : > { %v12123_v26 = vpop.f32.mrf.mxu0  ;;  %12326 = vmatmul.mubr.msk.bf16.gmra.mxu0 %vm535_vm4, %v16637_v55  ;;  %v12089_v1 = vpop.f32.mrf.mxu1  ;;  %12292 = vmatmul.mubr.msk.bf16.gmra.mxu1 %vm535_vm4, %v15990_v4  ;;  %v8280_v43 = vrot.slane %v18334_v60, 5  ;;  %v16683_v22 = vcombine.low %v8271_v0, %v8274_v49  ;;  %v8169_v0 = vmul.bf16 %v8151_v35, %v15295_v41  ;;  %v18342_v35 = vld [vmem:[#allocation8_spill] sm:$0xff] }
 0x328   : > { %12329 = vmatprep.mubr.msk.bf16.mxu0 %vm535_vm4, %v16643_v59  ;;  %v16672_v37 = vadd.f32 %v6332_v2, %v6055_v63  ;;  %v6060_v3 = vadd.f32 %v12089_v1, %v16306_v50  ;;  %12295 = vmatprep.mubr.msk.bf16.mxu1 %vm535_vm4, %v15995_v46  ;;  %v8279_v2 = vrot.slane %v8277_v53, 4  ;;  %v8286_v46 = vrot.slane %v8284_v39, 4  ;;  %v18336_v1 = vld [vmem:[#allocation48_spill] sm:$0xff] }
 0x329   : > { %v6345_v31 = vpop.f32.mrf.mxu0  ;;  %v5943_v4 = vpop.f32.mrf.mxu1  ;;  %v8287_v48 = vrot.slane %v18336_v1, 5  ;;  %v8298_v1 = vrot.slane %v18342_v35, 5 }
 0x32a   : > { %18333 = vst [vmem:[#allocation24_spill] sm:$0xff] %v16672_v37  ;;  %v16680_v8 = vadd.f32 %v12123_v26, %v6060_v3  ;;  %v6058_v56 = vadd.f32 %v5943_v4, %v16319_v18  ;;  %v8278_v18 = vsel %vm13408_vm12, %v10748_v45, %v8277_v53  ;;  %v8285_v53 = vsel %vm13408_vm12, %v10749_v6, %v8284_v39  ;;  %v18345_v6 = vld [vmem:[#allocation25_spill] sm:$0xff] }
 0x32b   : > { %v12124_v34 = vpop.f32.mrf.mxu0  ;;  %v12090_v50 = vpop.f32.mrf.mxu1  ;;  %v8170_v45 = vmul.bf16 %v8152_v38, %v15295_v41  ;;  %v10750_v39 = vrot.slane %v8169_v0, 9 }
 0x32c   : > { %18335 = vst [vmem:[#allocation23_spill] sm:$0xff] %v16680_v8  ;;  %v16687_v37 = vadd.f32 %v6345_v31, %v6058_v56  ;;  %v6061_v62 = vadd.f32 %v12090_v50, %v16343_v40  ;;  %v8281_v40 = vsel %vm13408_vm12, %v8279_v2, %v8280_v43  ;;  %v18340_v31 = vld [vmem:[#allocation40_spill] sm:$0xff]  ;;  %v18341_v56 = vld [vmem:[#allocation35_spill] sm:$0xff] }
 0x32d   : > { %v6348_v63 = vpop.f32.mrf.mxu0  ;;  %v5946_v7 = vpop.f32.mrf.mxu1  ;;  %v8291_v4 = vrot.slane %v18340_v31, 5  ;;  %v18344_v43 = vld [vmem:[#allocation52_spill] sm:$0xff]  ;;  %v16717_v31 = vcombine.low %v8278_v18, %v8281_v40 }
 0x32e   : > { %18337 = vst [vmem:[#allocation34_spill] sm:$0xff] %v16687_v37  ;;  %v16696_v49 = vadd.f32 %v12124_v34, %v6061_v62  ;;  %v6059_v3 = vadd.f32 %v5946_v7, %v18339_v10  ;;  %v8288_v34 = vsel %vm13408_vm12, %v8286_v46, %v8287_v48  ;;  %v18346_v46 = vld [vmem:[#allocation16_spill] sm:$0xff] }
 0x32f   : > { %v12127_v26 = vpop.f32.mrf.mxu0  ;;  %12330 = vmatmul.mubr.msk.bf16.gmra.mxu0 %vm535_vm4, %v16677_v19  ;;  %v12093_v60 = vpop.f32.mrf.mxu1  ;;  %12296 = vmatmul.mubr.msk.bf16.gmra.mxu1 %vm535_vm4, %v18341_v56  ;;  %v8294_v56 = vrot.slane %v18345_v6, 5  ;;  %v16723_v38 = vcombine.low %v8285_v53, %v8288_v34  ;;  %v18348_v18 = vld [vmem:[#allocation36_spill] sm:$0xff] }
 0x330   : > { %18338 = vst [vmem:[#allocation27_spill] sm:$0xff] %v16696_v49  ;;  %12333 = vmatprep.mubr.msk.bf16.mxu0 %vm535_vm4, %v16683_v22  ;;  %v16712_v62 = vadd.f32 %v6348_v63, %v6059_v3  ;;  %v6064_v2 = vadd.f32 %v12093_v60, %v18344_v43  ;;  %12299 = vmatprep.mubr.msk.bf16.mxu1 %vm535_vm4, %v16208_v36  ;;  %v8293_v63 = vrot.slane %v8291_v4, 4  ;;  %v8153_v3 = vld [vmem:[%s12668_s22 + $0x84] sm:$0xe]  ;;  %v10751_v43 = vrot.slane %v8170_v45, 9 }
 0x331   : > { %v6361_v50 = vpop.f32.mrf.mxu0  ;;  %v5959_v7 = vpop.f32.mrf.mxu1  ;;  %v18347_v36 = vld [vmem:[#allocation4_spill] sm:$0xff]  ;;  %v8171_v53 = vmul.bf16 %v8153_v3, %v15295_v41 }
 0x332   : > { %18343 = vst [vmem:[#allocation30_spill] sm:$0xff] %v16712_v62  ;;  %v16720_v49 = vadd.f32 %v12127_v26, %v6064_v2  ;;  %v6062_v48 = vadd.f32 %v5959_v7, %v18346_v46  ;;  %v8300_v62 = vrot.slane %v8298_v1, 4  ;;  %v8301_v37 = vrot.slane %v18347_v36, 5  ;;  %v18349_v2 = vld [vmem:[#allocation6_spill] sm:$0xff]  ;;  %v18350_v36 = vld [vmem:[#allocation5_spill] sm:$0xff] }
 0x333   : > { %v12128_v10 = vpop.f32.mrf.mxu0  ;;  %v12094_v35 = vpop.f32.mrf.mxu1  ;;  %v8292_v26 = vsel %vm13408_vm12, %v10750_v39, %v8291_v4  ;;  %v8305_v7 = vrot.slane %v18349_v2, 5  ;;  %v8299_v4 = vsel %vm13408_vm12, %v10751_v43, %v8298_v1 }
 0x334   : > { %v16727_v8 = vadd.f32 %v6361_v50, %v6062_v48  ;;  %v6065_v0 = vadd.f32 %v12094_v35, %v18348_v18  ;;  %v8295_v50 = vsel %vm13408_vm12, %v8293_v63, %v8294_v56  ;;  %v6951_v56 = vld [vmem:[%s12668_s22 + $0xcc] sm:$0xf]  ;;  %v8308_v18 = vrot.slane %v18350_v36, 5 }
 0x335   : > { %v6364_v60 = vpop.f32.mrf.mxu0  ;;  %v5962_v40 = vpop.f32.mrf.mxu1  ;;  %v16755_v35 = vcombine.low %v8292_v26, %v8295_v50  ;;  %v7005_v43 = vmul.bf16 %v6951_v56, %v15295_v41 }
 0x336   : > { %v16735_v34 = vadd.f32 %v12128_v10, %v6065_v0  ;;  %v6063_v45 = vadd.f32 %v5962_v40, %v16410_v51  ;;  %v8302_v10 = vsel %vm13408_vm12, %v8300_v62, %v8301_v37  ;;  %v8307_v62 = vrot.slane %v8305_v7, 4  ;;  %v18351_v40 = vld [vmem:[#allocation43_spill] sm:$0xff] }
 0x337   : > { %v12131_v6 = vpop.f32.mrf.mxu0  ;;  %12334 = vmatmul.mubr.msk.bf16.gmra.mxu0 %vm535_vm4, %v16717_v31  ;;  %v12097_v46 = vpop.f32.mrf.mxu1  ;;  %12300 = vmatmul.mubr.msk.bf16.gmra.mxu1 %vm535_vm4, %v16229_v33  ;;  %v10752_v33 = vrot.slane %v8171_v53, 9  ;;  %v16761_v37 = vcombine.low %v8299_v4, %v8302_v10  ;;  %v18352_v53 = vld [vmem:[#allocation11_spill] sm:$0xff]  ;;  %v7915_v10 = vshrl.u32 %v7005_v43, 16 }
 0x338   : > { %12337 = vmatprep.mubr.msk.bf16.mxu0 %vm535_vm4, %v16723_v38  ;;  %v16749_v51 = vadd.f32 %v6364_v60, %v6063_v45  ;;  %v6068_v39 = vadd.f32 %v12097_v46, %v16420_v32  ;;  %12303 = vmatprep.mubr.msk.bf16.mxu1 %vm535_vm4, %v16233_v11  ;;  %v8309_v46 = vsel %vm13408_vm12, %v8307_v62, %v8308_v18 }
 0x339   : > { %v6377_v48 = vpop.f32.mrf.mxu0  ;;  %v5975_v63 = vpop.f32.mrf.mxu1  ;;  %v8306_v2 = vsel %vm13408_vm12, %v10752_v33, %v8305_v7  ;;  %v7928_v7 = vshrl.u32 %v16537_v21, 16 }
 0x33a   : > { %v16758_v0 = vadd.f32 %v12131_v6, %v6068_v39  ;;  %v6066_v1 = vadd.f32 %v5975_v63, %v16439_v25  ;;  %v7918_v39 = vshll.u32 %v7005_v43, 16  ;;  %v16787_v18 = vcombine.low %v8306_v2, %v8309_v46 }
 0x33b   : > { %v12132_v3 = vpop.f32.mrf.mxu0  ;;  %v12098_v60 = vpop.f32.mrf.mxu1 }
 0x33c   : > { %v16764_v11 = vadd.f32 %v6377_v48, %v6066_v1  ;;  %v6069_v45 = vadd.f32 %v12098_v60, %v18351_v40  ;;  %v7920_v43 = vrot.slane %v7918_v39, 5 }
 0x33d   : > { %v6380_v32 = vpop.f32.mrf.mxu0  ;;  %v5978_v26 = vpop.f32.mrf.mxu1 }
 0x33e   : > { %v16769_v6 = vadd.f32 %v12132_v3, %v6069_v45  ;;  %v6067_v25 = vadd.f32 %v5978_v26, %v18352_v53  ;;  %v7924_v3 = vshll.u32 %v16537_v21, 16  ;;  %v7930_v45 = vrot.slane %v7928_v7, 4  ;;  %v18355_v7 = vld [vmem:[#allocation21_spill] sm:$0xff] }
 0x33f   : > { %v12135_v50 = vpop.f32.mrf.mxu0  ;;  %12338 = vmatmul.mubr.msk.bf16.gmra.mxu0 %vm535_vm4, %v16755_v35  ;;  %v12101_v48 = vpop.f32.mrf.mxu1  ;;  %12304 = vmatmul.mubr.msk.bf16.gmra.mxu1 %vm535_vm4, %v16336_v57 }
 0x340   : > { %12341 = vmatprep.mubr.msk.bf16.mxu0 %vm535_vm4, %v16761_v37  ;;  %v16780_v56 = vadd.f32 %v6380_v32, %v6067_v25  ;;  %v6072_v63 = vadd.f32 %v12101_v48, %v16469_v42  ;;  %12307 = vmatprep.mubr.msk.bf16.mxu1 %vm535_vm4, %v16428_v58  ;;  %v7917_v32 = vrot.slane %v7915_v10, 4  ;;  %v7926_v40 = vrot.slane %v7924_v3, 5 }
 0x341   : > { %v6393_v4 = vpop.f32.mrf.mxu0  ;;  %v5991_v33 = vpop.f32.mrf.mxu1 }
 0x342   : > { %v16789_v1 = vadd.f32 %v12135_v50, %v6072_v63  ;;  %v6070_v57 = vadd.f32 %v5991_v33, %v16476_v15  ;;  %v18353_v15 = vld [vmem:[#allocation32_spill] sm:$0xff]  ;;  %v7921_v10 = vor.u32 %v7920_v43, %v7917_v32  ;;  %v7931_v39 = vor.u32 %v7930_v45, %v7926_v40  ;;  %v18358_v43 = vld [vmem:[#allocation41_spill] sm:$0xff] }
 0x343   : > { %v12136_v36 = vpop.f32.mrf.mxu0  ;;  %v12102_v62 = vpop.f32.mrf.mxu1 }
 0x344   : > { %v16792_v42 = vadd.f32 %v6393_v4, %v6070_v57  ;;  %v6073_v58 = vadd.f32 %v12102_v62, %v16492_v27  ;;  %v7934_v27 = vshll.u32 %v16554_v29, 16  ;;  %v18354_v4 = vld [vmem:[#allocation39_spill] sm:$0xff] }
 0x345   : > { %v6396_v60 = vpop.f32.mrf.mxu0  ;;  %v5994_v26 = vpop.f32.mrf.mxu1  ;;  %v18356_v29 = vld [vmem:[#allocation7_spill] sm:$0xff] }
 0x346   : > { %v16797_v53 = vadd.f32 %v12136_v36, %v6073_v58  ;;  %v6071_v50 = vadd.f32 %v5994_v26, %v16501_v16  ;;  %v7936_v57 = vrot.slane %v7934_v27, 5  ;;  %v7922_v58 = vrot.slane %v7921_v10, 4 }
 0x347   : > { %v12139_v21 = vpop.f32.mrf.mxu0  ;;  %12342 = vmatmul.mubr.msk.bf16.gmra.mxu0 %vm535_vm4, %v16787_v18  ;;  %v12105_v25 = vpop.f32.mrf.mxu1  ;;  %12308 = vmatmul.mubr.msk.bf16.gmra.mxu1 %vm535_vm4, %v16459_v14 }
 0x348   : > { %12345 = vmatprep.mubr.msk.bf16.mxu0 %vm535_vm4, %v18353_v15  ;;  %v16805_v46 = vadd.f32 %v6396_v60, %v6071_v50  ;;  %v6076_v48 = vadd.f32 %v12105_v25, %v16511_v61  ;;  %12311 = vmatprep.mubr.msk.bf16.mxu1 %vm535_vm4, %v18354_v4  ;;  %v7932_v61 = vrot.slane %v7931_v39, 4  ;;  %v18357_v25 = vld [vmem:[#allocation49_spill] sm:$0xff]  ;;  %v7927_v39 = vsel %vm12912_vm9, %v7922_v58, %v7926_v40 }
 0x349   : > { %v6409_v2 = vpop.f32.mrf.mxu0  ;;  %v6007_v16 = vpop.f32.mrf.mxu1 }
 0x34a   : > { %v16810_v3 = vadd.f32 %v12139_v21, %v6076_v48  ;;  %v6074_v33 = vadd.f32 %v6007_v16, %v18355_v7  ;;  %v18359_v21 = vld [vmem:[#allocation50_spill] sm:$0xff]  ;;  %v7937_v16 = vsel %vm12912_vm9, %v7932_v61, %v7936_v57 }
 0x34b   : > { %v12140_v63 = vpop.f32.mrf.mxu0  ;;  %v12106_v36 = vpop.f32.mrf.mxu1  ;;  %v18363_v57 = vld [vmem:[#allocation42_spill] sm:$0xff] }
 0x34c   : > { %v16813_v62 = vadd.f32 %v6409_v2, %v6074_v33  ;;  %v6077_v60 = vadd.f32 %v12106_v36, %v18356_v29  ;;  %v10724_v29 = vcombine.low %v7927_v39, %v7937_v16 }
 0x34d   : > { %v6412_v14 = vpop.f32.mrf.mxu0  ;;  %v6010_v26 = vpop.f32.mrf.mxu1 }
 0x34e   : > { %v16818_v32 = vadd.f32 %v12140_v63, %v6077_v60  ;;  %v6075_v45 = vadd.f32 %v6010_v26, %v18358_v43 }
 0x34f   : > { %v12143_v50 = vpop.f32.mrf.mxu0  ;;  %12346 = vmatmul.mubr.msk.bf16.gmra.mxu0 %vm535_vm4, %v18357_v25  ;;  %v12109_v48 = vpop.f32.mrf.mxu1  ;;  %12312 = vmatmul.mubr.msk.bf16.gmra.mxu1 %vm535_vm4, %v16508_v54 }
 0x350   : > { %12349 = vmatprep.mubr.msk.bf16.mxu0 %vm535_vm4, %v18359_v21  ;;  %v16825_v27 = vadd.f32 %v6412_v14, %v6075_v45  ;;  %v6080_v4 = vadd.f32 %v12109_v48, %v16556_v12  ;;  %12315 = vmatprep.mubr.msk.bf16.mxu1 %vm535_vm4, %v16551_v9  ;;  %v18361_v12 = vld [vmem:[#allocation22_spill] sm:$0xff] }
 0x351   : > { %v6425_v2 = vpop.f32.mrf.mxu0  ;;  %v6023_v63 = vpop.f32.mrf.mxu1  ;;  %v18362_v45 = vld [vmem:[#allocation46_spill] sm:$0xff] }
 0x352   : > { %v16834_v33 = vadd.f32 %v12143_v50, %v6080_v4  ;;  %v6078_v54 = vadd.f32 %v6023_v63, %v16562_v44 }
 0x353   : > { %v12144_v7 = vpop.f32.mrf.mxu0  ;;  %v12110_v36 = vpop.f32.mrf.mxu1 }
 0x354   : > { %v16837_v60 = vadd.f32 %v6425_v2, %v6078_v54  ;;  %v6081_v26 = vadd.f32 %v12110_v36, %v18361_v12 }
 0x355   : > { %v6428_v14 = vpop.f32.mrf.mxu0  ;;  %v6026_v9 = vpop.f32.mrf.mxu1 }
 0x356   : > { %v16842_v40 = vadd.f32 %v12144_v7, %v6081_v26  ;;  %v6079_v58 = vadd.f32 %v6026_v9, %v18363_v57 }
 0x357   : > { %v12147_v43 = vpop.f32.mrf.mxu0  ;;  %12350 = vmatmul.mubr.msk.bf16.gmra.mxu0 %vm535_vm4, %v18362_v45  ;;  %v12113_v44 = vpop.f32.mrf.mxu1  ;;  %12316 = vmatmul.mubr.msk.bf16.gmra.mxu1 %vm535_vm4, %v10724_v29 }
 0x358   : > { %12389 = vmatprep.mubr.msk.bf16.mxu0 %vm535_vm4, %v16601_v47  ;;  %v16848_v50 = vadd.f32 %v6428_v14, %v6079_v58  ;;  %v6084_v48 = vadd.f32 %v12113_v44, %v16598_v30  ;;  %12355 = vmatprep.mubr.msk.bf16.mxu1 %vm535_vm4, %v18325_v28 }
 0x359   : > { %v6441_v61 = vpop.f32.mrf.mxu0  ;;  %v6039_v2 = vpop.f32.mrf.mxu1 }
 0x35a   : > { %v16853_v10 = vadd.f32 %v12147_v43, %v6084_v48  ;;  %v6082_v39 = vadd.f32 %v6039_v2, %v16605_v5 }
 0x35b   : > { %v12148_v4 = vpop.f32.mrf.mxu0  ;;  %v12114_v16 = vpop.f32.mrf.mxu1 }
 0x35c   : > { %v16856_v7 = vadd.f32 %v6441_v61, %v6082_v39  ;;  %v6085_v54 = vadd.f32 %v12114_v16, %v16614_v23 }
 0x35d   : > { %v6444_v63 = vpop.f32.mrf.mxu0  ;;  %v6042_v36 = vpop.f32.mrf.mxu1 }
 0x35e   : > { %v16861_v30 = vadd.f32 %v12148_v4, %v6085_v54  ;;  %v6083_v28 = vadd.f32 %v6042_v36, %v16631_v17 }
 0x35f   : > { %v12187_v14 = vpop.f32.mrf.mxu0  ;;  %12390 = vmatmul.mubr.msk.bf16.vlgmr.msra.gmra.mxu0 %vm535_vm4, %v16637_v55  ;;  %v12153_v29 = vpop.f32.mrf.mxu1  ;;  %12356 = vmatmul.mubr.msk.bf16.vlgmr.msra.gmra.mxu1 %vm535_vm4, %v16601_v47 }
 0x360   : > { %12393 = vmatprep.mubr.msk.bf16.mxu0 %vm535_vm4, %v16643_v59  ;;  %v16868_v12 = vadd.f32 %v6444_v63, %v6083_v28  ;;  %v6664_v23 = vadd.f32 %v12153_v29, %v16640_v24  ;;  %12359 = vmatprep.mubr.msk.bf16.mxu1 %vm535_vm4, %v16637_v55  ;;  %v18364_v55 = vld [vmem:[#allocation24_spill] sm:$0xff] }
 0x361   : > { %v6741_v5 = vpop.f32.mrf.mxu0  ;;  %v6535_v26 = vpop.f32.mrf.mxu1 }
 0x362   : > { %v16873_v43 = vadd.f32 %v12187_v14, %v6664_v23  ;;  %v6662_v17 = vadd.f32 %v6535_v26, %v16647_v52  ;;  %v18366_v14 = vld [vmem:[#allocation34_spill] sm:$0xff]  ;;  %v18367_v26 = vld [vmem:[#allocation27_spill] sm:$0xff] }
 0x363   : > { %v12188_v9 = vpop.f32.mrf.mxu0  ;;  %v12154_v57 = vpop.f32.mrf.mxu1 }
 0x364   : > { %v16876_v44 = vadd.f32 %v6741_v5, %v6662_v17  ;;  %v6665_v47 = vadd.f32 %v12154_v57, %v16656_v13  ;;  %v18365_v13 = vld [vmem:[#allocation23_spill] sm:$0xff] }
 0x365   : > { %v6744_v58 = vpop.f32.mrf.mxu0  ;;  %v6538_v61 = vpop.f32.mrf.mxu1 }
 0x366   : > { %v16881_v24 = vadd.f32 %v12188_v9, %v6665_v47  ;;  %v6663_v2 = vadd.f32 %v6538_v61, %v18364_v55 }
 0x367   : > { %v12191_v48 = vpop.f32.mrf.mxu0  ;;  %12394 = vmatmul.mubr.msk.bf16.gmra.mxu0 %vm535_vm4, %v16677_v19  ;;  %v12157_v4 = vpop.f32.mrf.mxu1  ;;  %12360 = vmatmul.mubr.msk.bf16.gmra.mxu1 %vm535_vm4, %v16643_v59 }
 0x368   : > { %12397 = vmatprep.mubr.msk.bf16.mxu0 %vm535_vm4, %v16683_v22  ;;  %v16888_v39 = vadd.f32 %v6744_v58, %v6663_v2  ;;  %v6668_v16 = vadd.f32 %v12157_v4, %v18365_v13  ;;  %12363 = vmatprep.mubr.msk.bf16.mxu1 %vm535_vm4, %v16677_v19  ;;  %v18368_v19 = vld [vmem:[#allocation30_spill] sm:$0xff] }
 0x369   : > { %v6757_v52 = vpop.f32.mrf.mxu0  ;;  %v6551_v63 = vpop.f32.mrf.mxu1 }
 0x36a   : > { %v16893_v36 = vadd.f32 %v12191_v48, %v6668_v16  ;;  %v6666_v28 = vadd.f32 %v6551_v63, %v18366_v14 }
 0x36b   : > { %v12192_v54 = vpop.f32.mrf.mxu0  ;;  %v12158_v29 = vpop.f32.mrf.mxu1 }
 0x36c   : > { %v16896_v23 = vadd.f32 %v6757_v52, %v6666_v28  ;;  %v6669_v59 = vadd.f32 %v12158_v29, %v18367_v26 }
 0x36d   : > { %v6760_v5 = vpop.f32.mrf.mxu0  ;;  %v6554_v9 = vpop.f32.mrf.mxu1 }
 0x36e   : > { %v16901_v57 = vadd.f32 %v12192_v54, %v6669_v59  ;;  %v6667_v58 = vadd.f32 %v6554_v9, %v18368_v19 }
 0x36f   : > { %v12195_v17 = vpop.f32.mrf.mxu0  ;;  %12398 = vmatmul.mubr.msk.bf16.gmra.mxu0 %vm535_vm4, %v16717_v31  ;;  %v12161_v47 = vpop.f32.mrf.mxu1  ;;  %12364 = vmatmul.mubr.msk.bf16.gmra.mxu1 %vm535_vm4, %v16683_v22 }
 0x370   : > { %12401 = vmatprep.mubr.msk.bf16.mxu0 %vm535_vm4, %v16723_v38  ;;  %v16908_v48 = vadd.f32 %v6760_v5, %v6667_v58  ;;  %v6672_v55 = vadd.f32 %v12161_v47, %v16720_v49  ;;  %12367 = vmatprep.mubr.msk.bf16.mxu1 %vm535_vm4, %v16717_v31  ;;  %v8158_v47 = vld [vmem:[%s12668_s22 + $0xc0] sm:$0xe] }
 0x371   : > { %v6773_v61 = vpop.f32.mrf.mxu0  ;;  %v6567_v2 = vpop.f32.mrf.mxu1 }
 0x372   : > { %v16913_v52 = vadd.f32 %v12195_v17, %v6672_v55  ;;  %v6670_v13 = vadd.f32 %v6567_v2, %v16727_v8 }
 0x373   : > { %v12196_v4 = vpop.f32.mrf.mxu0  ;;  %v12162_v16 = vpop.f32.mrf.mxu1 }
 0x374   : > { %v16916_v54 = vadd.f32 %v6773_v61, %v6670_v13  ;;  %v6673_v22 = vadd.f32 %v12162_v16, %v16735_v34 }
 0x375   : > { %v6776_v63 = vpop.f32.mrf.mxu0  ;;  %v6570_v14 = vpop.f32.mrf.mxu1 }
 0x376   : > { %v16921_v49 = vadd.f32 %v12196_v4, %v6673_v22  ;;  %v6671_v31 = vadd.f32 %v6570_v14, %v16749_v51  ;;  %v18369_v4 = vld [vmem:[#allocation47_spill] sm:$0xff] }
 0x377   : > { %v12199_v28 = vpop.f32.mrf.mxu0  ;;  %12402 = vmatmul.mubr.msk.bf16.gmra.mxu0 %vm535_vm4, %v16755_v35  ;;  %v12165_v8 = vpop.f32.mrf.mxu1  ;;  %12368 = vmatmul.mubr.msk.bf16.gmra.mxu1 %vm535_vm4, %v16723_v38  ;;  %v8637_v13 = vrot.slane %v18369_v4, 5 }
 0x378   : > { %12405 = vmatprep.mubr.msk.bf16.mxu0 %vm535_vm4, %v16761_v37  ;;  %v16928_v5 = vadd.f32 %v6776_v63, %v6671_v31  ;;  %v6676_v34 = vadd.f32 %v12165_v8, %v16758_v0  ;;  %12371 = vmatprep.mubr.msk.bf16.mxu1 %vm535_vm4, %v16755_v35 }
 0x379   : > { %v6789_v29 = vpop.f32.mrf.mxu0  ;;  %v6583_v26 = vpop.f32.mrf.mxu1 }
 0x37a   : > { %v16933_v9 = vadd.f32 %v12199_v28, %v6676_v34  ;;  %v6674_v51 = vadd.f32 %v6583_v26, %v16764_v11 }
 0x37b   : > { %v12200_v59 = vpop.f32.mrf.mxu0  ;;  %v12166_v17 = vpop.f32.mrf.mxu1 }
 0x37c   : > { %v16936_v58 = vadd.f32 %v6789_v29, %v6674_v51  ;;  %v6677_v38 = vadd.f32 %v12166_v17, %v16769_v6  ;;  %v8176_v6 = vmul.bf16 %v8158_v47, %v15295_v41  ;;  %v8639_v29 = vrot.slane %v8637_v13, 4  ;;  %v18370_v41 = vld [vmem:[#allocation20_spill] sm:$0xff] }
 0x37d   : > { %v6792_v19 = vpop.f32.mrf.mxu0  ;;  %v6586_v61 = vpop.f32.mrf.mxu1  ;;  %v8640_v34 = vrot.slane %v18370_v41, 5 }
 0x37e   : > { %v16942_v0 = vadd.f32 %v12200_v59, %v6677_v38  ;;  %v6675_v35 = vadd.f32 %v6586_v61, %v16780_v56  ;;  %v10790_v8 = vrot.slane %v8176_v6, 9 }
 0x37f   : > { %v12203_v55 = vpop.f32.mrf.mxu0  ;;  %12406 = vmatmul.mubr.msk.bf16.gmra.mxu0 %vm535_vm4, %v16787_v18  ;;  %v12169_v11 = vpop.f32.mrf.mxu1  ;;  %12372 = vmatmul.mubr.msk.bf16.gmra.mxu1 %vm535_vm4, %v16761_v37  ;;  %v8641_v38 = vsel %vm13408_vm12, %v8639_v29, %v8640_v34 }
 0x380   : > { %12409 = vmatprep.mubr.msk.bf16.mxu0 %vm535_vm4, %v18353_v15  ;;  %v16951_v16 = vadd.f32 %v6792_v19, %v6675_v35  ;;  %v6680_v63 = vadd.f32 %v12169_v11, %v16789_v1  ;;  %12375 = vmatprep.mubr.msk.bf16.mxu1 %vm535_vm4, %v16787_v18 }
 0x381   : > { %v6805_v2 = vpop.f32.mrf.mxu0  ;;  %v6599_v56 = vpop.f32.mrf.mxu1 }
 0x382   : > { %v16956_v14 = vadd.f32 %v12203_v55, %v6680_v63  ;;  %v6678_v28 = vadd.f32 %v6599_v56, %v16792_v42 }
 0x383   : > { %v12204_v22 = vpop.f32.mrf.mxu0  ;;  %v12170_v31 = vpop.f32.mrf.mxu1 }
 0x384   : > { %v16960_v26 = vadd.f32 %v6805_v2, %v6678_v28  ;;  %v6681_v59 = vadd.f32 %v12170_v31, %v16797_v53  ;;  %v8638_v53 = vsel %vm13408_vm12, %v10790_v8, %v8637_v13 }
 0x385   : > { %v6808_v37 = vpop.f32.mrf.mxu0  ;;  %v6602_v1 = vpop.f32.mrf.mxu1  ;;  %v10792_v11 = vcombine.low %v8638_v53, %v8641_v38 }
 0x386   : > { %v16965_v18 = vadd.f32 %v12204_v22, %v6681_v59  ;;  %v6679_v17 = vadd.f32 %v6602_v1, %v16805_v46  ;;  %v18371_v1 = vld [vmem:[#allocation28_spill] sm:$0xff] }
 0x387   : > { %v12207_v51 = vpop.f32.mrf.mxu0  ;;  %12410 = vmatmul.mubr.msk.bf16.gmra.mxu0 %vm535_vm4, %v18357_v25  ;;  %v12173_v42 = vpop.f32.mrf.mxu1  ;;  %12376 = vmatmul.mubr.msk.bf16.gmra.mxu1 %vm535_vm4, %v18353_v15 }
 0x388   : > { %12413 = vmatprep.mubr.msk.bf16.mxu0 %vm535_vm4, %v18359_v21  ;;  %v16976_v47 = vadd.f32 %v6808_v37, %v6679_v17  ;;  %v6684_v61 = vadd.f32 %v12173_v42, %v16810_v3  ;;  %12379 = vmatprep.mubr.msk.bf16.mxu1 %vm535_vm4, %v18357_v25 }
 0x389   : > { %v6821_v19 = vpop.f32.mrf.mxu0  ;;  %v6615_v46 = vpop.f32.mrf.mxu1 }
 0x38a   : > { %v16981_v35 = vadd.f32 %v12207_v51, %v6684_v61  ;;  %v6682_v15 = vadd.f32 %v6615_v46, %v16813_v62  ;;  %v18372_v51 = vld [vmem:[#allocation3_spill] sm:$0xff] }
 0x38b   : > { %v12208_v55 = vpop.f32.mrf.mxu0  ;;  %v12174_v2 = vpop.f32.mrf.mxu1 }
 0x38c   : > { %v16984_v4 = vadd.f32 %v6821_v19, %v6682_v15  ;;  %v6685_v20 = vadd.f32 %v12174_v2, %v16818_v32 }
 0x38d   : > { %v6824_v6 = vpop.f32.mrf.mxu0  ;;  %v6618_v13 = vpop.f32.mrf.mxu1 }
 0x38e   : > { %v16989_v3 = vadd.f32 %v12208_v55, %v6685_v20  ;;  %v6683_v25 = vadd.f32 %v6618_v13, %v16825_v27 }
 0x38f   : > { %v12211_v63 = vpop.f32.mrf.mxu0  ;;  %12414 = vmatmul.mubr.msk.bf16.gmra.mxu0 %vm535_vm4, %v18362_v45  ;;  %v12177_v56 = vpop.f32.mrf.mxu1  ;;  %12380 = vmatmul.mubr.msk.bf16.gmra.mxu1 %vm535_vm4, %v18359_v21 }
 0x390   : > { %12417 = vmatprep.mubr.msk.bf16.mxu0 %vm535_vm4, %v10792_v11  ;;  %v16995_v22 = vadd.f32 %v6824_v6, %v6683_v25  ;;  %v6688_v32 = vadd.f32 %v12177_v56, %v16834_v33  ;;  %12383 = vmatprep.mubr.msk.bf16.mxu1 %vm535_vm4, %v18362_v45  ;;  %v18373_v33 = vcombine.low %v18371_v1, %v18372_v51 }
 0x391   : > { %v6837_v62 = vpop.f32.mrf.mxu0  ;;  %v6631_v28 = vpop.f32.mrf.mxu1 }
 0x392   : > { %v17000_v37 = vadd.f32 %v12211_v63, %v6688_v32  ;;  %v6686_v27 = vadd.f32 %v6631_v28, %v16837_v60 }
 0x393   : > { %v12212_v31 = vpop.f32.mrf.mxu0  ;;  %v12178_v8 = vpop.f32.mrf.mxu1 }
 0x394   : > { %v17003_v41 = vadd.f32 %v6837_v62, %v6686_v27  ;;  %v6689_v21 = vadd.f32 %v12178_v8, %v16842_v40 }
 0x395   : > { %v6840_v29 = vpop.f32.mrf.mxu0  ;;  %v6634_v34 = vpop.f32.mrf.mxu1 }
 0x396   : > { %v17010_v45 = vadd.f32 %v12212_v31, %v6689_v21  ;;  %v6687_v17 = vadd.f32 %v6634_v34, %v16848_v50 }
 0x397   : > { %v12215_v59 = vpop.f32.mrf.mxu0  ;;  %12418 = vmatmul.mubr.msk.bf16.gmra.mxu0 %vm535_vm4, %v18373_v33  ;;  %v12181_v42 = vpop.f32.mrf.mxu1  ;;  %12384 = vmatmul.mubr.msk.bf16.gmra.mxu1 %vm535_vm4, %v10792_v11 }
 0x398   : > { %v17014_v19 = vadd.f32 %v6840_v29, %v6687_v17  ;;  %v6692_v53 = vadd.f32 %v12181_v42, %v16853_v10 }
 0x399   : > { %v6853_v60 = vpop.f32.mrf.mxu0  ;;  %v6647_v40 = vpop.f32.mrf.mxu1 }
 0x39a   : > { %v17017_v61 = vadd.f32 %v12215_v59, %v6692_v53  ;;  %v6690_v46 = vadd.f32 %v6647_v40, %v16856_v7  ;;  %v12582_v40 = vmov 0  }
 0x39b   : > { %v12216_v38 = vpop.f32.mrf.mxu0  ;;  %v12182_v55 = vpop.f32.mrf.mxu1  ;;  %9290 = vst.msk [vmem:[%s12663_s15] sm:$0xf] %vm9289_vm15, %v12582_v40  ;;  %9291 = vst.msk [vmem:[%s12663_s15 + $0x4] sm:$0xf] %vm9289_vm15, %v12582_v40 }
 0x39c   : > { %v17020_v2 = vadd.f32 %v6853_v60, %v6690_v46  ;;  %v6693_v50 = vadd.f32 %v12182_v55, %v16861_v30  ;;  %v10836_v60 = vld [vmem:[%s12663_s15 + $0x18] sm:$0x1]  ;;  %9293 = vst.msk [vmem:[%s12663_s15 + $0x8] sm:$0x1] %vm9292_vm13, %v12582_v40  ;;  %10833 = vst.msk [vmem:[%s12663_s15 + $0xd4] sm:$0x1] %vm9292_vm13, %v12582_v40 }
 0x39d   : > { %v6856_v15 = vpop.f32.mrf.mxu0  ;;  %v6650_v6 = vpop.f32.mrf.mxu1  ;;  %10831 = vst.msk [vmem:[%s12663_s15 + $0xcc] sm:$0xf] %vm9289_vm15, %v12582_v40  ;;  %10832 = vst.msk [vmem:[%s12663_s15 + $0xd0] sm:$0xf] %vm9289_vm15, %v12582_v40 }
 0x39e   : > { %v17023_v11 = vadd.f32 %v12216_v38, %v6693_v50  ;;  %v6691_v13 = vadd.f32 %v6650_v6, %v16868_v12  ;;  %v9306_v38 = vsel %vm17046_vm0, 0, %v10836_v60 }
 0x39f   : > { %v12255_v20 = vpop.f32.mrf.mxu0  ;;  %v12221_v63 = vpop.f32.mrf.mxu1  ;;  %10837 = vst [vmem:[%s12663_s15 + $0x18] sm:$0x1] %v9306_v38 }
 0x3a0   : > { %v17026_v25 = vadd.f32 %v6856_v15, %v6691_v13  ;;  %v7656_v56 = vadd.f32 %v12221_v63, %v16873_v43  ;;  %v10834_v15 = vld [vmem:[%s12663_s15 + $0xc] sm:$0x1] }
 0x3a1   : > { %v7755_v10 = vpop.f32.mrf.mxu0  ;;  %v7527_v62 = vpop.f32.mrf.mxu1 }
 0x3a2   : > { %v17029_v32 = vadd.f32 %v12255_v20, %v7656_v56  ;;  %v7654_v28 = vadd.f32 %v7527_v62, %v16876_v44  ;;  %v9303_v20 = vsel %vm17046_vm0, 0, %v10834_v15 }
 0x3a3   : > { %v12256_v7 = vpop.f32.mrf.mxu0  ;;  %v12222_v31 = vpop.f32.mrf.mxu1  ;;  %10835 = vst [vmem:[%s12663_s15 + $0xc] sm:$0x1] %v9303_v20 }
 0x3a4   : > { %v17032_v27 = vadd.f32 %v7755_v10, %v7654_v28  ;;  %v7657_v8 = vadd.f32 %v12222_v31, %v16881_v24  ;;  %v10868_v10 = vld [vmem:[%s12663_s15 + $0x20] sm:$0x1] }
 0x3a5   : > { %v7758_v30 = vpop.f32.mrf.mxu0  ;;  %v7530_v29 = vpop.f32.mrf.mxu1 }
 0x3a6   : > { %v17035_v21 = vadd.f32 %v12256_v7, %v7657_v8  ;;  %v7655_v34 = vadd.f32 %v7530_v29, %v16888_v39  ;;  %v9356_v7 = vsel %vm17071_vm2, 0, %v10868_v10  ;;  %v10872_v10 = vld [vmem:[%s12663_s15 + $0x38] sm:$0x1] }
 0x3a7   : > { %v12259_v12 = vpop.f32.mrf.mxu0  ;;  %v12225_v43 = vpop.f32.mrf.mxu1  ;;  %10869 = vst [vmem:[%s12663_s15 + $0x20] sm:$0x1] %v9356_v7 }
 0x3a8   : > { %v17038_v1 = vadd.f32 %v7758_v30, %v7655_v34  ;;  %v7660_v51 = vadd.f32 %v12225_v43, %v16893_v36  ;;  %v10866_v34 = vld [vmem:[%s12663_s15 + $0x14] sm:$0x1] }
 0x3a9   : > { %v7771_v59 = vpop.f32.mrf.mxu0  ;;  %v7543_v44 = vpop.f32.mrf.mxu1 }
 0x3aa   : > { %v17041_v17 = vadd.f32 %v12259_v12, %v7660_v51  ;;  %v7658_v24 = vadd.f32 %v7543_v44, %v16896_v23  ;;  %v9353_v51 = vsel %vm17071_vm2, 0, %v10866_v34 }
 0x3ab   : > { %v12260_v33 = vpop.f32.mrf.mxu0  ;;  %v12226_v39 = vpop.f32.mrf.mxu1  ;;  %10867 = vst [vmem:[%s12663_s15 + $0x14] sm:$0x1] %v9353_v51 }
 0x3ac   : > { %v17051_v53 = vadd.f32 %v7771_v59, %v7658_v24  ;;  %v7661_v23 = vadd.f32 %v12226_v39, %v16901_v57 }
 0x3ad   : > { %v7774_v42 = vpop.f32.mrf.mxu0  ;;  %v7546_v46 = vpop.f32.mrf.mxu1 }
 0x3ae   : > { %v17076_v50 = vadd.f32 %v12260_v33, %v7661_v23  ;;  %v7659_v6 = vadd.f32 %v7546_v46, %v16908_v48  ;;  %v10838_v23 = vld [vmem:[%s12663_s15 + $0x24] sm:$0x1] }
 0x3af   : > { %v12263_v57 = vpop.f32.mrf.mxu0  ;;  %v12229_v13 = vpop.f32.mrf.mxu1  ;;  %v9309_v46 = vsel %vm17046_vm0, 0, %v10838_v23  ;;  %v10844_v23 = vld [vmem:[%s12663_s15 + $0x48] sm:$0x1] }
 0x3b0   : > { %v17083_v56 = vadd.f32 %v7774_v42, %v7659_v6  ;;  %v7664_v62 = vadd.f32 %v12229_v13, %v16913_v52  ;;  %10839 = vst [vmem:[%s12663_s15 + $0x24] sm:$0x1] %v9309_v46 }
 0x3b1   : > { %v7787_v63 = vpop.f32.mrf.mxu0  ;;  %v7559_v28 = vpop.f32.mrf.mxu1 }
 0x3b2   : > { %v17089_v48 = vadd.f32 %v12263_v57, %v7664_v62  ;;  %v7662_v30 = vadd.f32 %v7559_v28, %v16916_v54  ;;  %v10840_v54 = vld [vmem:[%s12663_s15 + $0x30] sm:$0x1]  ;;  %v9362_v28 = vsel %vm17071_vm2, 0, %v10872_v10 }
 0x3b3   : > { %v12264_v31 = vpop.f32.mrf.mxu0  ;;  %v12230_v8 = vpop.f32.mrf.mxu1  ;;  %v9312_v42 = vsel %vm17046_vm0, 0, %v10840_v54  ;;  %10873 = vst [vmem:[%s12663_s15 + $0x38] sm:$0x1] %v9362_v28 }
 0x3b4   : > { %v17092_v12 = vadd.f32 %v7787_v63, %v7662_v30  ;;  %v7665_v52 = vadd.f32 %v12230_v8, %v16921_v49  ;;  %10841 = vst [vmem:[%s12663_s15 + $0x30] sm:$0x1] %v9312_v42 }
 0x3b5   : > { %v7790_v29 = vpop.f32.mrf.mxu0  ;;  %v7562_v43 = vpop.f32.mrf.mxu1 }
 0x3b6   : > { %v17098_v44 = vadd.f32 %v12264_v31, %v7665_v52  ;;  %v7663_v33 = vadd.f32 %v7562_v43, %v16928_v5 }
 0x3b7   : > { %v12267_v59 = vpop.f32.mrf.mxu0  ;;  %v12233_v24 = vpop.f32.mrf.mxu1 }
 0x3b8   : > { %v17105_v60 = vadd.f32 %v7790_v29, %v7663_v33  ;;  %v7668_v49 = vadd.f32 %v12233_v24, %v16933_v9  ;;  %v10870_v24 = vld [vmem:[%s12663_s15 + $0x2c] sm:$0x1] }
 0x3b9   : > { %v7803_v39 = vpop.f32.mrf.mxu0  ;;  %v7575_v40 = vpop.f32.mrf.mxu1  ;;  %v9359_v42 = vsel %vm17071_vm2, 0, %v10870_v24 }
 0x3ba   : > { %v17112_v5 = vadd.f32 %v12267_v59, %v7668_v49  ;;  %v7666_v57 = vadd.f32 %v7575_v40, %v16936_v58  ;;  %10871 = vst [vmem:[%s12663_s15 + $0x2c] sm:$0x1] %v9359_v42 }
 0x3bb   : > { %v12268_v38 = vpop.f32.mrf.mxu0  ;;  %v12234_v15 = vpop.f32.mrf.mxu1 }
 0x3bc   : > { %v17116_v20 = vadd.f32 %v7803_v39, %v7666_v57  ;;  %v7669_v13 = vadd.f32 %v12234_v15, %v16942_v0 }
 0x3bd   : > { %v7806_v6 = vpop.f32.mrf.mxu0  ;;  %v7578_v9 = vpop.f32.mrf.mxu1 }
 0x3be   : > { %v17120_v62 = vadd.f32 %v12268_v38, %v7669_v13  ;;  %v7667_v7 = vadd.f32 %v7578_v9, %v16951_v16  ;;  %v9318_v38 = vsel %vm17046_vm0, 0, %v10844_v23 }
 0x3bf   : > { %v12271_v63 = vpop.f32.mrf.mxu0  ;;  %v12237_v31 = vpop.f32.mrf.mxu1  ;;  %10845 = vst [vmem:[%s12663_s15 + $0x48] sm:$0x1] %v9318_v38  ;;  %v10848_v38 = vld [vmem:[%s12663_s15 + $0x60] sm:$0x1] }
 0x3c0   : > { %v17126_v30 = vadd.f32 %v7806_v6, %v7667_v7  ;;  %v7672_v8 = vadd.f32 %v12237_v31, %v16956_v14  ;;  %v10842_v6 = vld [vmem:[%s12663_s15 + $0x3c] sm:$0x1]  ;;  %v10876_v31 = vld [vmem:[%s12663_s15 + $0x50] sm:$0x1] }
 0x3c1   : > { %v7819_v58 = vpop.f32.mrf.mxu0  ;;  %v7591_v29 = vpop.f32.mrf.mxu1 }
 0x3c2   : > { %v17129_v52 = vadd.f32 %v12271_v63, %v7672_v8  ;;  %v7670_v34 = vadd.f32 %v7591_v29, %v16960_v26  ;;  %v9315_v63 = vsel %vm17046_vm0, 0, %v10842_v6  ;;  %v9368_v8 = vsel %vm17071_vm2, 0, %v10876_v31 }
 0x3c3   : > { %v12272_v0 = vpop.f32.mrf.mxu0  ;;  %v12238_v16 = vpop.f32.mrf.mxu1  ;;  %10843 = vst [vmem:[%s12663_s15 + $0x3c] sm:$0x1] %v9315_v63  ;;  %10877 = vst [vmem:[%s12663_s15 + $0x50] sm:$0x1] %v9368_v8 }
 0x3c4   : > { %v17132_v59 = vadd.f32 %v7819_v58, %v7670_v34  ;;  %v7673_v51 = vadd.f32 %v12238_v16, %v16965_v18 }
 0x3c5   : > { %v7822_v43 = vpop.f32.mrf.mxu0  ;;  %v7594_v33 = vpop.f32.mrf.mxu1 }
 0x3c6   : > { %v17136_v14 = vadd.f32 %v12272_v0, %v7673_v51  ;;  %v7671_v39 = vadd.f32 %v7594_v33, %v16976_v47 }
 0x3c7   : > { %v12275_v54 = vpop.f32.mrf.mxu0  ;;  %v12241_v49 = vpop.f32.mrf.mxu1 }
 0x3c8   : > { %v17143_v40 = vadd.f32 %v7822_v43, %v7671_v39  ;;  %v7676_v18 = vadd.f32 %v12241_v49, %v16981_v35 }
 0x3c9   : > { %v7835_v26 = vpop.f32.mrf.mxu0  ;;  %v7607_v46 = vpop.f32.mrf.mxu1 }
 0x3ca   : > { %v17149_v47 = vadd.f32 %v12275_v54, %v7676_v18  ;;  %v7674_v15 = vadd.f32 %v7607_v46, %v16984_v4 }
 0x3cb   : > { %v12276_v57 = vpop.f32.mrf.mxu0  ;;  %v12242_v13 = vpop.f32.mrf.mxu1 }
 0x3cc   : > { %v17155_v35 = vadd.f32 %v7835_v26, %v7674_v15  ;;  %v7677_v10 = vadd.f32 %v12242_v13, %v16989_v3  ;;  %v10874_v3 = vld [vmem:[%s12663_s15 + $0x44] sm:$0x1] }
 0x3cd   : > { %v7838_v9 = vpop.f32.mrf.mxu0  ;;  %v7610_v7 = vpop.f32.mrf.mxu1  ;;  %v9365_v33 = vsel %vm17071_vm2, 0, %v10874_v3  ;;  %v10880_v3 = vld [vmem:[%s12663_s15 + $0x68] sm:$0x1] }
 0x3ce   : > { %v17160_v58 = vadd.f32 %v12276_v57, %v7677_v10  ;;  %v7675_v4 = vadd.f32 %v7610_v7, %v16995_v22  ;;  %10875 = vst [vmem:[%s12663_s15 + $0x44] sm:$0x1] %v9365_v33 }
 0x3cf   : > { %v12279_v28 = vpop.f32.mrf.mxu0  ;;  %v12245_v29 = vpop.f32.mrf.mxu1 }
 0x3d0   : > { %v17166_v34 = vadd.f32 %v7838_v9, %v7675_v4  ;;  %v7680_v16 = vadd.f32 %v12245_v29, %v17000_v37 }
 0x3d1   : > { %v7851_v0 = vpop.f32.mrf.mxu0  ;;  %v7623_v43 = vpop.f32.mrf.mxu1 }
 0x3d2   : > { %v17172_v54 = vadd.f32 %v12279_v28, %v7680_v16  ;;  %v7678_v22 = vadd.f32 %v7623_v43, %v17003_v41  ;;  %v9324_v41 = vsel %vm17046_vm0, 0, %v10848_v38 }
 0x3d3   : > { %v12280_v51 = vpop.f32.mrf.mxu0  ;;  %v12246_v24 = vpop.f32.mrf.mxu1  ;;  %10849 = vst [vmem:[%s12663_s15 + $0x60] sm:$0x1] %v9324_v41 }
 0x3d4   : > { %v17176_v42 = vadd.f32 %v7851_v0, %v7678_v22  ;;  %v7681_v49 = vadd.f32 %v12246_v24, %v17010_v45  ;;  %v10878_v22 = vld [vmem:[%s12663_s15 + $0x5c] sm:$0x1] }
 0x3d5   : > { %v7854_v39 = vpop.f32.mrf.mxu0  ;;  %v7626_v37 = vpop.f32.mrf.mxu1 }
 0x3d6   : > { %v17179_v23 = vadd.f32 %v12280_v51, %v7681_v49  ;;  %v7679_v18 = vadd.f32 %v7626_v37, %v17014_v19  ;;  %v10846_v19 = vld [vmem:[%s12663_s15 + $0x54] sm:$0x1] }
 0x3d7   : > { %v12283_v26 = vpop.f32.mrf.mxu0  ;;  %v12249_v46 = vpop.f32.mrf.mxu1  ;;  %v9321_v28 = vsel %vm17046_vm0, 0, %v10846_v19 }
 0x3d8   : > { %v17185_v15 = vadd.f32 %v7854_v39, %v7679_v18  ;;  %v7684_v6 = vadd.f32 %v12249_v46, %v17017_v61  ;;  %10847 = vst [vmem:[%s12663_s15 + $0x54] sm:$0x1] %v9321_v28  ;;  %v10884_v28 = vld [vmem:[%s12663_s15 + $0x80] sm:$0x1] }
 0x3d9   : > { %v7867_v57 = vpop.f32.mrf.mxu0  ;;  %v7639_v45 = vpop.f32.mrf.mxu1 }
 0x3da   : > { %v17189_v9 = vadd.f32 %v12283_v26, %v7684_v6  ;;  %v7682_v63 = vadd.f32 %v7639_v45, %v17020_v2  ;;  %v10852_v26 = vld [vmem:[%s12663_s15 + $0x78] sm:$0x1]  ;;  %v10850_v45 = vld [vmem:[%s12663_s15 + $0x6c] sm:$0x1] }
 0x3db   : > { %v12284_v13 = vpop.f32.mrf.mxu0  ;;  %v12250_v10 = vpop.f32.mrf.mxu1  ;;  %v9330_v46 = vsel %vm17046_vm0, 0, %v10852_v26  ;;  %v9327_v19 = vsel %vm17046_vm0, 0, %v10850_v45 }
 0x3dc   : > { %v17195_v31 = vadd.f32 %v7867_v57, %v7682_v63  ;;  %v7685_v61 = vadd.f32 %v12250_v10, %v17023_v11  ;;  %v9374_v11 = vsel %vm17071_vm2, 0, %v10880_v3  ;;  %10853 = vst [vmem:[%s12663_s15 + $0x78] sm:$0x1] %v9330_v46  ;;  %10851 = vst [vmem:[%s12663_s15 + $0x6c] sm:$0x1] %v9327_v19 }
 0x3dd   : > { %v7870_v7 = vpop.f32.mrf.mxu0  ;;  %v7642_v4 = vpop.f32.mrf.mxu1  ;;  %10881 = vst [vmem:[%s12663_s15 + $0x68] sm:$0x1] %v9374_v11 }
 0x3de   : > { %v17201_v29 = vadd.f32 %v12284_v13, %v7685_v61  ;;  %v7683_v2 = vadd.f32 %v7642_v4, %v17026_v25  ;;  %v9371_v25 = vsel %vm17071_vm2, 0, %v10878_v22 }
 0x3df   : > { %v17199_v8 = vpop.f32.mrf.mxu0  ;;  %v17204_v0 = vpop.f32.mrf.mxu1  ;;  %10879 = vst [vmem:[%s12663_s15 + $0x5c] sm:$0x1] %v9371_v25  ;;  %v10882_v25 = vld [vmem:[%s12663_s15 + $0x74] sm:$0x1] }
 0x3e0   : > { %v17209_v43 = vadd.f32 %v7870_v7, %v7683_v2  ;;  %v9380_v2 = vsel %vm17071_vm2, 0, %v10884_v28 }
 0x3e1   : > { %v17206_v16 = vpop.f32.mrf.mxu0  ;;  %v17213_v51 = vpop.f32.mrf.mxu1  ;;  %10885 = vst [vmem:[%s12663_s15 + $0x80] sm:$0x1] %v9380_v2 }
 0x3e3   : > { %v17215_v33 = vpop.f32.mrf.mxu0  ;;  %v17221_v24 = vpop.f32.mrf.mxu1 }
 0x3e5   : > { %v17223_v39 = vpop.f32.mrf.mxu0  ;;  %v17226_v49 = vpop.f32.mrf.mxu1 }
 0x3e7   : > { %v17228_v37 = vpop.f32.mrf.mxu0  ;;  %v17231_v18 = vpop.f32.mrf.mxu1 }
 0x3e9   : > { %v8489_v38 = vpop.f32.mrf.mxu0  ;;  %v7999_v57 = vpop.f32.mrf.mxu1 }
 0x3ea   : > { %v8114_v6 = vadd.f32 %v7999_v57, %v17051_v53 }
 0x3eb   : > { %v12328_v41 = vpop.f32.mrf.mxu0  ;;  %v12294_v13 = vpop.f32.mrf.mxu1 }
 0x3ec   : > { %v17240_v10 = vadd.f32 %v8489_v38, %v8114_v6  ;;  %v8117_v7 = vadd.f32 %v12294_v13, %v17076_v50  ;;  %v9377_v38 = vsel %vm17071_vm2, 0, %v10882_v25 }
 0x3ed   : > { %v8492_v63 = vpop.f32.mrf.mxu0  ;;  %v8002_v61 = vpop.f32.mrf.mxu1  ;;  %10883 = vst [vmem:[%s12663_s15 + $0x74] sm:$0x1] %v9377_v38 }
 0x3ee   : > { %v17247_v53 = vadd.f32 %v12328_v41, %v8117_v7  ;;  %v8115_v3 = vadd.f32 %v8002_v61, %v17083_v56 }
 0x3ef   : > { %v12331_v4 = vpop.f32.mrf.mxu0  ;;  %v12297_v11 = vpop.f32.mrf.mxu1 }
 0x3f0   : > { %v17252_v26 = vadd.f32 %v8492_v63, %v8115_v3  ;;  %v8120_v50 = vadd.f32 %v12297_v11, %v17089_v48  ;;  %v10856_v3 = vld [vmem:[%s12663_s15 + $0x90] sm:$0x1] }
 0x3f1   : > { %v8505_v22 = vpop.f32.mrf.mxu0  ;;  %v8015_v46 = vpop.f32.mrf.mxu1 }
 0x3f2   : > { %v17258_v6 = vadd.f32 %v12331_v4, %v8120_v50  ;;  %v8118_v41 = vadd.f32 %v8015_v46, %v17092_v12 }
 0x3f3   : > { %v12332_v57 = vpop.f32.mrf.mxu0  ;;  %v12298_v56 = vpop.f32.mrf.mxu1 }
 0x3f4   : > { %v17261_v13 = vadd.f32 %v8505_v22, %v8118_v41  ;;  %v8121_v63 = vadd.f32 %v12298_v56, %v17098_v44  ;;  %v9336_v44 = vsel %vm17046_vm0, 0, %v10856_v3  ;;  %v10888_v56 = vld [vmem:[%s12663_s15 + $0x98] sm:$0x1] }
 0x3f5   : > { %v8508_v45 = vpop.f32.mrf.mxu0  ;;  %v8018_v48 = vpop.f32.mrf.mxu1  ;;  %10857 = vst [vmem:[%s12663_s15 + $0x90] sm:$0x1] %v9336_v44 }
 0x3f6   : > { %v17264_v7 = vadd.f32 %v12332_v57, %v8121_v63  ;;  %v8119_v28 = vadd.f32 %v8018_v48, %v17105_v60  ;;  %v10854_v60 = vld [vmem:[%s12663_s15 + $0x84] sm:$0x1] }
 0x3f7   : > { %v12335_v19 = vpop.f32.mrf.mxu0  ;;  %v12301_v61 = vpop.f32.mrf.mxu1  ;;  %v9333_v57 = vsel %vm17046_vm0, 0, %v10854_v60 }
 0x3f8   : > { %v17267_v4 = vadd.f32 %v8508_v45, %v8119_v28  ;;  %v8124_v12 = vadd.f32 %v12301_v61, %v17112_v5  ;;  %10855 = vst [vmem:[%s12663_s15 + $0x84] sm:$0x1] %v9333_v57  ;;  %v10886_v28 = vld [vmem:[%s12663_s15 + $0x8c] sm:$0x1] }
 0x3f9   : > { %v8521_v2 = vpop.f32.mrf.mxu0  ;;  %v8031_v11 = vpop.f32.mrf.mxu1 }
 0x3fa   : > { %v17273_v25 = vadd.f32 %v12335_v19, %v8124_v12  ;;  %v8122_v50 = vadd.f32 %v8031_v11, %v17116_v20  ;;  %v9386_v20 = vsel %vm17071_vm2, 0, %v10888_v56 }
 0x3fb   : > { %v12336_v22 = vpop.f32.mrf.mxu0  ;;  %v12302_v38 = vpop.f32.mrf.mxu1  ;;  %10889 = vst [vmem:[%s12663_s15 + $0x98] sm:$0x1] %v9386_v20 }
 0x3fc   : > { %v17280_v5 = vadd.f32 %v8521_v2, %v8122_v50  ;;  %v8125_v41 = vadd.f32 %v12302_v38, %v17120_v62  ;;  %v9383_v2 = vsel %vm17071_vm2, 0, %v10886_v28 }
 0x3fd   : > { %v8524_v46 = vpop.f32.mrf.mxu0  ;;  %v8034_v45 = vpop.f32.mrf.mxu1  ;;  %10887 = vst [vmem:[%s12663_s15 + $0x8c] sm:$0x1] %v9383_v2 }
 0x3fe   : > { %v17287_v48 = vadd.f32 %v12336_v22, %v8125_v41  ;;  %v8123_v19 = vadd.f32 %v8034_v45, %v17126_v30  ;;  %v10860_v45 = vld [vmem:[%s12663_s15 + $0xa8] sm:$0x1] }
 0x3ff   : > { %v12339_v63 = vpop.f32.mrf.mxu0  ;;  %v12305_v61 = vpop.f32.mrf.mxu1 }
 0x400   : > { %v17294_v62 = vadd.f32 %v8524_v46, %v8123_v19  ;;  %v8128_v3 = vadd.f32 %v12305_v61, %v17129_v52 }
 0x401   : > { %v8537_v12 = vpop.f32.mrf.mxu0  ;;  %v8047_v11 = vpop.f32.mrf.mxu1 }
 0x402   : > { %v17298_v50 = vadd.f32 %v12339_v63, %v8128_v3  ;;  %v8126_v30 = vadd.f32 %v8047_v11, %v17132_v59  ;;  %v9342_v59 = vsel %vm17046_vm0, 0, %v10860_v45 }
 0x403   : > { %v12340_v44 = vpop.f32.mrf.mxu0  ;;  %v12306_v22 = vpop.f32.mrf.mxu1  ;;  %10861 = vst [vmem:[%s12663_s15 + $0xa8] sm:$0x1] %v9342_v59 }
 0x404   : > { %v17301_v38 = vadd.f32 %v8537_v12, %v8126_v30  ;;  %v8129_v57 = vadd.f32 %v12306_v22, %v17136_v14  ;;  %v10858_v12 = vld [vmem:[%s12663_s15 + $0x9c] sm:$0x1]  ;;  %v10892_v22 = vld [vmem:[%s12663_s15 + $0xb0] sm:$0x1] }
 0x405   : > { %v8540_v60 = vpop.f32.mrf.mxu0  ;;  %v8050_v41 = vpop.f32.mrf.mxu1  ;;  %v9339_v3 = vsel %vm17046_vm0, 0, %v10858_v12 }
 0x406   : > { %v17304_v56 = vadd.f32 %v12340_v44, %v8129_v57  ;;  %v8127_v52 = vadd.f32 %v8050_v41, %v17143_v40  ;;  %10859 = vst [vmem:[%s12663_s15 + $0x9c] sm:$0x1] %v9339_v3  ;;  %v9392_v41 = vsel %vm17071_vm2, 0, %v10892_v22 }
 0x407   : > { %v12343_v46 = vpop.f32.mrf.mxu0  ;;  %v12309_v63 = vpop.f32.mrf.mxu1  ;;  %10893 = vst [vmem:[%s12663_s15 + $0xb0] sm:$0x1] %v9392_v41 }
 0x408   : > { %v17310_v19 = vadd.f32 %v8540_v60, %v8127_v52  ;;  %v8132_v28 = vadd.f32 %v12309_v63, %v17149_v47  ;;  %v10890_v52 = vld [vmem:[%s12663_s15 + $0xa4] sm:$0x1] }
 0x409   : > { %v8553_v20 = vpop.f32.mrf.mxu0  ;;  %v8063_v14 = vpop.f32.mrf.mxu1 }
 0x40a   : > { %v17315_v2 = vadd.f32 %v12343_v46, %v8132_v28  ;;  %v8130_v40 = vadd.f32 %v8063_v14, %v17155_v35 }
 0x40b   : > { %v12344_v61 = vpop.f32.mrf.mxu0  ;;  %v12310_v11 = vpop.f32.mrf.mxu1 }
 0x40c   : > { %v17321_v30 = vadd.f32 %v8553_v20, %v8130_v40  ;;  %v8133_v47 = vadd.f32 %v12310_v11, %v17160_v58  ;;  %v9389_v20 = vsel %vm17071_vm2, 0, %v10890_v52 }
 0x40d   : > { %v8556_v44 = vpop.f32.mrf.mxu0  ;;  %v8066_v60 = vpop.f32.mrf.mxu1  ;;  %10891 = vst [vmem:[%s12663_s15 + $0xa4] sm:$0x1] %v9389_v20  ;;  %v8112_v20 = vadd.f32 %v17204_v0, %v17029_v32 }
 0x40e   : > { %v17327_v46 = vadd.f32 %v12344_v61, %v8133_v47  ;;  %v8131_v35 = vadd.f32 %v8066_v60, %v17166_v34  ;;  %v10864_v47 = vld [vmem:[%s12663_s15 + $0xc0] sm:$0x1] }
 0x40f   : > { %v12347_v57 = vpop.f32.mrf.mxu0  ;;  %v12313_v45 = vpop.f32.mrf.mxu1 }
 0x410   : > { %v17334_v59 = vadd.f32 %v8556_v44, %v8131_v35  ;;  %v8136_v58 = vadd.f32 %v12313_v45, %v17172_v54  ;;  %v9348_v54 = vsel %vm17046_vm0, 0, %v10864_v47  ;;  %v8602_v47 = vadd.f32 %v17199_v8, %v8112_v20 }
 0x411   : > { %v8569_v63 = vpop.f32.mrf.mxu0  ;;  %v8079_v28 = vpop.f32.mrf.mxu1  ;;  %10865 = vst [vmem:[%s12663_s15 + $0xc0] sm:$0x1] %v9348_v54 }
 0x412   : > { %v17338_v61 = vadd.f32 %v12347_v57, %v8136_v58  ;;  %v8134_v34 = vadd.f32 %v8079_v28, %v17176_v42 }
 0x413   : > { %v12348_v14 = vpop.f32.mrf.mxu0  ;;  %v12314_v12 = vpop.f32.mrf.mxu1 }
 0x414   : > { %v17341_v3 = vadd.f32 %v8569_v63, %v8134_v34  ;;  %v8137_v11 = vadd.f32 %v12314_v12, %v17179_v23  ;;  %v10862_v63 = vld [vmem:[%s12663_s15 + $0xb4] sm:$0x1]  ;;  %v10896_v12 = vld [vmem:[%s12663_s15 + $0xc8] sm:$0x1] }
 0x415   : > { %v8572_v40 = vpop.f32.mrf.mxu0  ;;  %v8082_v44 = vpop.f32.mrf.mxu1  ;;  %v9398_v32 = vsel %vm17071_vm2, 0, %v10896_v12 }
 0x416   : > { %v17347_v60 = vadd.f32 %v12348_v14, %v8137_v11  ;;  %v8135_v57 = vadd.f32 %v8082_v44, %v17185_v15  ;;  %v9345_v15 = vsel %vm17046_vm0, 0, %v10862_v63  ;;  %10897 = vst [vmem:[%s12663_s15 + $0xc8] sm:$0x1] %v9398_v32  ;;  %v8113_v44 = vadd.f32 %v17221_v24, %v17035_v21  ;;  %v17387_v21 = vld [vmem:[%s17805_s3] ss:$0 sm:$0xff] }
 0x417   : > { %v12351_v22 = vpop.f32.mrf.mxu0  ;;  %v12317_v42 = vpop.f32.mrf.mxu1  ;;  %10863 = vst [vmem:[%s12663_s15 + $0xb4] sm:$0x1] %v9345_v15  ;;  %v8116_v63 = vadd.f32 %v17231_v18, %v17041_v17 }
 0x418   : > { %v17351_v35 = vadd.f32 %v8572_v40, %v8135_v57  ;;  %v8140_v52 = vadd.f32 %v12317_v42, %v17189_v9  ;;  %v8110_v9 = vadd.f32 %v17213_v51, %v17032_v27 }
 0x419   : > { %v8585_v41 = vpop.f32.mrf.mxu0  ;;  %v8095_v23 = vpop.f32.mrf.mxu1  ;;  %v8606_v18 = vadd.f32 %v17228_v37, %v8116_v63 }
 0x41a   : > { %v17357_v58 = vadd.f32 %v12351_v22, %v8140_v52  ;;  %v8138_v28 = vadd.f32 %v8095_v23, %v17195_v31  ;;  %v8111_v52 = vadd.f32 %v17226_v49, %v17038_v1  ;;  %v8603_v23 = vadd.f32 %v17215_v33, %v8113_v44  ;;  %v17400_v33 = vld [vmem:[%s17806_s4] ss:$0 sm:$0xff] }
 0x41b   : > { %v12352_v45 = vpop.f32.mrf.mxu0  ;;  %v12318_v14 = vpop.f32.mrf.mxu1 }
 0x41c   : > { %v17366_v40 = vadd.f32 %v8585_v41, %v8138_v28  ;;  %v8141_v11 = vadd.f32 %v12318_v14, %v17201_v29  ;;  %v8600_v29 = vadd.f32 %v17206_v16, %v8110_v9  ;;  %v10894_v41 = vld [vmem:[%s12663_s15 + $0xbc] sm:$0x1]  ;;  %v8601_v14 = vadd.f32 %v17223_v39, %v8111_v52  ;;  %v17407_v39 = vld [vmem:[%s17807_s5] ss:$0 sm:$0xff] }
 0x41d   : > { %v8588_v34 = vpop.f32.mrf.mxu0  ;;  %v8098_v0 = vpop.f32.mrf.mxu1 }
 0x41e   : > { %v17375_v22 = vadd.f32 %v12352_v45, %v8141_v11  ;;  %v8139_v27 = vadd.f32 %v8098_v0, %v17209_v43  ;;  %v9395_v43 = vsel %vm17071_vm2, 0, %v10894_v41 }
 0x41f   : > { %v12391_v31 = vpop.f32.mrf.mxu0  ;;  %v12357_v51 = vpop.f32.mrf.mxu1  ;;  %10895 = vst [vmem:[%s12663_s15 + $0xbc] sm:$0x1] %v9395_v43 }
 0x420   : > { %v17379_v57 = vadd.f32 %v8588_v34, %v8139_v27  ;;  %v8816_v42 = vadd.f32 %v12357_v51, %v8602_v47 }
 0x421   : > { %v8901_v54 = vpop.f32.mrf.mxu0  ;;  %v8687_v8 = vpop.f32.mrf.mxu1 }
 0x422   : > { %v9030_v16 = vadd.f32 %v12391_v31, %v8816_v42  ;;  %v8814_v45 = vadd.f32 %v8687_v8, %v8600_v29 }
 0x423   : > { %v12392_v24 = vpop.f32.mrf.mxu0  ;;  %v12358_v20 = vpop.f32.mrf.mxu1 }
 0x424   : > { %v9069_v49 = vadd.f32 %v17387_v21, %v9030_v16  ;;  %v9028_v28 = vadd.f32 %v8901_v54, %v8814_v45  ;;  %v8817_v15 = vadd.f32 %v12358_v20, %v8603_v23 }
 0x425   : > { %v8904_v1 = vpop.f32.mrf.mxu0  ;;  %v8690_v34 = vpop.f32.mrf.mxu1 }
 0x426   : > { %vm9101_vm3 = vcmp.gt.f32.partialorder %v9069_v49, 0.0  ;;  %v9133_v55 = vmul.f32 0.01, %v9069_v49  ;;  %v9067_v9 = vadd.f32 %v17387_v21, %v9028_v28  ;;  %v9031_v17 = vadd.f32 %v12392_v24, %v8817_v15 }
 0x427   : > { %v12395_v12 = vpop.f32.mrf.mxu0  ;;  %v8815_v11 = vadd.f32 %v8690_v34, %v8601_v14  ;;  %v12361_v32 = vpop.f32.mrf.mxu1 }
 0x428   : > { %v9165_v31 = vsel %vm9101_vm3, %v9069_v49, %v9133_v55  ;;  %vm9099_vm4 = vcmp.gt.f32.partialorder %v9067_v9, 0.0  ;;  %v9131_v47 = vmul.f32 0.01, %v9067_v9  ;;  %v9070_v44 = vadd.f32 %v17387_v21, %v9031_v17 }
 0x429   : > { %v8917_v0 = vpop.f32.mrf.mxu0  ;;  %v9204_v27 = vmul.f32 %v17400_v33, %v9165_v31  ;;  %v9029_v51 = vadd.f32 %v8904_v1, %v8815_v11  ;;  %v8820_v54 = vadd.f32 %v12361_v32, %v8606_v18  ;;  %v8703_v29 = vpop.f32.mrf.mxu1 }
 0x42a   : > { %v9163_v42 = vsel %vm9099_vm4, %v9067_v9, %v9131_v47  ;;  %vm9102_vm5 = vcmp.gt.f32.partialorder %v9070_v44, 0.0  ;;  %v9134_v37 = vmul.f32 0.01, %v9070_v44  ;;  %v8818_v41 = vadd.f32 %v8703_v29, %v17240_v10  ;;  %v10935_v29 = vld [vmem:[%s12663_s15 + $0x18] sm:$0xf] }
 0x42b   : > { %v9243_v52 = vadd.f32 %v17407_v39, %v9204_v27  ;;  %v9202_v8 = vmul.f32 %v17400_v33, %v9163_v42  ;;  %v9068_v24 = vadd.f32 %v17387_v21, %v9029_v51  ;;  %v9034_v43 = vadd.f32 %v12395_v12, %v8820_v54  ;;  %v12362_v23 = vpop.f32.mrf.mxu1  ;;  %v12396_v16 = vpop.f32.mrf.mxu0 }
 0x42c   : > { %v9166_v45 = vsel %vm9102_vm5, %v9070_v44, %v9134_v37  ;;  %v9032_v63 = vadd.f32 %v8917_v0, %v8818_v41  ;;  %v8821_v20 = vadd.f32 %v12362_v23, %v17247_v53 }
 0x42d   : > { %v11014_v1 = vpack.c.bf16 %v9243_v52, %v9243_v52  ;;  %v9241_v49 = vadd.f32 %v17407_v39, %v9202_v8  ;;  %v9205_v28 = vmul.f32 %v17400_v33, %v9166_v45  ;;  %vm9100_vm7 = vcmp.gt.f32.partialorder %v9068_v24, 0.0  ;;  %v17418_v10 = vpop.f32.mrf.mxu1  ;;  %v8920_v18 = vpop.f32.mrf.mxu0  ;;  %v10930_v45 = vld [vmem:[%s12663_s15 + $0xc] sm:$0xf] }
 0x42e   : > { %v9132_v15 = vmul.f32 0.01, %v9068_v24  ;;  %v9073_v14 = vadd.f32 %v17387_v21, %v9034_v43  ;;  %v9071_v34 = vadd.f32 %v17387_v21, %v9032_v63  ;;  %v9035_v12 = vadd.f32 %v12396_v16, %v8821_v20 }
 0x42f   : > { %v9500_v55 = vshrl.u32 %v11014_v1, 16  ;;  %v9503_v9 = vshll.u32 %v11014_v1, 16  ;;  %v11012_v17 = vpack.c.bf16 %v9241_v49, %v9241_v49  ;;  %v9244_v53 = vadd.f32 %v17407_v39, %v9205_v28  ;;  %v12365_v11 = vpop.f32.mrf.mxu1  ;;  %v12399_v16 = vpop.f32.mrf.mxu0 }
 0x430   : > { %v9164_v32 = vsel %vm9100_vm7, %v9068_v24, %v9132_v15  ;;  %vm9105_vm8 = vcmp.gt.f32.partialorder %v9073_v14, 0.0  ;;  %v9137_v0 = vmul.f32 0.01, %v9073_v14  ;;  %vm9103_vm9 = vcmp.gt.f32.partialorder %v9071_v34, 0.0 }
 0x431   : > { %v9502_v31 = vrot.slane %v9500_v55, 7  ;;  %v9483_v47 = vshrl.u32 %v11012_v17, 16  ;;  %v9486_v44 = vshll.u32 %v11012_v17, 16  ;;  %v11015_v27 = vpack.c.bf16 %v9244_v53, %v9244_v53  ;;  %v8719_v51 = vpop.f32.mrf.mxu1  ;;  %v10938_v17 = vld [vmem:[%s12663_s15 + $0x20] sm:$0x1] }
 0x432   : > { %v9203_v42 = vmul.f32 %v17400_v33, %v9164_v32  ;;  %v9169_v37 = vsel %vm9105_vm8, %v9073_v14, %v9137_v0  ;;  %v9135_v41 = vmul.f32 0.01, %v9071_v34  ;;  %v9074_v52 = vadd.f32 %v17387_v21, %v9035_v12 }
 0x433   : > { %v9505_v8 = vor.u32 %v9503_v9, %v9502_v31  ;;  %v9506_v24 = vrot.slane %v9502_v31, 4  ;;  %v9485_v43 = vrot.slane %v9483_v47, 7  ;;  %v9508_v23 = vshrl.u32 %v11015_v27, 16  ;;  %v17436_v28 = vpop.f32.mrf.mxu1 }
 0x434   : > { %v9511_v63 = vshll.u32 %v11015_v27, 16  ;;  %v9242_v20 = vadd.f32 %v17407_v39, %v9203_v42  ;;  %v9208_v1 = vmul.f32 %v17400_v33, %v9169_v37  ;;  %v9167_v49 = vsel %vm9103_vm9, %v9071_v34, %v9135_v41  ;;  %v8933_v27 = vpop.f32.mrf.mxu0 }
 0x435   : > { %v9812_v15 = vsel %vm17425_vm10, %v9505_v8, %v10935_v29  ;;  %v9488_v14 = vor.u32 %v9486_v44, %v9485_v43  ;;  %v9489_v12 = vrot.slane %v9485_v43, 4  ;;  %v9510_v55 = vrot.slane %v9508_v23, 7  ;;  %v17454_v8 = vpop.f32.mrf.mxu1 }
 0x436   : > { %10936 = vst [vmem:[%s12663_s15 + $0x18] sm:$0xf] %v9812_v15  ;;  %v11013_v53 = vpack.c.bf16 %v9242_v20, %v9242_v20  ;;  %v9247_v34 = vadd.f32 %v17407_v39, %v9208_v1  ;;  %v9206_v32 = vmul.f32 %v17400_v33, %v9167_v49  ;;  %vm9106_vm12 = vcmp.gt.f32.partialorder %v9074_v52, 0.0 }
 0x437   : > { %v9805_v0 = vsel %vm17425_vm10, %v9488_v14, %v10930_v45  ;;  %v9513_v31 = vor.u32 %v9511_v63, %v9510_v55  ;;  %v9515_v47 = vrot.slane %v9510_v55, 4  ;;  %v9138_v44 = vmul.f32 0.01, %v9074_v52  ;;  %v10933_v14 = vld [vmem:[%s12663_s15 + $0x14] sm:$0x1] }
 0x438   : > { %10931 = vst [vmem:[%s12663_s15 + $0xc] sm:$0xf] %v9805_v0  ;;  %v9491_v29 = vshrl.u32 %v11013_v53, 16  ;;  %v9494_v42 = vshll.u32 %v11013_v53, 16  ;;  %v11018_v37 = vpack.c.bf16 %v9247_v34, %v9247_v34  ;;  %v9245_v41 = vadd.f32 %v17407_v39, %v9206_v32  ;;  %v12369_v0 = vpop.f32.mrf.mxu1 }
 0x439   : > { %v9514_v43 = vsel %vm17443_vm11, %v9506_v24, %v9513_v31  ;;  %v9816_v23 = vsel %vm17046_vm0, %v9515_v47, %v10938_v17  ;;  %v9170_v45 = vsel %vm9106_vm12, %v9074_v52, %v9138_v44  ;;  %v8819_v63 = vadd.f32 %v17418_v10, %v17252_v26  ;;  %v12400_v52 = vpop.f32.mrf.mxu0  ;;  %v10945_v31 = vld [vmem:[%s12663_s15 + $0x30] sm:$0xf] }
 0x43a   : > { %10937 = vst.msk [vmem:[%s12663_s15 + $0x1c] sm:$0xf] %vm9289_vm15, %v9514_v43  ;;  %10939 = vst [vmem:[%s12663_s15 + $0x20] sm:$0x1] %v9816_v23  ;;  %v9493_v20 = vrot.slane %v9491_v29, 7  ;;  %v9534_v1 = vshrl.u32 %v11018_v37, 16  ;;  %v11016_v15 = vpack.c.bf16 %v9245_v41, %v9245_v41  ;;  %v9209_v55 = vmul.f32 %v17400_v33, %v9170_v45 }
 0x43b   : > { %v9537_v49 = vshll.u32 %v11018_v37, 16  ;;  %v9033_v53 = vadd.f32 %v8920_v18, %v8819_v63  ;;  %v8824_v24 = vadd.f32 %v12365_v11, %v17258_v6  ;;  %v8822_v17 = vadd.f32 %v8719_v51, %v17261_v13  ;;  %v8936_v43 = vpop.f32.mrf.mxu0  ;;  %v10940_v23 = vld [vmem:[%s12663_s15 + $0x24] sm:$0xf] }
 0x43c   : > { %v9496_v26 = vor.u32 %v9494_v42, %v9493_v20  ;;  %v9498_v10 = vrot.slane %v9493_v20, 4  ;;  %v9536_v34 = vrot.slane %v9534_v1, 7  ;;  %v9517_v32 = vshrl.u32 %v11016_v15, 16  ;;  %v8735_v20 = vpop.f32.mrf.mxu1 }
 0x43d   : > { %v9520_v47 = vshll.u32 %v11016_v15, 16  ;;  %v9248_v44 = vadd.f32 %v17407_v39, %v9209_v55  ;;  %v9072_v29 = vadd.f32 %v17387_v21, %v9033_v53  ;;  %v9038_v18 = vadd.f32 %v12399_v16, %v8824_v24 }
 0x43e   : > { %v9497_v6 = vsel %vm17443_vm11, %v9489_v12, %v9496_v26  ;;  %v9809_v13 = vsel %vm17046_vm0, %v9498_v10, %v10933_v14  ;;  %v9539_v11 = vor.u32 %v9537_v49, %v9536_v34  ;;  %v9540_v51 = vrot.slane %v9536_v34, 4  ;;  %v12403_v26 = vpop.f32.mrf.mxu0  ;;  %v10948_v10 = vld [vmem:[%s12663_s15 + $0x38] sm:$0x1] }
 0x43f   : > { %10932 = vst.msk [vmem:[%s12663_s15 + $0x10] sm:$0xf] %vm9289_vm15, %v9497_v6  ;;  %10934 = vst [vmem:[%s12663_s15 + $0x14] sm:$0x1] %v9809_v13  ;;  %v17479_v42 = vrot.slane %v9517_v32, 7  ;;  %v11019_v37 = vpack.c.bf16 %v9248_v44, %v9248_v44  ;;  %vm9104_vm13 = vcmp.gt.f32.partialorder %v9072_v29, 0.0  ;;  %v9077_v12 = vadd.f32 %v17387_v21, %v9038_v18 }
 0x440   : > { %v9136_v41 = vmul.f32 0.01, %v9072_v29  ;;  %v9826_v16 = vsel %vm17425_vm10, %v9539_v11, %v10945_v31  ;;  %v9036_v45 = vadd.f32 %v8933_v27, %v8822_v17  ;;  %v8825_v63 = vadd.f32 %v17436_v28, %v17264_v7 }
 0x441   : > { %10946 = vst [vmem:[%s12663_s15 + $0x30] sm:$0xf] %v9826_v16  ;;  %v9522_v1 = vor.u32 %v9520_v47, %v17479_v42  ;;  %v9523_v49 = vrot.slane %v17479_v42, 4  ;;  %v9542_v15 = vshrl.u32 %v11019_v37, 16  ;;  %v9545_v14 = vshll.u32 %v11019_v37, 16  ;;  %v17498_v47 = vpop.f32.mrf.mxu1 }
 0x442   : > { %v9168_v55 = vsel %vm9104_vm13, %v9072_v29, %v9136_v41  ;;  %vm9109_vm14 = vcmp.gt.f32.partialorder %v9077_v12, 0.0  ;;  %v9141_v53 = vmul.f32 0.01, %v9077_v12  ;;  %v9075_v24 = vadd.f32 %v17387_v21, %v9036_v45 }
 0x443   : > { %v9819_v27 = vsel %vm17425_vm10, %v9522_v1, %v10940_v23  ;;  %v9544_v17 = vrot.slane %v9542_v15, 7  ;;  %v9207_v7 = vmul.f32 %v17400_v33, %v9168_v55  ;;  %v9039_v28 = vadd.f32 %v12400_v52, %v8825_v63  ;;  %v8949_v23 = vpop.f32.mrf.mxu0 }
 0x444   : > { %10941 = vst [vmem:[%s12663_s15 + $0x24] sm:$0xf] %v9819_v27  ;;  %v9173_v34 = vsel %vm9109_vm14, %v9077_v12, %v9141_v53  ;;  %vm9107_vm1 = vcmp.gt.f32.partialorder %v9075_v24, 0.0  ;;  %v9139_v32 = vmul.f32 0.01, %v9075_v24  ;;  %v8823_v31 = vadd.f32 %v17454_v8, %v17267_v4 }
 0x445   : > { %v9547_v44 = vor.u32 %v9545_v14, %v9544_v17  ;;  %v9549_v29 = vrot.slane %v9544_v17, 4  ;;  %v9246_v18 = vadd.f32 %v17407_v39, %v9207_v7  ;;  %v9212_v6 = vmul.f32 %v17400_v33, %v9173_v34  ;;  %v12404_v7 = vpop.f32.mrf.mxu0 }
 0x446   : > { %v9171_v52 = vsel %vm9107_vm1, %v9075_v24, %v9139_v32  ;;  %v9078_v13 = vadd.f32 %v17387_v21, %v9039_v28  ;;  %v9037_v11 = vadd.f32 %v8936_v43, %v8823_v31  ;;  %v8828_v37 = vadd.f32 %v12369_v0, %v17273_v25  ;;  %v8738_v0 = vpop.f32.mrf.mxu1  ;;  %v10943_v28 = vld [vmem:[%s12663_s15 + $0x2c] sm:$0x1] }
 0x447   : > { %v9548_v41 = vsel %vm17443_vm11, %v9540_v51, %v9547_v44  ;;  %v9830_v4 = vsel %vm17046_vm0, %v9549_v29, %v10948_v10  ;;  %v11017_v8 = vpack.c.bf16 %v9246_v18, %v9246_v18  ;;  %v9251_v16 = vadd.f32 %v17407_v39, %v9212_v6 }
 0x448   : > { %10947 = vst.msk [vmem:[%s12663_s15 + $0x34] sm:$0xf] %vm9289_vm15, %v9548_v41  ;;  %10949 = vst [vmem:[%s12663_s15 + $0x38] sm:$0x1] %v9830_v4  ;;  %v9210_v12 = vmul.f32 %v17400_v33, %v9171_v52  ;;  %vm9110_vm2 = vcmp.gt.f32.partialorder %v9078_v13, 0.0  ;;  %v9076_v25 = vadd.f32 %v17387_v21, %v9037_v11  ;;  %v9042_v1 = vadd.f32 %v12403_v26, %v8828_v37  ;;  %v12373_v26 = vpop.f32.mrf.mxu1 }
 0x449   : > { %v9142_v45 = vmul.f32 0.01, %v9078_v13  ;;  %v9525_v43 = vshrl.u32 %v11017_v8, 16  ;;  %v9528_v51 = vshll.u32 %v11017_v8, 16  ;;  %v11022_v63 = vpack.c.bf16 %v9251_v16, %v9251_v16  ;;  %v10955_v52 = vld [vmem:[%s12663_s15 + $0x48] sm:$0xf]  ;;  %v8952_v8 = vpop.f32.mrf.mxu0 }
 0x44a   : > { %v9249_v15 = vadd.f32 %v17407_v39, %v9210_v12  ;;  %vm9108_vm3 = vcmp.gt.f32.partialorder %v9076_v25, 0.0  ;;  %v9140_v55 = vmul.f32 0.01, %v9076_v25  ;;  %v9081_v32 = vadd.f32 %v17387_v21, %v9042_v1 }
 0x44b   : > { %v9174_v14 = vsel %vm9110_vm2, %v9078_v13, %v9142_v45  ;;  %v9527_v53 = vrot.slane %v9525_v43, 7  ;;  %v9568_v24 = vshrl.u32 %v11022_v63, 16  ;;  %v9571_v27 = vshll.u32 %v11022_v63, 16  ;;  %v17532_v43 = vpop.f32.mrf.mxu1 }
 0x44c   : > { %v9213_v17 = vmul.f32 %v17400_v33, %v9174_v14  ;;  %v11020_v10 = vpack.c.bf16 %v9249_v15, %v9249_v15  ;;  %v9172_v34 = vsel %vm9108_vm3, %v9076_v25, %v9140_v55  ;;  %v8826_v31 = vadd.f32 %v8735_v20, %v17280_v5 }
 0x44d   : > { %v9530_v44 = vor.u32 %v9528_v51, %v9527_v53  ;;  %v9532_v29 = vrot.slane %v9527_v53, 4  ;;  %v9570_v18 = vrot.slane %v9568_v24, 7  ;;  %v9211_v37 = vmul.f32 %v17400_v33, %v9172_v34 }
 0x44e   : > { %v9252_v6 = vadd.f32 %v17407_v39, %v9213_v17  ;;  %v9551_v13 = vshrl.u32 %v11020_v10, 16  ;;  %v9554_v11 = vshll.u32 %v11020_v10, 16  ;;  %vm9113_vm4 = vcmp.gt.f32.partialorder %v9081_v32, 0.0  ;;  %v12407_v10 = vpop.f32.mrf.mxu0 }
 0x44f   : > { %v9531_v5 = vsel %vm17443_vm11, %v9523_v49, %v9530_v44  ;;  %v9823_v20 = vsel %vm17046_vm0, %v9532_v29, %v10943_v28  ;;  %v9573_v41 = vor.u32 %v9571_v27, %v9570_v18  ;;  %v9574_v4 = vrot.slane %v9570_v18, 4  ;;  %v10950_v49 = vld [vmem:[%s12663_s15 + $0x3c] sm:$0xf] }
 0x450   : > { %10942 = vst.msk [vmem:[%s12663_s15 + $0x28] sm:$0xf] %vm9289_vm15, %v9531_v5  ;;  %10944 = vst [vmem:[%s12663_s15 + $0x2c] sm:$0x1] %v9823_v20  ;;  %v9553_v16 = vrot.slane %v9551_v13, 7  ;;  %v11023_v12 = vpack.c.bf16 %v9252_v6, %v9252_v6  ;;  %v9250_v45 = vadd.f32 %v17407_v39, %v9211_v37  ;;  %v9040_v51 = vadd.f32 %v8949_v23, %v8826_v31  ;;  %v8965_v5 = vpop.f32.mrf.mxu0 }
 0x451   : > { %v9145_v25 = vmul.f32 0.01, %v9081_v32  ;;  %v9840_v42 = vsel %vm17425_vm10, %v9573_v41, %v10955_v52  ;;  %v8829_v63 = vadd.f32 %v17498_v47, %v17287_v48  ;;  %v8827_v1 = vadd.f32 %v8738_v0, %v17294_v62  ;;  %v10958_v48 = vld [vmem:[%s12663_s15 + $0x50] sm:$0x1]  ;;  %v12374_v0 = vpop.f32.mrf.mxu1 }
 0x452   : > { %10956 = vst [vmem:[%s12663_s15 + $0x48] sm:$0xf] %v9840_v42  ;;  %v9556_v15 = vor.u32 %v9554_v11, %v9553_v16  ;;  %v9557_v14 = vrot.slane %v9553_v16, 4  ;;  %v9576_v55 = vshrl.u32 %v11023_v12, 16  ;;  %v9579_v53 = vshll.u32 %v11023_v12, 16 }
 0x453   : > { %v11021_v24 = vpack.c.bf16 %v9250_v45, %v9250_v45  ;;  %v9177_v27 = vsel %vm9113_vm4, %v9081_v32, %v9145_v25  ;;  %v9079_v17 = vadd.f32 %v17387_v21, %v9040_v51  ;;  %v9043_v28 = vadd.f32 %v12404_v7, %v8829_v63  ;;  %v8754_v45 = vpop.f32.mrf.mxu1 }
 0x454   : > { %v9833_v23 = vsel %vm17425_vm10, %v9556_v15, %v10950_v49  ;;  %v9578_v34 = vrot.slane %v9576_v55, 7  ;;  %v9216_v62 = vmul.f32 %v17400_v33, %v9177_v27  ;;  %v9041_v47 = vadd.f32 %v8952_v8, %v8827_v1  ;;  %v10953_v8 = vld [vmem:[%s12663_s15 + $0x44] sm:$0x1]  ;;  %v12408_v55 = vpop.f32.mrf.mxu0 }
 0x455   : > { %10951 = vst [vmem:[%s12663_s15 + $0x3c] sm:$0xf] %v9833_v23  ;;  %v9559_v31 = vshrl.u32 %v11021_v24, 16  ;;  %v9562_v44 = vshll.u32 %v11021_v24, 16  ;;  %vm9111_vm5 = vcmp.gt.f32.partialorder %v9079_v17, 0.0  ;;  %v9082_v6 = vadd.f32 %v17387_v21, %v9043_v28  ;;  %v17572_v28 = vpop.f32.mrf.mxu1 }
 0x456   : > { %v9143_v29 = vmul.f32 0.01, %v9079_v17  ;;  %v9581_v32 = vor.u32 %v9579_v53, %v9578_v34  ;;  %v9583_v7 = vrot.slane %v9578_v34, 4  ;;  %v9255_v18 = vadd.f32 %v17407_v39, %v9216_v62  ;;  %v10965_v23 = vld [vmem:[%s12663_s15 + $0x60] sm:$0xf] }
 0x457   : > { %v9561_v52 = vrot.slane %v9559_v31, 7  ;;  %v9080_v11 = vadd.f32 %v17387_v21, %v9041_v47  ;;  %v8832_v37 = vadd.f32 %v12373_v26, %v17298_v50  ;;  %vm9114_vm6 = vcmp.gt.f32.partialorder %v9082_v6, 0.0 }
 0x458   : > { %v9175_v13 = vsel %vm9111_vm5, %v9079_v17, %v9143_v29  ;;  %v9582_v20 = vsel %vm17443_vm11, %v9574_v4, %v9581_v32  ;;  %v9844_v41 = vsel %vm17046_vm0, %v9583_v7, %v10958_v48  ;;  %v11026_v16 = vpack.c.bf16 %v9255_v18, %v9255_v18 }
 0x459   : > { %v9214_v12 = vmul.f32 %v17400_v33, %v9175_v13  ;;  %10957 = vst.msk [vmem:[%s12663_s15 + $0x4c] sm:$0xf] %vm9289_vm15, %v9582_v20  ;;  %10959 = vst [vmem:[%s12663_s15 + $0x50] sm:$0x1] %v9844_v41  ;;  %v9564_v25 = vor.u32 %v9562_v44, %v9561_v52  ;;  %v9566_v42 = vrot.slane %v9561_v52, 4  ;;  %vm9112_vm7 = vcmp.gt.f32.partialorder %v9080_v11, 0.0 }
 0x45a   : > { %v9146_v50 = vmul.f32 0.01, %v9082_v6  ;;  %v9602_v26 = vshrl.u32 %v11026_v16, 16  ;;  %v9605_v4 = vshll.u32 %v11026_v16, 16  ;;  %v9144_v15 = vmul.f32 0.01, %v9080_v11 }
 0x45b   : > { %v9253_v49 = vadd.f32 %v17407_v39, %v9214_v12  ;;  %v9565_v51 = vsel %vm17443_vm11, %v9557_v14, %v9564_v25  ;;  %v9837_v63 = vsel %vm17046_vm0, %v9566_v42, %v10953_v8  ;;  %v9046_v17 = vadd.f32 %v12407_v10, %v8832_v37  ;;  %v10960_v52 = vld [vmem:[%s12663_s15 + $0x54] sm:$0xf] }
 0x45c   : > { %v9178_v1 = vsel %vm9114_vm6, %v9082_v6, %v9146_v50  ;;  %10952 = vst.msk [vmem:[%s12663_s15 + $0x40] sm:$0xf] %vm9289_vm15, %v9565_v51  ;;  %10954 = vst [vmem:[%s12663_s15 + $0x44] sm:$0x1] %v9837_v63  ;;  %v17569_v53 = vrot.slane %v9602_v26, 7  ;;  %v9176_v34 = vsel %vm9112_vm7, %v9080_v11, %v9144_v15  ;;  %v8830_v14 = vadd.f32 %v17532_v43, %v17301_v38  ;;  %v8968_v38 = vpop.f32.mrf.mxu0  ;;  %v17586_v6 = vpop.f32.mrf.mxu1 }
 0x45d   : > { %v11024_v24 = vpack.c.bf16 %v9253_v49, %v9253_v49  ;;  %v9217_v27 = vmul.f32 %v17400_v33, %v9178_v1  ;;  %v8833_v48 = vadd.f32 %v12374_v0, %v17304_v56  ;;  %v8831_v62 = vadd.f32 %v8754_v45, %v17310_v19  ;;  %v10968_v15 = vld [vmem:[%s12663_s15 + $0x68] sm:$0x1] }
 0x45e   : > { %v9607_v47 = vor.u32 %v9605_v4, %v17569_v53  ;;  %v9608_v31 = vrot.slane %v17569_v53, 4  ;;  %v9215_v32 = vmul.f32 %v17400_v33, %v9176_v34  ;;  %v9085_v7 = vadd.f32 %v17387_v21, %v9046_v17  ;;  %v12411_v42 = vpop.f32.mrf.mxu0  ;;  %v12378_v49 = vpop.f32.mrf.mxu1 }
 0x45f   : > { %v9585_v44 = vshrl.u32 %v11024_v24, 16  ;;  %v9588_v29 = vshll.u32 %v11024_v24, 16  ;;  %v9256_v10 = vadd.f32 %v17407_v39, %v9217_v27  ;;  %v9044_v18 = vadd.f32 %v8965_v5, %v8830_v14 }
 0x460   : > { %v9854_v56 = vsel %vm17425_vm10, %v9607_v47, %v10965_v23  ;;  %v9047_v19 = vadd.f32 %v12408_v55, %v8833_v48  ;;  %v9045_v0 = vadd.f32 %v8968_v38, %v8831_v62  ;;  %v9254_v11 = vadd.f32 %v17407_v39, %v9215_v32  ;;  %v8981_v48 = vpop.f32.mrf.mxu0  ;;  %v10963_v62 = vld [vmem:[%s12663_s15 + $0x5c] sm:$0x1] }
 0x461   : > { %v9587_v43 = vrot.slane %v9585_v44, 7  ;;  %10966 = vst [vmem:[%s12663_s15 + $0x60] sm:$0xf] %v9854_v56  ;;  %v11027_v13 = vpack.c.bf16 %v9256_v10, %v9256_v10  ;;  %vm9117_vm8 = vcmp.gt.f32.partialorder %v9085_v7, 0.0  ;;  %v9149_v37 = vmul.f32 0.01, %v9085_v7  ;;  %v8770_v10 = vpop.f32.mrf.mxu1 }
 0x462   : > { %v9083_v5 = vadd.f32 %v17387_v21, %v9044_v18  ;;  %v9086_v8 = vadd.f32 %v17387_v21, %v9047_v19  ;;  %v11025_v45 = vpack.c.bf16 %v9254_v11, %v9254_v11  ;;  %v9084_v27 = vadd.f32 %v17387_v21, %v9045_v0 }
 0x463   : > { %v9590_v20 = vor.u32 %v9588_v29, %v9587_v43  ;;  %v9591_v41 = vrot.slane %v9587_v43, 4  ;;  %v9610_v16 = vshrl.u32 %v11027_v13, 16  ;;  %v9613_v12 = vshll.u32 %v11027_v13, 16 }
 0x464   : > { %v9181_v25 = vsel %vm9117_vm8, %v9085_v7, %v9149_v37  ;;  %vm9115_vm9 = vcmp.gt.f32.partialorder %v9083_v5, 0.0  ;;  %v9147_v4 = vmul.f32 0.01, %v9083_v5  ;;  %v9593_v63 = vshrl.u32 %v11025_v45, 16  ;;  %v12412_v37 = vpop.f32.mrf.mxu0 }
 0x465   : > { %v9847_v50 = vsel %vm17425_vm10, %v9590_v20, %v10960_v52  ;;  %v9220_v26 = vmul.f32 %v17400_v33, %v9181_v25  ;;  %v9612_v51 = vrot.slane %v9610_v16, 7  ;;  %v9596_v1 = vshll.u32 %v11025_v45, 16 }
 0x466   : > { %10961 = vst [vmem:[%s12663_s15 + $0x54] sm:$0xf] %v9847_v50  ;;  %vm9118_vm12 = vcmp.gt.f32.partialorder %v9086_v8, 0.0  ;;  %v9179_v53 = vsel %vm9115_vm9, %v9083_v5, %v9147_v4  ;;  %v9150_v24 = vmul.f32 0.01, %v9086_v8  ;;  %v9595_v34 = vrot.slane %v9593_v63, 7 }
 0x467   : > { %v9259_v55 = vadd.f32 %v17407_v39, %v9220_v26  ;;  %v9615_v17 = vor.u32 %v9613_v12, %v9612_v51  ;;  %v9617_v23 = vrot.slane %v9612_v51, 4  ;;  %v9218_v14 = vmul.f32 %v17400_v33, %v9179_v53  ;;  %v17622_v12 = vpop.f32.mrf.mxu1 }
 0x468   : > { %v9182_v44 = vsel %vm9118_vm12, %v9086_v8, %v9150_v24  ;;  %vm9116_vm13 = vcmp.gt.f32.partialorder %v9084_v27, 0.0  ;;  %v9148_v29 = vmul.f32 0.01, %v9084_v27  ;;  %v9598_v18 = vor.u32 %v9596_v1, %v9595_v34 }
 0x469   : > { %v11030_v47 = vpack.c.bf16 %v9259_v55, %v9259_v55  ;;  %v9616_v32 = vsel %vm17443_vm11, %v9608_v31, %v9615_v17  ;;  %v9858_v7 = vsel %vm17046_vm0, %v9617_v23, %v10968_v15  ;;  %v9600_v38 = vrot.slane %v9595_v34, 4  ;;  %v8783_v53 = vpop.f32.mrf.mxu1 }
 0x46a   : > { %10967 = vst.msk [vmem:[%s12663_s15 + $0x64] sm:$0xf] %vm9289_vm15, %v9616_v32  ;;  %10969 = vst [vmem:[%s12663_s15 + $0x68] sm:$0x1] %v9858_v7  ;;  %v9257_v19 = vadd.f32 %v17407_v39, %v9218_v14  ;;  %v9221_v0 = vmul.f32 %v17400_v33, %v9182_v44  ;;  %v9599_v52 = vsel %vm17443_vm11, %v9591_v41, %v9598_v18  ;;  %v10975_v41 = vld [vmem:[%s12663_s15 + $0x78] sm:$0xf] }
 0x46b   : > { %v9636_v56 = vshrl.u32 %v11030_v47, 16  ;;  %v9639_v43 = vshll.u32 %v11030_v47, 16  ;;  %v9851_v31 = vsel %vm17046_vm0, %v9600_v38, %v10963_v62  ;;  %v9180_v13 = vsel %vm9116_vm13, %v9084_v27, %v9148_v29  ;;  %10962 = vst.msk [vmem:[%s12663_s15 + $0x58] sm:$0xf] %vm9289_vm15, %v9599_v52  ;;  %v10978_v32 = vld [vmem:[%s12663_s15 + $0x80] sm:$0x1] }
 0x46c   : > { %v8836_v11 = vadd.f32 %v17572_v28, %v17315_v2  ;;  %10964 = vst [vmem:[%s12663_s15 + $0x5c] sm:$0x1] %v9851_v31  ;;  %v11028_v5 = vpack.c.bf16 %v9257_v19, %v9257_v19  ;;  %v9260_v8 = vadd.f32 %v17407_v39, %v9221_v0  ;;  %v9219_v16 = vmul.f32 %v17400_v33, %v9180_v13  ;;  %v10973_v31 = vld [vmem:[%s12663_s15 + $0x74] sm:$0x1] }
 0x46d   : > { %v9638_v20 = vrot.slane %v9636_v56, 7  ;;  %v8834_v25 = vadd.f32 %v17586_v6, %v17321_v30  ;;  %v8837_v50 = vadd.f32 %v12378_v49, %v17327_v46  ;;  %v8835_v2 = vadd.f32 %v8770_v10, %v17334_v59  ;;  %v10970_v59 = vld [vmem:[%s12663_s15 + $0x6c] sm:$0xf]  ;;  %v12382_v56 = vpop.f32.mrf.mxu1 }
 0x46e   : > { %v9050_v45 = vadd.f32 %v12411_v42, %v8836_v11  ;;  %v9619_v4 = vshrl.u32 %v11028_v5, 16  ;;  %v9622_v51 = vshll.u32 %v11028_v5, 16  ;;  %v11031_v63 = vpack.c.bf16 %v9260_v8, %v9260_v8  ;;  %v8984_v42 = vpop.f32.mrf.mxu0 }
 0x46f   : > { %v9641_v28 = vor.u32 %v9639_v43, %v9638_v20  ;;  %v9642_v26 = vrot.slane %v9638_v20, 4  ;;  %v9258_v1 = vadd.f32 %v17407_v39, %v9219_v16  ;;  %v9048_v55 = vadd.f32 %v8981_v48, %v8834_v25 }
 0x470   : > { %v9089_v15 = vadd.f32 %v17387_v21, %v9050_v45  ;;  %v9621_v6 = vrot.slane %v9619_v4, 7  ;;  %v9051_v46 = vadd.f32 %v12412_v37, %v8837_v50  ;;  %v9049_v49 = vadd.f32 %v8984_v42, %v8835_v2  ;;  %v12415_v38 = vpop.f32.mrf.mxu0  ;;  %v8786_v2 = vpop.f32.mrf.mxu1 }
 0x471   : > { %v9868_v30 = vsel %vm17425_vm10, %v9641_v28, %v10975_v41  ;;  %v9644_v24 = vshrl.u32 %v11031_v63, 16  ;;  %v9647_v27 = vshll.u32 %v11031_v63, 16  ;;  %v11029_v17 = vpack.c.bf16 %v9258_v1, %v9258_v1 }
 0x472   : > { %10976 = vst [vmem:[%s12663_s15 + $0x78] sm:$0xf] %v9868_v30  ;;  %vm9121_vm14 = vcmp.gt.f32.partialorder %v9089_v15, 0.0  ;;  %v9624_v23 = vor.u32 %v9622_v51, %v9621_v6  ;;  %v9625_v34 = vrot.slane %v9621_v6, 4  ;;  %v9153_v14 = vmul.f32 0.01, %v9089_v15  ;;  %v8997_v50 = vpop.f32.mrf.mxu0 }
 0x473   : > { %v9087_v48 = vadd.f32 %v17387_v21, %v9048_v55  ;;  %v9646_v62 = vrot.slane %v9644_v24, 7  ;;  %v9627_v47 = vshrl.u32 %v11029_v17, 16  ;;  %v9630_v44 = vshll.u32 %v11029_v17, 16 }
 0x474   : > { %v9090_v29 = vadd.f32 %v17387_v21, %v9051_v46  ;;  %v9861_v10 = vsel %vm17425_vm10, %v9624_v23, %v10970_v59  ;;  %v9185_v7 = vsel %vm9121_vm14, %v9089_v15, %v9153_v14  ;;  %v9088_v37 = vadd.f32 %v17387_v21, %v9049_v49  ;;  %v12416_v17 = vpop.f32.mrf.mxu0 }
 0x475   : > { %vm9119_vm1 = vcmp.gt.f32.partialorder %v9087_v48, 0.0  ;;  %v9151_v18 = vmul.f32 0.01, %v9087_v48  ;;  %10971 = vst [vmem:[%s12663_s15 + $0x6c] sm:$0xf] %v9861_v10  ;;  %v9649_v43 = vor.u32 %v9647_v27, %v9646_v62  ;;  %v9651_v19 = vrot.slane %v9646_v62, 4 }
 0x476   : > { %v9629_v0 = vrot.slane %v9627_v47, 7  ;;  %v9224_v52 = vmul.f32 %v17400_v33, %v9185_v7  ;;  %vm9122_vm2 = vcmp.gt.f32.partialorder %v9090_v29, 0.0  ;;  %v9154_v11 = vmul.f32 0.01, %v9090_v29  ;;  %v10985_v62 = vld [vmem:[%s12663_s15 + $0x90] sm:$0xf] }
 0x477   : > { %v9183_v13 = vsel %vm9119_vm1, %v9087_v48, %v9151_v18  ;;  %v9650_v20 = vsel %vm17443_vm11, %v9642_v26, %v9649_v43  ;;  %v9872_v5 = vsel %vm17046_vm0, %v9651_v19, %v10978_v32  ;;  %vm9120_vm3 = vcmp.gt.f32.partialorder %v9088_v37, 0.0  ;;  %v10980_v7 = vld [vmem:[%s12663_s15 + $0x84] sm:$0xf] }
 0x478   : > { %v9632_v8 = vor.u32 %v9630_v44, %v9629_v0  ;;  %v9634_v16 = vrot.slane %v9629_v0, 4  ;;  %10977 = vst.msk [vmem:[%s12663_s15 + $0x7c] sm:$0xf] %vm9289_vm15, %v9650_v20  ;;  %10979 = vst [vmem:[%s12663_s15 + $0x80] sm:$0x1] %v9872_v5  ;;  %v9263_v41 = vadd.f32 %v17407_v39, %v9224_v52  ;;  %v9222_v45 = vmul.f32 %v17400_v33, %v9183_v13 }
 0x479   : > { %v9186_v25 = vsel %vm9122_vm2, %v9090_v29, %v9154_v11  ;;  %v9152_v51 = vmul.f32 0.01, %v9088_v37  ;;  %v8840_v15 = vadd.f32 %v17622_v12, %v17338_v61  ;;  %v8838_v55 = vadd.f32 %v8783_v53, %v17341_v3  ;;  %v10988_v13 = vld [vmem:[%s12663_s15 + $0x98] sm:$0x1] }
 0x47a   : > { %v9633_v28 = vsel %vm17443_vm11, %v9625_v34, %v9632_v8  ;;  %v9865_v26 = vsel %vm17046_vm0, %v9634_v16, %v10973_v31  ;;  %v9225_v4 = vmul.f32 %v17400_v33, %v9186_v25  ;;  %v11034_v63 = vpack.c.bf16 %v9263_v41, %v9263_v41 }
 0x47b   : > { %10972 = vst.msk [vmem:[%s12663_s15 + $0x70] sm:$0xf] %vm9289_vm15, %v9633_v28  ;;  %10974 = vst [vmem:[%s12663_s15 + $0x74] sm:$0x1] %v9865_v26  ;;  %v9261_v1 = vadd.f32 %v17407_v39, %v9222_v45  ;;  %v9184_v30 = vsel %vm9120_vm3, %v9088_v37, %v9152_v51  ;;  %v8841_v6 = vadd.f32 %v12382_v56, %v17347_v60  ;;  %v12385_v56 = vpop.f32.mrf.mxu1 }
 0x47c   : > { %v9264_v42 = vadd.f32 %v17407_v39, %v9225_v4  ;;  %v8839_v46 = vadd.f32 %v8786_v2, %v17351_v35  ;;  %v9670_v49 = vshrl.u32 %v11034_v63, 16  ;;  %v9673_v59 = vshll.u32 %v11034_v63, 16  ;;  %v10983_v4 = vld [vmem:[%s12663_s15 + $0x8c] sm:$0x1] }
 0x47d   : > { %v11032_v24 = vpack.c.bf16 %v9261_v1, %v9261_v1  ;;  %v9223_v27 = vmul.f32 %v17400_v33, %v9184_v30  ;;  %v9054_v34 = vadd.f32 %v12415_v38, %v8840_v15  ;;  %v9052_v61 = vadd.f32 %v8997_v50, %v8838_v55  ;;  %v9000_v38 = vpop.f32.mrf.mxu0  ;;  %v8799_v2 = vpop.f32.mrf.mxu1 }
 0x47e   : > { %v11035_v23 = vpack.c.bf16 %v9264_v42, %v9264_v42  ;;  %v9055_v12 = vadd.f32 %v12416_v17, %v8841_v6  ;;  %v9672_v3 = vrot.slane %v9670_v49, 7  ;;  %v9053_v63 = vadd.f32 %v9000_v38, %v8839_v46 }
 0x47f   : > { %v9653_v53 = vshrl.u32 %v11032_v24, 16  ;;  %v9656_v14 = vshll.u32 %v11032_v24, 16  ;;  %v9262_v48 = vadd.f32 %v17407_v39, %v9223_v27  ;;  %v9093_v35 = vadd.f32 %v17387_v21, %v9054_v34  ;;  %v12419_v50 = vpop.f32.mrf.mxu0 }
 0x480   : > { %v9678_v60 = vshrl.u32 %v11035_v23, 16  ;;  %v9681_v47 = vshll.u32 %v11035_v23, 16  ;;  %v9091_v44 = vadd.f32 %v17387_v21, %v9052_v61  ;;  %v9675_v29 = vor.u32 %v9673_v59, %v9672_v3 }
 0x481   : > { %v9676_v10 = vrot.slane %v9672_v3, 4  ;;  %v9655_v32 = vrot.slane %v9653_v53, 7  ;;  %v11033_v18 = vpack.c.bf16 %v9262_v48, %v9262_v48  ;;  %vm9125_vm4 = vcmp.gt.f32.partialorder %v9093_v35, 0.0  ;;  %v9013_v17 = vpop.f32.mrf.mxu0  ;;  %v17712_v53 = vld [vmem:[%s17806_s4] ss:$0 sm:$0xff] }
 0x482   : > { %v9680_v43 = vrot.slane %v9678_v60, 7  ;;  %v9157_v19 = vmul.f32 0.01, %v9093_v35  ;;  %vm9123_vm5 = vcmp.gt.f32.partialorder %v9091_v44, 0.0  ;;  %v9882_v0 = vsel %vm17425_vm10, %v9675_v29, %v10985_v62 }
 0x483   : > { %v9658_v52 = vor.u32 %v9656_v14, %v9655_v32  ;;  %v9659_v31 = vrot.slane %v9655_v32, 4  ;;  %v9661_v11 = vshrl.u32 %v11033_v18, 16  ;;  %10986 = vst [vmem:[%s12663_s15 + $0x90] sm:$0xf] %v9882_v0  ;;  %v9664_v5 = vshll.u32 %v11033_v18, 16  ;;  %v12420_v32 = vpop.f32.mrf.mxu0 }
 0x484   : > { %v9683_v37 = vor.u32 %v9681_v47, %v9680_v43  ;;  %v9685_v20 = vrot.slane %v9680_v43, 4  ;;  %v9189_v8 = vsel %vm9125_vm4, %v9093_v35, %v9157_v19  ;;  %v9155_v25 = vmul.f32 0.01, %v9091_v44  ;;  %v17720_v35 = vld [vmem:[%s17807_s5] ss:$0 sm:$0xff] }
 0x485   : > { %v9875_v16 = vsel %vm17425_vm10, %v9658_v52, %v10980_v7  ;;  %v9663_v41 = vrot.slane %v9661_v11, 7  ;;  %v9228_v45 = vmul.f32 %v17400_v33, %v9189_v8  ;;  %v9094_v51 = vadd.f32 %v17387_v21, %v9055_v12  ;;  %v17697_v21 = vld [vmem:[%s17805_s3] ss:$0 sm:$0xff]  ;;  %v10995_v7 = vld [vmem:[%s12663_s15 + $0xa8] sm:$0xf] }
 0x486   : > { %10981 = vst [vmem:[%s12663_s15 + $0x84] sm:$0xf] %v9875_v16  ;;  %v9684_v28 = vsel %vm17443_vm11, %v9676_v10, %v9683_v37  ;;  %v9886_v26 = vsel %vm17046_vm0, %v9685_v20, %v10988_v13  ;;  %v9187_v42 = vsel %vm9123_vm5, %v9091_v44, %v9155_v25  ;;  %v9092_v46 = vadd.f32 %v17697_v21, %v9053_v63  ;;  %v10990_v37 = vld [vmem:[%s12663_s15 + $0x9c] sm:$0xf] }
 0x487   : > { %10987 = vst.msk [vmem:[%s12663_s15 + $0x94] sm:$0xf] %vm9289_vm15, %v9684_v28  ;;  %10989 = vst [vmem:[%s12663_s15 + $0x98] sm:$0x1] %v9886_v26  ;;  %v9666_v1 = vor.u32 %v9664_v5, %v9663_v41  ;;  %v9668_v15 = vrot.slane %v9663_v41, 4  ;;  %v9267_v55 = vadd.f32 %v17407_v39, %v9228_v45  ;;  %v9226_v30 = vmul.f32 %v17400_v33, %v9187_v42  ;;  %v12386_v33 = vpop.f32.mrf.mxu1 }
 0x488   : > { %vm9126_vm6 = vcmp.gt.f32.partialorder %v9094_v51, 0.0  ;;  %v9158_v6 = vmul.f32 0.01, %v9094_v51  ;;  %v8844_v27 = vadd.f32 %v12385_v56, %v17357_v58  ;;  %vm9124_vm7 = vcmp.gt.f32.partialorder %v9092_v46, 0.0 }
 0x489   : > { %v9667_v49 = vsel %vm17443_vm11, %v9659_v31, %v9666_v1  ;;  %v9879_v59 = vsel %vm17046_vm0, %v9668_v15, %v10983_v4  ;;  %v11038_v24 = vpack.c.bf16 %v9267_v55, %v9267_v55  ;;  %v9265_v23 = vadd.f32 %v17407_v39, %v9226_v30  ;;  %v8802_v16 = vpop.f32.mrf.mxu1 }
 0x48a   : > { %10982 = vst.msk [vmem:[%s12663_s15 + $0x88] sm:$0xf] %vm9289_vm15, %v9667_v49  ;;  %10984 = vst [vmem:[%s12663_s15 + $0x8c] sm:$0x1] %v9879_v59  ;;  %v9190_v34 = vsel %vm9126_vm6, %v9094_v51, %v9158_v6  ;;  %v9156_v61 = vmul.f32 0.01, %v9092_v46  ;;  %v9058_v14 = vadd.f32 %v12419_v50, %v8844_v27  ;;  %v8842_v60 = vadd.f32 %v8799_v2, %v17366_v40 }
 0x48b   : > { %v9704_v12 = vshrl.u32 %v11038_v24, 16  ;;  %v9707_v3 = vshll.u32 %v11038_v24, 16  ;;  %v9229_v58 = vmul.f32 %v17712_v53, %v9190_v34  ;;  %v11036_v48 = vpack.c.bf16 %v9265_v23, %v9265_v23  ;;  %v10998_v51 = vld [vmem:[%s12663_s15 + $0xb0] sm:$0x1]  ;;  %v10993_v49 = vld [vmem:[%s12663_s15 + $0xa4] sm:$0x1] }
 0x48c   : > { %v9188_v62 = vsel %vm9124_vm7, %v9092_v46, %v9156_v61  ;;  %v8845_v39 = vadd.f32 %v12386_v33, %v17375_v22  ;;  %v9097_v10 = vadd.f32 %v17697_v21, %v9058_v14  ;;  %v9056_v40 = vadd.f32 %v9013_v17, %v8842_v60  ;;  %v9016_v46 = vpop.f32.mrf.mxu0 }
 0x48d   : > { %v9706_v47 = vrot.slane %v9704_v12, 7  ;;  %v9268_v44 = vadd.f32 %v17720_v35, %v9229_v58  ;;  %v9227_v29 = vmul.f32 %v17712_v53, %v9188_v62  ;;  %v9687_v18 = vshrl.u32 %v11036_v48, 16 }
 0x48e   : > { %v9690_v38 = vshll.u32 %v11036_v48, 16  ;;  %v9059_v22 = vadd.f32 %v12420_v32, %v8845_v39  ;;  %vm9129_vm8 = vcmp.gt.f32.partialorder %v9097_v10, 0.0  ;;  %v9161_v31 = vmul.f32 0.01, %v9097_v10 }
 0x48f   : > { %v9709_v56 = vor.u32 %v9707_v3, %v9706_v47  ;;  %v9710_v43 = vrot.slane %v9706_v47, 4  ;;  %v11039_v19 = vpack.c.bf16 %v9268_v44, %v9268_v44  ;;  %v9266_v0 = vadd.f32 %v17720_v35, %v9227_v29 }
 0x490   : > { %v9689_v52 = vrot.slane %v9687_v18, 7  ;;  %v9095_v13 = vadd.f32 %v17697_v21, %v9056_v40  ;;  %v9193_v25 = vsel %vm9129_vm8, %v9097_v10, %v9161_v31  ;;  %v9098_v1 = vadd.f32 %v17697_v21, %v9059_v22  ;;  %v11005_v10 = vld [vmem:[%s12663_s15 + $0xc0] sm:$0xf] }
 0x491   : > { %v9896_v11 = vsel %vm17425_vm10, %v9709_v56, %v10995_v7  ;;  %v9712_v20 = vshrl.u32 %v11039_v19, 16  ;;  %v9715_v5 = vshll.u32 %v11039_v19, 16  ;;  %v11037_v8 = vpack.c.bf16 %v9266_v0, %v9266_v0  ;;  %v11000_v0 = vld [vmem:[%s12663_s15 + $0xb4] sm:$0xf] }
 0x492   : > { %10996 = vst [vmem:[%s12663_s15 + $0xa8] sm:$0xf] %v9896_v11  ;;  %v9692_v41 = vor.u32 %v9690_v38, %v9689_v52  ;;  %v9693_v45 = vrot.slane %v9689_v52, 4  ;;  %vm9127_vm9 = vcmp.gt.f32.partialorder %v9095_v13, 0.0  ;;  %v9232_v26 = vmul.f32 %v17712_v53, %v9193_v25 }
 0x493   : > { %v9714_v50 = vrot.slane %v9712_v20, 7  ;;  %v9695_v2 = vshrl.u32 %v11037_v8, 16  ;;  %v9698_v28 = vshll.u32 %v11037_v8, 16  ;;  %v9159_v63 = vmul.f32 0.01, %v9095_v13 }
 0x494   : > { %v9889_v4 = vsel %vm17425_vm10, %v9692_v41, %v10990_v37  ;;  %v8843_v15 = vadd.f32 %v8802_v16, %v17379_v57  ;;  %v9271_v6 = vadd.f32 %v17720_v35, %v9232_v26  ;;  %vm9130_vm12 = vcmp.gt.f32.partialorder %v9098_v1, 0.0  ;;  %v11008_v37 = vld [vmem:[%s12663_s15 + $0xc8] sm:$0x1] }
 0x495   : > { %10991 = vst [vmem:[%s12663_s15 + $0x9c] sm:$0xf] %v9889_v4  ;;  %v9717_v55 = vor.u32 %v9715_v5, %v9714_v50  ;;  %v9719_v42 = vrot.slane %v9714_v50, 4  ;;  %v9697_v30 = vrot.slane %v9695_v2, 7  ;;  %v9191_v59 = vsel %vm9127_vm9, %v9095_v13, %v9159_v63  ;;  %v11003_v2 = vld [vmem:[%s12663_s15 + $0xbc] sm:$0x1] }
 0x496   : > { %v9162_v24 = vmul.f32 0.01, %v9098_v1  ;;  %v9057_v27 = vadd.f32 %v9016_v46, %v8843_v15  ;;  %v11042_v34 = vpack.c.bf16 %v9271_v6, %v9271_v6  ;;  %v9230_v61 = vmul.f32 %v17712_v53, %v9191_v59 }
 0x497   : > { %v9718_v57 = vsel %vm17443_vm11, %v9710_v43, %v9717_v55  ;;  %v9900_v17 = vsel %vm17046_vm0, %v9719_v42, %v10998_v51  ;;  %v9700_v33 = vor.u32 %v9698_v28, %v9697_v30  ;;  %v9702_v23 = vrot.slane %v9697_v30, 4 }
 0x498   : > { %10997 = vst.msk [vmem:[%s12663_s15 + $0xac] sm:$0xf] %vm9289_vm15, %v9718_v57  ;;  %10999 = vst [vmem:[%s12663_s15 + $0xb0] sm:$0x1] %v9900_v17  ;;  %v9194_v12 = vsel %vm9130_vm12, %v9098_v1, %v9162_v24  ;;  %v9096_v3 = vadd.f32 %v17697_v21, %v9057_v27  ;;  %v9738_v62 = vshrl.u32 %v11042_v34, 16  ;;  %v9269_v60 = vadd.f32 %v17720_v35, %v9230_v61 }
 0x499   : > { %v9701_v58 = vsel %vm17443_vm11, %v9693_v45, %v9700_v33  ;;  %v9893_v14 = vsel %vm17046_vm0, %v9702_v23, %v10993_v49  ;;  %v9233_v48 = vmul.f32 %v17712_v53, %v9194_v12  ;;  %v9741_v44 = vshll.u32 %v11042_v34, 16 }
 0x49a   : > { %10992 = vst.msk [vmem:[%s12663_s15 + $0xa0] sm:$0xf] %vm9289_vm15, %v9701_v58  ;;  %10994 = vst [vmem:[%s12663_s15 + $0xa4] sm:$0x1] %v9893_v14  ;;  %vm9128_vm13 = vcmp.gt.f32.partialorder %v9096_v3, 0.0  ;;  %v9740_v47 = vrot.slane %v9738_v62, 7  ;;  %v11040_v29 = vpack.c.bf16 %v9269_v60, %v9269_v60 }
 0x49b   : > { %v9272_v39 = vadd.f32 %v17720_v35, %v9233_v48  ;;  %v9160_v21 = vmul.f32 0.01, %v9096_v3 }
 0x49c   : > { %v9743_v18 = vor.u32 %v9741_v44, %v9740_v47  ;;  %v9721_v38 = vshrl.u32 %v11040_v29, 16  ;;  %v9724_v19 = vshll.u32 %v11040_v29, 16  ;;  %v9744_v20 = vrot.slane %v9740_v47, 4 }
 0x49d   : > { %v11043_v32 = vpack.c.bf16 %v9272_v39, %v9272_v39  ;;  %v9192_v7 = vsel %vm9128_vm13, %v9096_v3, %v9160_v21 }
 0x49e   : > { %v9231_v22 = vmul.f32 %v17712_v53, %v9192_v7  ;;  %v9910_v56 = vsel %vm17425_vm10, %v9743_v18, %v11005_v10  ;;  %v9723_v43 = vrot.slane %v9721_v38, 7 }
 0x49f   : > { %v9746_v40 = vshrl.u32 %v11043_v32, 16  ;;  %11006 = vst [vmem:[%s12663_s15 + $0xc0] sm:$0xf] %v9910_v56  ;;  %v9749_v31 = vshll.u32 %v11043_v32, 16 }
 0x4a0   : > { %v9270_v13 = vadd.f32 %v17720_v35, %v9231_v22  ;;  %v9726_v11 = vor.u32 %v9724_v19, %v9723_v43  ;;  %v9727_v28 = vrot.slane %v9723_v43, 4 }
 0x4a1   : > { %v9748_v52 = vrot.slane %v9746_v40, 7 }
 0x4a2   : > { %v11041_v8 = vpack.c.bf16 %v9270_v13, %v9270_v13  ;;  %v9903_v16 = vsel %vm17425_vm10, %v9726_v11, %v11000_v0 }
 0x4a3   : > { %v9751_v5 = vor.u32 %v9749_v31, %v9748_v52  ;;  %v9753_v53 = vrot.slane %v9748_v52, 4  ;;  %11001 = vst [vmem:[%s12663_s15 + $0xb4] sm:$0xf] %v9903_v16 }
 0x4a4   : > { %v9729_v35 = vshrl.u32 %v11041_v8, 16  ;;  %v9732_v50 = vshll.u32 %v11041_v8, 16 }
 0x4a5   : > { %v9752_v41 = vsel %vm17443_vm11, %v9744_v20, %v9751_v5  ;;  %v9914_v45 = vsel %vm17046_vm0, %v9753_v53, %v11008_v37 }
 0x4a6   : > { %11007 = vst.msk [vmem:[%s12663_s15 + $0xc4] sm:$0xf] %vm9289_vm15, %v9752_v41  ;;  %11009 = vst [vmem:[%s12663_s15 + $0xc8] sm:$0x1] %v9914_v45  ;;  %v9731_v25 = vrot.slane %v9729_v35, 7 }
 0x4a8   : > { %v9734_v26 = vor.u32 %v9732_v50, %v9731_v25  ;;  %v9736_v54 = vrot.slane %v9731_v25, 4 }
 0x4aa   : > { %v9735_v4 = vsel %vm17443_vm11, %v9727_v28, %v9734_v26  ;;  %v9907_v51 = vsel %vm17046_vm0, %v9736_v54, %v11003_v2 }
 0x4ab   : > { %11002 = vst.msk [vmem:[%s12663_s15 + $0xb8] sm:$0xf] %vm9289_vm15, %v9735_v4  ;;  %11004 = vst [vmem:[%s12663_s15 + $0xbc] sm:$0x1] %v9907_v51 }
 0x4ac PF: > { %s16_s25 = sadd.s32 1, %s12578_s25   ;;  %s18382_s21 = smov %s12570_s23 }
 0x4ad   : > { %p13_p10 = scmp.ge.s32.totalorder %s16_s25, 10   ;;  %s18383_s22 = smov %s12574_s24 }
 0x4ae   : > { %s18384_s23 = smov %s18387_s26  ;;  %s18385_s24 = smov %s18391_s27 }
 0x4af   :  { %15 = sbr.rel (!%p13_p10) target bundleno = 3 (0x3), region = 109 }

</bundles_post_ra>
